<compile_context>
chip_gen: v7x
topology: tpu7x:2x2x1
jax: 0.10.0
libtpu: 0.0.40
codegen_flags: <defaults>
</compile_context>

<pallas_src>
import functools

import jax
import jax.numpy as jnp
from jax.experimental import pallas as pl
from jax.experimental.pallas import tpu as pltpu


_VMEM_BUDGET = 20 * 1024 * 1024  # conservative: leaves headroom even on v7x


# ---------------------------------------------------------------------------
# Pallas kernel: fused 3x3 conv (+bias, +ReLU) over one spatial row tile
# ---------------------------------------------------------------------------
def _conv3x3_kernel(x_ref, w_ref, b_ref, o_ref, patch_ref, *, th, wp, cin, relu):
    """One (batch, row-tile) grid step.

    "flat" = (rows x padded-width) flattened; channels live on the lane dim.
      x_ref     : ((th+2)*wp + 2, Cin)  bf16 halo tile of the padded input
      w_ref     : (9*Cin, Cout)         bf16 tap-major weights (VMEM resident)
      b_ref     : (1, Cout)             f32 bias               (VMEM resident)
      o_ref     : (th*wp, Cout)         conv output incl. 2 junk cols per row
      patch_ref : (th*wp, 9*Cin)        bf16 VMEM scratch (in-VMEM im2col)
    """
    m = th * wp
    # In-VMEM im2col: the 9 shifted taps of the halo tile are gathered into
    # the patch scratch.  This never touches HBM.
    for dy in range(3):
        for dx in range(3):
            j = dy * 3 + dx
            start = dy * wp + dx
            patch_ref[:, j * cin:(j + 1) * cin] = x_ref[start:start + m, :]

    # Single fused-K matmul on the MXU (bf16 inputs, f32 accumulation).
    acc = jnp.dot(patch_ref[...], w_ref[...],
                  preferred_element_type=jnp.float32)
    acc = acc + b_ref[...]
    if relu:
        acc = jnp.maximum(acc, 0.0)
    o_ref[...] = acc.astype(o_ref.dtype)


# ---------------------------------------------------------------------------
# Tiling heuristic
# ---------------------------------------------------------------------------
def _pick_row_tile(H, wp, cin, cout, out_bytes):
    """Largest row tile TH dividing H whose per-step working set fits VMEM."""
    best = 1
    cap = max(8, H // 2)          # keep >= 2 row tiles when H >= 16
    k = 9 * cin
    for th in range(1, min(H, cap) + 1):
        if H % th:
            continue
        m = th * wp
        use = (2 * ((th + 2) * wp + 2) * cin * 2   # halo tile, double-buffered
               + m * k * 2                         # bf16 patch scratch
               + m * cout * 4                      # f32 matmul result
               + 2 * m * cout * out_bytes          # output tile, double-buffered
               + k * cout * 2 + cout * 4)          # resident weights + bias
        if use <= _VMEM_BUDGET:
            best = th
    return best


# ---------------------------------------------------------------------------
# Conv wrapper (plain-JAX glue around the kernel)
# ---------------------------------------------------------------------------
def conv3x3_pallas(x_nhwc, w_flat, b_row, *, relu=True, out_dtype=jnp.bfloat16):
    """3x3 / stride-1 conv with reflection pad(1), bias, optional ReLU.

    x_nhwc : (N, H, W, Cin)
    w_flat : (9*Cin, Cout)  tap-major ((dy*3+dx)*Cin + c), bf16
    b_row  : (1, Cout)      f32
    returns (N, H, W, Cout) in `out_dtype`.
    """
    N, H, W, Cin = x_nhwc.shape
    Cout = w_flat.shape[1]
    wp = W + 2

    xp = jnp.pad(x_nhwc.astype(jnp.bfloat16),
                 ((0, 0), (1, 1), (1, 1), (0, 0)), mode="reflect")

    th = _pick_row_tile(H, wp, Cin, Cout, jnp.dtype(out_dtype).itemsize)
    ht = H // th
    m = th * wp
    L = (th + 2) * wp + 2      # +2 keeps the last tap's junk columns in bounds

    # Overlapping halo row tiles of the padded input, flattened over
    # (rows x padded width) so the kernel only needs 2-D refs.  Duplication is
    # only the 2-row halo per tile (~1.1-1.25x), not the 9x of im2col.
    xflat = jnp.pad(xp.reshape(N, (H + 2) * wp, Cin), ((0, 0), (0, 2), (0, 0)))
    tiles = jnp.stack(
        [xflat[:, h * th * wp: h * th * wp + L, :] for h in range(ht)], axis=1)

    out_flat = pl.pallas_call(
        functools.partial(_conv3x3_kernel, th=th, wp=wp, cin=Cin, relu=relu),
        out_shape=jax.ShapeDtypeStruct((N, ht, m, Cout), out_dtype),
        grid=(N, ht),
        in_specs=[
            pl.BlockSpec((None, None, L, Cin), lambda n, h: (n, h, 0, 0)),
            pl.BlockSpec((9 * Cin, Cout), lambda n, h: (0, 0)),   # resident
            pl.BlockSpec((1, Cout), lambda n, h: (0, 0)),         # resident
        ],
        out_specs=pl.BlockSpec((None, None, m, Cout), lambda n, h: (n, h, 0, 0)),
        scratch_shapes=[pltpu.VMEM((m, 9 * Cin), jnp.bfloat16)],
        compiler_params=pltpu.CompilerParams(
            dimension_semantics=("parallel", "parallel"),
            vmem_limit_bytes=64 * 1024 * 1024,
        ),
    )(tiles, w_flat, b_row)

    # (N, ht, th*wp, Cout) -> (N, H, wp, Cout) -> drop the 2 junk columns.
    return out_flat.reshape(N, H, wp, Cout)[:, :, :W, :]


def maxpool2x2(x_nhwc):
    """MaxPool2d(kernel=2, stride=2).  Plain jnp on purpose: XLA fuses it into
    the gather that builds the next conv's input tiles, so there is no
    standalone pooling kernel and no extra HBM round trip.  The PyTorch
    module's `return_indices=True` indices are unused by encoder3.forward's
    return value and are not produced."""
    # TODO(synk): odd H/W (floor-mode pooling) not handled; H, W assumed
    # divisible by 4 as in the reference usage.
    return jnp.maximum(
        jnp.maximum(x_nhwc[:, 0::2, 0::2, :], x_nhwc[:, 0::2, 1::2, :]),
        jnp.maximum(x_nhwc[:, 1::2, 0::2, :], x_nhwc[:, 1::2, 1::2, :]))


# ---------------------------------------------------------------------------
# Parameter construction (deterministic, synthetic) and preparation
# ---------------------------------------------------------------------------
def _conv_params(key, cout, cin, k):
    kw_key, kb_key = jax.random.split(key)
    fan_in = cin * k * k
    scale = (2.0 / fan_in) ** 0.5
    w = scale * jax.random.normal(kw_key, (cout, cin, k, k), dtype=jnp.float32)
    b = 0.01 * jax.random.normal(kb_key, (cout,), dtype=jnp.float32)
    return w, b


def init_encoder3_params(ref_channel, seed=0):
    keys = jax.random.split(jax.random.PRNGKey(seed), 8)
    p = {}
    p["conv0"] = _conv_params(keys[0], 1, ref_channel, 3)
    p["conv1"] = _conv_params(keys[1], 3, 1, 1)
    p["conv2"] = _conv_params(keys[2], 64, 3, 3)
    p["conv3"] = _conv_params(keys[3], 64, 64, 3)
    p["conv4"] = _conv_params(keys[4], 128, 64, 3)
    p["conv5"] = _conv_params(keys[5], 128, 128, 3)
    p["conv6"] = _conv_params(keys[6], 256, 128, 3)
    return p


def _flatten_weight(w_pt):
    """(Cout, Cin, 3, 3) -> (9*Cin, Cout), tap-major, bf16 (MXU input)."""
    cout, cin, kh, kw = w_pt.shape
    return (jnp.transpose(w_pt, (2, 3, 1, 0))
            .reshape(kh * kw * cin, cout).astype(jnp.bfloat16))


def _prep_params(params):
    """Flatten weights for the kernels and fold conv1 into conv2.

    conv1 is a 1x1 *linear* conv (no ReLU).  A 1x1 conv commutes with
    reflection padding, so  conv2(pad(conv1(x))) == conv2'(pad(x))  with
      W2'[o, 0, ky, kx] = sum_c W2[o, c, ky, kx] * W1[c]
      b2'[o]            = b2[o] + sum_{c,ky,kx} W2[o, c, ky, kx] * b1[c]
    """
    prep = {}
    w0, b0 = params["conv0"]
    prep["conv0"] = (_flatten_weight(w0), b0.reshape(1, -1).astype(jnp.float32))

    w1, b1 = params["conv1"]            # (3, 1, 1, 1), (3,)
    w2, b2 = params["conv2"]            # (64, 3, 3, 3), (64,)
    w1v = w1.reshape(-1)
    w2f = jnp.einsum("ocyx,c->oyx", w2, w1v)[:, None, :, :]   # (64, 1, 3, 3)
    b2f = b2 + jnp.einsum("ocyx,c->o", w2, b1)
    prep["conv2"] = (_flatten_weight(w2f), b2f.reshape(1, -1).astype(jnp.float32))

    for name in ("conv3", "conv4", "conv5", "conv6"):
        w, b = params[name]
        prep[name] = (_flatten_weight(w), b.reshape(1, -1).astype(jnp.float32))
    return prep


# ---------------------------------------------------------------------------
# encoder3 forward (mirrors the PyTorch module)
# ---------------------------------------------------------------------------
def encoder3_forward(x_nchw, params):
    prep = _prep_params(params)

    x = jnp.transpose(x_nchw, (0, 2, 3, 1))          # NCHW -> NHWC

    if x.shape[-1] > 1:                              # "x.shape[1] > 1" in NCHW
        w, b = prep["conv0"]
        x = conv3x3_pallas(x, w, b, relu=True)

    # conv1 (1x1, linear) is folded into conv2 -- see _prep_params.
    w, b = prep["conv2"]
    out = conv3x3_pallas(x, w, b, relu=True)

    w, b = prep["conv3"]
    out = conv3x3_pallas(out, w, b, relu=True)
    out = maxpool2x2(out)

    w, b = prep["conv4"]
    out = conv3x3_pallas(out, w, b, relu=True)

    w, b = prep["conv5"]
    out = conv3x3_pallas(out, w, b, relu=True)
    out = maxpool2x2(out)

    w, b = prep["conv6"]
    out = conv3x3_pallas(out, w, b, relu=True, out_dtype=jnp.float32)

    return jnp.transpose(out, (0, 3, 1, 2))          # NHWC -> NCHW


# ---------------------------------------------------------------------------
if __name__ == "__main__":
    N, C, H, W = 2, 4, 16, 16  # ref_channel = 4
    key = jax.random.PRNGKey(0)
    x = jax.random.normal(key, (N, C, H, W), dtype=jnp.float32)

    params = init_encoder3_params(ref_channel=C, seed=0)

    out = jax.jit(encoder3_forward)(x, params)
    out = jax.block_until_ready(out)

    assert out.shape == (N, 256, H // 4, W // 4), out.shape
    assert bool(jnp.all(jnp.isfinite(out)))
    print("KERNEL_OK")
</pallas_src>

<mosaic_0001>
module attributes {stable_mosaic.version = 11 : i64} {
  func.func @_conv3x3_kernel(%arg0: i32, %arg1: i32, %arg2: memref<1x1x182x4xbf16, #tpu.memory_space<vmem>>, %arg3: memref<36x1xbf16, #tpu.memory_space<vmem>>, %arg4: memref<1x1xf32, #tpu.memory_space<vmem>>, %arg5: memref<1x1x144x1xbf16, #tpu.memory_space<vmem>>, %arg6: memref<144x36xbf16, #tpu.memory_space<vmem>>) attributes {dimension_semantics = [#tpu.dimension_semantics<parallel>, #tpu.dimension_semantics<parallel>], iteration_bounds = array<i64: 2, 2>, scalar_prefetch = 0 : i64, scratch_operands = 1 : i64, tpu.core_type = #tpu.core_type<tc>, window_params = [{transform_indices = @transform_0, window_bounds = array<i64: 1, 1, 182, 4>}, {pipeline_mode = #tpu.pipeline_mode<synchronous>, transform_indices = @transform_1, window_bounds = array<i64: 36, 1>}, {pipeline_mode = #tpu.pipeline_mode<synchronous>, transform_indices = @transform_2, window_bounds = array<i64: 1, 1>}, {transform_indices = @transform_3, window_bounds = array<i64: 1, 1, 144, 1>}]} {
    %c0 = arith.constant 0 : index
    %c0_0 = arith.constant 0 : index
    %c0_1 = arith.constant 0 : index
    %c0_2 = arith.constant 0 : index
    %0 = vector.load %arg2[%c0, %c0_0, %c0_1, %c0_2] : memref<1x1x182x4xbf16, #tpu.memory_space<vmem>>, vector<1x1x144x4xbf16>
    %1 = vector.shape_cast %0 : vector<1x1x144x4xbf16> to vector<144x4xbf16>
    %c0_3 = arith.constant 0 : index
    %c0_4 = arith.constant 0 : index
    %2 = vector.load %arg6[%c0_3, %c0_4] : memref<144x36xbf16, #tpu.memory_space<vmem>>, vector<144x4xbf16>
    tpu.vector_store %arg6[%c0_3, %c0_4], %1 {strides = array<i32>} : memref<144x36xbf16, #tpu.memory_space<vmem>>, vector<144x4xbf16>,
    %c0_5 = arith.constant 0 : index
    %c0_6 = arith.constant 0 : index
    %c1 = arith.constant 1 : index
    %c0_7 = arith.constant 0 : index
    %3 = vector.load %arg2[%c0_5, %c0_6, %c1, %c0_7] : memref<1x1x182x4xbf16, #tpu.memory_space<vmem>>, vector<1x1x144x4xbf16>
    %4 = vector.shape_cast %3 : vector<1x1x144x4xbf16> to vector<144x4xbf16>
    %c0_8 = arith.constant 0 : index
    %c4 = arith.constant 4 : index
    %5 = vector.load %arg6[%c0_8, %c4] : memref<144x36xbf16, #tpu.memory_space<vmem>>, vector<144x4xbf16>
    tpu.vector_store %arg6[%c0_8, %c4], %4 {strides = array<i32>} : memref<144x36xbf16, #tpu.memory_space<vmem>>, vector<144x4xbf16>,
    %c0_9 = arith.constant 0 : index
    %c0_10 = arith.constant 0 : index
    %c2 = arith.constant 2 : index
    %c0_11 = arith.constant 0 : index
    %6 = vector.load %arg2[%c0_9, %c0_10, %c2, %c0_11] : memref<1x1x182x4xbf16, #tpu.memory_space<vmem>>, vector<1x1x144x4xbf16>
    %7 = vector.shape_cast %6 : vector<1x1x144x4xbf16> to vector<144x4xbf16>
    %c0_12 = arith.constant 0 : index
    %c8 = arith.constant 8 : index
    %8 = vector.load %arg6[%c0_12, %c8] : memref<144x36xbf16, #tpu.memory_space<vmem>>, vector<144x4xbf16>
    tpu.vector_store %arg6[%c0_12, %c8], %7 {strides = array<i32>} : memref<144x36xbf16, #tpu.memory_space<vmem>>, vector<144x4xbf16>,
    %c0_13 = arith.constant 0 : index
    %c0_14 = arith.constant 0 : index
    %c18 = arith.constant 18 : index
    %c0_15 = arith.constant 0 : index
    %9 = vector.load %arg2[%c0_13, %c0_14, %c18, %c0_15] : memref<1x1x182x4xbf16, #tpu.memory_space<vmem>>, vector<1x1x144x4xbf16>
    %10 = vector.shape_cast %9 : vector<1x1x144x4xbf16> to vector<144x4xbf16>
    %c0_16 = arith.constant 0 : index
    %c12 = arith.constant 12 : index
    %11 = vector.load %arg6[%c0_16, %c12] : memref<144x36xbf16, #tpu.memory_space<vmem>>, vector<144x4xbf16>
    tpu.vector_store %arg6[%c0_16, %c12], %10 {strides = array<i32>} : memref<144x36xbf16, #tpu.memory_space<vmem>>, vector<144x4xbf16>,
    %c0_17 = arith.constant 0 : index
    %c0_18 = arith.constant 0 : index
    %c19 = arith.constant 19 : index
    %c0_19 = arith.constant 0 : index
    %12 = vector.load %arg2[%c0_17, %c0_18, %c19, %c0_19] : memref<1x1x182x4xbf16, #tpu.memory_space<vmem>>, vector<1x1x144x4xbf16>
    %13 = vector.shape_cast %12 : vector<1x1x144x4xbf16> to vector<144x4xbf16>
    %c0_20 = arith.constant 0 : index
    %c16 = arith.constant 16 : index
    %14 = vector.load %arg6[%c0_20, %c16] : memref<144x36xbf16, #tpu.memory_space<vmem>>, vector<144x4xbf16>
    tpu.vector_store %arg6[%c0_20, %c16], %13 {strides = array<i32>} : memref<144x36xbf16, #tpu.memory_space<vmem>>, vector<144x4xbf16>,
    %c0_21 = arith.constant 0 : index
    %c0_22 = arith.constant 0 : index
    %c20 = arith.constant 20 : index
    %c0_23 = arith.constant 0 : index
    %15 = vector.load %arg2[%c0_21, %c0_22, %c20, %c0_23] : memref<1x1x182x4xbf16, #tpu.memory_space<vmem>>, vector<1x1x144x4xbf16>
    %16 = vector.shape_cast %15 : vector<1x1x144x4xbf16> to vector<144x4xbf16>
    %c0_24 = arith.constant 0 : index
    %c20_25 = arith.constant 20 : index
    %17 = vector.load %arg6[%c0_24, %c20_25] : memref<144x36xbf16, #tpu.memory_space<vmem>>, vector<144x4xbf16>
    tpu.vector_store %arg6[%c0_24, %c20_25], %16 {strides = array<i32>} : memref<144x36xbf16, #tpu.memory_space<vmem>>, vector<144x4xbf16>,
    %c0_26 = arith.constant 0 : index
    %c0_27 = arith.constant 0 : index
    %c36 = arith.constant 36 : index
    %c0_28 = arith.constant 0 : index
    %18 = vector.load %arg2[%c0_26, %c0_27, %c36, %c0_28] : memref<1x1x182x4xbf16, #tpu.memory_space<vmem>>, vector<1x1x144x4xbf16>
    %19 = vector.shape_cast %18 : vector<1x1x144x4xbf16> to vector<144x4xbf16>
    %c0_29 = arith.constant 0 : index
    %c24 = arith.constant 24 : index
    %20 = vector.load %arg6[%c0_29, %c24] : memref<144x36xbf16, #tpu.memory_space<vmem>>, vector<144x4xbf16>
    tpu.vector_store %arg6[%c0_29, %c24], %19 {strides = array<i32>} : memref<144x36xbf16, #tpu.memory_space<vmem>>, vector<144x4xbf16>,
    %c0_30 = arith.constant 0 : index
    %c0_31 = arith.constant 0 : index
    %c37 = arith.constant 37 : index
    %c0_32 = arith.constant 0 : index
    %21 = vector.load %arg2[%c0_30, %c0_31, %c37, %c0_32] : memref<1x1x182x4xbf16, #tpu.memory_space<vmem>>, vector<1x1x144x4xbf16>
    %22 = vector.shape_cast %21 : vector<1x1x144x4xbf16> to vector<144x4xbf16>
    %c0_33 = arith.constant 0 : index
    %c28 = arith.constant 28 : index
    %23 = vector.load %arg6[%c0_33, %c28] : memref<144x36xbf16, #tpu.memory_space<vmem>>, vector<144x4xbf16>
    tpu.vector_store %arg6[%c0_33, %c28], %22 {strides = array<i32>} : memref<144x36xbf16, #tpu.memory_space<vmem>>, vector<144x4xbf16>,
    %c0_34 = arith.constant 0 : index
    %c0_35 = arith.constant 0 : index
    %c38 = arith.constant 38 : index
    %c0_36 = arith.constant 0 : index
    %24 = vector.load %arg2[%c0_34, %c0_35, %c38, %c0_36] : memref<1x1x182x4xbf16, #tpu.memory_space<vmem>>, vector<1x1x144x4xbf16>
    %25 = vector.shape_cast %24 : vector<1x1x144x4xbf16> to vector<144x4xbf16>
    %c0_37 = arith.constant 0 : index
    %c32 = arith.constant 32 : index
    %26 = vector.load %arg6[%c0_37, %c32] : memref<144x36xbf16, #tpu.memory_space<vmem>>, vector<144x4xbf16>
    tpu.vector_store %arg6[%c0_37, %c32], %25 {strides = array<i32>} : memref<144x36xbf16, #tpu.memory_space<vmem>>, vector<144x4xbf16>,
    %c0_38 = arith.constant 0 : index
    %c0_39 = arith.constant 0 : index
    %27 = vector.load %arg6[%c0_38, %c0_39] : memref<144x36xbf16, #tpu.memory_space<vmem>>, vector<144x36xbf16>
    %c0_40 = arith.constant 0 : index
    %c0_41 = arith.constant 0 : index
    %28 = vector.load %arg3[%c0_40, %c0_41] : memref<36x1xbf16, #tpu.memory_space<vmem>>, vector<36x1xbf16>
    %cst = arith.constant dense<0.000000e+00> : vector<144x1xf32>
    %29 = tpu.matmul %27, %28, %cst {dimension_numbers = #tpu.dot_dimension_numbers<[1], [0], [0], [1], [0, 0, 1, 1], [], []>} : vector<144x36xbf16>, vector<36x1xbf16>, vector<144x1xf32> -> vector<144x1xf32>
    %c0_42 = arith.constant 0 : index
    %c0_43 = arith.constant 0 : index
    %30 = vector.load %arg4[%c0_42, %c0_43] : memref<1x1xf32, #tpu.memory_space<vmem>>, vector<1x1xf32>
    %31 = vector.broadcast %30 : vector<1x1xf32> to vector<144x1xf32>
    %32 = arith.addf %29, %31 : vector<144x1xf32>
    %cst_44 = arith.constant 0.000000e+00 : f32
    %33 = vector.broadcast %cst_44 : f32 to vector<144x1xf32>
    %34 = arith.maximumf %32, %33 : vector<144x1xf32>
    %35 = arith.truncf %34 : vector<144x1xf32> to vector<144x1xbf16>
    %c0_45 = arith.constant 0 : index
    %c0_46 = arith.constant 0 : index
    %c0_47 = arith.constant 0 : index
    %c0_48 = arith.constant 0 : index
    %36 = vector.load %arg5[%c0_45, %c0_46, %c0_47, %c0_48] : memref<1x1x144x1xbf16, #tpu.memory_space<vmem>>, vector<1x1x144x1xbf16>
    %37 = vector.shape_cast %36 : vector<1x1x144x1xbf16> to vector<144x1xbf16>
    %38 = vector.shape_cast %35 : vector<144x1xbf16> to vector<1x1x144x1xbf16>
    tpu.vector_store %arg5[%c0_45, %c0_46, %c0_47, %c0_48], %38 {strides = array<i32>} : memref<1x1x144x1xbf16, #tpu.memory_space<vmem>>, vector<1x1x144x1xbf16>,
    return
  }
  func.func @transform_0(%arg0: i32, %arg1: i32) -> (i32, i32, i32, i32) {
    %c0_i32 = arith.constant 0 : i32
    %c0_i32_0 = arith.constant 0 : i32
    %c0_i32_1 = arith.constant 0 : i32
    return %arg0, %arg1, %c0_i32, %c0_i32_0 : i32, i32, i32, i32
  }
  func.func @transform_1(%arg0: i32, %arg1: i32) -> (i32, i32) {
    %c0_i32 = arith.constant 0 : i32
    %c0_i32_0 = arith.constant 0 : i32
    %c0_i32_1 = arith.constant 0 : i32
    return %c0_i32, %c0_i32_0 : i32, i32
  }
  func.func @transform_2(%arg0: i32, %arg1: i32) -> (i32, i32) {
    %c0_i32 = arith.constant 0 : i32
    %c0_i32_0 = arith.constant 0 : i32
    %c0_i32_1 = arith.constant 0 : i32
    return %c0_i32, %c0_i32_0 : i32, i32
  }
  func.func @transform_3(%arg0: i32, %arg1: i32) -> (i32, i32, i32, i32) {
    %c0_i32 = arith.constant 0 : i32
    %c0_i32_0 = arith.constant 0 : i32
    %c0_i32_1 = arith.constant 0 : i32
    return %arg0, %arg1, %c0_i32, %c0_i32_0 : i32, i32, i32, i32
  }
}

module attributes {stable_mosaic.version = 11 : i64} {
  func.func @_conv3x3_kernel(%arg0: i32, %arg1: i32, %arg2: memref<1x1x182x1xbf16, #tpu.memory_space<vmem>>, %arg3: memref<9x64xbf16, #tpu.memory_space<vmem>>, %arg4: memref<1x64xf32, #tpu.memory_space<vmem>>, %arg5: memref<1x1x144x64xbf16, #tpu.memory_space<vmem>>, %arg6: memref<144x9xbf16, #tpu.memory_space<vmem>>) attributes {dimension_semantics = [#tpu.dimension_semantics<parallel>, #tpu.dimension_semantics<parallel>], iteration_bounds = array<i64: 2, 2>, scalar_prefetch = 0 : i64, scratch_operands = 1 : i64, tpu.core_type = #tpu.core_type<tc>, window_params = [{transform_indices = @transform_0, window_bounds = array<i64: 1, 1, 182, 1>}, {pipeline_mode = #tpu.pipeline_mode<synchronous>, transform_indices = @transform_1, window_bounds = array<i64: 9, 64>}, {pipeline_mode = #tpu.pipeline_mode<synchronous>, transform_indices = @transform_2, window_bounds = array<i64: 1, 64>}, {transform_indices = @transform_3, window_bounds = array<i64: 1, 1, 144, 64>}]} {
    %c0 = arith.constant 0 : index
    %c0_0 = arith.constant 0 : index
    %c0_1 = arith.constant 0 : index
    %c0_2 = arith.constant 0 : index
    %0 = vector.load %arg2[%c0, %c0_0, %c0_1, %c0_2] : memref<1x1x182x1xbf16, #tpu.memory_space<vmem>>, vector<1x1x144x1xbf16>
    %1 = vector.shape_cast %0 : vector<1x1x144x1xbf16> to vector<144x1xbf16>
    %c0_3 = arith.constant 0 : index
    %c0_4 = arith.constant 0 : index
    %2 = vector.load %arg6[%c0_3, %c0_4] : memref<144x9xbf16, #tpu.memory_space<vmem>>, vector<144x1xbf16>
    tpu.vector_store %arg6[%c0_3, %c0_4], %1 {strides = array<i32>} : memref<144x9xbf16, #tpu.memory_space<vmem>>, vector<144x1xbf16>,
    %c0_5 = arith.constant 0 : index
    %c0_6 = arith.constant 0 : index
    %c1 = arith.constant 1 : index
    %c0_7 = arith.constant 0 : index
    %3 = vector.load %arg2[%c0_5, %c0_6, %c1, %c0_7] : memref<1x1x182x1xbf16, #tpu.memory_space<vmem>>, vector<1x1x144x1xbf16>
    %4 = vector.shape_cast %3 : vector<1x1x144x1xbf16> to vector<144x1xbf16>
    %c0_8 = arith.constant 0 : index
    %c1_9 = arith.constant 1 : index
    %5 = vector.load %arg6[%c0_8, %c1_9] : memref<144x9xbf16, #tpu.memory_space<vmem>>, vector<144x1xbf16>
    tpu.vector_store %arg6[%c0_8, %c1_9], %4 {strides = array<i32>} : memref<144x9xbf16, #tpu.memory_space<vmem>>, vector<144x1xbf16>,
    %c0_10 = arith.constant 0 : index
    %c0_11 = arith.constant 0 : index
    %c2 = arith.constant 2 : index
    %c0_12 = arith.constant 0 : index
    %6 = vector.load %arg2[%c0_10, %c0_11, %c2, %c0_12] : memref<1x1x182x1xbf16, #tpu.memory_space<vmem>>, vector<1x1x144x1xbf16>
    %7 = vector.shape_cast %6 : vector<1x1x144x1xbf16> to vector<144x1xbf16>
    %c0_13 = arith.constant 0 : index
    %c2_14 = arith.constant 2 : index
    %8 = vector.load %arg6[%c0_13, %c2_14] : memref<144x9xbf16, #tpu.memory_space<vmem>>, vector<144x1xbf16>
    tpu.vector_store %arg6[%c0_13, %c2_14], %7 {strides = array<i32>} : memref<144x9xbf16, #tpu.memory_space<vmem>>, vector<144x1xbf16>,
    %c0_15 = arith.constant 0 : index
    %c0_16 = arith.constant 0 : index
    %c18 = arith.constant 18 : index
    %c0_17 = arith.constant 0 : index
    %9 = vector.load %arg2[%c0_15, %c0_16, %c18, %c0_17] : memref<1x1x182x1xbf16, #tpu.memory_space<vmem>>, vector<1x1x144x1xbf16>
    %10 = vector.shape_cast %9 : vector<1x1x144x1xbf16> to vector<144x1xbf16>
    %c0_18 = arith.constant 0 : index
    %c3 = arith.constant 3 : index
    %11 = vector.load %arg6[%c0_18, %c3] : memref<144x9xbf16, #tpu.memory_space<vmem>>, vector<144x1xbf16>
    tpu.vector_store %arg6[%c0_18, %c3], %10 {strides = array<i32>} : memref<144x9xbf16, #tpu.memory_space<vmem>>, vector<144x1xbf16>,
    %c0_19 = arith.constant 0 : index
    %c0_20 = arith.constant 0 : index
    %c19 = arith.constant 19 : index
    %c0_21 = arith.constant 0 : index
    %12 = vector.load %arg2[%c0_19, %c0_20, %c19, %c0_21] : memref<1x1x182x1xbf16, #tpu.memory_space<vmem>>, vector<1x1x144x1xbf16>
    %13 = vector.shape_cast %12 : vector<1x1x144x1xbf16> to vector<144x1xbf16>
    %c0_22 = arith.constant 0 : index
    %c4 = arith.constant 4 : index
    %14 = vector.load %arg6[%c0_22, %c4] : memref<144x9xbf16, #tpu.memory_space<vmem>>, vector<144x1xbf16>
    tpu.vector_store %arg6[%c0_22, %c4], %13 {strides = array<i32>} : memref<144x9xbf16, #tpu.memory_space<vmem>>, vector<144x1xbf16>,
    %c0_23 = arith.constant 0 : index
    %c0_24 = arith.constant 0 : index
    %c20 = arith.constant 20 : index
    %c0_25 = arith.constant 0 : index
    %15 = vector.load %arg2[%c0_23, %c0_24, %c20, %c0_25] : memref<1x1x182x1xbf16, #tpu.memory_space<vmem>>, vector<1x1x144x1xbf16>
    %16 = vector.shape_cast %15 : vector<1x1x144x1xbf16> to vector<144x1xbf16>
    %c0_26 = arith.constant 0 : index
    %c5 = arith.constant 5 : index
    %17 = vector.load %arg6[%c0_26, %c5] : memref<144x9xbf16, #tpu.memory_space<vmem>>, vector<144x1xbf16>
    tpu.vector_store %arg6[%c0_26, %c5], %16 {strides = array<i32>} : memref<144x9xbf16, #tpu.memory_space<vmem>>, vector<144x1xbf16>,
    %c0_27 = arith.constant 0 : index
    %c0_28 = arith.constant 0 : index
    %c36 = arith.constant 36 : index
    %c0_29 = arith.constant 0 : index
    %18 = vector.load %arg2[%c0_27, %c0_28, %c36, %c0_29] : memref<1x1x182x1xbf16, #tpu.memory_space<vmem>>, vector<1x1x144x1xbf16>
    %19 = vector.shape_cast %18 : vector<1x1x144x1xbf16> to vector<144x1xbf16>
    %c0_30 = arith.constant 0 : index
    %c6 = arith.constant 6 : index
    %20 = vector.load %arg6[%c0_30, %c6] : memref<144x9xbf16, #tpu.memory_space<vmem>>, vector<144x1xbf16>
    tpu.vector_store %arg6[%c0_30, %c6], %19 {strides = array<i32>} : memref<144x9xbf16, #tpu.memory_space<vmem>>, vector<144x1xbf16>,
    %c0_31 = arith.constant 0 : index
    %c0_32 = arith.constant 0 : index
    %c37 = arith.constant 37 : index
    %c0_33 = arith.constant 0 : index
    %21 = vector.load %arg2[%c0_31, %c0_32, %c37, %c0_33] : memref<1x1x182x1xbf16, #tpu.memory_space<vmem>>, vector<1x1x144x1xbf16>
    %22 = vector.shape_cast %21 : vector<1x1x144x1xbf16> to vector<144x1xbf16>
    %c0_34 = arith.constant 0 : index
    %c7 = arith.constant 7 : index
    %23 = vector.load %arg6[%c0_34, %c7] : memref<144x9xbf16, #tpu.memory_space<vmem>>, vector<144x1xbf16>
    tpu.vector_store %arg6[%c0_34, %c7], %22 {strides = array<i32>} : memref<144x9xbf16, #tpu.memory_space<vmem>>, vector<144x1xbf16>,
    %c0_35 = arith.constant 0 : index
    %c0_36 = arith.constant 0 : index
    %c38 = arith.constant 38 : index
    %c0_37 = arith.constant 0 : index
    %24 = vector.load %arg2[%c0_35, %c0_36, %c38, %c0_37] : memref<1x1x182x1xbf16, #tpu.memory_space<vmem>>, vector<1x1x144x1xbf16>
    %25 = vector.shape_cast %24 : vector<1x1x144x1xbf16> to vector<144x1xbf16>
    %c0_38 = arith.constant 0 : index
    %c8 = arith.constant 8 : index
    %26 = vector.load %arg6[%c0_38, %c8] : memref<144x9xbf16, #tpu.memory_space<vmem>>, vector<144x1xbf16>
    tpu.vector_store %arg6[%c0_38, %c8], %25 {strides = array<i32>} : memref<144x9xbf16, #tpu.memory_space<vmem>>, vector<144x1xbf16>,
    %c0_39 = arith.constant 0 : index
    %c0_40 = arith.constant 0 : index
    %27 = vector.load %arg6[%c0_39, %c0_40] : memref<144x9xbf16, #tpu.memory_space<vmem>>, vector<144x9xbf16>
    %c0_41 = arith.constant 0 : index
    %c0_42 = arith.constant 0 : index
    %28 = vector.load %arg3[%c0_41, %c0_42] : memref<9x64xbf16, #tpu.memory_space<vmem>>, vector<9x64xbf16>
    %cst = arith.constant dense<0.000000e+00> : vector<144x64xf32>
    %29 = tpu.matmul %27, %28, %cst {dimension_numbers = #tpu.dot_dimension_numbers<[1], [0], [0], [1], [0, 0, 1, 1], [], []>} : vector<144x9xbf16>, vector<9x64xbf16>, vector<144x64xf32> -> vector<144x64xf32>
    %c0_43 = arith.constant 0 : index
    %c0_44 = arith.constant 0 : index
    %30 = vector.load %arg4[%c0_43, %c0_44] : memref<1x64xf32, #tpu.memory_space<vmem>>, vector<1x64xf32>
    %31 = vector.broadcast %30 : vector<1x64xf32> to vector<144x64xf32>
    %32 = arith.addf %29, %31 : vector<144x64xf32>
    %cst_45 = arith.constant 0.000000e+00 : f32
    %33 = vector.broadcast %cst_45 : f32 to vector<144x64xf32>
    %34 = arith.maximumf %32, %33 : vector<144x64xf32>
    %35 = arith.truncf %34 : vector<144x64xf32> to vector<144x64xbf16>
    %c0_46 = arith.constant 0 : index
    %c0_47 = arith.constant 0 : index
    %c0_48 = arith.constant 0 : index
    %c0_49 = arith.constant 0 : index
    %36 = vector.load %arg5[%c0_46, %c0_47, %c0_48, %c0_49] : memref<1x1x144x64xbf16, #tpu.memory_space<vmem>>, vector<1x1x144x64xbf16>
    %37 = vector.shape_cast %36 : vector<1x1x144x64xbf16> to vector<144x64xbf16>
    %38 = vector.shape_cast %35 : vector<144x64xbf16> to vector<1x1x144x64xbf16>
    tpu.vector_store %arg5[%c0_46, %c0_47, %c0_48, %c0_49], %38 {strides = array<i32>} : memref<1x1x144x64xbf16, #tpu.memory_space<vmem>>, vector<1x1x144x64xbf16>,
    return
  }
  func.func @transform_0(%arg0: i32, %arg1: i32) -> (i32, i32, i32, i32) {
    %c0_i32 = arith.constant 0 : i32
    %c0_i32_0 = arith.constant 0 : i32
    %c0_i32_1 = arith.constant 0 : i32
    return %arg0, %arg1, %c0_i32, %c0_i32_0 : i32, i32, i32, i32
  }
  func.func @transform_1(%arg0: i32, %arg1: i32) -> (i32, i32) {
    %c0_i32 = arith.constant 0 : i32
    %c0_i32_0 = arith.constant 0 : i32
    %c0_i32_1 = arith.constant 0 : i32
    return %c0_i32, %c0_i32_0 : i32, i32
  }
  func.func @transform_2(%arg0: i32, %arg1: i32) -> (i32, i32) {
    %c0_i32 = arith.constant 0 : i32
    %c0_i32_0 = arith.constant 0 : i32
    %c0_i32_1 = arith.constant 0 : i32
    return %c0_i32, %c0_i32_0 : i32, i32
  }
  func.func @transform_3(%arg0: i32, %arg1: i32) -> (i32, i32, i32, i32) {
    %c0_i32 = arith.constant 0 : i32
    %c0_i32_0 = arith.constant 0 : i32
    %c0_i32_1 = arith.constant 0 : i32
    return %arg0, %arg1, %c0_i32, %c0_i32_0 : i32, i32, i32, i32
  }
}

module attributes {stable_mosaic.version = 11 : i64} {
  func.func @_conv3x3_kernel(%arg0: i32, %arg1: i32, %arg2: memref<1x1x182x64xbf16, #tpu.memory_space<vmem>>, %arg3: memref<576x64xbf16, #tpu.memory_space<vmem>>, %arg4: memref<1x64xf32, #tpu.memory_space<vmem>>, %arg5: memref<1x1x144x64xbf16, #tpu.memory_space<vmem>>, %arg6: memref<144x576xbf16, #tpu.memory_space<vmem>>) attributes {dimension_semantics = [#tpu.dimension_semantics<parallel>, #tpu.dimension_semantics<parallel>], iteration_bounds = array<i64: 2, 2>, scalar_prefetch = 0 : i64, scratch_operands = 1 : i64, tpu.core_type = #tpu.core_type<tc>, window_params = [{transform_indices = @transform_0, window_bounds = array<i64: 1, 1, 182, 64>}, {pipeline_mode = #tpu.pipeline_mode<synchronous>, transform_indices = @transform_1, window_bounds = array<i64: 576, 64>}, {pipeline_mode = #tpu.pipeline_mode<synchronous>, transform_indices = @transform_2, window_bounds = array<i64: 1, 64>}, {transform_indices = @transform_3, window_bounds = array<i64: 1, 1, 144, 64>}]} {
    %c0 = arith.constant 0 : index
    %c0_0 = arith.constant 0 : index
    %c0_1 = arith.constant 0 : index
    %c0_2 = arith.constant 0 : index
    %0 = vector.load %arg2[%c0, %c0_0, %c0_1, %c0_2] : memref<1x1x182x64xbf16, #tpu.memory_space<vmem>>, vector<1x1x144x64xbf16>
    %1 = vector.shape_cast %0 : vector<1x1x144x64xbf16> to vector<144x64xbf16>
    %c0_3 = arith.constant 0 : index
    %c0_4 = arith.constant 0 : index
    %2 = vector.load %arg6[%c0_3, %c0_4] : memref<144x576xbf16, #tpu.memory_space<vmem>>, vector<144x64xbf16>
    tpu.vector_store %arg6[%c0_3, %c0_4], %1 {strides = array<i32>} : memref<144x576xbf16, #tpu.memory_space<vmem>>, vector<144x64xbf16>,
    %c0_5 = arith.constant 0 : index
    %c0_6 = arith.constant 0 : index
    %c1 = arith.constant 1 : index
    %c0_7 = arith.constant 0 : index
    %3 = vector.load %arg2[%c0_5, %c0_6, %c1, %c0_7] : memref<1x1x182x64xbf16, #tpu.memory_space<vmem>>, vector<1x1x144x64xbf16>
    %4 = vector.shape_cast %3 : vector<1x1x144x64xbf16> to vector<144x64xbf16>
    %c0_8 = arith.constant 0 : index
    %c64 = arith.constant 64 : index
    %5 = vector.load %arg6[%c0_8, %c64] : memref<144x576xbf16, #tpu.memory_space<vmem>>, vector<144x64xbf16>
    tpu.vector_store %arg6[%c0_8, %c64], %4 {strides = array<i32>} : memref<144x576xbf16, #tpu.memory_space<vmem>>, vector<144x64xbf16>,
    %c0_9 = arith.constant 0 : index
    %c0_10 = arith.constant 0 : index
    %c2 = arith.constant 2 : index
    %c0_11 = arith.constant 0 : index
    %6 = vector.load %arg2[%c0_9, %c0_10, %c2, %c0_11] : memref<1x1x182x64xbf16, #tpu.memory_space<vmem>>, vector<1x1x144x64xbf16>
    %7 = vector.shape_cast %6 : vector<1x1x144x64xbf16> to vector<144x64xbf16>
    %c0_12 = arith.constant 0 : index
    %c128 = arith.constant 128 : index
    %8 = vector.load %arg6[%c0_12, %c128] : memref<144x576xbf16, #tpu.memory_space<vmem>>, vector<144x64xbf16>
    tpu.vector_store %arg6[%c0_12, %c128], %7 {strides = array<i32>} : memref<144x576xbf16, #tpu.memory_space<vmem>>, vector<144x64xbf16>,
    %c0_13 = arith.constant 0 : index
    %c0_14 = arith.constant 0 : index
    %c18 = arith.constant 18 : index
    %c0_15 = arith.constant 0 : index
    %9 = vector.load %arg2[%c0_13, %c0_14, %c18, %c0_15] : memref<1x1x182x64xbf16, #tpu.memory_space<vmem>>, vector<1x1x144x64xbf16>
    %10 = vector.shape_cast %9 : vector<1x1x144x64xbf16> to vector<144x64xbf16>
    %c0_16 = arith.constant 0 : index
    %c192 = arith.constant 192 : index
    %11 = vector.load %arg6[%c0_16, %c192] : memref<144x576xbf16, #tpu.memory_space<vmem>>, vector<144x64xbf16>
    tpu.vector_store %arg6[%c0_16, %c192], %10 {strides = array<i32>} : memref<144x576xbf16, #tpu.memory_space<vmem>>, vector<144x64xbf16>,
    %c0_17 = arith.constant 0 : index
    %c0_18 = arith.constant 0 : index
    %c19 = arith.constant 19 : index
    %c0_19 = arith.constant 0 : index
    %12 = vector.load %arg2[%c0_17, %c0_18, %c19, %c0_19] : memref<1x1x182x64xbf16, #tpu.memory_space<vmem>>, vector<1x1x144x64xbf16>
    %13 = vector.shape_cast %12 : vector<1x1x144x64xbf16> to vector<144x64xbf16>
    %c0_20 = arith.constant 0 : index
    %c256 = arith.constant 256 : index
    %14 = vector.load %arg6[%c0_20, %c256] : memref<144x576xbf16, #tpu.memory_space<vmem>>, vector<144x64xbf16>
    tpu.vector_store %arg6[%c0_20, %c256], %13 {strides = array<i32>} : memref<144x576xbf16, #tpu.memory_space<vmem>>, vector<144x64xbf16>,
    %c0_21 = arith.constant 0 : index
    %c0_22 = arith.constant 0 : index
    %c20 = arith.constant 20 : index
    %c0_23 = arith.constant 0 : index
    %15 = vector.load %arg2[%c0_21, %c0_22, %c20, %c0_23] : memref<1x1x182x64xbf16, #tpu.memory_space<vmem>>, vector<1x1x144x64xbf16>
    %16 = vector.shape_cast %15 : vector<1x1x144x64xbf16> to vector<144x64xbf16>
    %c0_24 = arith.constant 0 : index
    %c320 = arith.constant 320 : index
    %17 = vector.load %arg6[%c0_24, %c320] : memref<144x576xbf16, #tpu.memory_space<vmem>>, vector<144x64xbf16>
    tpu.vector_store %arg6[%c0_24, %c320], %16 {strides = array<i32>} : memref<144x576xbf16, #tpu.memory_space<vmem>>, vector<144x64xbf16>,
    %c0_25 = arith.constant 0 : index
    %c0_26 = arith.constant 0 : index
    %c36 = arith.constant 36 : index
    %c0_27 = arith.constant 0 : index
    %18 = vector.load %arg2[%c0_25, %c0_26, %c36, %c0_27] : memref<1x1x182x64xbf16, #tpu.memory_space<vmem>>, vector<1x1x144x64xbf16>
    %19 = vector.shape_cast %18 : vector<1x1x144x64xbf16> to vector<144x64xbf16>
    %c0_28 = arith.constant 0 : index
    %c384 = arith.constant 384 : index
    %20 = vector.load %arg6[%c0_28, %c384] : memref<144x576xbf16, #tpu.memory_space<vmem>>, vector<144x64xbf16>
    tpu.vector_store %arg6[%c0_28, %c384], %19 {strides = array<i32>} : memref<144x576xbf16, #tpu.memory_space<vmem>>, vector<144x64xbf16>,
    %c0_29 = arith.constant 0 : index
    %c0_30 = arith.constant 0 : index
    %c37 = arith.constant 37 : index
    %c0_31 = arith.constant 0 : index
    %21 = vector.load %arg2[%c0_29, %c0_30, %c37, %c0_31] : memref<1x1x182x64xbf16, #tpu.memory_space<vmem>>, vector<1x1x144x64xbf16>
    %22 = vector.shape_cast %21 : vector<1x1x144x64xbf16> to vector<144x64xbf16>
    %c0_32 = arith.constant 0 : index
    %c448 = arith.constant 448 : index
    %23 = vector.load %arg6[%c0_32, %c448] : memref<144x576xbf16, #tpu.memory_space<vmem>>, vector<144x64xbf16>
    tpu.vector_store %arg6[%c0_32, %c448], %22 {strides = array<i32>} : memref<144x576xbf16, #tpu.memory_space<vmem>>, vector<144x64xbf16>,
    %c0_33 = arith.constant 0 : index
    %c0_34 = arith.constant 0 : index
    %c38 = arith.constant 38 : index
    %c0_35 = arith.constant 0 : index
    %24 = vector.load %arg2[%c0_33, %c0_34, %c38, %c0_35] : memref<1x1x182x64xbf16, #tpu.memory_space<vmem>>, vector<1x1x144x64xbf16>
    %25 = vector.shape_cast %24 : vector<1x1x144x64xbf16> to vector<144x64xbf16>
    %c0_36 = arith.constant 0 : index
    %c512 = arith.constant 512 : index
    %26 = vector.load %arg6[%c0_36, %c512] : memref<144x576xbf16, #tpu.memory_space<vmem>>, vector<144x64xbf16>
    tpu.vector_store %arg6[%c0_36, %c512], %25 {strides = array<i32>} : memref<144x576xbf16, #tpu.memory_space<vmem>>, vector<144x64xbf16>,
    %c0_37 = arith.constant 0 : index
    %c0_38 = arith.constant 0 : index
    %27 = vector.load %arg6[%c0_37, %c0_38] : memref<144x576xbf16, #tpu.memory_space<vmem>>, vector<144x576xbf16>
    %c0_39 = arith.constant 0 : index
    %c0_40 = arith.constant 0 : index
    %28 = vector.load %arg3[%c0_39, %c0_40] : memref<576x64xbf16, #tpu.memory_space<vmem>>, vector<576x64xbf16>
    %cst = arith.constant dense<0.000000e+00> : vector<144x64xf32>
    %29 = tpu.matmul %27, %28, %cst {dimension_numbers = #tpu.dot_dimension_numbers<[1], [0], [0], [1], [0, 0, 1, 1], [], []>} : vector<144x576xbf16>, vector<576x64xbf16>, vector<144x64xf32> -> vector<144x64xf32>
    %c0_41 = arith.constant 0 : index
    %c0_42 = arith.constant 0 : index
    %30 = vector.load %arg4[%c0_41, %c0_42] : memref<1x64xf32, #tpu.memory_space<vmem>>, vector<1x64xf32>
    %31 = vector.broadcast %30 : vector<1x64xf32> to vector<144x64xf32>
    %32 = arith.addf %29, %31 : vector<144x64xf32>
    %cst_43 = arith.constant 0.000000e+00 : f32
    %33 = vector.broadcast %cst_43 : f32 to vector<144x64xf32>
    %34 = arith.maximumf %32, %33 : vector<144x64xf32>
    %35 = arith.truncf %34 : vector<144x64xf32> to vector<144x64xbf16>
    %c0_44 = arith.constant 0 : index
    %c0_45 = arith.constant 0 : index
    %c0_46 = arith.constant 0 : index
    %c0_47 = arith.constant 0 : index
    %36 = vector.load %arg5[%c0_44, %c0_45, %c0_46, %c0_47] : memref<1x1x144x64xbf16, #tpu.memory_space<vmem>>, vector<1x1x144x64xbf16>
    %37 = vector.shape_cast %36 : vector<1x1x144x64xbf16> to vector<144x64xbf16>
    %38 = vector.shape_cast %35 : vector<144x64xbf16> to vector<1x1x144x64xbf16>
    tpu.vector_store %arg5[%c0_44, %c0_45, %c0_46, %c0_47], %38 {strides = array<i32>} : memref<1x1x144x64xbf16, #tpu.memory_space<vmem>>, vector<1x1x144x64xbf16>,
    return
  }
  func.func @transform_0(%arg0: i32, %arg1: i32) -> (i32, i32, i32, i32) {
    %c0_i32 = arith.constant 0 : i32
    %c0_i32_0 = arith.constant 0 : i32
    %c0_i32_1 = arith.constant 0 : i32
    return %arg0, %arg1, %c0_i32, %c0_i32_0 : i32, i32, i32, i32
  }
  func.func @transform_1(%arg0: i32, %arg1: i32) -> (i32, i32) {
    %c0_i32 = arith.constant 0 : i32
    %c0_i32_0 = arith.constant 0 : i32
    %c0_i32_1 = arith.constant 0 : i32
    return %c0_i32, %c0_i32_0 : i32, i32
  }
  func.func @transform_2(%arg0: i32, %arg1: i32) -> (i32, i32) {
    %c0_i32 = arith.constant 0 : i32
    %c0_i32_0 = arith.constant 0 : i32
    %c0_i32_1 = arith.constant 0 : i32
    return %c0_i32, %c0_i32_0 : i32, i32
  }
  func.func @transform_3(%arg0: i32, %arg1: i32) -> (i32, i32, i32, i32) {
    %c0_i32 = arith.constant 0 : i32
    %c0_i32_0 = arith.constant 0 : i32
    %c0_i32_1 = arith.constant 0 : i32
    return %arg0, %arg1, %c0_i32, %c0_i32_0 : i32, i32, i32, i32
  }
}

module attributes {stable_mosaic.version = 11 : i64} {
  func.func @_conv3x3_kernel(%arg0: i32, %arg1: i32, %arg2: memref<1x1x102x64xbf16, #tpu.memory_space<vmem>>, %arg3: memref<576x128xbf16, #tpu.memory_space<vmem>>, %arg4: memref<1x128xf32, #tpu.memory_space<vmem>>, %arg5: memref<1x1x80x128xbf16, #tpu.memory_space<vmem>>, %arg6: memref<80x576xbf16, #tpu.memory_space<vmem>>) attributes {dimension_semantics = [#tpu.dimension_semantics<parallel>, #tpu.dimension_semantics<parallel>], iteration_bounds = array<i64: 2, 1>, scalar_prefetch = 0 : i64, scratch_operands = 1 : i64, tpu.core_type = #tpu.core_type<tc>, window_params = [{transform_indices = @transform_0, window_bounds = array<i64: 1, 1, 102, 64>}, {pipeline_mode = #tpu.pipeline_mode<synchronous>, transform_indices = @transform_1, window_bounds = array<i64: 576, 128>}, {pipeline_mode = #tpu.pipeline_mode<synchronous>, transform_indices = @transform_2, window_bounds = array<i64: 1, 128>}, {transform_indices = @transform_3, window_bounds = array<i64: 1, 1, 80, 128>}]} {
    %c0 = arith.constant 0 : index
    %c0_0 = arith.constant 0 : index
    %c0_1 = arith.constant 0 : index
    %c0_2 = arith.constant 0 : index
    %0 = vector.load %arg2[%c0, %c0_0, %c0_1, %c0_2] : memref<1x1x102x64xbf16, #tpu.memory_space<vmem>>, vector<1x1x80x64xbf16>
    %1 = vector.shape_cast %0 : vector<1x1x80x64xbf16> to vector<80x64xbf16>
    %c0_3 = arith.constant 0 : index
    %c0_4 = arith.constant 0 : index
    %2 = vector.load %arg6[%c0_3, %c0_4] : memref<80x576xbf16, #tpu.memory_space<vmem>>, vector<80x64xbf16>
    tpu.vector_store %arg6[%c0_3, %c0_4], %1 {strides = array<i32>} : memref<80x576xbf16, #tpu.memory_space<vmem>>, vector<80x64xbf16>,
    %c0_5 = arith.constant 0 : index
    %c0_6 = arith.constant 0 : index
    %c1 = arith.constant 1 : index
    %c0_7 = arith.constant 0 : index
    %3 = vector.load %arg2[%c0_5, %c0_6, %c1, %c0_7] : memref<1x1x102x64xbf16, #tpu.memory_space<vmem>>, vector<1x1x80x64xbf16>
    %4 = vector.shape_cast %3 : vector<1x1x80x64xbf16> to vector<80x64xbf16>
    %c0_8 = arith.constant 0 : index
    %c64 = arith.constant 64 : index
    %5 = vector.load %arg6[%c0_8, %c64] : memref<80x576xbf16, #tpu.memory_space<vmem>>, vector<80x64xbf16>
    tpu.vector_store %arg6[%c0_8, %c64], %4 {strides = array<i32>} : memref<80x576xbf16, #tpu.memory_space<vmem>>, vector<80x64xbf16>,
    %c0_9 = arith.constant 0 : index
    %c0_10 = arith.constant 0 : index
    %c2 = arith.constant 2 : index
    %c0_11 = arith.constant 0 : index
    %6 = vector.load %arg2[%c0_9, %c0_10, %c2, %c0_11] : memref<1x1x102x64xbf16, #tpu.memory_space<vmem>>, vector<1x1x80x64xbf16>
    %7 = vector.shape_cast %6 : vector<1x1x80x64xbf16> to vector<80x64xbf16>
    %c0_12 = arith.constant 0 : index
    %c128 = arith.constant 128 : index
    %8 = vector.load %arg6[%c0_12, %c128] : memref<80x576xbf16, #tpu.memory_space<vmem>>, vector<80x64xbf16>
    tpu.vector_store %arg6[%c0_12, %c128], %7 {strides = array<i32>} : memref<80x576xbf16, #tpu.memory_space<vmem>>, vector<80x64xbf16>,
    %c0_13 = arith.constant 0 : index
    %c0_14 = arith.constant 0 : index
    %c10 = arith.constant 10 : index
    %c0_15 = arith.constant 0 : index
    %9 = vector.load %arg2[%c0_13, %c0_14, %c10, %c0_15] : memref<1x1x102x64xbf16, #tpu.memory_space<vmem>>, vector<1x1x80x64xbf16>
    %10 = vector.shape_cast %9 : vector<1x1x80x64xbf16> to vector<80x64xbf16>
    %c0_16 = arith.constant 0 : index
    %c192 = arith.constant 192 : index
    %11 = vector.load %arg6[%c0_16, %c192] : memref<80x576xbf16, #tpu.memory_space<vmem>>, vector<80x64xbf16>
    tpu.vector_store %arg6[%c0_16, %c192], %10 {strides = array<i32>} : memref<80x576xbf16, #tpu.memory_space<vmem>>, vector<80x64xbf16>,
    %c0_17 = arith.constant 0 : index
    %c0_18 = arith.constant 0 : index
    %c11 = arith.constant 11 : index
    %c0_19 = arith.constant 0 : index
    %12 = vector.load %arg2[%c0_17, %c0_18, %c11, %c0_19] : memref<1x1x102x64xbf16, #tpu.memory_space<vmem>>, vector<1x1x80x64xbf16>
    %13 = vector.shape_cast %12 : vector<1x1x80x64xbf16> to vector<80x64xbf16>
    %c0_20 = arith.constant 0 : index
    %c256 = arith.constant 256 : index
    %14 = vector.load %arg6[%c0_20, %c256] : memref<80x576xbf16, #tpu.memory_space<vmem>>, vector<80x64xbf16>
    tpu.vector_store %arg6[%c0_20, %c256], %13 {strides = array<i32>} : memref<80x576xbf16, #tpu.memory_space<vmem>>, vector<80x64xbf16>,
    %c0_21 = arith.constant 0 : index
    %c0_22 = arith.constant 0 : index
    %c12 = arith.constant 12 : index
    %c0_23 = arith.constant 0 : index
    %15 = vector.load %arg2[%c0_21, %c0_22, %c12, %c0_23] : memref<1x1x102x64xbf16, #tpu.memory_space<vmem>>, vector<1x1x80x64xbf16>
    %16 = vector.shape_cast %15 : vector<1x1x80x64xbf16> to vector<80x64xbf16>
    %c0_24 = arith.constant 0 : index
    %c320 = arith.constant 320 : index
    %17 = vector.load %arg6[%c0_24, %c320] : memref<80x576xbf16, #tpu.memory_space<vmem>>, vector<80x64xbf16>
    tpu.vector_store %arg6[%c0_24, %c320], %16 {strides = array<i32>} : memref<80x576xbf16, #tpu.memory_space<vmem>>, vector<80x64xbf16>,
    %c0_25 = arith.constant 0 : index
    %c0_26 = arith.constant 0 : index
    %c20 = arith.constant 20 : index
    %c0_27 = arith.constant 0 : index
    %18 = vector.load %arg2[%c0_25, %c0_26, %c20, %c0_27] : memref<1x1x102x64xbf16, #tpu.memory_space<vmem>>, vector<1x1x80x64xbf16>
    %19 = vector.shape_cast %18 : vector<1x1x80x64xbf16> to vector<80x64xbf16>
    %c0_28 = arith.constant 0 : index
    %c384 = arith.constant 384 : index
    %20 = vector.load %arg6[%c0_28, %c384] : memref<80x576xbf16, #tpu.memory_space<vmem>>, vector<80x64xbf16>
    tpu.vector_store %arg6[%c0_28, %c384], %19 {strides = array<i32>} : memref<80x576xbf16, #tpu.memory_space<vmem>>, vector<80x64xbf16>,
    %c0_29 = arith.constant 0 : index
    %c0_30 = arith.constant 0 : index
    %c21 = arith.constant 21 : index
    %c0_31 = arith.constant 0 : index
    %21 = vector.load %arg2[%c0_29, %c0_30, %c21, %c0_31] : memref<1x1x102x64xbf16, #tpu.memory_space<vmem>>, vector<1x1x80x64xbf16>
    %22 = vector.shape_cast %21 : vector<1x1x80x64xbf16> to vector<80x64xbf16>
    %c0_32 = arith.constant 0 : index
    %c448 = arith.constant 448 : index
    %23 = vector.load %arg6[%c0_32, %c448] : memref<80x576xbf16, #tpu.memory_space<vmem>>, vector<80x64xbf16>
    tpu.vector_store %arg6[%c0_32, %c448], %22 {strides = array<i32>} : memref<80x576xbf16, #tpu.memory_space<vmem>>, vector<80x64xbf16>,
    %c0_33 = arith.constant 0 : index
    %c0_34 = arith.constant 0 : index
    %c22 = arith.constant 22 : index
    %c0_35 = arith.constant 0 : index
    %24 = vector.load %arg2[%c0_33, %c0_34, %c22, %c0_35] : memref<1x1x102x64xbf16, #tpu.memory_space<vmem>>, vector<1x1x80x64xbf16>
    %25 = vector.shape_cast %24 : vector<1x1x80x64xbf16> to vector<80x64xbf16>
    %c0_36 = arith.constant 0 : index
    %c512 = arith.constant 512 : index
    %26 = vector.load %arg6[%c0_36, %c512] : memref<80x576xbf16, #tpu.memory_space<vmem>>, vector<80x64xbf16>
    tpu.vector_store %arg6[%c0_36, %c512], %25 {strides = array<i32>} : memref<80x576xbf16, #tpu.memory_space<vmem>>, vector<80x64xbf16>,
    %c0_37 = arith.constant 0 : index
    %c0_38 = arith.constant 0 : index
    %27 = vector.load %arg6[%c0_37, %c0_38] : memref<80x576xbf16, #tpu.memory_space<vmem>>, vector<80x576xbf16>
    %c0_39 = arith.constant 0 : index
    %c0_40 = arith.constant 0 : index
    %28 = vector.load %arg3[%c0_39, %c0_40] : memref<576x128xbf16, #tpu.memory_space<vmem>>, vector<576x128xbf16>
    %cst = arith.constant dense<0.000000e+00> : vector<80x128xf32>
    %29 = tpu.matmul %27, %28, %cst {dimension_numbers = #tpu.dot_dimension_numbers<[1], [0], [0], [1], [0, 0, 1, 1], [], []>} : vector<80x576xbf16>, vector<576x128xbf16>, vector<80x128xf32> -> vector<80x128xf32>
    %c0_41 = arith.constant 0 : index
    %c0_42 = arith.constant 0 : index
    %30 = vector.load %arg4[%c0_41, %c0_42] : memref<1x128xf32, #tpu.memory_space<vmem>>, vector<1x128xf32>
    %31 = vector.broadcast %30 : vector<1x128xf32> to vector<80x128xf32>
    %32 = arith.addf %29, %31 : vector<80x128xf32>
    %cst_43 = arith.constant 0.000000e+00 : f32
    %33 = vector.broadcast %cst_43 : f32 to vector<80x128xf32>
    %34 = arith.maximumf %32, %33 : vector<80x128xf32>
    %35 = arith.truncf %34 : vector<80x128xf32> to vector<80x128xbf16>
    %c0_44 = arith.constant 0 : index
    %c0_45 = arith.constant 0 : index
    %c0_46 = arith.constant 0 : index
    %c0_47 = arith.constant 0 : index
    %36 = vector.load %arg5[%c0_44, %c0_45, %c0_46, %c0_47] : memref<1x1x80x128xbf16, #tpu.memory_space<vmem>>, vector<1x1x80x128xbf16>
    %37 = vector.shape_cast %36 : vector<1x1x80x128xbf16> to vector<80x128xbf16>
    %38 = vector.shape_cast %35 : vector<80x128xbf16> to vector<1x1x80x128xbf16>
    tpu.vector_store %arg5[%c0_44, %c0_45, %c0_46, %c0_47], %38 {strides = array<i32>} : memref<1x1x80x128xbf16, #tpu.memory_space<vmem>>, vector<1x1x80x128xbf16>,
    return
  }
  func.func @transform_0(%arg0: i32, %arg1: i32) -> (i32, i32, i32, i32) {
    %c0_i32 = arith.constant 0 : i32
    %c0_i32_0 = arith.constant 0 : i32
    %c0_i32_1 = arith.constant 0 : i32
    return %arg0, %arg1, %c0_i32, %c0_i32_0 : i32, i32, i32, i32
  }
  func.func @transform_1(%arg0: i32, %arg1: i32) -> (i32, i32) {
    %c0_i32 = arith.constant 0 : i32
    %c0_i32_0 = arith.constant 0 : i32
    %c0_i32_1 = arith.constant 0 : i32
    return %c0_i32, %c0_i32_0 : i32, i32
  }
  func.func @transform_2(%arg0: i32, %arg1: i32) -> (i32, i32) {
    %c0_i32 = arith.constant 0 : i32
    %c0_i32_0 = arith.constant 0 : i32
    %c0_i32_1 = arith.constant 0 : i32
    return %c0_i32, %c0_i32_0 : i32, i32
  }
  func.func @transform_3(%arg0: i32, %arg1: i32) -> (i32, i32, i32, i32) {
    %c0_i32 = arith.constant 0 : i32
    %c0_i32_0 = arith.constant 0 : i32
    %c0_i32_1 = arith.constant 0 : i32
    return %arg0, %arg1, %c0_i32, %c0_i32_0 : i32, i32, i32, i32
  }
}

module attributes {stable_mosaic.version = 11 : i64} {
  func.func @_conv3x3_kernel(%arg0: i32, %arg1: i32, %arg2: memref<1x1x102x128xbf16, #tpu.memory_space<vmem>>, %arg3: memref<1152x128xbf16, #tpu.memory_space<vmem>>, %arg4: memref<1x128xf32, #tpu.memory_space<vmem>>, %arg5: memref<1x1x80x128xbf16, #tpu.memory_space<vmem>>, %arg6: memref<80x1152xbf16, #tpu.memory_space<vmem>>) attributes {dimension_semantics = [#tpu.dimension_semantics<parallel>, #tpu.dimension_semantics<parallel>], iteration_bounds = array<i64: 2, 1>, scalar_prefetch = 0 : i64, scratch_operands = 1 : i64, tpu.core_type = #tpu.core_type<tc>, window_params = [{transform_indices = @transform_0, window_bounds = array<i64: 1, 1, 102, 128>}, {pipeline_mode = #tpu.pipeline_mode<synchronous>, transform_indices = @transform_1, window_bounds = array<i64: 1152, 128>}, {pipeline_mode = #tpu.pipeline_mode<synchronous>, transform_indices = @transform_2, window_bounds = array<i64: 1, 128>}, {transform_indices = @transform_3, window_bounds = array<i64: 1, 1, 80, 128>}]} {
    %c0 = arith.constant 0 : index
    %c0_0 = arith.constant 0 : index
    %c0_1 = arith.constant 0 : index
    %c0_2 = arith.constant 0 : index
    %0 = vector.load %arg2[%c0, %c0_0, %c0_1, %c0_2] : memref<1x1x102x128xbf16, #tpu.memory_space<vmem>>, vector<1x1x80x128xbf16>
    %1 = vector.shape_cast %0 : vector<1x1x80x128xbf16> to vector<80x128xbf16>
    %c0_3 = arith.constant 0 : index
    %c0_4 = arith.constant 0 : index
    %2 = vector.load %arg6[%c0_3, %c0_4] : memref<80x1152xbf16, #tpu.memory_space<vmem>>, vector<80x128xbf16>
    tpu.vector_store %arg6[%c0_3, %c0_4], %1 {strides = array<i32>} : memref<80x1152xbf16, #tpu.memory_space<vmem>>, vector<80x128xbf16>,
    %c0_5 = arith.constant 0 : index
    %c0_6 = arith.constant 0 : index
    %c1 = arith.constant 1 : index
    %c0_7 = arith.constant 0 : index
    %3 = vector.load %arg2[%c0_5, %c0_6, %c1, %c0_7] : memref<1x1x102x128xbf16, #tpu.memory_space<vmem>>, vector<1x1x80x128xbf16>
    %4 = vector.shape_cast %3 : vector<1x1x80x128xbf16> to vector<80x128xbf16>
    %c0_8 = arith.constant 0 : index
    %c128 = arith.constant 128 : index
    %5 = vector.load %arg6[%c0_8, %c128] : memref<80x1152xbf16, #tpu.memory_space<vmem>>, vector<80x128xbf16>
    tpu.vector_store %arg6[%c0_8, %c128], %4 {strides = array<i32>} : memref<80x1152xbf16, #tpu.memory_space<vmem>>, vector<80x128xbf16>,
    %c0_9 = arith.constant 0 : index
    %c0_10 = arith.constant 0 : index
    %c2 = arith.constant 2 : index
    %c0_11 = arith.constant 0 : index
    %6 = vector.load %arg2[%c0_9, %c0_10, %c2, %c0_11] : memref<1x1x102x128xbf16, #tpu.memory_space<vmem>>, vector<1x1x80x128xbf16>
    %7 = vector.shape_cast %6 : vector<1x1x80x128xbf16> to vector<80x128xbf16>
    %c0_12 = arith.constant 0 : index
    %c256 = arith.constant 256 : index
    %8 = vector.load %arg6[%c0_12, %c256] : memref<80x1152xbf16, #tpu.memory_space<vmem>>, vector<80x128xbf16>
    tpu.vector_store %arg6[%c0_12, %c256], %7 {strides = array<i32>} : memref<80x1152xbf16, #tpu.memory_space<vmem>>, vector<80x128xbf16>,
    %c0_13 = arith.constant 0 : index
    %c0_14 = arith.constant 0 : index
    %c10 = arith.constant 10 : index
    %c0_15 = arith.constant 0 : index
    %9 = vector.load %arg2[%c0_13, %c0_14, %c10, %c0_15] : memref<1x1x102x128xbf16, #tpu.memory_space<vmem>>, vector<1x1x80x128xbf16>
    %10 = vector.shape_cast %9 : vector<1x1x80x128xbf16> to vector<80x128xbf16>
    %c0_16 = arith.constant 0 : index
    %c384 = arith.constant 384 : index
    %11 = vector.load %arg6[%c0_16, %c384] : memref<80x1152xbf16, #tpu.memory_space<vmem>>, vector<80x128xbf16>
    tpu.vector_store %arg6[%c0_16, %c384], %10 {strides = array<i32>} : memref<80x1152xbf16, #tpu.memory_space<vmem>>, vector<80x128xbf16>,
    %c0_17 = arith.constant 0 : index
    %c0_18 = arith.constant 0 : index
    %c11 = arith.constant 11 : index
    %c0_19 = arith.constant 0 : index
    %12 = vector.load %arg2[%c0_17, %c0_18, %c11, %c0_19] : memref<1x1x102x128xbf16, #tpu.memory_space<vmem>>, vector<1x1x80x128xbf16>
    %13 = vector.shape_cast %12 : vector<1x1x80x128xbf16> to vector<80x128xbf16>
    %c0_20 = arith.constant 0 : index
    %c512 = arith.constant 512 : index
    %14 = vector.load %arg6[%c0_20, %c512] : memref<80x1152xbf16, #tpu.memory_space<vmem>>, vector<80x128xbf16>
    tpu.vector_store %arg6[%c0_20, %c512], %13 {strides = array<i32>} : memref<80x1152xbf16, #tpu.memory_space<vmem>>, vector<80x128xbf16>,
    %c0_21 = arith.constant 0 : index
    %c0_22 = arith.constant 0 : index
    %c12 = arith.constant 12 : index
    %c0_23 = arith.constant 0 : index
    %15 = vector.load %arg2[%c0_21, %c0_22, %c12, %c0_23] : memref<1x1x102x128xbf16, #tpu.memory_space<vmem>>, vector<1x1x80x128xbf16>
    %16 = vector.shape_cast %15 : vector<1x1x80x128xbf16> to vector<80x128xbf16>
    %c0_24 = arith.constant 0 : index
    %c640 = arith.constant 640 : index
    %17 = vector.load %arg6[%c0_24, %c640] : memref<80x1152xbf16, #tpu.memory_space<vmem>>, vector<80x128xbf16>
    tpu.vector_store %arg6[%c0_24, %c640], %16 {strides = array<i32>} : memref<80x1152xbf16, #tpu.memory_space<vmem>>, vector<80x128xbf16>,
    %c0_25 = arith.constant 0 : index
    %c0_26 = arith.constant 0 : index
    %c20 = arith.constant 20 : index
    %c0_27 = arith.constant 0 : index
    %18 = vector.load %arg2[%c0_25, %c0_26, %c20, %c0_27] : memref<1x1x102x128xbf16, #tpu.memory_space<vmem>>, vector<1x1x80x128xbf16>
    %19 = vector.shape_cast %18 : vector<1x1x80x128xbf16> to vector<80x128xbf16>
    %c0_28 = arith.constant 0 : index
    %c768 = arith.constant 768 : index
    %20 = vector.load %arg6[%c0_28, %c768] : memref<80x1152xbf16, #tpu.memory_space<vmem>>, vector<80x128xbf16>
    tpu.vector_store %arg6[%c0_28, %c768], %19 {strides = array<i32>} : memref<80x1152xbf16, #tpu.memory_space<vmem>>, vector<80x128xbf16>,
    %c0_29 = arith.constant 0 : index
    %c0_30 = arith.constant 0 : index
    %c21 = arith.constant 21 : index
    %c0_31 = arith.constant 0 : index
    %21 = vector.load %arg2[%c0_29, %c0_30, %c21, %c0_31] : memref<1x1x102x128xbf16, #tpu.memory_space<vmem>>, vector<1x1x80x128xbf16>
    %22 = vector.shape_cast %21 : vector<1x1x80x128xbf16> to vector<80x128xbf16>
    %c0_32 = arith.constant 0 : index
    %c896 = arith.constant 896 : index
    %23 = vector.load %arg6[%c0_32, %c896] : memref<80x1152xbf16, #tpu.memory_space<vmem>>, vector<80x128xbf16>
    tpu.vector_store %arg6[%c0_32, %c896], %22 {strides = array<i32>} : memref<80x1152xbf16, #tpu.memory_space<vmem>>, vector<80x128xbf16>,
    %c0_33 = arith.constant 0 : index
    %c0_34 = arith.constant 0 : index
    %c22 = arith.constant 22 : index
    %c0_35 = arith.constant 0 : index
    %24 = vector.load %arg2[%c0_33, %c0_34, %c22, %c0_35] : memref<1x1x102x128xbf16, #tpu.memory_space<vmem>>, vector<1x1x80x128xbf16>
    %25 = vector.shape_cast %24 : vector<1x1x80x128xbf16> to vector<80x128xbf16>
    %c0_36 = arith.constant 0 : index
    %c1024 = arith.constant 1024 : index
    %26 = vector.load %arg6[%c0_36, %c1024] : memref<80x1152xbf16, #tpu.memory_space<vmem>>, vector<80x128xbf16>
    tpu.vector_store %arg6[%c0_36, %c1024], %25 {strides = array<i32>} : memref<80x1152xbf16, #tpu.memory_space<vmem>>, vector<80x128xbf16>,
    %c0_37 = arith.constant 0 : index
    %c0_38 = arith.constant 0 : index
    %27 = vector.load %arg6[%c0_37, %c0_38] : memref<80x1152xbf16, #tpu.memory_space<vmem>>, vector<80x1152xbf16>
    %c0_39 = arith.constant 0 : index
    %c0_40 = arith.constant 0 : index
    %28 = vector.load %arg3[%c0_39, %c0_40] : memref<1152x128xbf16, #tpu.memory_space<vmem>>, vector<1152x128xbf16>
    %cst = arith.constant dense<0.000000e+00> : vector<80x128xf32>
    %29 = tpu.matmul %27, %28, %cst {dimension_numbers = #tpu.dot_dimension_numbers<[1], [0], [0], [1], [0, 0, 1, 1], [], []>} : vector<80x1152xbf16>, vector<1152x128xbf16>, vector<80x128xf32> -> vector<80x128xf32>
    %c0_41 = arith.constant 0 : index
    %c0_42 = arith.constant 0 : index
    %30 = vector.load %arg4[%c0_41, %c0_42] : memref<1x128xf32, #tpu.memory_space<vmem>>, vector<1x128xf32>
    %31 = vector.broadcast %30 : vector<1x128xf32> to vector<80x128xf32>
    %32 = arith.addf %29, %31 : vector<80x128xf32>
    %cst_43 = arith.constant 0.000000e+00 : f32
    %33 = vector.broadcast %cst_43 : f32 to vector<80x128xf32>
    %34 = arith.maximumf %32, %33 : vector<80x128xf32>
    %35 = arith.truncf %34 : vector<80x128xf32> to vector<80x128xbf16>
    %c0_44 = arith.constant 0 : index
    %c0_45 = arith.constant 0 : index
    %c0_46 = arith.constant 0 : index
    %c0_47 = arith.constant 0 : index
    %36 = vector.load %arg5[%c0_44, %c0_45, %c0_46, %c0_47] : memref<1x1x80x128xbf16, #tpu.memory_space<vmem>>, vector<1x1x80x128xbf16>
    %37 = vector.shape_cast %36 : vector<1x1x80x128xbf16> to vector<80x128xbf16>
    %38 = vector.shape_cast %35 : vector<80x128xbf16> to vector<1x1x80x128xbf16>
    tpu.vector_store %arg5[%c0_44, %c0_45, %c0_46, %c0_47], %38 {strides = array<i32>} : memref<1x1x80x128xbf16, #tpu.memory_space<vmem>>, vector<1x1x80x128xbf16>,
    return
  }
  func.func @transform_0(%arg0: i32, %arg1: i32) -> (i32, i32, i32, i32) {
    %c0_i32 = arith.constant 0 : i32
    %c0_i32_0 = arith.constant 0 : i32
    %c0_i32_1 = arith.constant 0 : i32
    return %arg0, %arg1, %c0_i32, %c0_i32_0 : i32, i32, i32, i32
  }
  func.func @transform_1(%arg0: i32, %arg1: i32) -> (i32, i32) {
    %c0_i32 = arith.constant 0 : i32
    %c0_i32_0 = arith.constant 0 : i32
    %c0_i32_1 = arith.constant 0 : i32
    return %c0_i32, %c0_i32_0 : i32, i32
  }
  func.func @transform_2(%arg0: i32, %arg1: i32) -> (i32, i32) {
    %c0_i32 = arith.constant 0 : i32
    %c0_i32_0 = arith.constant 0 : i32
    %c0_i32_1 = arith.constant 0 : i32
    return %c0_i32, %c0_i32_0 : i32, i32
  }
  func.func @transform_3(%arg0: i32, %arg1: i32) -> (i32, i32, i32, i32) {
    %c0_i32 = arith.constant 0 : i32
    %c0_i32_0 = arith.constant 0 : i32
    %c0_i32_1 = arith.constant 0 : i32
    return %arg0, %arg1, %c0_i32, %c0_i32_0 : i32, i32, i32, i32
  }
}

module attributes {stable_mosaic.version = 11 : i64} {
  func.func @_conv3x3_kernel(%arg0: i32, %arg1: i32, %arg2: memref<1x1x38x128xbf16, #tpu.memory_space<vmem>>, %arg3: memref<1152x256xbf16, #tpu.memory_space<vmem>>, %arg4: memref<1x256xf32, #tpu.memory_space<vmem>>, %arg5: memref<1x1x24x256xf32, #tpu.memory_space<vmem>>, %arg6: memref<24x1152xbf16, #tpu.memory_space<vmem>>) attributes {dimension_semantics = [#tpu.dimension_semantics<parallel>, #tpu.dimension_semantics<parallel>], iteration_bounds = array<i64: 2, 1>, scalar_prefetch = 0 : i64, scratch_operands = 1 : i64, tpu.core_type = #tpu.core_type<tc>, window_params = [{transform_indices = @transform_0, window_bounds = array<i64: 1, 1, 38, 128>}, {pipeline_mode = #tpu.pipeline_mode<synchronous>, transform_indices = @transform_1, window_bounds = array<i64: 1152, 256>}, {pipeline_mode = #tpu.pipeline_mode<synchronous>, transform_indices = @transform_2, window_bounds = array<i64: 1, 256>}, {transform_indices = @transform_3, window_bounds = array<i64: 1, 1, 24, 256>}]} {
    %c0 = arith.constant 0 : index
    %c0_0 = arith.constant 0 : index
    %c0_1 = arith.constant 0 : index
    %c0_2 = arith.constant 0 : index
    %0 = vector.load %arg2[%c0, %c0_0, %c0_1, %c0_2] : memref<1x1x38x128xbf16, #tpu.memory_space<vmem>>, vector<1x1x24x128xbf16>
    %1 = vector.shape_cast %0 : vector<1x1x24x128xbf16> to vector<24x128xbf16>
    %c0_3 = arith.constant 0 : index
    %c0_4 = arith.constant 0 : index
    %2 = vector.load %arg6[%c0_3, %c0_4] : memref<24x1152xbf16, #tpu.memory_space<vmem>>, vector<24x128xbf16>
    tpu.vector_store %arg6[%c0_3, %c0_4], %1 {strides = array<i32>} : memref<24x1152xbf16, #tpu.memory_space<vmem>>, vector<24x128xbf16>,
    %c0_5 = arith.constant 0 : index
    %c0_6 = arith.constant 0 : index
    %c1 = arith.constant 1 : index
    %c0_7 = arith.constant 0 : index
    %3 = vector.load %arg2[%c0_5, %c0_6, %c1, %c0_7] : memref<1x1x38x128xbf16, #tpu.memory_space<vmem>>, vector<1x1x24x128xbf16>
    %4 = vector.shape_cast %3 : vector<1x1x24x128xbf16> to vector<24x128xbf16>
    %c0_8 = arith.constant 0 : index
    %c128 = arith.constant 128 : index
    %5 = vector.load %arg6[%c0_8, %c128] : memref<24x1152xbf16, #tpu.memory_space<vmem>>, vector<24x128xbf16>
    tpu.vector_store %arg6[%c0_8, %c128], %4 {strides = array<i32>} : memref<24x1152xbf16, #tpu.memory_space<vmem>>, vector<24x128xbf16>,
    %c0_9 = arith.constant 0 : index
    %c0_10 = arith.constant 0 : index
    %c2 = arith.constant 2 : index
    %c0_11 = arith.constant 0 : index
    %6 = vector.load %arg2[%c0_9, %c0_10, %c2, %c0_11] : memref<1x1x38x128xbf16, #tpu.memory_space<vmem>>, vector<1x1x24x128xbf16>
    %7 = vector.shape_cast %6 : vector<1x1x24x128xbf16> to vector<24x128xbf16>
    %c0_12 = arith.constant 0 : index
    %c256 = arith.constant 256 : index
    %8 = vector.load %arg6[%c0_12, %c256] : memref<24x1152xbf16, #tpu.memory_space<vmem>>, vector<24x128xbf16>
    tpu.vector_store %arg6[%c0_12, %c256], %7 {strides = array<i32>} : memref<24x1152xbf16, #tpu.memory_space<vmem>>, vector<24x128xbf16>,
    %c0_13 = arith.constant 0 : index
    %c0_14 = arith.constant 0 : index
    %c6 = arith.constant 6 : index
    %c0_15 = arith.constant 0 : index
    %9 = vector.load %arg2[%c0_13, %c0_14, %c6, %c0_15] : memref<1x1x38x128xbf16, #tpu.memory_space<vmem>>, vector<1x1x24x128xbf16>
    %10 = vector.shape_cast %9 : vector<1x1x24x128xbf16> to vector<24x128xbf16>
    %c0_16 = arith.constant 0 : index
    %c384 = arith.constant 384 : index
    %11 = vector.load %arg6[%c0_16, %c384] : memref<24x1152xbf16, #tpu.memory_space<vmem>>, vector<24x128xbf16>
    tpu.vector_store %arg6[%c0_16, %c384], %10 {strides = array<i32>} : memref<24x1152xbf16, #tpu.memory_space<vmem>>, vector<24x128xbf16>,
    %c0_17 = arith.constant 0 : index
    %c0_18 = arith.constant 0 : index
    %c7 = arith.constant 7 : index
    %c0_19 = arith.constant 0 : index
    %12 = vector.load %arg2[%c0_17, %c0_18, %c7, %c0_19] : memref<1x1x38x128xbf16, #tpu.memory_space<vmem>>, vector<1x1x24x128xbf16>
    %13 = vector.shape_cast %12 : vector<1x1x24x128xbf16> to vector<24x128xbf16>
    %c0_20 = arith.constant 0 : index
    %c512 = arith.constant 512 : index
    %14 = vector.load %arg6[%c0_20, %c512] : memref<24x1152xbf16, #tpu.memory_space<vmem>>, vector<24x128xbf16>
    tpu.vector_store %arg6[%c0_20, %c512], %13 {strides = array<i32>} : memref<24x1152xbf16, #tpu.memory_space<vmem>>, vector<24x128xbf16>,
    %c0_21 = arith.constant 0 : index
    %c0_22 = arith.constant 0 : index
    %c8 = arith.constant 8 : index
    %c0_23 = arith.constant 0 : index
    %15 = vector.load %arg2[%c0_21, %c0_22, %c8, %c0_23] : memref<1x1x38x128xbf16, #tpu.memory_space<vmem>>, vector<1x1x24x128xbf16>
    %16 = vector.shape_cast %15 : vector<1x1x24x128xbf16> to vector<24x128xbf16>
    %c0_24 = arith.constant 0 : index
    %c640 = arith.constant 640 : index
    %17 = vector.load %arg6[%c0_24, %c640] : memref<24x1152xbf16, #tpu.memory_space<vmem>>, vector<24x128xbf16>
    tpu.vector_store %arg6[%c0_24, %c640], %16 {strides = array<i32>} : memref<24x1152xbf16, #tpu.memory_space<vmem>>, vector<24x128xbf16>,
    %c0_25 = arith.constant 0 : index
    %c0_26 = arith.constant 0 : index
    %c12 = arith.constant 12 : index
    %c0_27 = arith.constant 0 : index
    %18 = vector.load %arg2[%c0_25, %c0_26, %c12, %c0_27] : memref<1x1x38x128xbf16, #tpu.memory_space<vmem>>, vector<1x1x24x128xbf16>
    %19 = vector.shape_cast %18 : vector<1x1x24x128xbf16> to vector<24x128xbf16>
    %c0_28 = arith.constant 0 : index
    %c768 = arith.constant 768 : index
    %20 = vector.load %arg6[%c0_28, %c768] : memref<24x1152xbf16, #tpu.memory_space<vmem>>, vector<24x128xbf16>
    tpu.vector_store %arg6[%c0_28, %c768], %19 {strides = array<i32>} : memref<24x1152xbf16, #tpu.memory_space<vmem>>, vector<24x128xbf16>,
    %c0_29 = arith.constant 0 : index
    %c0_30 = arith.constant 0 : index
    %c13 = arith.constant 13 : index
    %c0_31 = arith.constant 0 : index
    %21 = vector.load %arg2[%c0_29, %c0_30, %c13, %c0_31] : memref<1x1x38x128xbf16, #tpu.memory_space<vmem>>, vector<1x1x24x128xbf16>
    %22 = vector.shape_cast %21 : vector<1x1x24x128xbf16> to vector<24x128xbf16>
    %c0_32 = arith.constant 0 : index
    %c896 = arith.constant 896 : index
    %23 = vector.load %arg6[%c0_32, %c896] : memref<24x1152xbf16, #tpu.memory_space<vmem>>, vector<24x128xbf16>
    tpu.vector_store %arg6[%c0_32, %c896], %22 {strides = array<i32>} : memref<24x1152xbf16, #tpu.memory_space<vmem>>, vector<24x128xbf16>,
    %c0_33 = arith.constant 0 : index
    %c0_34 = arith.constant 0 : index
    %c14 = arith.constant 14 : index
    %c0_35 = arith.constant 0 : index
    %24 = vector.load %arg2[%c0_33, %c0_34, %c14, %c0_35] : memref<1x1x38x128xbf16, #tpu.memory_space<vmem>>, vector<1x1x24x128xbf16>
    %25 = vector.shape_cast %24 : vector<1x1x24x128xbf16> to vector<24x128xbf16>
    %c0_36 = arith.constant 0 : index
    %c1024 = arith.constant 1024 : index
    %26 = vector.load %arg6[%c0_36, %c1024] : memref<24x1152xbf16, #tpu.memory_space<vmem>>, vector<24x128xbf16>
    tpu.vector_store %arg6[%c0_36, %c1024], %25 {strides = array<i32>} : memref<24x1152xbf16, #tpu.memory_space<vmem>>, vector<24x128xbf16>,
    %c0_37 = arith.constant 0 : index
    %c0_38 = arith.constant 0 : index
    %27 = vector.load %arg6[%c0_37, %c0_38] : memref<24x1152xbf16, #tpu.memory_space<vmem>>, vector<24x1152xbf16>
    %c0_39 = arith.constant 0 : index
    %c0_40 = arith.constant 0 : index
    %28 = vector.load %arg3[%c0_39, %c0_40] : memref<1152x256xbf16, #tpu.memory_space<vmem>>, vector<1152x256xbf16>
    %cst = arith.constant dense<0.000000e+00> : vector<24x256xf32>
    %29 = tpu.matmul %27, %28, %cst {dimension_numbers = #tpu.dot_dimension_numbers<[1], [0], [0], [1], [0, 0, 1, 1], [], []>} : vector<24x1152xbf16>, vector<1152x256xbf16>, vector<24x256xf32> -> vector<24x256xf32>
    %c0_41 = arith.constant 0 : index
    %c0_42 = arith.constant 0 : index
    %30 = vector.load %arg4[%c0_41, %c0_42] : memref<1x256xf32, #tpu.memory_space<vmem>>, vector<1x256xf32>
    %31 = vector.broadcast %30 : vector<1x256xf32> to vector<24x256xf32>
    %32 = arith.addf %29, %31 : vector<24x256xf32>
    %cst_43 = arith.constant 0.000000e+00 : f32
    %33 = vector.broadcast %cst_43 : f32 to vector<24x256xf32>
    %34 = arith.maximumf %32, %33 : vector<24x256xf32>
    %c0_44 = arith.constant 0 : index
    %c0_45 = arith.constant 0 : index
    %c0_46 = arith.constant 0 : index
    %c0_47 = arith.constant 0 : index
    %35 = vector.load %arg5[%c0_44, %c0_45, %c0_46, %c0_47] : memref<1x1x24x256xf32, #tpu.memory_space<vmem>>, vector<1x1x24x256xf32>
    %36 = vector.shape_cast %35 : vector<1x1x24x256xf32> to vector<24x256xf32>
    %37 = vector.shape_cast %34 : vector<24x256xf32> to vector<1x1x24x256xf32>
    tpu.vector_store %arg5[%c0_44, %c0_45, %c0_46, %c0_47], %37 {strides = array<i32>} : memref<1x1x24x256xf32, #tpu.memory_space<vmem>>, vector<1x1x24x256xf32>,
    return
  }
  func.func @transform_0(%arg0: i32, %arg1: i32) -> (i32, i32, i32, i32) {
    %c0_i32 = arith.constant 0 : i32
    %c0_i32_0 = arith.constant 0 : i32
    %c0_i32_1 = arith.constant 0 : i32
    return %arg0, %arg1, %c0_i32, %c0_i32_0 : i32, i32, i32, i32
  }
  func.func @transform_1(%arg0: i32, %arg1: i32) -> (i32, i32) {
    %c0_i32 = arith.constant 0 : i32
    %c0_i32_0 = arith.constant 0 : i32
    %c0_i32_1 = arith.constant 0 : i32
    return %c0_i32, %c0_i32_0 : i32, i32
  }
  func.func @transform_2(%arg0: i32, %arg1: i32) -> (i32, i32) {
    %c0_i32 = arith.constant 0 : i32
    %c0_i32_0 = arith.constant 0 : i32
    %c0_i32_1 = arith.constant 0 : i32
    return %c0_i32, %c0_i32_0 : i32, i32
  }
  func.func @transform_3(%arg0: i32, %arg1: i32) -> (i32, i32, i32, i32) {
    %c0_i32 = arith.constant 0 : i32
    %c0_i32_0 = arith.constant 0 : i32
    %c0_i32_1 = arith.constant 0 : i32
    return %arg0, %arg1, %c0_i32, %c0_i32_0 : i32, i32, i32, i32
  }
}

</mosaic_0001>

<bundles_post_ra>
// kernel: encoder3_forward.6
= control target key start
LH: loop header
LB: loop body
LE: loop exit
PB: predicated region body
PF: predicated region fallthrough
CT: control target
= control target key end

     0   :  { %s3550_s0 = inlined_call_operand.hbm [shape: bf16[2,2,182,4], index: 0, kind: input, shape index: {}]   ;;  %s3551_s1 = inlined_call_operand.hbm [shape: bf16[36,1], index: 1, kind: input, shape index: {}]   ;;  %s3552_s2 = inlined_call_operand.<no memory space> [shape: f32[1,1], index: 2, kind: input, shape index: {}]   ;;  %s3553_s3 = inlined_call_operand.hbm [shape: bf16[2,2,144,1], index: 3, kind: output, shape index: {}]  }
   0x1   :  { %3562 = sst [smem:[#allocation15_spill]] %s3551_s1  ;;  %v8_v0 = vstv %s3552_s2 }
   0x2   :  { %9 = vst [vmem:[#allocation3] sm:$0x1] %v8_v0 }
   0x3   :  { %10 = vsyncpa [#allocation5], 0 }
   0x4   :  { %12 = vsyncpa [#allocation5 + $0x1], 0 }
   0x5   :  { %13 = vsyncpa [#allocation8], 0 }
   0x6   :  { %14 = vsyncpa [#allocation6], 0 }
   0x7   :  { %16 = vsyncpa [#allocation6 + $0x1], 0  ;;  %s2503_s14 = smov 0   ;;  %s2505_s15 = smov 0  }
   0x8   :  { %s2507_s16 = smov 0   ;;  %s2509_s17 = smov 0  }
   0x9   :  { %s2511_s18 = smov 0   ;;  %s2513_s19 = smov 0  }
   0xa   :  { %s2515_s20 = smov 0   ;;  %s2517_s2 = smov 0  }
   0xb LB: > { %s1892_s21 = sadd.s32 4294967295, %s2462_s2   ;;  %s1893_s22 = sadd.s32 4294967294, %s2462_s2   ;;  %s2462_s2 = sphi %s2517_s2, %s22_s2   ;;  %s2458_s20 = sphi %s2515_s20, %s3589_s20   ;;  %s2454_s19 = sphi %s2513_s19, %s3588_s19   ;;  %s2450_s18 = sphi %s2511_s18, %s3587_s18   ;;  %s2446_s17 = sphi %s2509_s17, %s3586_s17   ;;  %s2442_s16 = sphi %s2507_s16, %s3585_s16   ;;  %s2438_s15 = sphi %s2505_s15, %s3584_s15   ;;  %s2434_s14 = sphi %s2503_s14, %s3583_s14  }
   0xc   : > { %p56_p0 = scmp.ne.s32.totalorder %s2438_s15, %s2434_s14  ;;  %p2547_p1 = scmp.eq.s32.totalorder %s1892_s21, 0 }
   0xd   : > { %p2551_p2 = scmp.eq.s32.totalorder %s1892_s21, 3  ;;  %p130_p3 = scmp.eq.s32.totalorder %s1893_s22, 3 }
   0xe   : > { %s3563_s23 = scalar_select %p2547_p1, 1, 0 }
   0xf   : > { %s3564_s24 = scalar_select %p2551_p2, 1, 0 }
  0x10   : > { %p2557_p4 = por %p2547_p1, %p56_p0  ;;  %p1894_p5 = scmp.ge.s32.totalorder %s2462_s2, 1 }
  0x11   : > { %p2562_p6 = por %p130_p3, %p56_p0  ;;  %p137_p7 = scmp.lt.s32.totalorder %s2462_s2, 5 }
  0x12   : > { %s3565_s25 = scalar_select %p2557_p4, 1, 0 }
  0x13   : > { %s3566_s26 = scalar_select %p2562_p6, 1, 0 }
  0x14   : > { %p2567_p8 = pnand %p1894_p5, %p137_p7  ;;  %s2464_s28 = smov [#allocation7]  }
  0x15   : > { %s149_s29 = sshll.u32 %s2464_s28, 4  ;;  %s3569_s1 = sld [smem:[#allocation15_spill]]  ;;  %s150_s29 = int_to_ptr.vmem [resolvable:$true] %s149_s29 }
  0x16   : > { %s3567_s27 = scalar_select %p2567_p8, 1, 0 }
  0x17   : > { %p2116_p9 = pneg %p2567_p8 }
  0x19   : > { %p2575_p10 = pnand %p2116_p9, %p2547_p1 }
  0x1b   : > { %s2302_s6 = scalar_lea.hbm %s3569_s1, 320  ;;  %p2304_p12 = pneg %p2575_p10 }
  0x1c   : > { %p2303_p11 = scmp.ne.s32.totalorder %s3569_s1, %s2302_s6  ;;  %p2309_p3 = scmp.lt.u32.totalorder %s2302_s6, %s3569_s1 }
  0x1e   : > { %p2305_p13 = pnand %p2304_p12, %p2303_p11 }
  0x20   : > { %p2306_p0 = pneg %p2305_p13 }
  0x22   : > { %p2311_p5 = pnand %p2309_p3, %p2306_p0 }
  0x24   : > { %2314 = shalt.err (!%p2311_p5)
}
  0x25   : > { %s2315_s11 = scalar_lea.vmem %s150_s29, 320  ;;  %p2323_p1 = scmp.lt.s32.totalorder %s150_s29, %s150_s29 }
  0x26   : > { %p2316_p7 = scmp.ne.s32.totalorder %s150_s29, %s2315_s11  ;;  %p2324_p4 = scmp.lt.s32.totalorder %s2315_s11, %s2315_s11 }
  0x28   : > { %p2318_p9 = pnand %p2316_p7, %p2304_p12  ;;  %p2325_p8 = por %p2324_p4, %p2323_p1 }
  0x2a   : > { %p2319_p6 = pneg %p2318_p9 }
  0x2c   : > { %p2326_p2 = pnand %p2325_p8, %p2319_p6 }
  0x2e   : > { %2329 = shalt.err (!%p2326_p2)
}
  0x2f   : > { %s3558_s12 = smov 64   ;;  %s3559_s13 = smov 4  }
  0x30   : > { %2119 = dma.hbm_to_vmem [thread:$0]  (!%p2575_p10), %s3569_s1, 320, %s150_s29, [#allocation8], %s3558_s12, %s3558_s12, %s3559_s13  }
  0x31   : > { %s31_s28 = sadd.s32 1, %s2454_s19  ;;  %s34_s4 = sadd.s32 1, %s2458_s20 }
  0x32   : > { %p32_p1 = scmp.ge.s32.totalorder %s31_s28, 2  ;;  %s43_s5 = sadd.s32 1, %s2442_s16 }
  0x33   : > { %p50_p2 = scmp.ne.s32.totalorder %s2442_s16, %s2438_s15  ;;  %p51_p4 = scmp.eq.s32.totalorder %s2462_s2, 0 }
  0x34   : > { %s3591_s28 = smov (%p32_p1, %s31_s28), 0  ;;  %s3593_s4 = smov (!%p32_p1, %s34_s4), %s2458_s20 }
  0x35   : > { %3570 = sst [smem:[#allocation13_spill]] %s3591_s28  ;;  %s39_s30 = ssub.s32 %s2454_s19, %s3591_s28 }
  0x36   : > { %p36_p6 = scmp.ge.s32.totalorder %s3593_s4, 2  ;;  %p3571_p8 = scmp.ne.s32.totalorder %s3564_s24, 0 }
  0x37   : > { %p52_p10 = por %p51_p4, %p50_p2  ;;  %p2129_p12 = scmp.lt.s32.totalorder %s2462_s2, 4 }
  0x38   : > { %p2611_p11 = por %p3571_p8, %p50_p2  ;;  %s3595_s4 = smov (%p36_p6, %s3593_s4), 0 }
  0x39   : > { %3573 = sst [smem:[#allocation14_spill]] %s3595_s4  ;;  %s166_s29 = sand.u32 1, %s2442_s16  }
  0x3a   : > { %s2102_s7 = smul.u32 23, %s2454_s19  ;;  %s38_s8 = ssub.s32 %s2458_s20, %s3595_s4 }
  0x3b   : > { %s40_s9 = sor.u32 %s39_s30, %s38_s8  ;;  %s2101_s10 = smul.u32 92, %s166_s29 }
  0x3c   : > { %p41_p13 = scmp.eq.s32.totalorder %s40_s9, 0  ;;  %s2103_s11 = smul.u32 46, %s2458_s20 }
  0x3d   : > { %p2623_p0 = pnand %p2129_p12, %p52_p10  ;;  %s170_s12 = scalar_lea.vmem [#allocation4], %s2101_s10 }
  0x3e   : > { %s2628_s24 = scalar_select %p41_p13, %s2442_s16, %s43_s5  }
  0x3f   : > { %s176_s22 = sadd.s32 %s2103_s11, %s2102_s7  ;;  %s179_s13 = sshll.u32 %s170_s12, 4  ;;  %s2630_s13 = int_to_ptr.vmem [resolvable:$true] %s179_s13 }
  0x40   : > { %s1897_s1 = sshll.u32 %s176_s22, 6  ;;  %s2637_s8 = scalar_lea.sflag [#allocation5], %s166_s29 }
  0x41   : > { %s2635_s30 = scalar_lea.hbm %s3550_s0, %s1897_s1  ;;  %p2332_p5 = pneg %p2623_p0 }
  0x42   : > { %s2330_s9 = scalar_lea.hbm %s2635_s30, 1472  ;;  %s2335_s28 = scalar_lea.hbm %s3550_s0, 5888 }
  0x43   : > { %p2331_p3 = scmp.ne.s32.totalorder %s2635_s30, %s2330_s9  ;;  %p2336_p1 = scmp.lt.u32.totalorder %s2635_s30, %s3550_s0 }
  0x44   : > { %p2337_p2 = scmp.lt.u32.totalorder %s2335_s28, %s2330_s9  ;;  %p2339_p6 = scmp.lt.u32.totalorder %s2330_s9, %s2635_s30 }
  0x45   : > { %p2333_p7 = pnand %p2332_p5, %p2331_p3 }
  0x46   : > { %p2338_p4 = por %p2337_p2, %p2336_p1 }
  0x47   : > { %p2334_p9 = pneg %p2333_p7 }
  0x48   : > { %p2340_p8 = por %p2339_p6, %p2338_p4 }
  0x4a   : > { %p2341_p10 = pnand %p2340_p8, %p2334_p9 }
  0x4c   : > { %2344 = shalt.err (!%p2341_p10)
}
  0x4d   : > { %s2345_s29 = scalar_lea.vmem %s2630_s13, 1472  ;;  %s2467_s7 = smov [#allocation4]  }
  0x4e   : > { %p2346_p12 = scmp.ne.s32.totalorder %s2630_s13, %s2345_s29  ;;  %s2350_s10 = sshll.u32 %s2467_s7, 4  ;;  %s2351_s10 = int_to_ptr.vmem [resolvable:$false] %s2350_s10 }
  0x4f   : > { %s2352_s11 = scalar_lea.vmem %s2351_s10, 2944  ;;  %p2353_p7 = scmp.lt.s32.totalorder %s2630_s13, %s2351_s10 }
  0x50   : > { %p2348_p13 = pnand %p2346_p12, %p2332_p5  ;;  %p2354_p1 = scmp.lt.s32.totalorder %s2352_s11, %s2345_s29 }
  0x52   : > { %p2349_p3 = pneg %p2348_p13  ;;  %p2355_p2 = por %p2354_p1, %p2353_p7 }
  0x54   : > { %p2356_p4 = pnand %p2355_p2, %p2349_p3 }
  0x56   : > { %2359 = shalt.err (!%p2356_p4)
}
  0x57   : > { %s3575_s22 = smov 4   ;;  %s3576_s9 = smov 64  }
  0x58   : > { %2123 = dma.hbm_to_vmem [thread:$0]  (!%p2623_p0), %s2635_s30, 1472, %s2630_s13, %s2637_s8, %s3576_s9, %s3576_s9, %s3575_s22  }
  0x59   : > { %p3577_p5 = scmp.ne.s32.totalorder %s3567_s27, 0 }
  0x5a   : > { %s2671_s12 = sand.u32 (!%p3577_p5), 1, %s2438_s15   ;;  %p3578_p9 = scmp.ne.s32.totalorder (!%p3577_p5), %s3565_s25, 0 }
  0x5b   : > { %191 = sbr.rel (%p3577_p5) target bundleno = 606 (0x25e), region = 32  ;;  %s194_s28 = scalar_lea.sflag (!%p3577_p5), [#allocation5], %s2671_s12 }
  0x5c   : > { %s2104_s5 = smul.u32 (!%p3577_p5), 92, %s2671_s12 }
  0x5e   : > { %s2675_s1 = scalar_lea.vmem (!%p3577_p5), [#allocation4], %s2104_s5 }
  0x62   : > { %2421 = dma.done.wait (%p3578_p9), %s194_s28, 1472  }
  0x63   : > { %2423 = vsyncadd (%p3578_p9), %s194_s28, 4294965824  ;;  %p3579_p0 = scmp.ne.s32.totalorder %s3563_s23, 0 }
  0x65   : > { %2425 = dma.done.wait (%p3579_p0), [#allocation8], 320  }
  0x66   : > { %2427 = vsyncadd (%p3579_p0), [#allocation8], 4294966976  ;;  %vm555_vm0 = vcmask 1046528   ;;  %vm996_vm1 = vcmask 1045504   ;;  %v2210_v1 = vld [vmem:[%s2675_s1 + $0x8] sm:$0xfe]  }
  0x67   : > { %v2687_v2 = vld [vmem:[%s2675_s1 + $0x10] sm:$0xff]   ;;  %v679_v3 = vrot.slane %v2210_v1, 1  ;;  %v2212_v5 = vld [vmem:[%s2675_s1] sm:$0xfe]   ;;  %vm1437_vm2 = vcmask 1044480   ;;  %v2692_v6 = vld [vmem:[%s2675_s1 + $0x8] sm:$0xff]  }
  0x68   : > { %v680_v4 = vrot.slane %v2687_v2, 1  ;;  %v556_v8 = vrot.slane %v2212_v5, 1  ;;  %v2698_v9 = vld [vmem:[%s2675_s1 + $0x18] sm:$0xff]   ;;  %s2468_s23 = smov 12   ;;  %v557_v10 = vrot.slane %v2692_v6, 1  ;;  %v2704_v12 = vld [vmem:[%s2675_s1 + $0x10] sm:$0xff]  }
  0x69   : > { %v2214_v11 = vld [vmem:[%s2675_s1 + $0x10] sm:$0xfc]   ;;  %v1121_v13 = vrot.slane %v2698_v9, 2  ;;  %v2708_v14 = vld [vmem:[%s2675_s1 + $0x18] sm:$0xff]   ;;  %v2216_v17 = vld [vmem:[%s2675_s1 + $0x8] sm:$0xfc]  }
  0x6a   : > { %v681_v7 = vsel %vm555_vm0, %v679_v3, %v680_v4  ;;  %v558_v15 = vsel %vm555_vm0, %v556_v8, %v557_v10  ;;  %v1120_v16 = vrot.slane %v2214_v11, 2  ;;  %v998_v18 = vrot.slane %v2704_v12, 2  ;;  %s2469_s25 = smov 8   ;;  %v2218_v21 = vld [vmem:[%s2675_s1 + $0x10] sm:$0xf8]   ;;  %s2470_s27 = smov 24  }
  0x6b   : > { %698 = vrot.lane.b32.xlu1 %v681_v7, %s2468_s23  ;;  %575 = vrot.lane.b32.xlu0 %v558_v15, %s2469_s25  ;;  %vm374_vm3 = vsmask.f32 7424  ;;  %v997_v20 = vrot.slane %v2216_v17, 2  ;;  %v1439_v22 = vrot.slane %v2708_v14, 3  ;;  %v1438_v24 = vrot.slane %v2218_v21, 3  ;;  %v2220_v25 = vld [vmem:[%s2675_s1] sm:$0xff]  }
  0x6c   : > { %v1122_v19 = vsel %vm996_vm1, %v1120_v16, %v1121_v13  ;;  %v2221_v26 = vld [vmem:[%s2675_s1 + $0x8] sm:$0xff]   ;;  %vm802_vm4 = vsmask.f32 6400  ;;  %s2471_s13 = smov 20   ;;  %v376_v28 = vshrl.u32 %v2220_v25, 16  ;;  %v378_v29 = vshll.u32 %v2220_v25, 16 }
  0x6d   : > { %v999_v23 = vsel %vm996_vm1, %v997_v20, %v998_v18  ;;  %v1440_v27 = vsel %vm1437_vm2, %v1438_v24, %v1439_v22  ;;  %v383_v30 = vshll.u32 %v2221_v26, 16  ;;  %v2223_v31 = vld [vmem:[%s2675_s1 + $0x10] sm:$0xff]   ;;  %s2472_s21 = smov 32   ;;  %v2222_v32 = vld [vmem:[%s2675_s1 + $0x8] sm:$0xfe]   ;;  %v2225_v43 = vld [vmem:[%s2675_s1 + $0x18] sm:$0xff]  }
  0x6e   : > { %vm1243_vm5 = vsmask.f32 5376  ;;  %v380_v33 = vrot.slane %v378_v29, 1  ;;  %v812_v35 = vshrl.u32 %v2223_v31, 16  ;;  %v815_v36 = vshll.u32 %v2223_v31, 16  ;;  %v2226_v44 = vld [vmem:[%s2675_s1 + $0x28] sm:$0xff]  }
  0x6f   : > { %1139 = vrot.lane.b32.xlu1 %v1122_v19, %s2470_s27  ;;  %1016 = vrot.lane.b32.xlu0 %v999_v23, %s2471_s13  ;;  %v385_v34 = vrot.slane %v383_v30, 1  ;;  %v804_v37 = vshrl.u32 %v2222_v32, 16  ;;  %v807_v38 = vshll.u32 %v2222_v32, 16  ;;  %v2224_v39 = vld [vmem:[%s2675_s1 + $0x10] sm:$0xfc]   ;;  %v1253_v51 = vshrl.u32 %v2225_v43, 16 }
  0x70   : > { %v381_v40 = vor.u32 %v380_v33, %v376_v28  ;;  %v814_v41 = vrot.slane %v812_v35, 1  ;;  %v817_v42 = vrot.slane %v815_v36, 2  ;;  %v1245_v47 = vshrl.u32 %v2224_v39, 16  ;;  %s2473_s30 = smov 4   ;;  %v2742_v56 = vld [vmem:[%s2675_s1 + $0x30] sm:$0xff]   ;;  %s2474_s8 = smov 16  }
  0x71   : > { %v806_v45 = vrot.slane %v804_v37, 1  ;;  %v809_v46 = vrot.slane %v807_v38, 2  ;;  %v1248_v48 = vshll.u32 %v2224_v39, 16  ;;  %v1256_v52 = vshll.u32 %v2225_v43, 16  ;;  %v2745_v61 = vld [vmem:[%s2675_s1 + $0x10] sm:$0xff]   ;;  %v2760_v15 = vld [vmem:[%s2675_s1 + $0x28] sm:$0xff]  }
  0x72   : > { %v386_v49 = vsel %vm374_vm3, %v381_v40, %v385_v34  ;;  %v2738_v50 = vor.u32 %v817_v42, %v814_v41  ;;  %v1247_v54 = vrot.slane %v1245_v47, 2  ;;  %v415_v57 = vshll.u32 %v2226_v44, 16  ;;  %v2763_v16 = vld [vmem:[%s2675_s1 + $0x30] sm:$0xff]   ;;  %s2475_s4 = smov 28   ;;  %v2785_v29 = vld [vmem:[%s2675_s1 + $0x38] sm:$0xff]   ;;  %s2105_s29 = smul.u32 72, %s2671_s12 }
  0x73   : > { %1457 = vrot.lane.b32.xlu1 %v1440_v27, %s2472_s21  ;;  %451 = vrot.lane.b32.xlu0 %v386_v49, %s2473_s30  ;;  %v810_v53 = vor.u32 %v809_v46, %v806_v45  ;;  %v1250_v55 = vrot.slane %v1248_v48, 3  ;;  %v1255_v58 = vrot.slane %v1253_v51, 2  ;;  %v1258_v59 = vrot.slane %v1256_v52, 3  ;;  %v2770_v21 = vld [vmem:[%s2675_s1 + $0x10] sm:$0xff]   ;;  %v2793_v31 = vld [vmem:[%s2675_s1 + $0x18] sm:$0xff]   ;;  %s2106_s10 = smul.u32 18, %s2446_s17 }
  0x74   : > { %v419_v60 = vshrl.u32 %v2226_v44, 16  ;;  %v2749_v0 = vrot.slane %v415_v57, 1  ;;  %v423_v1 = vshll.u32 %v2742_v56, 16  ;;  %v387_v5 = vshrl.u32 %v2221_v26, 16  ;;  %v2782_v28 = vld [vmem:[%s2675_s1 + $0x30] sm:$0xff]   ;;  %v2236_v37 = vld [vmem:[%s2675_s1 + $0x38] sm:$0xff]  }
  0x75   : > { %v819_v62 = vsel %vm802_vm4, %v810_v53, %v2738_v50  ;;  %v1251_v63 = vor.u32 %v1250_v55, %v1247_v54  ;;  %v2753_v3 = vor.u32 %v1258_v59, %v1255_v58  ;;  %v391_v7 = vshll.u32 %v2745_v61, 16  ;;  %v2237_v41 = vld [vmem:[%s2675_s1 + $0x18] sm:$0xff]   ;;  %v2814_v42 = vld [vmem:[%s2675_s1 + $0x30] sm:$0xff]   ;;  %v2839_v59 = vld [vmem:[%s2675_s1 + $0x40] sm:$0xff]   ;;  %s3433_s7 = scalar_lea.vmem [#allocation9], %s2105_s29  ;;  %s2107_s11 = smul.u32 36, %s2450_s18 }
  0x76   : > { %v421_v8 = vor.u32 %v419_v60, %v2749_v0  ;;  %v2757_v11 = vrot.slane %v423_v1, 1  ;;  %v389_v19 = vor.u32 %v387_v5, %v385_v34  ;;  %v565_v24 = vrot.slane %v2760_v15, 1  ;;  %v2235_v34 = vld [vmem:[%s2675_s1 + $0x30] sm:$0xff]   ;;  %v2824_v51 = vld [vmem:[%s2675_s1 + $0x38] sm:$0xff]   ;;  %v2849_v1 = vld [vmem:[%s2675_s1 + $0x20] sm:$0xff]   ;;  %s1792_s18 = sshll.u32 %s3433_s7, 4  ;;  %s3493_s18 = int_to_ptr.vmem [resolvable:$true] %s1792_s18 }
  0x77   : > { %892 = vrot.lane.b32.xlu1 %v819_v62, %s2474_s8  ;;  %v1260_v17 = vsel %vm1243_vm5, %v1251_v63, %v2753_v3  ;;  %v2767_v20 = vrot.slane %v391_v7, 1  ;;  %v567_v25 = vrot.slane %v2763_v16, 1  ;;  %v559_v27 = vrot.slane %v2770_v21, 1  ;;  %v2830_v57 = vld [vmem:[%s2675_s1 + $0x18] sm:$0xff]   ;;  %v2262_v16 = vld [vmem:[%s2675_s1 + $0x48] sm:$0xff]   ;;  %s1789_s22 = sadd.s32 %s2107_s11, %s2106_s10 }
  0x78   : > { %1333 = vrot.lane.b32.xlu0 %v1260_v17, %s2475_s4  ;;  %v426_v23 = vsel %vm374_vm3, %v421_v8, %v2757_v11  ;;  %v688_v32 = vrot.slane %v2782_v28, 1  ;;  %v690_v33 = vrot.slane %v2785_v29, 1  ;;  %v682_v36 = vrot.slane %v2793_v31, 1  ;;  %v2833_v58 = vld [vmem:[%s2675_s1 + $0x38] sm:$0xff]   ;;  %s2020_s17 = sshll.u32 %s1789_s22, 6 }
  0x79   : > { %v394_v26 = vsel %vm374_vm3, %v389_v19, %v2767_v20  ;;  %v568_v30 = vsel %vm555_vm0, %v565_v24, %v567_v25  ;;  %v560_v35 = vsel %vm555_vm0, %v557_v10, %v559_v27  ;;  %v848_v39 = vshrl.u32 %v2235_v34, 16  ;;  %v2244_v19 = vld [vmem:[%s2675_s1 + $0x38] sm:$0xff]   ;;  %s3487_s28 = scalar_lea.hbm %s3553_s3, %s2020_s17 }
  0x7a   : > { %v691_v38 = vsel %vm555_vm0, %v688_v32, %v690_v33  ;;  %v851_v40 = vshll.u32 %v2235_v34, 16  ;;  %v857_v43 = vshrl.u32 %v2236_v37, 16  ;;  %v860_v6 = vshll.u32 %v2236_v37, 16 }
  0x7b   : > { %461 = vrot.lane.b32.xlu1 %v426_v23, %s2473_s30  ;;  %v850_v10 = vrot.slane %v848_v39, 1  ;;  %v821_v45 = vshrl.u32 %v2237_v41, 16  ;;  %v824_v46 = vshll.u32 %v2237_v41, 16  ;;  %v683_v47 = vsel %vm555_vm0, %v680_v4, %v682_v36  ;;  %v2245_v23 = vld [vmem:[%s2675_s1 + $0x40] sm:$0xff]   ;;  %v2874_v41 = vld [vmem:[%s2675_s1 + $0x38] sm:$0xff]  }
  0x7c   : > { %453 = vrot.lane.b32.xlu0 %v394_v26, %s2473_s30  ;;  %v853_v44 = vrot.slane %v851_v40, 2  ;;  %v859_v48 = vrot.slane %v857_v43, 1  ;;  %v862_v49 = vrot.slane %v860_v6, 2  ;;  %v1006_v52 = vrot.slane %v2814_v42, 2  ;;  %v2246_v26 = vld [vmem:[%s2675_s1 + $0x20] sm:$0xff]  }
  0x7d   : > { %v823_v54 = vrot.slane %v821_v45, 1  ;;  %v826_v55 = vrot.slane %v824_v46, 2  ;;  %v1008_v4 = vrot.slane %v2824_v51, 2  ;;  %v1000_v62 = vrot.slane %v2830_v57, 2  ;;  %v3033_v51 = vld [vmem:[%s2675_s1 + $0x28] sm:$0xff]  }
  0x7e   : > { %v2827_v53 = vor.u32 %v853_v44, %v850_v10  ;;  %v2835_v2 = vor.u32 %v862_v49, %v859_v48  ;;  %v1129_v8 = vrot.slane %v2833_v58, 2  ;;  %v1131_v17 = vrot.slane %v2839_v59, 2  ;;  %v2882_v10 = vld [vmem:[%s2675_s1 + $0x40] sm:$0xff]  }
  0x7f   : > { %585 = vrot.lane.b32.xlu1 %v568_v30, %s2469_s25  ;;  %v2842_v60 = vor.u32 %v826_v55, %v823_v54  ;;  %v1009_v7 = vsel %vm996_vm1, %v1006_v52, %v1008_v4  ;;  %v1123_v30 = vrot.slane %v2849_v1, 2  ;;  %v1289_v34 = vshrl.u32 %v2244_v19, 16  ;;  %v2893_v49 = vld [vmem:[%s2675_s1 + $0x20] sm:$0xff]  }
  0x80   : > { %577 = vrot.lane.b32.xlu0 %v560_v35, %s2469_s25  ;;  %v864_v63 = vsel %vm802_vm4, %v2827_v53, %v2835_v2  ;;  %v1292_v35 = vshll.u32 %v2244_v19, 16  ;;  %v1298_v37 = vshrl.u32 %v2245_v23, 16  ;;  %v1262_v39 = vshrl.u32 %v2246_v26, 16  ;;  %v3055_v59 = vld [vmem:[%s2675_s1 + $0x20] sm:$0xff]  }
  0x81   : > { %v828_v5 = vsel %vm802_vm4, %v2738_v50, %v2842_v60  ;;  %v1001_v50 = vsel %vm996_vm1, %v998_v18, %v1000_v62  ;;  %v1265_v40 = vshll.u32 %v2246_v26, 16  ;;  %v1132_v12 = vsel %vm996_vm1, %v1129_v8, %v1131_v17 }
  0x82   : > { %v1291_v18 = vrot.slane %v1289_v34, 2  ;;  %v1294_v43 = vrot.slane %v1292_v35, 3  ;;  %v1300_v6 = vrot.slane %v1298_v37, 2  ;;  %v1264_v45 = vrot.slane %v1262_v39, 2  ;;  %v2937_v39 = vld [vmem:[%s2675_s1 + $0x40] sm:$0xff]  }
  0x83   : > { %708 = vrot.lane.b32.xlu1 %v691_v38, %s2468_s23  ;;  %v1301_v38 = vshll.u32 %v2245_v23, 16  ;;  %v1267_v46 = vrot.slane %v1265_v40, 3  ;;  %v427_v54 = vshrl.u32 %v2742_v56, 16  ;;  %v1449_v9 = vrot.slane %v2882_v10, 3 }
  0x84   : > { %700 = vrot.lane.b32.xlu0 %v683_v47, %s2468_s23  ;;  %v1124_v47 = vsel %vm996_vm1, %v1121_v13, %v1123_v30  ;;  %v2890_v48 = vor.u32 %v1294_v43, %v1291_v18  ;;  %v2907_v13 = vld [vmem:[%s2675_s1 + $0x18] sm:$0xff]   ;;  %v395_v23 = vshrl.u32 %v2745_v61, 16  ;;  %v1441_v26 = vrot.slane %v2893_v49, 3  ;;  %v2257_v43 = vld [vmem:[%s2675_s1 + $0x20] sm:$0xff]  }
  0x85   : > { %v1303_v44 = vrot.slane %v1301_v38, 3  ;;  %v399_v34 = vshll.u32 %v2907_v13, 16  ;;  %v429_v61 = vor.u32 %v427_v54, %v2757_v11  ;;  %v2930_v38 = vld [vmem:[%s2675_s1 + $0x38] sm:$0xff]   ;;  %v2256_v11 = vld [vmem:[%s2675_s1 + $0x40] sm:$0xff]   ;;  %vm297_vm6 = vcmask 31744  }
  0x86   : > { %v1442_v40 = vsel %vm1437_vm2, %v1439_v22, %v1441_v26  ;;  %v869_v14 = vshll.u32 %v2256_v11, 16  ;;  %v830_v22 = vshrl.u32 %v2257_v43, 16  ;;  %vm1558_vm7 = vcmask 1041408  }
  0x87   : > { %902 = vrot.lane.b32.xlu1 %v864_v63, %s2474_s8  ;;  %v2897_v55 = vor.u32 %v1303_v44, %v1300_v6  ;;  %v2899_v63 = vor.u32 %v1267_v46, %v1264_v45  ;;  %v2945_v18 = vrot.slane %v399_v34, 1  ;;  %v569_v44 = vrot.slane %v2930_v38, 1  ;;  %v2954_v45 = vld [vmem:[%s2675_s1 + $0x20] sm:$0xff]  }
  0x88   : > { %894 = vrot.lane.b32.xlu0 %v828_v5, %s2474_s8  ;;  %v1447_v5 = vrot.slane %v2874_v41, 3  ;;  %v866_v46 = vshrl.u32 %v2256_v11, 16  ;;  %v684_v34 = vrot.slane %v2954_v45, 1  ;;  %vm2477_vm8 = vmmov 0   ;;  %v2296_v45 = vld [vmem:[%s2675_s1 + $0x30] sm:$0xff]  }
  0x89   : > { %v1305_v56 = vsel %vm1243_vm5, %v2890_v48, %v2897_v55  ;;  %304 = vst.msk [vmem:[#allocation2 + $0x30] sm:$0xff] %vm297_vm6, %v2296_v45  ;;  %v3211_v45 = vld [vmem:[%s2675_s1 + $0x50] sm:$0xff]   ;;  %vm478_vm9 = vcmask 64544   ;;  %vm602_vm10 = vcmask 97344   ;;  %vm725_vm11 = vcmask 130144  }
  0x8a   : > { %v1450_v35 = vsel %vm1437_vm2, %v1447_v5, %v1449_v9  ;;  %v685_v21 = vsel %vm555_vm0, %v682_v36, %v684_v34  ;;  %v3009_v36 = vld [vmem:[%s2675_s1 + $0x28] sm:$0xff]   ;;  %vm919_vm12 = vcmask 162944   ;;  %vm1043_vm13 = vcmask 195744  }
  0x8b   : > { %1026 = vrot.lane.b32.xlu1 %v1009_v7, %s2471_s13  ;;  %v2903_v7 = vld [vmem:[%s2675_s1 + $0x38] sm:$0xff]   ;;  %vm1166_vm14 = vcmask 228544   ;;  %vm1360_vm15 = vcmask 261344  }
  0x8c   : > { %1018 = vrot.lane.b32.xlu0 %v1001_v50, %s2471_s13  ;;  %v431_v19 = vshll.u32 %v2903_v7, 16  ;;  %v1269_v50 = vsel %vm1243_vm5, %v2753_v3, %v2899_v63  ;;  %v2933_v3 = vld [vmem:[%s2675_s1 + $0x18] sm:$0xff]   ;;  %v435_v1 = vshrl.u32 %v2903_v7, 16 }
  0x8d   : > { %v561_v54 = vrot.slane %v2933_v3, 1 }
  0x8e   : > { %v2927_v37 = vrot.slane %v431_v19, 1  ;;  %v868_v19 = vrot.slane %v866_v46, 1  ;;  %v1307_v46 = vshrl.u32 %v2262_v16, 16 }
  0x8f   : > { %1149 = vrot.lane.b32.xlu1 %v1132_v12, %s2470_s27  ;;  %v397_v12 = vor.u32 %v395_v23, %v2767_v20  ;;  %v833_v20 = vshll.u32 %v2257_v43, 16  ;;  %v871_v23 = vrot.slane %v869_v14, 2  ;;  %v2988_v43 = vld [vmem:[%s2675_s1 + $0x20] sm:$0xff]   ;;  %v1310_v14 = vshll.u32 %v2262_v16, 16 }
  0x90   : > { %1141 = vrot.lane.b32.xlu0 %v1124_v47, %s2470_s27  ;;  %v434_v6 = vsel %vm374_vm3, %v429_v61, %v2927_v37  ;;  %v1002_v31 = vrot.slane %v2988_v43, 2  ;;  %v2300_v43 = vld [vmem:[%s2675_s1 + $0x40] sm:$0xff]  }
  0x91   : > { %v402_v47 = vsel %vm374_vm3, %v397_v12, %v2945_v18  ;;  %v835_v61 = vrot.slane %v833_v20, 2  ;;  %v562_v12 = vsel %vm555_vm0, %v559_v27, %v561_v54  ;;  %v2984_v11 = vor.u32 %v871_v23, %v868_v19  ;;  %306 = vst.msk [vmem:[#allocation2 + $0x40] sm:$0xff] %vm297_vm6, %v2300_v43 }
  0x93   : > { %1343 = vrot.lane.b32.xlu1 %v1305_v56, %s2475_s4  ;;  %v692_v56 = vrot.slane %v2937_v39, 1 }
  0x94   : > { %1335 = vrot.lane.b32.xlu0 %v1269_v50, %s2475_s4  ;;  %v570_v50 = vsel %vm555_vm0, %v567_v25, %v569_v44 }
  0x95   : > { %v693_v25 = vsel %vm555_vm0, %v690_v33, %v692_v56  ;;  %v3001_v33 = vld [vmem:[%s2675_s1 + $0x48] sm:$0xff]  }
  0x96   : > { %v1133_v23 = vrot.slane %v3001_v33, 2  ;;  %v3225_v33 = vld [vmem:[%s2675_s1 + $0x30] sm:$0xff]  }
  0x97   : > { %1467 = vrot.lane.b32.xlu1 %v1450_v35, %s2472_s21  ;;  %v832_v35 = vrot.slane %v830_v22, 1  ;;  %v873_v22 = vsel %vm802_vm4, %v2835_v2, %v2984_v11 }
  0x98   : > { %1459 = vrot.lane.b32.xlu0 %v1442_v40, %s2472_s21  ;;  %v2970_v40 = vld [vmem:[%s2675_s1 + $0x40] sm:$0xff]  }
  0x99   : > { %v2995_v27 = vor.u32 %v835_v61, %v832_v35  ;;  %v1010_v29 = vrot.slane %v2970_v40, 2  ;;  %v1312_v35 = vrot.slane %v1310_v14, 3  ;;  %v3024_v61 = vld [vmem:[%s2675_s1 + $0x48] sm:$0xff]   ;;  %v1443_v14 = vrot.slane %v3033_v51, 3 }
  0x9b   : > { %463 = vrot.lane.b32.xlu1 %v434_v6, %s2473_s30  ;;  %v2263_v6 = vld [vmem:[%s2675_s1 + $0x28] sm:$0xff]   ;;  %v837_v20 = vsel %vm802_vm4, %v2842_v60, %v2995_v27  ;;  %v1011_v2 = vsel %vm996_vm1, %v1008_v4, %v1010_v29  ;;  %v1125_v60 = vrot.slane %v3009_v36, 2  ;;  %v1134_v4 = vsel %vm996_vm1, %v1131_v17, %v1133_v23 }
  0x9c   : > { %455 = vrot.lane.b32.xlu0 %v402_v47, %s2473_s30  ;;  %v1271_v47 = vshrl.u32 %v2263_v6, 16  ;;  %v1274_v19 = vshll.u32 %v2263_v6, 16  ;;  %v3043_v6 = vld [vmem:[%s2675_s1 + $0x40] sm:$0xff]   ;;  %v1444_v10 = vsel %vm1437_vm2, %v1441_v26, %v1443_v14  ;;  %v1453_v36 = vrot.slane %v3211_v45, 3 }
  0x9d   : > { %v1126_v57 = vsel %vm996_vm1, %v1123_v30, %v1125_v60  ;;  %v439_v30 = vshll.u32 %v3043_v6, 16 }
  0x9e   : > { %v1273_v16 = vrot.slane %v1271_v47, 2  ;;  %v407_v47 = vshll.u32 %v3055_v59, 16 }
  0x9f   : > { %587 = vrot.lane.b32.xlu1 %v570_v50, %s2469_s25  ;;  %v1309_v50 = vrot.slane %v1307_v46, 2  ;;  %v1451_v46 = vrot.slane %v3024_v61, 3 }
  0xa0   : > { %579 = vrot.lane.b32.xlu0 %v562_v12, %s2469_s25  ;;  %v1003_v12 = vsel %vm996_vm1, %v1000_v62, %v1002_v31 }
  0xa1   : > { %v1452_v7 = vsel %vm1437_vm2, %v1449_v9, %v1451_v46  ;;  %v3095_v9 = vrot.slane %v407_v47, 1  ;;  %v2476_v47 = vmov 0.0  }
  0xa2   : > { %2053 = vmatprep.subr.bf16.mxu0 %v2476_v47  ;;  %2095 = vmatprep.subr.bf16.mxu1 %v2476_v47 }
  0xa3   : > { %710 = vrot.lane.b32.xlu1 %v693_v25, %s2468_s23  ;;  %v1276_v25 = vrot.slane %v1274_v19, 3  ;;  %v437_v19 = vor.u32 %v435_v1, %v2927_v37  ;;  %v2287_v1 = vld [vmem:[#allocation7] sm:$0xff]   ;;  %2059 = vmatprep.mubr.msk.bf16.mxu0 %vm2477_vm8, %v2476_v47 }
  0xa4   : > { %702 = vrot.lane.b32.xlu0 %v685_v21, %s2468_s23  ;;  %v3040_v21 = vor.u32 %v1312_v35, %v1309_v50  ;;  %v3086_v50 = vld [vmem:[%s2675_s1 + $0x20] sm:$0xff]   ;;  %v2273_v35 = vld [vmem:[%s2675_s1 + $0x28] sm:$0xff]   ;;  %2054 = vmatpush3.bf16.msra.mxu0 %v2287_v1 }
  0xa5   : > { %v3051_v62 = vor.u32 %v1276_v25, %v1273_v16  ;;  %v3101_v16 = vld [vmem:[%s2675_s1 + $0x48] sm:$0xff]   ;;  %2055 = vmatprep.subr.bf16.mxu0 %v2476_v47  ;;  %2098 = vmatpush3.bf16.msra.mxu1 %v2287_v1  ;;  %v2279_v1 = vld [vmem:[%s2675_s1 + $0x30] sm:$0xff]  }
  0xa6   : > { %v1314_v17 = vsel %vm1243_vm5, %v2897_v55, %v3040_v21  ;;  %v3072_v55 = vld [vmem:[%s2675_s1 + $0x40] sm:$0xff]   ;;  %v3104_v25 = vld [vmem:[%s2675_s1 + $0x28] sm:$0xff]   ;;  %2096 = vmatprep.subr.bf16.mxu1 %v2476_v47  ;;  %2079 = vmatprep.mubr.msk.bf16.mxu1 %vm2477_vm8, %v2476_v47 }
  0xa7   : > { %904 = vrot.lane.b32.xlu1 %v873_v22, %s2474_s8  ;;  %v1278_v22 = vsel %vm1243_vm5, %v2899_v63, %v3051_v62  ;;  %v3080_v63 = vrot.slane %v439_v30, 1  ;;  %v571_v37 = vrot.slane %v3072_v55, 1 }
  0xa8   : > { %896 = vrot.lane.b32.xlu0 %v837_v20, %s2474_s8  ;;  %v403_v20 = vshrl.u32 %v2907_v13, 16  ;;  %v2272_v13 = vld [vmem:[%s2675_s1 + $0x48] sm:$0xff]  }
  0xa9   : > { %v442_v49 = vsel %vm374_vm3, %v437_v19, %v3080_v63  ;;  %v878_v26 = vshll.u32 %v2272_v13, 16  ;;  %v686_v19 = vrot.slane %v3104_v25, 1 }
  0xab   : > { %1028 = vrot.lane.b32.xlu1 %v1011_v2, %s2471_s13  ;;  %v2285_v2 = vld [vmem:[%s2675_s1] sm:$0xff]   ;;  %v687_v39 = vsel %vm555_vm0, %v684_v34, %v686_v19  ;;  %v689_v15 = vsel %vm555_vm0, %v686_v19, %v688_v32 }
  0xac   : > { %1020 = vrot.lane.b32.xlu0 %v1003_v12, %s2471_s13  ;;  %v405_v12 = vor.u32 %v403_v20, %v2945_v18  ;;  %298 = vst.msk [vmem:[#allocation2] sm:$0xff] %vm297_vm6, %v2285_v2  ;;  %v563_v18 = vrot.slane %v3086_v50, 1  ;;  %v694_v20 = vrot.slane %v3101_v16, 1  ;;  %v880_v2 = vrot.slane %v878_v26, 2  ;;  %v3139_v26 = vld [vmem:[%s2675_s1 + $0x28] sm:$0xff]  }
  0xae   : > { %v410_v30 = vsel %vm374_vm3, %v405_v12, %v3095_v9  ;;  %v2278_v12 = vld [vmem:[%s2675_s1 + $0x50] sm:$0xff]   ;;  %v564_v38 = vsel %vm555_vm0, %v561_v54, %v563_v18  ;;  %v695_v3 = vsel %vm555_vm0, %v692_v56, %v694_v20 }
  0xaf   : > { %1151 = vrot.lane.b32.xlu1 %v1134_v4, %s2470_s27  ;;  %v875_v4 = vshrl.u32 %v2272_v13, 16 }
  0xb0   : > { %1143 = vrot.lane.b32.xlu0 %v1126_v57, %s2470_s27  ;;  %v839_v57 = vshrl.u32 %v2273_v35, 16 }
  0xb1   : > { %v877_v13 = vrot.slane %v875_v4, 1  ;;  %v3136_v4 = vld [vmem:[%s2675_s1 + $0x48] sm:$0xff]  }
  0xb3   : > { %1345 = vrot.lane.b32.xlu1 %v1314_v17, %s2475_s4  ;;  %v842_v17 = vshll.u32 %v2273_v35, 16  ;;  %v2290_v35 = vld [vmem:[%s2675_s1 + $0x8] sm:$0xff]   ;;  %v3147_v54 = vor.u32 %v880_v2, %v877_v13  ;;  %v1004_v13 = vrot.slane %v3139_v26, 2  ;;  %v1319_v2 = vshll.u32 %v2278_v12, 16 }
  0xb4   : > { %1337 = vrot.lane.b32.xlu0 %v1278_v22, %s2475_s4  ;;  %v2289_v22 = vld [vmem:[%s2675_s1 + $0x28] sm:$0xff]   ;;  %299 = vst.msk [vmem:[#allocation2 + $0x8] sm:$0xff] %vm297_vm6, %v2290_v35  ;;  %v3173_v35 = vld [vmem:[%s2675_s1 + $0x30] sm:$0xff]  }
  0xb5   : > { %303 = vst.msk [vmem:[#allocation2 + $0x28] sm:$0xff] %vm297_vm6, %v2289_v22  ;;  %v882_v34 = vsel %vm802_vm4, %v2984_v11, %v3147_v54 }
  0xb7   : > { %1469 = vrot.lane.b32.xlu1 %v1452_v7, %s2472_s21  ;;  %v572_v7 = vsel %vm555_vm0, %v569_v44, %v571_v37  ;;  %v844_v44 = vrot.slane %v842_v17, 2  ;;  %v3151_v17 = vld [vmem:[%s2675_s1 + $0x50] sm:$0xff]  }
  0xb8   : > { %1461 = vrot.lane.b32.xlu0 %v1444_v10, %s2472_s21  ;;  %v841_v10 = vrot.slane %v839_v57, 1  ;;  %v2293_v57 = vld [vmem:[#allocation7 + $0x10] ss:$0 sps:$4 sm:$0x33]  }
  0xb9   : > { %v1560_v22 = vsel %vm1558_vm7, %v2293_v57, 0  ;;  %v1321_v57 = vrot.slane %v1319_v2, 3 }
  0xba   : > { %v3160_v56 = vor.u32 %v844_v44, %v841_v10  ;;  %v1135_v10 = vrot.slane %v3151_v17, 2  ;;  %v2297_v44 = vld [vmem:[%s2675_s1 + $0x10] sm:$0xff]  }
  0xbb   : > { %465 = vrot.lane.b32.xlu1 %v442_v49, %s2473_s30  ;;  %v2291_v49 = vld [vmem:[#allocation7 + $0x8] sm:$0xff]   ;;  %300 = vst.msk [vmem:[#allocation2 + $0x10] sm:$0xff] %vm297_vm6, %v2297_v44  ;;  %v443_v44 = vshrl.u32 %v3043_v6, 16 }
  0xbc   : > { %457 = vrot.lane.b32.xlu0 %v410_v30, %s2473_s30  ;;  %2056 = vmatpush3.bf16.msra.mxu0 %v2291_v49  ;;  %v1316_v30 = vshrl.u32 %v2278_v12, 16  ;;  %v1280_v12 = vshrl.u32 %v2279_v1, 16  ;;  %v846_v11 = vsel %vm802_vm4, %v2995_v27, %v3160_v56  ;;  %v1005_v27 = vsel %vm996_vm1, %v1002_v31, %v1004_v13  ;;  %v2301_v31 = vld [vmem:[%s2675_s1 + $0x20] sm:$0xff]  }
  0xbd   : > { %2057 = vmatprep.subr.bf16.mxu0 %v2476_v47  ;;  %2099 = vmatpush3.bf16.msra.mxu1 %v2291_v49  ;;  %302 = vst.msk [vmem:[#allocation2 + $0x20] sm:$0xff] %vm297_vm6, %v2301_v31  ;;  %v445_v6 = vor.u32 %v443_v44, %v3080_v63  ;;  %v2294_v44 = vld [vmem:[%s2675_s1 + $0x58] ss:$0 sps:$4 sm:$0x77]   ;;  %v855_v28 = vsel %vm802_vm4, %v3160_v56, %v2827_v53 }
  0xbe   : > { %2097 = vmatprep.subr.bf16.mxu1 %v2476_v47  ;;  %v1318_v49 = vrot.slane %v1316_v30, 2  ;;  %v1127_v30 = vrot.slane %v3173_v35, 2  ;;  %v1007_v53 = vsel %vm996_vm1, %v1004_v13, %v1006_v52 }
  0xbf   : > { %589 = vrot.lane.b32.xlu1 %v572_v7, %s2469_s25  ;;  %v1012_v7 = vrot.slane %v3136_v4, 2 }
  0xc0   : > { %581 = vrot.lane.b32.xlu0 %v564_v38, %s2469_s25  ;;  %2058 = vmatpush3.bf16.msra.mxu0 %v1560_v22  ;;  %v1283_v38 = vshll.u32 %v2279_v1, 16  ;;  %v3208_v2 = vor.u32 %v1321_v57, %v1318_v49  ;;  %v1445_v49 = vrot.slane %v3225_v33, 3  ;;  %v2283_v57 = vld [vmem:[%s2675_s1 + $0x48] ss:$0 sps:$4 sm:$0x11]   ;;  %v1130_v42 = vsel %vm996_vm1, %v1127_v30, %v1129_v8 }
  0xc1   : > { %2100 = vmatpush3.bf16.msra.mxu1 %v1560_v22  ;;  %v1013_v1 = vsel %vm996_vm1, %v1010_v29, %v1012_v7  ;;  %v1282_v22 = vrot.slane %v1280_v12, 2  ;;  %v1136_v29 = vsel %vm996_vm1, %v1133_v23, %v1135_v10  ;;  %v1128_v12 = vsel %vm996_vm1, %v1125_v60, %v1127_v30 }
  0xc2   : > { %v1285_v40 = vrot.slane %v1283_v38, 3  ;;  %v1323_v23 = vsel %vm1243_vm5, %v3040_v21, %v3208_v2  ;;  %v1454_v21 = vsel %vm1437_vm2, %v1451_v46, %v1453_v36  ;;  %v573_v46 = vrot.slane %v2283_v57, 1 }
  0xc3   : > { %712 = vrot.lane.b32.xlu1 %v695_v3, %s2468_s23  ;;  %v2298_v3 = vld [vmem:[%s2675_s1 + $0x38] sm:$0xff]  }
  0xc4   : > { %704 = vrot.lane.b32.xlu0 %v687_v39, %s2468_s23  ;;  %v2299_v39 = vld [vmem:[%s2675_s1 + $0x18] sm:$0xff]   ;;  %305 = vst.msk [vmem:[#allocation2 + $0x38] sm:$0xff] %vm297_vm6, %v2298_v3  ;;  %v3222_v38 = vor.u32 %v1285_v40, %v1282_v22  ;;  %v411_v3 = vshrl.u32 %v3055_v59, 16  ;;  %v2284_v22 = vld [vmem:[%s2675_s1 + $0x50] ss:$0 sps:$4 sm:$0x11]  }
  0xc5   : > { %301 = vst.msk [vmem:[#allocation2 + $0x18] sm:$0xff] %vm297_vm6, %v2299_v39 }
  0xc6   : > { %v413_v59 = vor.u32 %v411_v3, %v3095_v9  ;;  %v1296_v58 = vsel %vm1243_vm5, %v3222_v38, %v2890_v48  ;;  %v1448_v48 = vsel %vm1437_vm2, %v1445_v49, %v1447_v5 }
  0xc7   : > { %906 = vrot.lane.b32.xlu1 %v882_v34, %s2474_s8  ;;  %v2282_v34 = vld [vmem:[%s2675_s1 + $0x48] ss:$0 sps:$4 sm:$0x11]  }
  0xc8   : > { %898 = vrot.lane.b32.xlu0 %v846_v11, %s2474_s8  ;;  %v447_v60 = vshll.u32 %v2282_v34, 16  ;;  %v1287_v11 = vsel %vm1243_vm5, %v3051_v62, %v3222_v38  ;;  %v1446_v62 = vsel %vm1437_vm2, %v1443_v14, %v1445_v49  ;;  %v418_v51 = vsel %vm374_vm3, %v413_v59, %v2749_v0 }
  0xc9   : > { %v574_v14 = vsel %vm555_vm0, %v571_v37, %v573_v46  ;;  %v696_v34 = vrot.slane %v2284_v22, 1 }
  0xca   : > { %v449_v39 = vrot.slane %v447_v60, 1  ;;  %v1328_v60 = vshll.u32 %v2294_v44, 16 }
  0xcb   : > { %1030 = vrot.lane.b32.xlu1 %v1013_v1, %s2471_s13  ;;  %v2286_v1 = vld [vmem:[%s2675_s1 + $0x50] ss:$0 sps:$4 sm:$0x33]   ;;  %v697_v55 = vsel %vm555_vm0, %v694_v20, %v696_v34  ;;  %v1325_v20 = vshrl.u32 %v2294_v44, 16 }
  0xcc   : > { %1022 = vrot.lane.b32.xlu0 %v1005_v27, %s2471_s13  ;;  %v450_v61 = vsel %vm374_vm3, %v445_v6, %v449_v39  ;;  %v884_v63 = vshrl.u32 %v2286_v1, 16  ;;  %v887_v40 = vshll.u32 %v2286_v1, 16  ;;  %v1330_v3 = vrot.slane %v1328_v60, 3 }
  0xcd   : > { %vm1530_vm3 = vcmask 293888  }
  0xce   : > { %v886_v43 = vrot.slane %v884_v63, 1  ;;  %v889_v31 = vrot.slane %v887_v40, 2 }
  0xcf   : > { %1153 = vrot.lane.b32.xlu1 %v1136_v29, %s2470_s27 }
  0xd0   : > { %1145 = vrot.lane.b32.xlu0 %v1128_v12, %s2470_s27  ;;  %v566_v12 = vsel %vm555_vm0, %v563_v18, %v565_v24  ;;  %v890_v37 = vor.u32 %v889_v31, %v886_v43  ;;  %v2292_v18 = vld [vmem:[%s2675_s1 + $0x58] ss:$0 sps:$4 sm:$0x33]   ;;  %vm1484_vm0 = vcmask 294144  }
  0xd1   : > { %v1137_v19 = vrot.slane %v2292_v18, 2 }
  0xd2   : > { %v891_v24 = vsel %vm802_vm4, %v3147_v54, %v890_v37  ;;  %v1327_v54 = vrot.slane %v1325_v20, 2 }
  0xd3   : > { %1347 = vrot.lane.b32.xlu1 %v1323_v23, %s2475_s4  ;;  %v2288_v23 = vld [vmem:[%s2675_s1 + $0x50] ss:$0 sps:$4 sm:$0x33]  }
  0xd4   : > { %1339 = vrot.lane.b32.xlu0 %v1287_v11, %s2475_s4  ;;  %v1014_v16 = vrot.slane %v2288_v23, 2  ;;  %v1331_v57 = vor.u32 %v1330_v3, %v1327_v54 }
  0xd6   : > { %v1015_v25 = vsel %vm996_vm1, %v1012_v7, %v1014_v16  ;;  %v1138_v7 = vsel %vm996_vm1, %v1135_v10, %v1137_v19  ;;  %v1332_v17 = vsel %vm1243_vm5, %v3208_v2, %v1331_v57  ;;  %vm1757_vm1 = vcmask 3072  }
  0xd7   : > { %1471 = vrot.lane.b32.xlu1 %v1454_v21, %s2472_s21  ;;  %v2295_v21 = vld [vmem:[%s2675_s1 + $0x58] ss:$0 sps:$4 sm:$0x77]   ;;  %s1777_s1 = scalar_lea.sflag [#allocation6], %s2671_s12 }
  0xd8   : > { %1463 = vrot.lane.b32.xlu0 %v1446_v62, %s2472_s21  ;;  %v1455_v13 = vrot.slane %v2295_v21, 3 }
  0xda   : > { %v1456_v30 = vsel %vm1437_vm2, %v1453_v36, %v1455_v13 }
  0xdb   : > { %467 = vrot.lane.b32.xlu1 %v450_v61, %s2473_s30 }
  0xdc   : > { %459 = vrot.lane.b32.xlu0 %v418_v51, %s2473_s30 }
  0xdd   : > { %v699_v27 = vpop.permute.xlu1 %698  ;;  %v576_v29 = vpop.permute.xlu0 %575 }
  0xdf   : > { %591 = vrot.lane.b32.xlu1 %v574_v14, %s2469_s25 }
  0xe0   : > { %583 = vrot.lane.b32.xlu0 %v566_v12, %s2469_s25  ;;  %s2478_s25 = smov [#allocation9]  }
  0xe1   : > { %v1140_v9 = vpop.permute.xlu1 %1139  ;;  %v1017_v0 = vpop.permute.xlu0 %1016 }
  0xe3   : > { %714 = vrot.lane.b32.xlu1 %v697_v55, %s2468_s23 }
  0xe4   : > { %706 = vrot.lane.b32.xlu0 %v689_v15, %s2468_s23  ;;  %s2360_s23 = scalar_lea.vmem %s3493_s18, 1152 }
  0xe5   : > { %v1458_v50 = vpop.permute.xlu1 %1457  ;;  %v452_v11 = vpop.permute.xlu0 %451  ;;  %p2361_p6 = scmp.ne.s32.totalorder %s3493_s18, %s2360_s23 }
  0xe6   : > { %479 = vst.msk [vmem:[#allocation2] sm:$0xff] %vm478_vm9, %v452_v11 }
  0xe7   : > { %603 = vst.msk [vmem:[#allocation2] sm:$0xff] %vm602_vm10, %v576_v29  ;;  %908 = vrot.lane.b32.xlu1 %v891_v24, %s2474_s8  ;;  %p2362_p8 = pnand %p2361_p6, %p2611_p11 }
  0xe8   : > { %726 = vst.msk [vmem:[#allocation2] sm:$0xff] %vm725_vm11, %v699_v27  ;;  %900 = vrot.lane.b32.xlu0 %v855_v28, %s2474_s8 }
  0xe9   : > { %v893_v32 = vpop.permute.xlu1 %892  ;;  %p2363_p10 = pneg %p2362_p8 }
  0xea   : > { %920 = vst.msk [vmem:[#allocation2] sm:$0xff] %vm919_vm12, %v893_v32  ;;  %v1334_v4 = vpop.permute.xlu0 %1333 }
  0xeb   : > { %1044 = vst.msk [vmem:[#allocation2] sm:$0xff] %vm1043_vm13, %v1017_v0  ;;  %1032 = vrot.lane.b32.xlu1 %v1015_v25, %s2471_s13 }
  0xec   : > { %1167 = vst.msk [vmem:[#allocation2] sm:$0xff] %vm1166_vm14, %v1140_v9  ;;  %1024 = vrot.lane.b32.xlu0 %v1007_v53, %s2471_s13 }
  0xed   : > { %1361 = vst.msk [vmem:[#allocation2] sm:$0xff] %vm1360_vm15, %v1334_v4  ;;  %v462_v56 = vpop.permute.xlu1 %461 }
  0xee   : > { %1485 = vst.msk [vmem:[#allocation2] sm:$0xff] %vm1484_vm0, %v1458_v50  ;;  %v454_v52 = vpop.permute.xlu0 %453 }
  0xef   : > { %484 = vst.msk [vmem:[#allocation2 + $0x28] sm:$0xff] %vm478_vm9, %v462_v56  ;;  %1155 = vrot.lane.b32.xlu1 %v1138_v7, %s2470_s27  ;;  %480 = vst.msk [vmem:[#allocation2 + $0x8] sm:$0xff] %vm478_vm9, %v454_v52 }
  0xf0   : > { %1147 = vrot.lane.b32.xlu0 %v1130_v42, %s2470_s27  ;;  %s2364_s27 = sshll.u32 %s2478_s25, 4  ;;  %s2365_s27 = int_to_ptr.vmem [resolvable:$false] %s2364_s27 }
  0xf1   : > { %v586_v26 = vpop.permute.xlu1 %585  ;;  %s2366_s13 = scalar_lea.vmem %s2365_s27, 2304  ;;  %p2367_p12 = scmp.lt.s32.totalorder %s3493_s18, %s2365_s27 }
  0xf2   : > { %608 = vst.msk [vmem:[#allocation2 + $0x28] sm:$0xff] %vm602_vm10, %v586_v26  ;;  %v578_v8 = vpop.permute.xlu0 %577  ;;  %p2368_p13 = scmp.lt.s32.totalorder %s2366_s13, %s2360_s23 }
  0xf3   : > { %1349 = vrot.lane.b32.xlu1 %v1332_v17, %s2475_s4  ;;  %604 = vst.msk [vmem:[#allocation2 + $0x8] sm:$0xff] %vm602_vm10, %v578_v8 }
  0xf4   : > { %1341 = vrot.lane.b32.xlu0 %v1296_v58, %s2475_s4  ;;  %p2369_p3 = por %p2368_p13, %p2367_p12 }
  0xf5   : > { %v709_v35 = vpop.permute.xlu1 %708  ;;  %v1494_v10 = vld [vmem:[#allocation2] sm:$0xff] }
  0xf6   : > { %731 = vst.msk [vmem:[#allocation2 + $0x28] sm:$0xff] %vm725_vm11, %v709_v35  ;;  %2060 = vmatmul.mubr.msk.bf16.vlgmr.msra.gmra.mrb[0].mxu0 %vm1530_vm3, %v1494_v10  ;;  %v701_v2 = vpop.permute.xlu0 %700  ;;  %p2370_p7 = pnand %p2369_p3, %p2363_p10 }
  0xf7   : > { %2063 = vmatprep.mubr.msk.bf16.mxu0 %vm2477_vm8, %v2476_v47  ;;  %1473 = vrot.lane.b32.xlu1 %v1456_v30, %s2472_s21  ;;  %727 = vst.msk [vmem:[#allocation2 + $0x8] sm:$0xff] %vm725_vm11, %v701_v2 }
  0xf8   : > { %1465 = vrot.lane.b32.xlu0 %v1448_v48, %s2472_s21 }
  0xf9   : > { %v903_v45 = vpop.permute.xlu1 %902 }
  0xfa   : > { %925 = vst.msk [vmem:[#allocation2 + $0x28] sm:$0xff] %vm919_vm12, %v903_v45  ;;  %v895_v38 = vpop.permute.xlu0 %894 }
  0xfb   : > { %921 = vst.msk [vmem:[#allocation2 + $0x8] sm:$0xff] %vm919_vm12, %v895_v38 }
  0xfd   : > { %v1027_v41 = vpop.permute.xlu1 %1026 }
  0xfe   : > { %1049 = vst.msk [vmem:[#allocation2 + $0x28] sm:$0xff] %vm1043_vm13, %v1027_v41  ;;  %v1019_v5 = vpop.permute.xlu0 %1018  ;;  %v3428_v41 = vld [vmem:[#allocation3] ss:$0 sm:$0xff] }
  0xff   : > { %1045 = vst.msk [vmem:[#allocation2 + $0x8] sm:$0xff] %vm1043_vm13, %v1019_v5 }
 0x101   : > { %v1150_v33 = vpop.permute.xlu1 %1149 }
 0x102   : > { %1172 = vst.msk [vmem:[#allocation2 + $0x28] sm:$0xff] %vm1166_vm14, %v1150_v33  ;;  %v1142_v36 = vpop.permute.xlu0 %1141 }
 0x103   : > { %1168 = vst.msk [vmem:[#allocation2 + $0x8] sm:$0xff] %vm1166_vm14, %v1142_v36 }
 0x105   : > { %v1344_v49 = vpop.permute.xlu1 %1343 }
 0x106   : > { %1366 = vst.msk [vmem:[#allocation2 + $0x28] sm:$0xff] %vm1360_vm15, %v1344_v49  ;;  %v1336_v6 = vpop.permute.xlu0 %1335 }
 0x107   : > { %1362 = vst.msk [vmem:[#allocation2 + $0x8] sm:$0xff] %vm1360_vm15, %v1336_v6 }
 0x109   : > { %v1468_v39 = vpop.permute.xlu1 %1467 }
 0x10a   : > { %1490 = vst.msk [vmem:[#allocation2 + $0x28] sm:$0xff] %vm1484_vm0, %v1468_v39  ;;  %v1460_v1 = vpop.permute.xlu0 %1459 }
 0x10b   : > { %1486 = vst.msk [vmem:[#allocation2 + $0x8] sm:$0xff] %vm1484_vm0, %v1460_v1 }
 0x10d   : > { %v464_v62 = vpop.permute.xlu1 %463 }
 0x10e   : > { %485 = vst.msk [vmem:[#allocation2 + $0x30] sm:$0xff] %vm478_vm9, %v464_v62  ;;  %v456_v59 = vpop.permute.xlu0 %455 }
 0x10f   : > { %481 = vst.msk [vmem:[#allocation2 + $0x10] sm:$0xff] %vm478_vm9, %v456_v59 }
 0x111   : > { %v588_v27 = vpop.permute.xlu1 %587  ;;  %v1499_v61 = vld [vmem:[#allocation2 + $0x28] sm:$0xff] }
 0x112   : > { %609 = vst.msk [vmem:[#allocation2 + $0x30] sm:$0xff] %vm602_vm10, %v588_v27  ;;  %2080 = vmatmul.mubr.msk.bf16.vlgmr.msra.gmra.mrb[0].mxu1 %vm1530_vm3, %v1499_v61  ;;  %v580_v46 = vpop.permute.xlu0 %579  ;;  %v1495_v22 = vld [vmem:[#allocation2 + $0x8] sm:$0xff] }
 0x113   : > { %2083 = vmatprep.mubr.msk.bf16.mxu1 %vm2477_vm8, %v2476_v47  ;;  %605 = vst.msk [vmem:[#allocation2 + $0x10] sm:$0xff] %vm602_vm10, %v580_v46  ;;  %2064 = vmatmul.mubr.msk.bf16.gmra.mrb[4].mxu0 %vm1530_vm3, %v1495_v22 }
 0x114   : > { %2067 = vmatprep.mubr.msk.bf16.mxu0 %vm2477_vm8, %v2476_v47 }
 0x115   : > { %v711_v63 = vpop.permute.xlu1 %710 }
 0x116   : > { %732 = vst.msk [vmem:[#allocation2 + $0x30] sm:$0xff] %vm725_vm11, %v711_v63  ;;  %v703_v40 = vpop.permute.xlu0 %702 }
 0x117   : > { %728 = vst.msk [vmem:[#allocation2 + $0x10] sm:$0xff] %vm725_vm11, %v703_v40 }
 0x119   : > { %v905_v29 = vpop.permute.xlu1 %904 }
 0x11a   : > { %926 = vst.msk [vmem:[#allocation2 + $0x30] sm:$0xff] %vm919_vm12, %v905_v29  ;;  %v897_v51 = vpop.permute.xlu0 %896 }
 0x11b   : > { %922 = vst.msk [vmem:[#allocation2 + $0x10] sm:$0xff] %vm919_vm12, %v897_v51 }
 0x11d   : > { %v1029_v14 = vpop.permute.xlu1 %1028 }
 0x11e   : > { %1050 = vst.msk [vmem:[#allocation2 + $0x30] sm:$0xff] %vm1043_vm13, %v1029_v14  ;;  %v1021_v9 = vpop.permute.xlu0 %1020 }
 0x11f   : > { %1046 = vst.msk [vmem:[#allocation2 + $0x10] sm:$0xff] %vm1043_vm13, %v1021_v9 }
 0x121   : > { %v1152_v34 = vpop.permute.xlu1 %1151 }
 0x122   : > { %1173 = vst.msk [vmem:[#allocation2 + $0x30] sm:$0xff] %vm1166_vm14, %v1152_v34  ;;  %v1144_v43 = vpop.permute.xlu0 %1143 }
 0x123   : > { %1169 = vst.msk [vmem:[#allocation2 + $0x10] sm:$0xff] %vm1166_vm14, %v1144_v43 }
 0x125   : > { %v1346_v31 = vpop.permute.xlu1 %1345 }
 0x126   : > { %1367 = vst.msk [vmem:[#allocation2 + $0x30] sm:$0xff] %vm1360_vm15, %v1346_v31  ;;  %v1338_v12 = vpop.permute.xlu0 %1337 }
 0x127   : > { %1363 = vst.msk [vmem:[#allocation2 + $0x10] sm:$0xff] %vm1360_vm15, %v1338_v12 }
 0x129   : > { %v1470_v0 = vpop.permute.xlu1 %1469 }
 0x12a   : > { %1491 = vst.msk [vmem:[#allocation2 + $0x30] sm:$0xff] %vm1484_vm0, %v1470_v0  ;;  %v1462_v55 = vpop.permute.xlu0 %1461 }
 0x12b   : > { %1487 = vst.msk [vmem:[#allocation2 + $0x10] sm:$0xff] %vm1484_vm0, %v1462_v55 }
 0x12d   : > { %v466_v37 = vpop.permute.xlu1 %465 }
 0x12e   : > { %486 = vst.msk [vmem:[#allocation2 + $0x38] sm:$0xff] %vm478_vm9, %v466_v37  ;;  %v458_v23 = vpop.permute.xlu0 %457 }
 0x12f   : > { %482 = vst.msk [vmem:[#allocation2 + $0x18] sm:$0xff] %vm478_vm9, %v458_v23 }
 0x131   : > { %v590_v44 = vpop.permute.xlu1 %589  ;;  %v1500_v15 = vld [vmem:[#allocation2 + $0x30] sm:$0xff] }
 0x132   : > { %610 = vst.msk [vmem:[#allocation2 + $0x38] sm:$0xff] %vm602_vm10, %v590_v44  ;;  %2084 = vmatmul.mubr.msk.bf16.gmra.mrb[4].mxu1 %vm1530_vm3, %v1500_v15  ;;  %v582_v50 = vpop.permute.xlu0 %581  ;;  %v1496_v24 = vld [vmem:[#allocation2 + $0x10] sm:$0xff] }
 0x133   : > { %2087 = vmatprep.mubr.msk.bf16.mxu1 %vm2477_vm8, %v2476_v47  ;;  %606 = vst.msk [vmem:[#allocation2 + $0x18] sm:$0xff] %vm602_vm10, %v582_v50  ;;  %2068 = vmatmul.mubr.msk.bf16.gmra.mrb[8].mxu0 %vm1530_vm3, %v1496_v24 }
 0x134   : > { %2071 = vmatprep.mubr.msk.bf16.mxu0 %vm2477_vm8, %v2476_v47 }
 0x135   : > { %v713_v16 = vpop.permute.xlu1 %712 }
 0x136   : > { %733 = vst.msk [vmem:[#allocation2 + $0x38] sm:$0xff] %vm725_vm11, %v713_v16  ;;  %v705_v18 = vpop.permute.xlu0 %704 }
 0x137   : > { %729 = vst.msk [vmem:[#allocation2 + $0x18] sm:$0xff] %vm725_vm11, %v705_v18 }
 0x139   : > { %v907_v20 = vpop.permute.xlu1 %906 }
 0x13a   : > { %927 = vst.msk [vmem:[#allocation2 + $0x38] sm:$0xff] %vm919_vm12, %v907_v20  ;;  %v899_v60 = vpop.permute.xlu0 %898 }
 0x13b   : > { %923 = vst.msk [vmem:[#allocation2 + $0x18] sm:$0xff] %vm919_vm12, %v899_v60 }
 0x13d   : > { %v1031_v11 = vpop.permute.xlu1 %1030 }
 0x13e   : > { %1051 = vst.msk [vmem:[#allocation2 + $0x38] sm:$0xff] %vm1043_vm13, %v1031_v11  ;;  %v1023_v28 = vpop.permute.xlu0 %1022 }
 0x13f   : > { %1047 = vst.msk [vmem:[#allocation2 + $0x18] sm:$0xff] %vm1043_vm13, %v1023_v28 }
 0x141   : > { %v1154_v32 = vpop.permute.xlu1 %1153 }
 0x142   : > { %1174 = vst.msk [vmem:[#allocation2 + $0x38] sm:$0xff] %vm1166_vm14, %v1154_v32  ;;  %v1146_v25 = vpop.permute.xlu0 %1145 }
 0x143   : > { %1170 = vst.msk [vmem:[#allocation2 + $0x18] sm:$0xff] %vm1166_vm14, %v1146_v25 }
 0x145   : > { %v1348_v19 = vpop.permute.xlu1 %1347 }
 0x146   : > { %1368 = vst.msk [vmem:[#allocation2 + $0x38] sm:$0xff] %vm1360_vm15, %v1348_v19  ;;  %v1340_v54 = vpop.permute.xlu0 %1339 }
 0x147   : > { %1364 = vst.msk [vmem:[#allocation2 + $0x18] sm:$0xff] %vm1360_vm15, %v1340_v54 }
 0x149   : > { %v1472_v3 = vpop.permute.xlu1 %1471 }
 0x14a   : > { %1492 = vst.msk [vmem:[#allocation2 + $0x38] sm:$0xff] %vm1484_vm0, %v1472_v3  ;;  %v1464_v53 = vpop.permute.xlu0 %1463 }
 0x14b   : > { %1488 = vst.msk [vmem:[#allocation2 + $0x18] sm:$0xff] %vm1484_vm0, %v1464_v53 }
 0x14d   : > { %v468_v4 = vpop.permute.xlu1 %467 }
 0x14e   : > { %487 = vst.msk [vmem:[#allocation2 + $0x40] sm:$0xff] %vm478_vm9, %v468_v4  ;;  %v460_v56 = vpop.permute.xlu0 %459 }
 0x14f   : > { %483 = vst.msk [vmem:[#allocation2 + $0x20] sm:$0xff] %vm478_vm9, %v460_v56 }
 0x151   : > { %v592_v7 = vpop.permute.xlu1 %591  ;;  %v1501_v57 = vld [vmem:[#allocation2 + $0x38] sm:$0xff] }
 0x152   : > { %611 = vst.msk [vmem:[#allocation2 + $0x40] sm:$0xff] %vm602_vm10, %v592_v7  ;;  %2088 = vmatmul.mubr.msk.bf16.gmra.mrb[8].mxu1 %vm1530_vm3, %v1501_v57  ;;  %v584_v21 = vpop.permute.xlu0 %583  ;;  %v1497_v42 = vld [vmem:[#allocation2 + $0x18] sm:$0xff] }
 0x153   : > { %2091 = vmatprep.mubr.msk.bf16.mxu1 %vm2477_vm8, %v2476_v47  ;;  %607 = vst.msk [vmem:[#allocation2 + $0x20] sm:$0xff] %vm602_vm10, %v584_v21  ;;  %2072 = vmatmul.mubr.msk.bf16.gmra.mrb[12].mxu0 %vm1530_vm3, %v1497_v42 }
 0x154   : > { %2075 = vmatprep.mubr.msk.bf16.mxu0 %vm2477_vm8, %v2476_v47 }
 0x155   : > { %v715_v52 = vpop.permute.xlu1 %714 }
 0x156   : > { %734 = vst.msk [vmem:[#allocation2 + $0x40] sm:$0xff] %vm725_vm11, %v715_v52  ;;  %v707_v26 = vpop.permute.xlu0 %706 }
 0x157   : > { %730 = vst.msk [vmem:[#allocation2 + $0x20] sm:$0xff] %vm725_vm11, %v707_v26 }
 0x159   : > { %v909_v17 = vpop.permute.xlu1 %908 }
 0x15a   : > { %928 = vst.msk [vmem:[#allocation2 + $0x40] sm:$0xff] %vm919_vm12, %v909_v17  ;;  %v901_v13 = vpop.permute.xlu0 %900 }
 0x15b   : > { %924 = vst.msk [vmem:[#allocation2 + $0x20] sm:$0xff] %vm919_vm12, %v901_v13 }
 0x15d   : > { %v1033_v58 = vpop.permute.xlu1 %1032 }
 0x15e   : > { %1052 = vst.msk [vmem:[#allocation2 + $0x40] sm:$0xff] %vm1043_vm13, %v1033_v58  ;;  %v1025_v8 = vpop.permute.xlu0 %1024 }
 0x15f   : > { %1048 = vst.msk [vmem:[#allocation2 + $0x20] sm:$0xff] %vm1043_vm13, %v1025_v8 }
 0x161   : > { %v1156_v35 = vpop.permute.xlu1 %1155 }
 0x162   : > { %1175 = vst.msk [vmem:[#allocation2 + $0x40] sm:$0xff] %vm1166_vm14, %v1156_v35  ;;  %v1148_v47 = vpop.permute.xlu0 %1147 }
 0x163   : > { %1171 = vst.msk [vmem:[#allocation2 + $0x20] sm:$0xff] %vm1166_vm14, %v1148_v47 }
 0x165   : > { %v1350_v10 = vpop.permute.xlu1 %1349 }
 0x166   : > { %1369 = vst.msk [vmem:[#allocation2 + $0x40] sm:$0xff] %vm1360_vm15, %v1350_v10  ;;  %v1342_v30 = vpop.permute.xlu0 %1341 }
 0x167   : > { %1365 = vst.msk [vmem:[#allocation2 + $0x20] sm:$0xff] %vm1360_vm15, %v1342_v30 }
 0x169   : > { %v1474_v48 = vpop.permute.xlu1 %1473 }
 0x16a   : > { %1493 = vst.msk [vmem:[#allocation2 + $0x40] sm:$0xff] %vm1484_vm0, %v1474_v48  ;;  %v1466_v2 = vpop.permute.xlu0 %1465 }
 0x16b   : > { %1489 = vst.msk [vmem:[#allocation2 + $0x20] sm:$0xff] %vm1484_vm0, %v1466_v2 }
 0x171   : > { %v1502_v45 = vld [vmem:[#allocation2 + $0x40] sm:$0xff] }
 0x172   : > { %2092 = vmatmul.mubr.msk.bf16.gmra.mrb[12].mxu1 %vm1530_vm3, %v1502_v45  ;;  %v1498_v38 = vld [vmem:[#allocation2 + $0x20] sm:$0xff] }
 0x173   : > { %2076 = vmatmul.mubr.msk.bf16.gmra.mrb[16].mxu0 %vm1530_vm3, %v1498_v38 }
 0x1c9   : > { %v1596_v5 = vpop.f32.mrb[0].mxu0 }
 0x1ca   : > { %v1597_v33 = vadd.f32 %v3428_v41, %v1596_v5  ;;  %v2061_v36 = vpop.f32.mrb[1].mxu0 }
 0x1cb   : > { %v1599_v49 = vpop.f32.mrb[2].mxu0 }
 0x1cc   : > { %v1667_v6 = vmax.f32 %v1597_v33, 0.0  ;;  %v1600_v39 = vadd.f32 %v3428_v41, %v1599_v49  ;;  %v2062_v1 = vpop.f32.mrb[3].mxu0 }
 0x1ce   : > { %v2023_v62 = vpack.c.bf16 %v1667_v6, %v1667_v6  ;;  %v1668_v59 = vmax.f32 %v1600_v39, 0.0 }
 0x1d0   : > { %1758 = vst.msk [vmem:[%s3433_s7] sm:$0xf] %vm1757_vm1, %v2023_v62  ;;  %v2024_v27 = vpack.c.bf16 %v1668_v59, %v1668_v59 }
 0x1d2   : > { %1759 = vst.msk [vmem:[%s3433_s7 + $0x4] sm:$0xf] %vm1757_vm1, %v2024_v27 }
 0x1e5   : > { %v1636_v61 = vpop.f32.mrb[0].mxu1 }
 0x1e6   : > { %v1637_v46 = vadd.f32 %v3428_v41, %v1636_v61  ;;  %v2081_v22 = vpop.f32.mrb[1].mxu1  ;;  %v1604_v63 = vpop.f32.mrb[4].mxu0 }
 0x1e7   : > { %v1639_v40 = vpop.f32.mrb[2].mxu1  ;;  %v1605_v29 = vadd.f32 %v3428_v41, %v1604_v63  ;;  %v2065_v14 = vpop.f32.mrb[5].mxu0 }
 0x1e8   : > { %v1677_v51 = vmax.f32 %v1637_v46, 0.0  ;;  %v1640_v9 = vadd.f32 %v3428_v41, %v1639_v40  ;;  %v2082_v34 = vpop.f32.mrb[3].mxu1  ;;  %v1607_v43 = vpop.f32.mrb[6].mxu0 }
 0x1e9   : > { %v1669_v31 = vmax.f32 %v1605_v29, 0.0  ;;  %v1608_v0 = vadd.f32 %v3428_v41, %v1607_v43  ;;  %v2066_v37 = vpop.f32.mrb[7].mxu0 }
 0x1ea   : > { %v2033_v12 = vpack.c.bf16 %v1677_v51, %v1677_v51  ;;  %v1678_v55 = vmax.f32 %v1640_v9, 0.0 }
 0x1eb   : > { %v2025_v23 = vpack.c.bf16 %v1669_v31, %v1669_v31  ;;  %v1670_v44 = vmax.f32 %v1608_v0, 0.0 }
 0x1ec   : > { %1768 = vst.msk [vmem:[%s3433_s7 + $0x28] sm:$0xf] %vm1757_vm1, %v2033_v12  ;;  %v2034_v15 = vpack.c.bf16 %v1678_v55, %v1678_v55 }
 0x1ed   : > { %1760 = vst.msk [vmem:[%s3433_s7 + $0x8] sm:$0xf] %vm1757_vm1, %v2025_v23  ;;  %v2026_v50 = vpack.c.bf16 %v1670_v44, %v1670_v44 }
 0x1ee   : > { %1769 = vst.msk [vmem:[%s3433_s7 + $0x2c] sm:$0xf] %vm1757_vm1, %v2034_v15 }
 0x1ef   : > { %1761 = vst.msk [vmem:[%s3433_s7 + $0xc] sm:$0xf] %vm1757_vm1, %v2026_v50 }
 0x205   : > { %v1644_v24 = vpop.f32.mrb[4].mxu1 }
 0x206   : > { %v1645_v16 = vadd.f32 %v3428_v41, %v1644_v24  ;;  %v2085_v18 = vpop.f32.mrb[5].mxu1  ;;  %v1612_v20 = vpop.f32.mrb[8].mxu0 }
 0x207   : > { %v1647_v60 = vpop.f32.mrb[6].mxu1  ;;  %v1613_v11 = vadd.f32 %v3428_v41, %v1612_v20  ;;  %v2069_v32 = vpop.f32.mrb[9].mxu0 }
 0x208   : > { %v1679_v28 = vmax.f32 %v1645_v16, 0.0  ;;  %v1648_v25 = vadd.f32 %v3428_v41, %v1647_v60  ;;  %v2086_v19 = vpop.f32.mrb[7].mxu1  ;;  %v1615_v54 = vpop.f32.mrb[10].mxu0 }
 0x209   : > { %v1671_v3 = vmax.f32 %v1613_v11, 0.0  ;;  %v1616_v4 = vadd.f32 %v3428_v41, %v1615_v54  ;;  %v2070_v7 = vpop.f32.mrb[11].mxu0 }
 0x20a   : > { %v2035_v53 = vpack.c.bf16 %v1679_v28, %v1679_v28  ;;  %v1680_v56 = vmax.f32 %v1648_v25, 0.0 }
 0x20b   : > { %v2027_v57 = vpack.c.bf16 %v1671_v3, %v1671_v3  ;;  %v1672_v21 = vmax.f32 %v1616_v4, 0.0 }
 0x20c   : > { %1770 = vst.msk [vmem:[%s3433_s7 + $0x30] sm:$0xf] %vm1757_vm1, %v2035_v53  ;;  %v2036_v42 = vpack.c.bf16 %v1680_v56, %v1680_v56 }
 0x20d   : > { %1762 = vst.msk [vmem:[%s3433_s7 + $0x10] sm:$0xf] %vm1757_vm1, %v2027_v57  ;;  %v2028_v52 = vpack.c.bf16 %v1672_v21, %v1672_v21 }
 0x20e   : > { %1771 = vst.msk [vmem:[%s3433_s7 + $0x34] sm:$0xf] %vm1757_vm1, %v2036_v42 }
 0x20f   : > { %1763 = vst.msk [vmem:[%s3433_s7 + $0x14] sm:$0xf] %vm1757_vm1, %v2028_v52 }
 0x225   : > { %v1652_v26 = vpop.f32.mrb[8].mxu1 }
 0x226   : > { %v1653_v17 = vadd.f32 %v3428_v41, %v1652_v26  ;;  %v2089_v13 = vpop.f32.mrb[9].mxu1  ;;  %v1620_v58 = vpop.f32.mrb[12].mxu0 }
 0x227   : > { %v1655_v8 = vpop.f32.mrb[10].mxu1  ;;  %v1621_v35 = vadd.f32 %v3428_v41, %v1620_v58  ;;  %v2073_v10 = vpop.f32.mrb[13].mxu0 }
 0x228   : > { %v1681_v47 = vmax.f32 %v1653_v17, 0.0  ;;  %v1656_v30 = vadd.f32 %v3428_v41, %v1655_v8  ;;  %v2090_v48 = vpop.f32.mrb[11].mxu1  ;;  %v1623_v2 = vpop.f32.mrb[14].mxu0 }
 0x229   : > { %v1673_v45 = vmax.f32 %v1621_v35, 0.0  ;;  %v1624_v5 = vadd.f32 %v3428_v41, %v1623_v2  ;;  %v2074_v36 = vpop.f32.mrb[15].mxu0 }
 0x22a   : > { %v2037_v38 = vpack.c.bf16 %v1681_v47, %v1681_v47  ;;  %v1682_v33 = vmax.f32 %v1656_v30, 0.0 }
 0x22b   : > { %v2029_v49 = vpack.c.bf16 %v1673_v45, %v1673_v45  ;;  %v1674_v6 = vmax.f32 %v1624_v5, 0.0 }
 0x22c   : > { %1772 = vst.msk [vmem:[%s3433_s7 + $0x38] sm:$0xf] %vm1757_vm1, %v2037_v38  ;;  %v2038_v39 = vpack.c.bf16 %v1682_v33, %v1682_v33 }
 0x22d   : > { %1764 = vst.msk [vmem:[%s3433_s7 + $0x18] sm:$0xf] %vm1757_vm1, %v2029_v49  ;;  %v2030_v1 = vpack.c.bf16 %v1674_v6, %v1674_v6 }
 0x22e   : > { %1773 = vst.msk [vmem:[%s3433_s7 + $0x3c] sm:$0xf] %vm1757_vm1, %v2038_v39 }
 0x22f   : > { %1765 = vst.msk [vmem:[%s3433_s7 + $0x1c] sm:$0xf] %vm1757_vm1, %v2030_v1 }
 0x245   : > { %v1660_v62 = vpop.f32.mrb[12].mxu1 }
 0x246   : > { %v1661_v59 = vadd.f32 %v3428_v41, %v1660_v62  ;;  %v2093_v27 = vpop.f32.mrb[13].mxu1  ;;  %v1628_v61 = vpop.f32.mrb[16].mxu0 }
 0x247   : > { %v1663_v46 = vpop.f32.mrb[14].mxu1  ;;  %v1629_v22 = vadd.f32 %v3428_v41, %v1628_v61  ;;  %v2077_v40 = vpop.f32.mrb[17].mxu0 }
 0x248   : > { %v1683_v63 = vmax.f32 %v1661_v59, 0.0  ;;  %v1664_v29 = vadd.f32 %v3428_v41, %v1663_v46  ;;  %v2094_v51 = vpop.f32.mrb[15].mxu1  ;;  %v1631_v14 = vpop.f32.mrb[18].mxu0 }
 0x249   : > { %v1675_v9 = vmax.f32 %v1629_v22, 0.0  ;;  %v1632_v43 = vadd.f32 %v3428_v41, %v1631_v14  ;;  %v2078_v12 = vpop.f32.mrb[19].mxu0 }
 0x24a   : > { %v2039_v34 = vpack.c.bf16 %v1683_v63, %v1683_v63  ;;  %v1684_v31 = vmax.f32 %v1664_v29, 0.0 }
 0x24b   : > { %v2031_v0 = vpack.c.bf16 %v1675_v9, %v1675_v9  ;;  %v1676_v55 = vmax.f32 %v1632_v43, 0.0 }
 0x24c   : > { %1774 = vst.msk [vmem:[%s3433_s7 + $0x40] sm:$0xf] %vm1757_vm1, %v2039_v34  ;;  %v2040_v37 = vpack.c.bf16 %v1684_v31, %v1684_v31 }
 0x24d   : > { %1766 = vst.msk [vmem:[%s3433_s7 + $0x20] sm:$0xf] %vm1757_vm1, %v2031_v0  ;;  %v2032_v23 = vpack.c.bf16 %v1676_v55, %v1676_v55 }
 0x24e   : > { %1775 = vst.msk [vmem:[%s3433_s7 + $0x44] sm:$0xf] %vm1757_vm1, %v2040_v37 }
 0x24f   : > { %1767 = vst.msk [vmem:[%s3433_s7 + $0x24] sm:$0xf] %vm1757_vm1, %v2032_v23 }
 0x250   : > { %2373 = shalt.err (!%p2370_p7)
}
 0x251   : > { %s2374_s21 = scalar_lea.hbm %s3487_s28, 1152  ;;  %s2378_s29 = scalar_lea.hbm %s3553_s3, 4608 }
 0x252   : > { %p2375_p1 = scmp.ne.s32.totalorder %s3487_s28, %s2374_s21  ;;  %p2379_p5 = scmp.lt.u32.totalorder %s3487_s28, %s3553_s3 }
 0x253   : > { %p2380_p9 = scmp.lt.u32.totalorder %s2378_s29, %s2374_s21  ;;  %p2382_p6 = scmp.lt.u32.totalorder %s2374_s21, %s3487_s28 }
 0x254   : > { %p2376_p2 = pnand %p2375_p1, %p2611_p11 }
 0x255   : > { %p2381_p0 = por %p2380_p9, %p2379_p5 }
 0x256   : > { %p2377_p4 = pneg %p2376_p2 }
 0x257   : > { %p2383_p8 = por %p2382_p6, %p2381_p0 }
 0x259   : > { %p2384_p10 = pnand %p2383_p8, %p2377_p4 }
 0x25b   : > { %2387 = shalt.err (!%p2384_p10)
}
 0x25c   : > { %s2479_s11 = smov 64  }
 0x25d   : > { %2114 = dma.vmem_to_hbm [thread:$0]  (%p2611_p11), %s3493_s18, 1152, %s3487_s28, %s1777_s1, %s2479_s11, %s2479_s11, %s2473_s30  }
 0x25e PF: > { %p2131_p12 = scmp.ge.s32.totalorder %s2462_s2, 2  ;;  %s1807_s22 = sand.u32 1, %s2434_s14  }
 0x25f   : > { %p3580_p13 = scmp.ne.s32.totalorder %s3566_s26, 0  ;;  %s1808_s17 = scalar_lea.sflag [#allocation6], %s1807_s22 }
 0x261   : > { %p2125_p3 = pnand %p2131_p12, %p3580_p13 }
 0x263   : > { %2429 = dma.done.wait (!%p2125_p3), %s1808_s17, 1152  }
 0x264   : > { %2431 = vsyncadd (!%p2125_p3), %s1808_s17, 4294966144  ;;  %s22_s2 = sadd.s32 1, %s2462_s2   ;;  %s3581_s6 = sld [smem:[#allocation13_spill]] }
 0x265   : > { %p19_p7 = scmp.ge.s32.totalorder %s22_s2, 6   ;;  %s3582_s12 = sld [smem:[#allocation14_spill]] }
 0x266   : > { %s3583_s14 = smov %s2438_s15  ;;  %s3584_s15 = smov %s2442_s16 }
 0x267   : > { %s3585_s16 = smov %s2628_s24  ;;  %s3586_s17 = smov %s2454_s19 }
 0x268   : > { %s3587_s18 = smov %s2458_s20  ;;  %21 = sbr.rel (!%p19_p7) target bundleno = 11 (0xb), region = 81 }
 0x26a   : > { %s3588_s19 = smov %s3581_s6 }
 0x26b   : > { %s3589_s20 = smov %s3582_s12 }
 0x26f   :  { %1813 = vsyncpa [#allocation5], 1 }
 0x270   :  { %1815 = vsyncpa [#allocation5 + $0x1], 1 }
 0x271   :  { %1816 = vsyncpa [#allocation8], 1 }
 0x272   :  { %1817 = vsyncpa [#allocation6], 1 }
 0x273   :  { %1819 = vsyncpa [#allocation6 + $0x1], 1 }

// kernel: encoder3_forward.7
= control target key start
LH: loop header
LB: loop body
LE: loop exit
PB: predicated region body
PF: predicated region fallthrough
CT: control target
= control target key end

     0   :  { %s3622_s0 = inlined_call_operand.hbm [shape: bf16[2,2,182,1], index: 0, kind: input, shape index: {}]   ;;  %s3623_s1 = inlined_call_operand.hbm [shape: bf16[9,64], index: 1, kind: input, shape index: {}]   ;;  %s3624_s2 = inlined_call_operand.hbm [shape: f32[1,64], index: 2, kind: input, shape index: {}]   ;;  %s3625_s3 = inlined_call_operand.hbm [shape: bf16[2,2,144,64], index: 3, kind: output, shape index: {}]  }
   0x1   :  { %3635 = sst [smem:[#allocation16_spill]] %s3623_s1 }
   0x2   :  { %3636 = sst [smem:[#allocation17_spill]] %s3624_s2 }
   0x3   :  { %8 = vsyncpa [#allocation4], 0 }
   0x4   :  { %10 = vsyncpa [#allocation4 + $0x1], 0 }
   0x5   :  { %11 = vsyncpa [#allocation7], 0 }
   0x6   :  { %12 = vsyncpa [#allocation5], 0 }
   0x7   :  { %14 = vsyncpa [#allocation5 + $0x1], 0  ;;  %s2538_s12 = smov 0   ;;  %s2540_s13 = smov 0  }
   0x8   :  { %s2542_s14 = smov 0   ;;  %s2544_s15 = smov 0  }
   0x9   :  { %s2546_s16 = smov 0   ;;  %s2548_s17 = smov 0  }
   0xa   :  { %s2550_s18 = smov 0   ;;  %s2552_s19 = smov 0  }
   0xb LB: > { %3637 = sst [smem:[#allocation13_spill]] %s2490_s17  ;;  %s1901_s20 = sadd.s32 4294967295, %s2498_s19   ;;  %s2498_s19 = sphi %s2552_s19, %s20_s19   ;;  %s2494_s18 = sphi %s2550_s18, %s3665_s18   ;;  %s2490_s17 = sphi %s2548_s17, %s3659_s17   ;;  %s2486_s16 = sphi %s2546_s16, %s3664_s16   ;;  %s2482_s15 = sphi %s2544_s15, %s3658_s15   ;;  %s2478_s14 = sphi %s2542_s14, %s3663_s14   ;;  %s2474_s13 = sphi %s2540_s13, %s3662_s13   ;;  %s2470_s12 = sphi %s2538_s12, %s3661_s12  }
   0xc   : > { %s1902_s21 = sadd.s32 4294967294, %s2498_s19   ;;  %p54_p0 = scmp.ne.s32.totalorder %s2474_s13, %s2470_s12 }
   0xd   : > { %p2582_p1 = scmp.eq.s32.totalorder %s1901_s20, 0  ;;  %p2586_p2 = scmp.eq.s32.totalorder %s1901_s20, 3 }
   0xe   : > { %p128_p3 = scmp.eq.s32.totalorder %s1902_s21, 3  ;;  %p1903_p5 = scmp.ge.s32.totalorder %s2498_s19, 1 }
   0xf   : > { %s3638_s22 = scalar_select %p2582_p1, 1, 0 }
  0x10   : > { %s3639_s23 = scalar_select %p2586_p2, 1, 0 }
  0x11   : > { %p2592_p4 = por %p2582_p1, %p54_p0  ;;  %p2597_p6 = por %p128_p3, %p54_p0 }
  0x12   : > { %p135_p7 = scmp.lt.s32.totalorder %s2498_s19, 5  ;;  %s2500_s27 = smov [#allocation6]  }
  0x13   : > { %s3640_s24 = scalar_select %p2592_p4, 1, 0 }
  0x14   : > { %s3641_s25 = scalar_select %p2597_p6, 1, 0 }
  0x15   : > { %p2602_p8 = pnand %p1903_p5, %p135_p7  ;;  %s147_s28 = sshll.u32 %s2500_s27, 4  ;;  %s148_s28 = int_to_ptr.vmem [resolvable:$true] %s147_s28 }
  0x16   : > { %s2501_s30 = smov [#allocation8]   ;;  %s3644_s1 = sld [smem:[#allocation16_spill]] }
  0x17   : > { %s3642_s26 = scalar_select %p2602_p8, 1, 0 }
  0x18   : > { %p2119_p9 = pneg %p2602_p8  ;;  %s161_s4 = sshll.u32 %s2501_s30, 4  ;;  %s2614_s4 = int_to_ptr.vmem [resolvable:$true] %s161_s4 }
  0x1a   : > { %p2610_p10 = pnand %p2119_p9, %p2582_p1 }
  0x1c   : > { %s2310_s7 = scalar_lea.hbm %s3644_s1, 128  ;;  %p2312_p12 = pneg %p2610_p10 }
  0x1d   : > { %p2311_p11 = scmp.ne.s32.totalorder %s3644_s1, %s2310_s7  ;;  %p2317_p3 = scmp.lt.u32.totalorder %s2310_s7, %s3644_s1 }
  0x1f   : > { %p2313_p13 = pnand %p2312_p12, %p2311_p11 }
  0x21   : > { %p2314_p0 = pneg %p2313_p13 }
  0x23   : > { %p2319_p5 = pnand %p2317_p3, %p2314_p0 }
  0x25   : > { %2322 = shalt.err (!%p2319_p5)
}
  0x26   : > { %s2323_s20 = scalar_lea.vmem %s148_s28, 128  ;;  %p2331_p1 = scmp.lt.s32.totalorder %s148_s28, %s148_s28 }
  0x27   : > { %p2324_p7 = scmp.ne.s32.totalorder %s148_s28, %s2323_s20  ;;  %p2332_p4 = scmp.lt.s32.totalorder %s2323_s20, %s2323_s20 }
  0x29   : > { %p2326_p9 = pnand %p2324_p7, %p2312_p12  ;;  %p2333_p8 = por %p2332_p4, %p2331_p1 }
  0x2b   : > { %p2327_p6 = pneg %p2326_p9 }
  0x2d   : > { %p2334_p2 = pnand %p2333_p8, %p2327_p6 }
  0x2f   : > { %2337 = shalt.err (!%p2334_p2)
}
  0x30   : > { %s3630_s21 = smov 64   ;;  %s3631_s27 = smov 4  }
  0x31   : > { %2122 = dma.hbm_to_vmem [thread:$0]  (!%p2610_p10), %s3644_s1, 128, %s148_s28, [#allocation7], %s3630_s21, %s3630_s21, %s3631_s27  }
  0x32   : > { %s3645_s2 = sld [smem:[#allocation17_spill]] }
  0x38   : > { %s2338_s8 = scalar_lea.hbm %s3645_s2, 16 }
  0x39   : > { %p2339_p1 = scmp.ne.s32.totalorder %s3645_s2, %s2338_s8  ;;  %p2345_p6 = scmp.lt.u32.totalorder %s2338_s8, %s3645_s2 }
  0x3b   : > { %p2341_p2 = pnand %p2339_p1, %p2312_p12 }
  0x3d   : > { %p2342_p4 = pneg %p2341_p2 }
  0x3f   : > { %p2347_p8 = pnand %p2345_p6, %p2342_p4 }
  0x41   : > { %2350 = shalt.err (!%p2347_p8)
}
  0x42   : > { %s2351_s28 = scalar_lea.vmem %s2614_s4, 16  ;;  %s2358_s30 = scalar_lea.vmem %s2614_s4, 32 }
  0x43   : > { %p2352_p11 = scmp.ne.s32.totalorder %s2614_s4, %s2351_s28  ;;  %p2359_p3 = scmp.lt.s32.totalorder %s2614_s4, %s2614_s4 }
  0x44   : > { %p2360_p5 = scmp.lt.s32.totalorder %s2358_s30, %s2351_s28 }
  0x45   : > { %p2354_p13 = pnand %p2352_p11, %p2312_p12 }
  0x46   : > { %p2361_p7 = por %p2360_p5, %p2359_p3 }
  0x47   : > { %p2355_p0 = pneg %p2354_p13 }
  0x49   : > { %p2362_p9 = pnand %p2361_p7, %p2355_p0 }
  0x4b   : > { %2365 = shalt.err (!%p2362_p9)
}
  0x4c   : > { %2125 = dma.hbm_to_vmem [thread:$0]  (!%p2610_p10), %s3645_s2, 16, %s2614_s4, [#allocation7]  }
  0x4d   : > { %s29_s7 = sadd.s32 1, %s2490_s17  ;;  %s32_s8 = sadd.s32 1, %s2494_s18 }
  0x4e   : > { %p30_p12 = scmp.ge.s32.totalorder %s29_s7, 2  ;;  %s41_s29 = sadd.s32 1, %s2478_s14 }
  0x4f   : > { %p48_p1 = scmp.ne.s32.totalorder %s2478_s14, %s2474_s13  ;;  %p49_p2 = scmp.eq.s32.totalorder %s2498_s19, 0 }
  0x50   : > { %s3667_s7 = smov (%p30_p12, %s29_s7), 0  ;;  %s3669_s8 = smov (!%p30_p12, %s32_s8), %s2494_s18 }
  0x51   : > { %3646 = sst [smem:[#allocation14_spill]] %s3667_s7  ;;  %s37_s9 = ssub.s32 %s2490_s17, %s3667_s7 }
  0x52   : > { %p2678_p4 = por %p49_p2, %p48_p1  ;;  %p34_p10 = scmp.ge.s32.totalorder %s3669_s8, 2 }
  0x53   : > { %p3648_p6 = scmp.ne.s32.totalorder %s3639_s23, 0  ;;  %p2136_p11 = scmp.lt.s32.totalorder %s2498_s19, 4 }
  0x54   : > { %s172_s11 = sand.u32 1, %s2478_s14   ;;  %s3671_s8 = smov (%p34_p10, %s3669_s8), 0 }
  0x55   : > { %p2684_p8 = por %p3648_p6, %p48_p1  ;;  %3650 = sst [smem:[#allocation15_spill]] %s3671_s8 }
  0x56   : > { %s2100_s20 = smul.u32 92, %s172_s11  ;;  %s36_s28 = ssub.s32 %s2494_s18, %s3671_s8 }
  0x57   : > { %s2101_s30 = smul.u32 23, %s2490_s17  ;;  %s38_s5 = sor.u32 %s37_s9, %s36_s28 }
  0x58   : > { %p39_p13 = scmp.eq.s32.totalorder %s38_s5, 0  ;;  %s2102_s6 = smul.u32 46, %s2494_s18 }
  0x59   : > { %s176_s21 = scalar_lea.vmem [#allocation3], %s2100_s20  ;;  %p2698_p0 = pnand %p2136_p11, %p2678_p4 }
  0x5a   : > { %s185_s27 = sshll.u32 %s176_s21, 4  ;;  %s182_s2 = sadd.s32 %s2102_s6, %s2101_s30  ;;  %s2705_s27 = int_to_ptr.vmem [resolvable:$true] %s185_s27 }
  0x5b   : > { %s2703_s1 = scalar_select %p39_p13, %s2478_s14, %s41_s29  }
  0x5c   : > { %s1907_s7 = sshll.u32 %s182_s2, 6  ;;  %s2712_s21 = scalar_lea.sflag [#allocation4], %s172_s11 }
  0x5d   : > { %s2710_s9 = scalar_lea.hbm %s3622_s0, %s1907_s7  ;;  %p2368_p5 = pneg %p2698_p0 }
  0x5e   : > { %s2366_s10 = scalar_lea.hbm %s2710_s9, 1472  ;;  %s2371_s17 = scalar_lea.hbm %s3622_s0, 5888 }
  0x5f   : > { %p2367_p3 = scmp.ne.s32.totalorder %s2710_s9, %s2366_s10  ;;  %p2372_p12 = scmp.lt.u32.totalorder %s2710_s9, %s3622_s0 }
  0x60   : > { %p2373_p1 = scmp.lt.u32.totalorder %s2371_s17, %s2366_s10  ;;  %p2375_p4 = scmp.lt.u32.totalorder %s2366_s10, %s2710_s9 }
  0x61   : > { %p2369_p7 = pnand %p2368_p5, %p2367_p3 }
  0x62   : > { %p2374_p2 = por %p2373_p1, %p2372_p12 }
  0x63   : > { %p2370_p9 = pneg %p2369_p7 }
  0x64   : > { %p2376_p10 = por %p2375_p4, %p2374_p2 }
  0x66   : > { %p2377_p6 = pnand %p2376_p10, %p2370_p9 }
  0x68   : > { %2380 = shalt.err (!%p2377_p6)
}
  0x69   : > { %s2381_s11 = scalar_lea.vmem %s2705_s27, 1472  ;;  %s2504_s20 = smov [#allocation3]  }
  0x6a   : > { %p2382_p11 = scmp.ne.s32.totalorder %s2705_s27, %s2381_s11  ;;  %s2386_s28 = sshll.u32 %s2504_s20, 4  ;;  %s2387_s28 = int_to_ptr.vmem [resolvable:$false] %s2386_s28 }
  0x6b   : > { %s2388_s30 = scalar_lea.vmem %s2387_s28, 2944  ;;  %p2389_p7 = scmp.lt.s32.totalorder %s2705_s27, %s2387_s28 }
  0x6c   : > { %p2384_p13 = pnand %p2382_p11, %p2368_p5  ;;  %p2390_p12 = scmp.lt.s32.totalorder %s2388_s30, %s2381_s11 }
  0x6e   : > { %p2385_p3 = pneg %p2384_p13  ;;  %p2391_p1 = por %p2390_p12, %p2389_p7 }
  0x70   : > { %p2392_p2 = pnand %p2391_p1, %p2385_p3 }
  0x72   : > { %2395 = shalt.err (!%p2392_p2)
}
  0x73   : > { %s3652_s5 = smov 4   ;;  %s3653_s6 = smov 64  }
  0x74   : > { %2129 = dma.hbm_to_vmem [thread:$0]  (!%p2698_p0), %s2710_s9, 1472, %s2705_s27, %s2712_s21, %s3653_s6, %s3653_s6, %s3652_s5  }
  0x75   : > { %p3654_p5 = scmp.ne.s32.totalorder %s3642_s26, 0 }
  0x76   : > { %s2746_s10 = sand.u32 (!%p3654_p5), 1, %s2474_s13   ;;  %p3655_p9 = scmp.ne.s32.totalorder (!%p3654_p5), %s3640_s24, 0 }
  0x77   : > { %197 = sbr.rel (%p3654_p5) target bundleno = 634 (0x27a), region = 32  ;;  %s200_s29 = scalar_lea.sflag (!%p3654_p5), [#allocation4], %s2746_s10 }
  0x78   : > { %s2103_s2 = smul.u32 (!%p3654_p5), 92, %s2746_s10 }
  0x7a   : > { %s2750_s17 = scalar_lea.vmem (!%p3654_p5), [#allocation3], %s2103_s2 }
  0x7e   : > { %2457 = dma.done.wait (%p3655_p9), %s200_s29, 1472  }
  0x7f   : > { %2459 = vsyncadd (%p3655_p9), %s200_s29, 4294965824  ;;  %p3656_p0 = scmp.ne.s32.totalorder %s3638_s22, 0 }
  0x81   : > { %2461 = dma.done.wait (%p3656_p0), [#allocation7], 144  }
  0x82   : > { %2463 = vsyncadd (%p3656_p0), [#allocation7], 4294967152  ;;  %vm565_vm0 = vcmask 1046528   ;;  %vm1006_vm1 = vcmask 1045504   ;;  %v2220_v0 = vld [vmem:[%s2750_s17 + $0x8] sm:$0xfe]  }
  0x83   : > { %v2762_v1 = vld [vmem:[%s2750_s17 + $0x10] sm:$0xff]   ;;  %v689_v2 = vrot.slane %v2220_v0, 1  ;;  %v2222_v4 = vld [vmem:[%s2750_s17] sm:$0xfe]   ;;  %vm1447_vm2 = vcmask 1044480   ;;  %v2767_v5 = vld [vmem:[%s2750_s17 + $0x8] sm:$0xff]  }
  0x84   : > { %v690_v3 = vrot.slane %v2762_v1, 1  ;;  %v566_v7 = vrot.slane %v2222_v4, 1  ;;  %v2773_v8 = vld [vmem:[%s2750_s17 + $0x18] sm:$0xff]   ;;  %s2505_s22 = smov 3   ;;  %v567_v9 = vrot.slane %v2767_v5, 1  ;;  %v2779_v11 = vld [vmem:[%s2750_s17 + $0x10] sm:$0xff]  }
  0x85   : > { %v2224_v10 = vld [vmem:[%s2750_s17 + $0x10] sm:$0xfc]   ;;  %v1131_v12 = vrot.slane %v2773_v8, 2  ;;  %v2783_v13 = vld [vmem:[%s2750_s17 + $0x18] sm:$0xff]   ;;  %v2226_v16 = vld [vmem:[%s2750_s17 + $0x8] sm:$0xfc]  }
  0x86   : > { %v691_v6 = vsel %vm565_vm0, %v689_v2, %v690_v3  ;;  %v568_v14 = vsel %vm565_vm0, %v566_v7, %v567_v9  ;;  %v1130_v15 = vrot.slane %v2224_v10, 2  ;;  %v1008_v17 = vrot.slane %v2779_v11, 2  ;;  %s2506_s24 = smov 2   ;;  %v2228_v20 = vld [vmem:[%s2750_s17 + $0x10] sm:$0xf8]   ;;  %s2507_s26 = smov 6  }
  0x87   : > { %708 = vrot.lane.b32.xlu1 %v691_v6, %s2505_s22  ;;  %585 = vrot.lane.b32.xlu0 %v568_v14, %s2506_s24  ;;  %vm384_vm3 = vsmask.f32 7424  ;;  %v1007_v19 = vrot.slane %v2226_v16, 2  ;;  %v1449_v21 = vrot.slane %v2783_v13, 3  ;;  %v1448_v23 = vrot.slane %v2228_v20, 3  ;;  %v2230_v24 = vld [vmem:[%s2750_s17] sm:$0xff]  }
  0x88   : > { %v1132_v18 = vsel %vm1006_vm1, %v1130_v15, %v1131_v12  ;;  %v2231_v25 = vld [vmem:[%s2750_s17 + $0x8] sm:$0xff]   ;;  %vm812_vm4 = vsmask.f32 6400  ;;  %s2508_s27 = smov 5   ;;  %v386_v27 = vshrl.u32 %v2230_v24, 16  ;;  %v388_v28 = vshll.u32 %v2230_v24, 16 }
  0x89   : > { %v1009_v22 = vsel %vm1006_vm1, %v1007_v19, %v1008_v17  ;;  %v1450_v26 = vsel %vm1447_vm2, %v1448_v23, %v1449_v21  ;;  %v393_v29 = vshll.u32 %v2231_v25, 16  ;;  %v2233_v30 = vld [vmem:[%s2750_s17 + $0x10] sm:$0xff]   ;;  %s2509_s23 = smov 8   ;;  %v2232_v31 = vld [vmem:[%s2750_s17 + $0x8] sm:$0xfe]   ;;  %v2235_v42 = vld [vmem:[%s2750_s17 + $0x18] sm:$0xff]  }
  0x8a   : > { %vm1253_vm5 = vsmask.f32 5376  ;;  %v390_v32 = vrot.slane %v388_v28, 1  ;;  %v822_v34 = vshrl.u32 %v2233_v30, 16  ;;  %v825_v35 = vshll.u32 %v2233_v30, 16  ;;  %v2236_v43 = vld [vmem:[%s2750_s17 + $0x28] sm:$0xff]  }
  0x8b   : > { %1149 = vrot.lane.b32.xlu1 %v1132_v18, %s2507_s26  ;;  %1026 = vrot.lane.b32.xlu0 %v1009_v22, %s2508_s27  ;;  %v395_v33 = vrot.slane %v393_v29, 1  ;;  %v814_v36 = vshrl.u32 %v2232_v31, 16  ;;  %v817_v37 = vshll.u32 %v2232_v31, 16  ;;  %v2234_v38 = vld [vmem:[%s2750_s17 + $0x10] sm:$0xfc]   ;;  %v1263_v50 = vshrl.u32 %v2235_v42, 16 }
  0x8c   : > { %v391_v39 = vor.u32 %v390_v32, %v386_v27  ;;  %v824_v40 = vrot.slane %v822_v34, 1  ;;  %v827_v41 = vrot.slane %v825_v35, 2  ;;  %v1255_v46 = vshrl.u32 %v2234_v38, 16  ;;  %s2510_s9 = smov 1   ;;  %v2817_v55 = vld [vmem:[%s2750_s17 + $0x30] sm:$0xff]   ;;  %s2511_s21 = smov 4  }
  0x8d   : > { %v816_v44 = vrot.slane %v814_v36, 1  ;;  %v819_v45 = vrot.slane %v817_v37, 2  ;;  %v1258_v47 = vshll.u32 %v2234_v38, 16  ;;  %v1266_v51 = vshll.u32 %v2235_v42, 16  ;;  %v2820_v60 = vld [vmem:[%s2750_s17 + $0x10] sm:$0xff]   ;;  %v2835_v14 = vld [vmem:[%s2750_s17 + $0x28] sm:$0xff]  }
  0x8e   : > { %v396_v48 = vsel %vm384_vm3, %v391_v39, %v395_v33  ;;  %v2813_v49 = vor.u32 %v827_v41, %v824_v40  ;;  %v1257_v53 = vrot.slane %v1255_v46, 2  ;;  %v425_v56 = vshll.u32 %v2236_v43, 16  ;;  %v2838_v15 = vld [vmem:[%s2750_s17 + $0x30] sm:$0xff]   ;;  %s2512_s7 = smov 7   ;;  %v2860_v28 = vld [vmem:[%s2750_s17 + $0x38] sm:$0xff]   ;;  %s2104_s8 = smul.u32 72, %s2746_s10 }
  0x8f   : > { %1467 = vrot.lane.b32.xlu1 %v1450_v26, %s2509_s23  ;;  %461 = vrot.lane.b32.xlu0 %v396_v48, %s2510_s9  ;;  %v820_v52 = vor.u32 %v819_v45, %v816_v44  ;;  %v1260_v54 = vrot.slane %v1258_v47, 3  ;;  %v1265_v57 = vrot.slane %v1263_v50, 2  ;;  %v1268_v58 = vrot.slane %v1266_v51, 3  ;;  %v2845_v20 = vld [vmem:[%s2750_s17 + $0x10] sm:$0xff]   ;;  %v2868_v30 = vld [vmem:[%s2750_s17 + $0x18] sm:$0xff]   ;;  %s2105_s20 = smul.u32 18, %s2482_s15 }
  0x90   : > { %v429_v59 = vshrl.u32 %v2236_v43, 16  ;;  %v2824_v63 = vrot.slane %v425_v56, 1  ;;  %v433_v0 = vshll.u32 %v2817_v55, 16  ;;  %v397_v4 = vshrl.u32 %v2231_v25, 16  ;;  %v2857_v27 = vld [vmem:[%s2750_s17 + $0x30] sm:$0xff]   ;;  %v2246_v36 = vld [vmem:[%s2750_s17 + $0x38] sm:$0xff]  }
  0x91   : > { %v829_v61 = vsel %vm812_vm4, %v820_v52, %v2813_v49  ;;  %v1261_v62 = vor.u32 %v1260_v54, %v1257_v53  ;;  %v2828_v2 = vor.u32 %v1268_v58, %v1265_v57  ;;  %v401_v6 = vshll.u32 %v2820_v60, 16  ;;  %v2247_v40 = vld [vmem:[%s2750_s17 + $0x18] sm:$0xff]   ;;  %v2889_v41 = vld [vmem:[%s2750_s17 + $0x30] sm:$0xff]   ;;  %v2914_v58 = vld [vmem:[%s2750_s17 + $0x40] sm:$0xff]   ;;  %s3505_s11 = scalar_lea.vmem [#allocation9], %s2104_s8  ;;  %s2106_s28 = smul.u32 36, %s2486_s16 }
  0x92   : > { %v431_v7 = vor.u32 %v429_v59, %v2824_v63  ;;  %v2832_v10 = vrot.slane %v433_v0, 1  ;;  %v399_v18 = vor.u32 %v397_v4, %v395_v33  ;;  %v575_v23 = vrot.slane %v2835_v14, 1  ;;  %v2245_v33 = vld [vmem:[%s2750_s17 + $0x30] sm:$0xff]   ;;  %v2899_v50 = vld [vmem:[%s2750_s17 + $0x38] sm:$0xff]   ;;  %v2924_v0 = vld [vmem:[%s2750_s17 + $0x20] sm:$0xff]   ;;  %s1792_s16 = sshll.u32 %s3505_s11, 4  ;;  %s3565_s16 = int_to_ptr.vmem [resolvable:$true] %s1792_s16 }
  0x93   : > { %902 = vrot.lane.b32.xlu1 %v829_v61, %s2511_s21  ;;  %v1270_v16 = vsel %vm1253_vm5, %v1261_v62, %v2828_v2  ;;  %v2842_v19 = vrot.slane %v401_v6, 1  ;;  %v577_v24 = vrot.slane %v2838_v15, 1  ;;  %v569_v26 = vrot.slane %v2845_v20, 1  ;;  %v2905_v56 = vld [vmem:[%s2750_s17 + $0x18] sm:$0xff]   ;;  %v2272_v15 = vld [vmem:[%s2750_s17 + $0x48] sm:$0xff]   ;;  %s1789_s30 = sadd.s32 %s2106_s28, %s2105_s20  ;;  %s1777_s29 = scalar_lea.sflag [#allocation5], %s2746_s10 }
  0x94   : > { %1343 = vrot.lane.b32.xlu0 %v1270_v16, %s2512_s7  ;;  %v436_v22 = vsel %vm384_vm3, %v431_v7, %v2832_v10  ;;  %v698_v31 = vrot.slane %v2857_v27, 1  ;;  %v700_v32 = vrot.slane %v2860_v28, 1  ;;  %v692_v35 = vrot.slane %v2868_v30, 1  ;;  %v2908_v57 = vld [vmem:[%s2750_s17 + $0x38] sm:$0xff]   ;;  %s2029_s15 = sshll.u32 %s1789_s30, 6 }
  0x95   : > { %v404_v25 = vsel %vm384_vm3, %v399_v18, %v2842_v19  ;;  %v578_v29 = vsel %vm565_vm0, %v575_v23, %v577_v24  ;;  %v570_v34 = vsel %vm565_vm0, %v567_v9, %v569_v26  ;;  %v858_v38 = vshrl.u32 %v2245_v33, 16  ;;  %v2254_v18 = vld [vmem:[%s2750_s17 + $0x38] sm:$0xff]   ;;  %s3559_s2 = scalar_lea.hbm %s3625_s3, %s2029_s15 }
  0x96   : > { %v701_v37 = vsel %vm565_vm0, %v698_v31, %v700_v32  ;;  %v861_v39 = vshll.u32 %v2245_v33, 16  ;;  %v867_v42 = vshrl.u32 %v2246_v36, 16  ;;  %v870_v5 = vshll.u32 %v2246_v36, 16 }
  0x97   : > { %471 = vrot.lane.b32.xlu1 %v436_v22, %s2510_s9  ;;  %v860_v9 = vrot.slane %v858_v38, 1  ;;  %v831_v44 = vshrl.u32 %v2247_v40, 16  ;;  %v834_v45 = vshll.u32 %v2247_v40, 16  ;;  %v693_v46 = vsel %vm565_vm0, %v690_v3, %v692_v35  ;;  %v2255_v22 = vld [vmem:[%s2750_s17 + $0x40] sm:$0xff]   ;;  %v2949_v40 = vld [vmem:[%s2750_s17 + $0x38] sm:$0xff]  }
  0x98   : > { %463 = vrot.lane.b32.xlu0 %v404_v25, %s2510_s9  ;;  %v863_v43 = vrot.slane %v861_v39, 2  ;;  %v869_v47 = vrot.slane %v867_v42, 1  ;;  %v872_v48 = vrot.slane %v870_v5, 2  ;;  %v1016_v51 = vrot.slane %v2889_v41, 2  ;;  %v2256_v25 = vld [vmem:[%s2750_s17 + $0x20] sm:$0xff]  }
  0x99   : > { %v833_v53 = vrot.slane %v831_v44, 1  ;;  %v836_v54 = vrot.slane %v834_v45, 2  ;;  %v1018_v3 = vrot.slane %v2899_v50, 2  ;;  %v1010_v61 = vrot.slane %v2905_v56, 2  ;;  %v3108_v50 = vld [vmem:[%s2750_s17 + $0x28] sm:$0xff]  }
  0x9a   : > { %v2902_v52 = vor.u32 %v863_v43, %v860_v9  ;;  %v2910_v1 = vor.u32 %v872_v48, %v869_v47  ;;  %v1139_v7 = vrot.slane %v2908_v57, 2  ;;  %v1141_v16 = vrot.slane %v2914_v58, 2  ;;  %v2957_v9 = vld [vmem:[%s2750_s17 + $0x40] sm:$0xff]  }
  0x9b   : > { %595 = vrot.lane.b32.xlu1 %v578_v29, %s2506_s24  ;;  %v2917_v59 = vor.u32 %v836_v54, %v833_v53  ;;  %v1019_v6 = vsel %vm1006_vm1, %v1016_v51, %v1018_v3  ;;  %v1133_v29 = vrot.slane %v2924_v0, 2  ;;  %v1299_v33 = vshrl.u32 %v2254_v18, 16  ;;  %v2968_v48 = vld [vmem:[%s2750_s17 + $0x20] sm:$0xff]  }
  0x9c   : > { %587 = vrot.lane.b32.xlu0 %v570_v34, %s2506_s24  ;;  %v874_v62 = vsel %vm812_vm4, %v2902_v52, %v2910_v1  ;;  %v1302_v34 = vshll.u32 %v2254_v18, 16  ;;  %v1308_v36 = vshrl.u32 %v2255_v22, 16  ;;  %v1272_v38 = vshrl.u32 %v2256_v25, 16  ;;  %v3130_v58 = vld [vmem:[%s2750_s17 + $0x20] sm:$0xff]  }
  0x9d   : > { %v838_v4 = vsel %vm812_vm4, %v2813_v49, %v2917_v59  ;;  %v1011_v49 = vsel %vm1006_vm1, %v1008_v17, %v1010_v61  ;;  %v1275_v39 = vshll.u32 %v2256_v25, 16  ;;  %v1142_v11 = vsel %vm1006_vm1, %v1139_v7, %v1141_v16 }
  0x9e   : > { %v1301_v17 = vrot.slane %v1299_v33, 2  ;;  %v1304_v42 = vrot.slane %v1302_v34, 3  ;;  %v1310_v5 = vrot.slane %v1308_v36, 2  ;;  %v1274_v44 = vrot.slane %v1272_v38, 2  ;;  %v3012_v38 = vld [vmem:[%s2750_s17 + $0x40] sm:$0xff]  }
  0x9f   : > { %718 = vrot.lane.b32.xlu1 %v701_v37, %s2505_s22  ;;  %v1311_v37 = vshll.u32 %v2255_v22, 16  ;;  %v1277_v45 = vrot.slane %v1275_v39, 3  ;;  %v437_v53 = vshrl.u32 %v2817_v55, 16  ;;  %v1459_v8 = vrot.slane %v2957_v9, 3 }
  0xa0   : > { %710 = vrot.lane.b32.xlu0 %v693_v46, %s2505_s22  ;;  %v1134_v46 = vsel %vm1006_vm1, %v1131_v12, %v1133_v29  ;;  %v2965_v47 = vor.u32 %v1304_v42, %v1301_v17  ;;  %v2982_v12 = vld [vmem:[%s2750_s17 + $0x18] sm:$0xff]   ;;  %v405_v22 = vshrl.u32 %v2820_v60, 16  ;;  %v1451_v25 = vrot.slane %v2968_v48, 3  ;;  %v2267_v42 = vld [vmem:[%s2750_s17 + $0x20] sm:$0xff]  }
  0xa1   : > { %v1313_v43 = vrot.slane %v1311_v37, 3  ;;  %v409_v33 = vshll.u32 %v2982_v12, 16  ;;  %v439_v60 = vor.u32 %v437_v53, %v2832_v10  ;;  %v3005_v37 = vld [vmem:[%s2750_s17 + $0x38] sm:$0xff]   ;;  %v2266_v10 = vld [vmem:[%s2750_s17 + $0x40] sm:$0xff]   ;;  %vm307_vm6 = vcmask 7168  }
  0xa2   : > { %v1452_v39 = vsel %vm1447_vm2, %v1449_v21, %v1451_v25  ;;  %v879_v13 = vshll.u32 %v2266_v10, 16  ;;  %v840_v21 = vshrl.u32 %v2267_v42, 16  ;;  %vm1555_vm7 = vcmask 1043456  }
  0xa3   : > { %912 = vrot.lane.b32.xlu1 %v874_v62, %s2511_s21  ;;  %v2972_v54 = vor.u32 %v1313_v43, %v1310_v5  ;;  %v2974_v62 = vor.u32 %v1277_v45, %v1274_v44  ;;  %v3020_v17 = vrot.slane %v409_v33, 1  ;;  %v579_v43 = vrot.slane %v3005_v37, 1  ;;  %v3029_v44 = vld [vmem:[%s2750_s17 + $0x20] sm:$0xff]  }
  0xa4   : > { %904 = vrot.lane.b32.xlu0 %v838_v4, %s2511_s21  ;;  %v1457_v4 = vrot.slane %v2949_v40, 3  ;;  %v876_v45 = vshrl.u32 %v2266_v10, 16  ;;  %v694_v33 = vrot.slane %v3029_v44, 1  ;;  %vm2515_vm8 = vmmov 0   ;;  %v3247_v44 = vld [vmem:[%s2750_s17 + $0x30] sm:$0xff]  }
  0xa5   : > { %v1315_v55 = vsel %vm1253_vm5, %v2965_v47, %v2972_v54  ;;  %vm488_vm9 = vcmask 15368   ;;  %vm612_vm10 = vcmask 23568   ;;  %vm735_vm11 = vcmask 31768  }
  0xa6   : > { %v1460_v34 = vsel %vm1447_vm2, %v1457_v4, %v1459_v8  ;;  %v695_v20 = vsel %vm565_vm0, %v692_v35, %v694_v33  ;;  %v3084_v35 = vld [vmem:[%s2750_s17 + $0x28] sm:$0xff]   ;;  %vm929_vm12 = vcmask 39968   ;;  %vm1053_vm13 = vcmask 48168  }
  0xa7   : > { %1036 = vrot.lane.b32.xlu1 %v1019_v6, %s2508_s27  ;;  %v2978_v6 = vld [vmem:[%s2750_s17 + $0x38] sm:$0xff]   ;;  %vm1176_vm14 = vcmask 56368   ;;  %vm1370_vm15 = vcmask 64568  }
  0xa8   : > { %1028 = vrot.lane.b32.xlu0 %v1011_v49, %s2508_s27  ;;  %v441_v18 = vshll.u32 %v2978_v6, 16  ;;  %v1279_v49 = vsel %vm1253_vm5, %v2828_v2, %v2974_v62  ;;  %v3008_v2 = vld [vmem:[%s2750_s17 + $0x18] sm:$0xff]   ;;  %v445_v0 = vshrl.u32 %v2978_v6, 16 }
  0xa9   : > { %v571_v53 = vrot.slane %v3008_v2, 1  ;;  %v2289_v2 = vld [vmem:[%s2750_s17 + $0x30] sm:$0xff]  }
  0xaa   : > { %v3002_v36 = vrot.slane %v441_v18, 1  ;;  %v878_v18 = vrot.slane %v876_v45, 1  ;;  %v1317_v45 = vshrl.u32 %v2272_v15, 16 }
  0xab   : > { %1159 = vrot.lane.b32.xlu1 %v1142_v11, %s2507_s26  ;;  %v407_v11 = vor.u32 %v405_v22, %v2842_v19  ;;  %v843_v19 = vshll.u32 %v2267_v42, 16  ;;  %v881_v22 = vrot.slane %v879_v13, 2  ;;  %v3063_v42 = vld [vmem:[%s2750_s17 + $0x20] sm:$0xff]   ;;  %v1320_v13 = vshll.u32 %v2272_v15, 16 }
  0xac   : > { %1151 = vrot.lane.b32.xlu0 %v1134_v46, %s2507_s26  ;;  %v444_v5 = vsel %vm384_vm3, %v439_v60, %v3002_v36  ;;  %v1012_v30 = vrot.slane %v3063_v42, 2  ;;  %v2308_v42 = vld [vmem:[%s2750_s17 + $0x40] sm:$0xff]  }
  0xad   : > { %v412_v46 = vsel %vm384_vm3, %v407_v11, %v3020_v17  ;;  %v845_v60 = vrot.slane %v843_v19, 2  ;;  %v572_v11 = vsel %vm565_vm0, %v569_v26, %v571_v53  ;;  %v3059_v10 = vor.u32 %v881_v22, %v878_v18  ;;  %316 = vst.msk [vmem:[#allocation2 + $0x40] sm:$0xff] %vm307_vm6, %v2308_v42 }
  0xaf   : > { %1353 = vrot.lane.b32.xlu1 %v1315_v55, %s2512_s7  ;;  %v702_v55 = vrot.slane %v3012_v38, 1 }
  0xb0   : > { %1345 = vrot.lane.b32.xlu0 %v1279_v49, %s2512_s7  ;;  %v580_v49 = vsel %vm565_vm0, %v577_v24, %v579_v43 }
  0xb1   : > { %v703_v24 = vsel %vm565_vm0, %v700_v32, %v702_v55  ;;  %v3076_v32 = vld [vmem:[%s2750_s17 + $0x48] sm:$0xff]  }
  0xb2   : > { %v1143_v22 = vrot.slane %v3076_v32, 2  ;;  %v3297_v32 = vld [vmem:[%s2750_s17 + $0x30] sm:$0xff]  }
  0xb3   : > { %1477 = vrot.lane.b32.xlu1 %v1460_v34, %s2509_s23  ;;  %v842_v34 = vrot.slane %v840_v21, 1  ;;  %v883_v21 = vsel %vm812_vm4, %v2910_v1, %v3059_v10 }
  0xb4   : > { %1469 = vrot.lane.b32.xlu0 %v1452_v39, %s2509_s23  ;;  %v3045_v39 = vld [vmem:[%s2750_s17 + $0x40] sm:$0xff]  }
  0xb5   : > { %v3070_v26 = vor.u32 %v845_v60, %v842_v34  ;;  %v1020_v28 = vrot.slane %v3045_v39, 2  ;;  %v1322_v34 = vrot.slane %v1320_v13, 3  ;;  %v3099_v60 = vld [vmem:[%s2750_s17 + $0x48] sm:$0xff]   ;;  %v1453_v13 = vrot.slane %v3108_v50, 3 }
  0xb6   : > { %v1137_v39 = vrot.slane %v3247_v44, 2 }
  0xb7   : > { %473 = vrot.lane.b32.xlu1 %v444_v5, %s2510_s9  ;;  %v2273_v5 = vld [vmem:[%s2750_s17 + $0x28] sm:$0xff]   ;;  %v847_v19 = vsel %vm812_vm4, %v2917_v59, %v3070_v26  ;;  %v1021_v1 = vsel %vm1006_vm1, %v1018_v3, %v1020_v28  ;;  %v1135_v59 = vrot.slane %v3084_v35, 2  ;;  %v1144_v3 = vsel %vm1006_vm1, %v1141_v16, %v1143_v22 }
  0xb8   : > { %465 = vrot.lane.b32.xlu0 %v412_v46, %s2510_s9  ;;  %v1281_v46 = vshrl.u32 %v2273_v5, 16  ;;  %v1284_v18 = vshll.u32 %v2273_v5, 16  ;;  %v3118_v5 = vld [vmem:[%s2750_s17 + $0x40] sm:$0xff]   ;;  %v1454_v9 = vsel %vm1447_vm2, %v1451_v25, %v1453_v13  ;;  %v1140_v41 = vsel %vm1006_vm1, %v1137_v39, %v1139_v7 }
  0xb9   : > { %v1136_v56 = vsel %vm1006_vm1, %v1133_v29, %v1135_v59  ;;  %v449_v29 = vshll.u32 %v3118_v5, 16 }
  0xba   : > { %v1283_v15 = vrot.slane %v1281_v46, 2  ;;  %v417_v46 = vshll.u32 %v3130_v58, 16 }
  0xbb   : > { %597 = vrot.lane.b32.xlu1 %v580_v49, %s2506_s24  ;;  %v1319_v49 = vrot.slane %v1317_v45, 2  ;;  %v1461_v45 = vrot.slane %v3099_v60, 3 }
  0xbc   : > { %589 = vrot.lane.b32.xlu0 %v572_v11, %s2506_s24  ;;  %v1013_v11 = vsel %vm1006_vm1, %v1010_v61, %v1012_v30 }
  0xbd   : > { %v1462_v6 = vsel %vm1447_vm2, %v1459_v8, %v1461_v45 }
  0xbf   : > { %720 = vrot.lane.b32.xlu1 %v703_v24, %s2505_s22  ;;  %v1286_v24 = vrot.slane %v1284_v18, 3  ;;  %v447_v18 = vor.u32 %v445_v0, %v3002_v36  ;;  %v3169_v36 = vrot.slane %v417_v46, 1 }
  0xc0   : > { %712 = vrot.lane.b32.xlu0 %v695_v20, %s2505_s22  ;;  %v3115_v20 = vor.u32 %v1322_v34, %v1319_v49  ;;  %v3161_v49 = vld [vmem:[%s2750_s17 + $0x20] sm:$0xff]   ;;  %v3172_v34 = vld [vmem:[%s2750_s17 + $0x48] sm:$0xff]  }
  0xc1   : > { %v3126_v61 = vor.u32 %v1286_v24, %v1283_v15  ;;  %v704_v0 = vrot.slane %v3172_v34, 1 }
  0xc2   : > { %v1324_v16 = vsel %vm1253_vm5, %v2972_v54, %v3115_v20  ;;  %v2282_v54 = vld [vmem:[%s2750_s17 + $0x48] sm:$0xff]  }
  0xc3   : > { %914 = vrot.lane.b32.xlu1 %v883_v21, %s2511_s21  ;;  %v1288_v21 = vsel %vm1253_vm5, %v2974_v62, %v3126_v61  ;;  %v3156_v62 = vld [vmem:[%s2750_s17 + $0x40] sm:$0xff]   ;;  %v885_v15 = vshrl.u32 %v2282_v54, 16  ;;  %v888_v25 = vshll.u32 %v2282_v54, 16  ;;  %v3192_v54 = vld [vmem:[%s2750_s17 + $0x48] sm:$0xff]  }
  0xc4   : > { %906 = vrot.lane.b32.xlu0 %v847_v19, %s2511_s21  ;;  %v413_v19 = vshrl.u32 %v2982_v12, 16  ;;  %v2295_v12 = vld [vmem:[%s2750_s17] sm:$0xff]   ;;  %v581_v48 = vrot.slane %v3156_v62, 1  ;;  %v1022_v38 = vrot.slane %v3192_v54, 2 }
  0xc5   : > { %308 = vst.msk [vmem:[#allocation2] sm:$0xff] %vm307_vm6, %v2295_v12  ;;  %v887_v46 = vrot.slane %v885_v15, 1  ;;  %v2288_v15 = vld [vmem:[%s2750_s17 + $0x50] sm:$0xff]  }
  0xc6   : > { %v415_v8 = vor.u32 %v413_v19, %v3020_v17  ;;  %v573_v17 = vrot.slane %v3161_v49, 1  ;;  %v2299_v19 = vld [vmem:[%s2750_s17 + $0x8] sm:$0xff]  }
  0xc7   : > { %1038 = vrot.lane.b32.xlu1 %v1021_v1, %s2508_s27  ;;  %v3153_v1 = vrot.slane %v449_v29, 1  ;;  %309 = vst.msk [vmem:[#allocation2 + $0x8] sm:$0xff] %vm307_vm6, %v2299_v19 }
  0xc8   : > { %1030 = vrot.lane.b32.xlu0 %v1013_v11, %s2508_s27  ;;  %v2283_v11 = vld [vmem:[%s2750_s17 + $0x28] sm:$0xff]   ;;  %v574_v37 = vsel %vm565_vm0, %v571_v53, %v573_v17  ;;  %v2514_v53 = vmov 65535  }
  0xc9   : > { %v452_v24 = vsel %vm384_vm3, %v447_v18, %v3153_v1  ;;  %v849_v29 = vshrl.u32 %v2283_v11, 16  ;;  %v890_v18 = vrot.slane %v888_v25, 2  ;;  %v705_v25 = vsel %vm565_vm0, %v702_v55, %v704_v0 }
  0xcb   : > { %1161 = vrot.lane.b32.xlu1 %v1144_v3, %s2507_s26  ;;  %v3183_v3 = vld [vmem:[%s2750_s17 + $0x28] sm:$0xff]  }
  0xcc   : > { %1153 = vrot.lane.b32.xlu0 %v1136_v56, %s2507_s26  ;;  %v2298_v56 = vld [vmem:[%s2750_s17 + $0x28] sm:$0xff]   ;;  %v696_v12 = vrot.slane %v3183_v3, 1 }
  0xcd   : > { %313 = vst.msk [vmem:[#allocation2 + $0x28] sm:$0xff] %vm307_vm6, %v2298_v56  ;;  %v3220_v56 = vor.u32 %v890_v18, %v887_v46  ;;  %v3239_v46 = vld [vmem:[%s2750_s17 + $0x50] sm:$0xff]   ;;  %v1326_v18 = vshrl.u32 %v2288_v15, 16 }
  0xce   : > { %v699_v14 = vsel %vm565_vm0, %v696_v12, %v698_v31 }
  0xcf   : > { %1355 = vrot.lane.b32.xlu1 %v1324_v16, %s2512_s7  ;;  %v420_v16 = vsel %vm384_vm3, %v415_v8, %v3169_v36  ;;  %v2513_v8 = vmov 0.0  }
  0xd0   : > { %1347 = vrot.lane.b32.xlu0 %v1288_v21, %s2512_s7  ;;  %v852_v21 = vshll.u32 %v2283_v11, 16  ;;  %2060 = vmatprep.subr.bf16.mxu0 %v2513_v8 }
  0xd1   : > { %2098 = vmatprep.subr.bf16.mxu1 %v2513_v8  ;;  %2062 = vmatprep.mubr.msk.bf16.mxu0 %vm2515_vm8, %v2513_v8 }
  0xd2   : > { %v854_v11 = vrot.slane %v852_v21, 2  ;;  %2082 = vmatprep.mubr.msk.bf16.mxu1 %vm2515_vm8, %v2513_v8 }
  0xd3   : > { %1479 = vrot.lane.b32.xlu1 %v1462_v6, %s2509_s23  ;;  %v582_v6 = vsel %vm565_vm0, %v579_v43, %v581_v48  ;;  %v851_v43 = vrot.slane %v849_v29, 1  ;;  %v697_v29 = vsel %vm565_vm0, %v694_v33, %v696_v12  ;;  %v1290_v33 = vshrl.u32 %v2289_v2, 16 }
  0xd4   : > { %1471 = vrot.lane.b32.xlu0 %v1454_v9, %s2509_s23  ;;  %v3204_v9 = vld [vmem:[%s2750_s17 + $0x28] sm:$0xff]  }
  0xd5   : > { %v3235_v21 = vor.u32 %v854_v11, %v851_v43  ;;  %v1014_v19 = vrot.slane %v3204_v9, 2  ;;  %v2305_v43 = vld [vmem:[%s2750_s17 + $0x10] sm:$0xff]   ;;  %v2306_v11 = vld [vmem:[%s2750_s17 + $0x38] sm:$0xff]  }
  0xd6   : > { %310 = vst.msk [vmem:[#allocation2 + $0x10] sm:$0xff] %vm307_vm6, %v2305_v43  ;;  %315 = vst.msk [vmem:[#allocation2 + $0x38] sm:$0xff] %vm307_vm6, %v2306_v11  ;;  %v453_v11 = vshrl.u32 %v3118_v5, 16 }
  0xd7   : > { %475 = vrot.lane.b32.xlu1 %v452_v24, %s2510_s9  ;;  %v2301_v24 = vld [vmem:[#allocation6] sm:$0x1f]   ;;  %v865_v27 = vsel %vm812_vm4, %v3235_v21, %v2902_v52  ;;  %v1017_v52 = vsel %vm1006_vm1, %v1014_v19, %v1016_v51 }
  0xd8   : > { %467 = vrot.lane.b32.xlu0 %v420_v16, %s2510_s9  ;;  %v1557_v16 = vsel %vm1555_vm7, 4294967295, %v2514_v53  ;;  %v892_v53 = vsel %vm812_vm4, %v3059_v10, %v3220_v56  ;;  %v2307_v10 = vld [vmem:[%s2750_s17 + $0x18] sm:$0xff]   ;;  %v455_v5 = vor.u32 %v453_v11, %v3153_v1 }
  0xd9   : > { %v1558_v55 = vsel %vm1447_vm2, %v1557_v16, 0  ;;  %v1329_v16 = vshll.u32 %v2288_v15, 16  ;;  %v1023_v15 = vsel %vm1006_vm1, %v1020_v28, %v1022_v38  ;;  %311 = vst.msk [vmem:[#allocation2 + $0x18] sm:$0xff] %vm307_vm6, %v2307_v10  ;;  %v1292_v28 = vrot.slane %v1290_v33, 2 }
  0xda   : > { %v1138_v33 = vsel %vm1006_vm1, %v1135_v59, %v1137_v39  ;;  %v421_v10 = vshrl.u32 %v3130_v58, 16  ;;  %v2302_v11 = vld [vmem:[%s2750_s17 + $0x58] ss:$0 sps:$4 sm:$0x77]  }
  0xdb   : > { %599 = vrot.lane.b32.xlu1 %v582_v6, %s2506_s24  ;;  %v1560_v6 = vand.u32 %v2301_v24, %v1558_v55  ;;  %v856_v24 = vsel %vm812_vm4, %v3070_v26, %v3235_v21  ;;  %v1145_v55 = vrot.slane %v3239_v46, 2  ;;  %v1328_v26 = vrot.slane %v1326_v18, 2 }
  0xdc   : > { %591 = vrot.lane.b32.xlu0 %v574_v37, %s2506_s24  ;;  %v2304_v37 = vld [vmem:[%s2750_s17 + $0x30] sm:$0xff]   ;;  %v423_v58 = vor.u32 %v421_v10, %v3169_v36 }
  0xdd   : > { %2061 = vmatpush3.bf16.msra.mxu0 %v1560_v6  ;;  %2099 = vmatpush3.bf16.msra.mxu1 %v1560_v6  ;;  %314 = vst.msk [vmem:[#allocation2 + $0x30] sm:$0xff] %vm307_vm6, %v2304_v37  ;;  %v1146_v18 = vsel %vm1006_vm1, %v1143_v22, %v1145_v55 }
  0xde   : > { %v428_v50 = vsel %vm384_vm3, %v423_v58, %v2824_v63 }
  0xdf   : > { %722 = vrot.lane.b32.xlu1 %v705_v25, %s2505_s22  ;;  %v1293_v25 = vshll.u32 %v2289_v2, 16  ;;  %v1331_v2 = vrot.slane %v1329_v16, 3  ;;  %v2292_v16 = vld [vmem:[%s2750_s17 + $0x48] ss:$0 sps:$4 sm:$0x11]  }
  0xe0   : > { %714 = vrot.lane.b32.xlu0 %v697_v29, %s2505_s22  ;;  %v1015_v29 = vsel %vm1006_vm1, %v1012_v30, %v1014_v19  ;;  %v2309_v30 = vld [vmem:[%s2750_s17 + $0x20] sm:$0xff]   ;;  %v457_v59 = vshll.u32 %v2292_v16, 16 }
  0xe1   : > { %v1295_v6 = vrot.slane %v1293_v25, 3  ;;  %v3280_v37 = vor.u32 %v1331_v2, %v1328_v26  ;;  %312 = vst.msk [vmem:[#allocation2 + $0x20] sm:$0xff] %vm307_vm6, %v2309_v30  ;;  %v1455_v25 = vrot.slane %v3297_v32, 3  ;;  %v2296_v2 = vld [vmem:[%s2750_s17 + $0x50] ss:$0 sps:$4 sm:$0x33]  }
  0xe2   : > { %v459_v26 = vrot.slane %v457_v59, 1  ;;  %v894_v1 = vshrl.u32 %v2296_v2, 16  ;;  %v1338_v59 = vshll.u32 %v2302_v11, 16 }
  0xe3   : > { %916 = vrot.lane.b32.xlu1 %v892_v53, %s2511_s21  ;;  %v3283_v53 = vld [vmem:[%s2750_s17 + $0x50] sm:$0xff]   ;;  %v3294_v43 = vor.u32 %v1295_v6, %v1292_v28  ;;  %v1333_v22 = vsel %vm1253_vm5, %v3115_v20, %v3280_v37  ;;  %v897_v6 = vshll.u32 %v2296_v2, 16 }
  0xe4   : > { %908 = vrot.lane.b32.xlu0 %v856_v24, %s2511_s21  ;;  %v1463_v35 = vrot.slane %v3283_v53, 3  ;;  %v460_v60 = vsel %vm384_vm3, %v455_v5, %v459_v26  ;;  %v2294_v28 = vld [vmem:[%s2750_s17 + $0x50] ss:$0 sps:$4 sm:$0x11]   ;;  %v896_v42 = vrot.slane %v894_v1, 1  ;;  %v1340_v10 = vrot.slane %v1338_v59, 3 }
  0xe5   : > { %v1297_v24 = vsel %vm1253_vm5, %v3126_v61, %v3294_v43  ;;  %v1456_v61 = vsel %vm1447_vm2, %v1453_v13, %v1455_v25  ;;  %v706_v16 = vrot.slane %v2294_v28, 1  ;;  %v899_v30 = vrot.slane %v897_v6, 2 }
  0xe6   : > { %v1464_v20 = vsel %vm1447_vm2, %v1461_v45, %v1463_v35  ;;  %v1306_v57 = vsel %vm1253_vm5, %v3294_v43, %v2965_v47  ;;  %vm1527_vm3 = vcmask 72704   ;;  %v1458_v47 = vsel %vm1447_vm2, %v1455_v25, %v1457_v4 }
  0xe7   : > { %1040 = vrot.lane.b32.xlu1 %v1023_v15, %s2508_s27  ;;  %v2293_v15 = vld [vmem:[%s2750_s17 + $0x48] ss:$0 sps:$4 sm:$0x11]   ;;  %v707_v62 = vsel %vm565_vm0, %v704_v0, %v706_v16  ;;  %v1335_v0 = vshrl.u32 %v2302_v11, 16 }
  0xe8   : > { %1032 = vrot.lane.b32.xlu0 %v1015_v29, %s2508_s27  ;;  %v583_v45 = vrot.slane %v2293_v15, 1 }
  0xea   : > { %v584_v13 = vsel %vm565_vm0, %v581_v48, %v583_v45  ;;  %v900_v48 = vor.u32 %v899_v30, %v896_v42 }
  0xeb   : > { %1163 = vrot.lane.b32.xlu1 %v1146_v18, %s2507_s26 }
  0xec   : > { %1155 = vrot.lane.b32.xlu0 %v1138_v33, %s2507_s26  ;;  %v576_v33 = vsel %vm565_vm0, %v573_v17, %v575_v23  ;;  %v901_v23 = vsel %vm812_vm4, %v3220_v56, %v900_v48  ;;  %v2300_v17 = vld [vmem:[%s2750_s17 + $0x58] ss:$0 sps:$4 sm:$0x33]   ;;  %v1337_v56 = vrot.slane %v1335_v0, 2  ;;  %vm1494_vm0 = vcmask 72768  }
  0xed   : > { %v1147_v12 = vrot.slane %v2300_v17, 2 }
  0xee   : > { %v1341_v15 = vor.u32 %v1340_v10, %v1337_v56 }
  0xef   : > { %1357 = vrot.lane.b32.xlu1 %v1333_v22, %s2512_s7  ;;  %v2297_v22 = vld [vmem:[%s2750_s17 + $0x50] ss:$0 sps:$4 sm:$0x33]   ;;  %v1148_v21 = vsel %vm1006_vm1, %v1145_v55, %v1147_v12 }
  0xf0   : > { %1349 = vrot.lane.b32.xlu0 %v1297_v24, %s2512_s7  ;;  %v1024_v34 = vrot.slane %v2297_v22, 2  ;;  %v1342_v19 = vsel %vm1253_vm5, %v3280_v37, %v1341_v15 }
  0xf2   : > { %v1025_v3 = vsel %vm1006_vm1, %v1022_v38, %v1024_v34  ;;  %vm1757_vm1 = vcmask 519168  }
  0xf3   : > { %1481 = vrot.lane.b32.xlu1 %v1464_v20, %s2509_s23  ;;  %v2303_v20 = vld [vmem:[%s2750_s17 + $0x58] ss:$0 sps:$4 sm:$0x77]   ;;  %s2396_s17 = scalar_lea.vmem %s3565_s16, 1152 }
  0xf4   : > { %1473 = vrot.lane.b32.xlu0 %v1456_v61, %s2509_s23  ;;  %v1465_v46 = vrot.slane %v2303_v20, 3  ;;  %p2397_p4 = scmp.ne.s32.totalorder %s3565_s16, %s2396_s17 }
  0xf6   : > { %v1466_v39 = vsel %vm1447_vm2, %v1463_v35, %v1465_v46  ;;  %p2398_p10 = pnand %p2397_p4, %p2684_p8 }
  0xf7   : > { %477 = vrot.lane.b32.xlu1 %v460_v60, %s2510_s9 }
  0xf8   : > { %469 = vrot.lane.b32.xlu0 %v428_v50, %s2510_s9  ;;  %p2399_p6 = pneg %p2398_p10 }
  0xf9   : > { %v709_v29 = vpop.permute.xlu1 %708  ;;  %v586_v18 = vpop.permute.xlu0 %585 }
  0xfb   : > { %601 = vrot.lane.b32.xlu1 %v584_v13, %s2506_s24 }
  0xfc   : > { %593 = vrot.lane.b32.xlu0 %v576_v33, %s2506_s24 }
  0xfd   : > { %v1150_v36 = vpop.permute.xlu1 %1149  ;;  %v1027_v63 = vpop.permute.xlu0 %1026 }
  0xff   : > { %724 = vrot.lane.b32.xlu1 %v707_v62, %s2505_s22 }
 0x100   : > { %716 = vrot.lane.b32.xlu0 %v699_v14, %s2505_s22  ;;  %s2516_s22 = smov [#allocation9]  }
 0x101   : > { %v1468_v49 = vpop.permute.xlu1 %1467  ;;  %v462_v24 = vpop.permute.xlu0 %461  ;;  %s2400_s24 = sshll.u32 %s2516_s22, 4  ;;  %s2401_s24 = int_to_ptr.vmem [resolvable:$false] %s2400_s24 }
 0x102   : > { %489 = vst.msk [vmem:[#allocation2] sm:$0xff] %vm488_vm9, %v462_v24  ;;  %p2403_p11 = scmp.lt.s32.totalorder %s3565_s16, %s2401_s24 }
 0x103   : > { %613 = vst.msk [vmem:[#allocation2] sm:$0xff] %vm612_vm10, %v586_v18  ;;  %918 = vrot.lane.b32.xlu1 %v901_v23, %s2511_s21 }
 0x104   : > { %736 = vst.msk [vmem:[#allocation2] sm:$0xff] %vm735_vm11, %v709_v29  ;;  %910 = vrot.lane.b32.xlu0 %v865_v27, %s2511_s21 }
 0x105   : > { %v903_v31 = vpop.permute.xlu1 %902 }
 0x106   : > { %930 = vst.msk [vmem:[#allocation2] sm:$0xff] %vm929_vm12, %v903_v31  ;;  %v1344_v54 = vpop.permute.xlu0 %1343 }
 0x107   : > { %1054 = vst.msk [vmem:[#allocation2] sm:$0xff] %vm1053_vm13, %v1027_v63  ;;  %1042 = vrot.lane.b32.xlu1 %v1025_v3, %s2508_s27 }
 0x108   : > { %1177 = vst.msk [vmem:[#allocation2] sm:$0xff] %vm1176_vm14, %v1150_v36  ;;  %1034 = vrot.lane.b32.xlu0 %v1017_v52, %s2508_s27 }
 0x109   : > { %1371 = vst.msk [vmem:[#allocation2] sm:$0xff] %vm1370_vm15, %v1344_v54  ;;  %v472_v38 = vpop.permute.xlu1 %471 }
 0x10a   : > { %1495 = vst.msk [vmem:[#allocation2] sm:$0xff] %vm1494_vm0, %v1468_v49  ;;  %v464_v51 = vpop.permute.xlu0 %463 }
 0x10b   : > { %494 = vst.msk [vmem:[#allocation2 + $0x28] sm:$0xff] %vm488_vm9, %v472_v38  ;;  %1165 = vrot.lane.b32.xlu1 %v1148_v21, %s2507_s26  ;;  %490 = vst.msk [vmem:[#allocation2 + $0x8] sm:$0xff] %vm488_vm9, %v464_v51 }
 0x10c   : > { %1157 = vrot.lane.b32.xlu0 %v1140_v41, %s2507_s26  ;;  %s2402_s26 = scalar_lea.vmem %s2401_s24, 2304 }
 0x10d   : > { %v596_v9 = vpop.permute.xlu1 %595  ;;  %p2404_p13 = scmp.lt.s32.totalorder %s2402_s26, %s2396_s17 }
 0x10e   : > { %618 = vst.msk [vmem:[#allocation2 + $0x28] sm:$0xff] %vm612_vm10, %v596_v9  ;;  %v588_v7 = vpop.permute.xlu0 %587 }
 0x10f   : > { %1359 = vrot.lane.b32.xlu1 %v1342_v19, %s2512_s7  ;;  %614 = vst.msk [vmem:[#allocation2 + $0x8] sm:$0xff] %vm612_vm10, %v588_v7  ;;  %p2405_p3 = por %p2404_p13, %p2403_p11 }
 0x110   : > { %1351 = vrot.lane.b32.xlu0 %v1306_v57, %s2512_s7 }
 0x111   : > { %v719_v44 = vpop.permute.xlu1 %718  ;;  %v1504_v55 = vld [vmem:[#allocation2] sm:$0xff]  ;;  %p2406_p7 = pnand %p2405_p3, %p2399_p6 }
 0x112   : > { %741 = vst.msk [vmem:[#allocation2 + $0x28] sm:$0xff] %vm735_vm11, %v719_v44  ;;  %2063 = vmatmul.mubr.msk.bf16.vlgmr.msra.gmra.mrb[0].mxu0 %vm1527_vm3, %v1504_v55  ;;  %v711_v37 = vpop.permute.xlu0 %710 }
 0x113   : > { %2066 = vmatprep.mubr.msk.bf16.mxu0 %vm2515_vm8, %v2513_v8  ;;  %1483 = vrot.lane.b32.xlu1 %v1466_v39, %s2509_s23  ;;  %737 = vst.msk [vmem:[#allocation2 + $0x8] sm:$0xff] %vm735_vm11, %v711_v37 }
 0x114   : > { %1475 = vrot.lane.b32.xlu0 %v1458_v47, %s2509_s23 }
 0x115   : > { %v913_v53 = vpop.permute.xlu1 %912 }
 0x116   : > { %935 = vst.msk [vmem:[#allocation2 + $0x28] sm:$0xff] %vm929_vm12, %v913_v53  ;;  %v905_v43 = vpop.permute.xlu0 %904 }
 0x117   : > { %931 = vst.msk [vmem:[#allocation2 + $0x8] sm:$0xff] %vm929_vm12, %v905_v43 }
 0x119   : > { %v1037_v40 = vpop.permute.xlu1 %1036 }
 0x11a   : > { %1059 = vst.msk [vmem:[#allocation2 + $0x28] sm:$0xff] %vm1053_vm13, %v1037_v40  ;;  %v1029_v4 = vpop.permute.xlu0 %1028  ;;  %v3500_v40 = vld [vmem:[#allocation8] ss:$0 sm:$0xff] }
 0x11b   : > { %1055 = vst.msk [vmem:[#allocation2 + $0x8] sm:$0xff] %vm1053_vm13, %v1029_v4 }
 0x11d   : > { %v1160_v32 = vpop.permute.xlu1 %1159 }
 0x11e   : > { %1182 = vst.msk [vmem:[#allocation2 + $0x28] sm:$0xff] %vm1176_vm14, %v1160_v32  ;;  %v1152_v35 = vpop.permute.xlu0 %1151 }
 0x11f   : > { %1178 = vst.msk [vmem:[#allocation2 + $0x8] sm:$0xff] %vm1176_vm14, %v1152_v35 }
 0x121   : > { %v1354_v25 = vpop.permute.xlu1 %1353 }
 0x122   : > { %1376 = vst.msk [vmem:[#allocation2 + $0x28] sm:$0xff] %vm1370_vm15, %v1354_v25  ;;  %v1346_v5 = vpop.permute.xlu0 %1345 }
 0x123   : > { %1372 = vst.msk [vmem:[#allocation2 + $0x8] sm:$0xff] %vm1370_vm15, %v1346_v5 }
 0x125   : > { %v1478_v26 = vpop.permute.xlu1 %1477 }
 0x126   : > { %1500 = vst.msk [vmem:[#allocation2 + $0x28] sm:$0xff] %vm1494_vm0, %v1478_v26  ;;  %v1470_v2 = vpop.permute.xlu0 %1469 }
 0x127   : > { %1496 = vst.msk [vmem:[#allocation2 + $0x8] sm:$0xff] %vm1494_vm0, %v1470_v2 }
 0x129   : > { %v474_v61 = vpop.permute.xlu1 %473 }
 0x12a   : > { %495 = vst.msk [vmem:[#allocation2 + $0x30] sm:$0xff] %vm488_vm9, %v474_v61  ;;  %v466_v58 = vpop.permute.xlu0 %465 }
 0x12b   : > { %491 = vst.msk [vmem:[#allocation2 + $0x10] sm:$0xff] %vm488_vm9, %v466_v58 }
 0x12d   : > { %v598_v29 = vpop.permute.xlu1 %597  ;;  %v1509_v60 = vld [vmem:[#allocation2 + $0x28] sm:$0xff] }
 0x12e   : > { %619 = vst.msk [vmem:[#allocation2 + $0x30] sm:$0xff] %vm612_vm10, %v598_v29  ;;  %2083 = vmatmul.mubr.msk.bf16.vlgmr.msra.gmra.mrb[0].mxu1 %vm1527_vm3, %v1509_v60  ;;  %v590_v45 = vpop.permute.xlu0 %589  ;;  %v1505_v28 = vld [vmem:[#allocation2 + $0x8] sm:$0xff] }
 0x12f   : > { %2086 = vmatprep.mubr.msk.bf16.mxu1 %vm2515_vm8, %v2513_v8  ;;  %615 = vst.msk [vmem:[#allocation2 + $0x10] sm:$0xff] %vm612_vm10, %v590_v45  ;;  %2067 = vmatmul.mubr.msk.bf16.gmra.mrb[4].mxu0 %vm1527_vm3, %v1505_v28 }
 0x130   : > { %2070 = vmatprep.mubr.msk.bf16.mxu0 %vm2515_vm8, %v2513_v8 }
 0x131   : > { %v721_v1 = vpop.permute.xlu1 %720 }
 0x132   : > { %742 = vst.msk [vmem:[#allocation2 + $0x30] sm:$0xff] %vm735_vm11, %v721_v1  ;;  %v713_v6 = vpop.permute.xlu0 %712 }
 0x133   : > { %738 = vst.msk [vmem:[#allocation2 + $0x10] sm:$0xff] %vm735_vm11, %v713_v6 }
 0x135   : > { %v915_v18 = vpop.permute.xlu1 %914 }
 0x136   : > { %936 = vst.msk [vmem:[#allocation2 + $0x30] sm:$0xff] %vm929_vm12, %v915_v18  ;;  %v907_v50 = vpop.permute.xlu0 %906 }
 0x137   : > { %932 = vst.msk [vmem:[#allocation2 + $0x10] sm:$0xff] %vm929_vm12, %v907_v50 }
 0x139   : > { %v1039_v13 = vpop.permute.xlu1 %1038 }
 0x13a   : > { %1060 = vst.msk [vmem:[#allocation2 + $0x30] sm:$0xff] %vm1053_vm13, %v1039_v13  ;;  %v1031_v36 = vpop.permute.xlu0 %1030 }
 0x13b   : > { %1056 = vst.msk [vmem:[#allocation2 + $0x10] sm:$0xff] %vm1053_vm13, %v1031_v36 }
 0x13d   : > { %v1162_v16 = vpop.permute.xlu1 %1161 }
 0x13e   : > { %1183 = vst.msk [vmem:[#allocation2 + $0x30] sm:$0xff] %vm1176_vm14, %v1162_v16  ;;  %v1154_v42 = vpop.permute.xlu0 %1153 }
 0x13f   : > { %1179 = vst.msk [vmem:[#allocation2 + $0x10] sm:$0xff] %vm1176_vm14, %v1154_v42 }
 0x141   : > { %v1356_v30 = vpop.permute.xlu1 %1355 }
 0x142   : > { %1377 = vst.msk [vmem:[#allocation2 + $0x30] sm:$0xff] %vm1370_vm15, %v1356_v30  ;;  %v1348_v33 = vpop.permute.xlu0 %1347 }
 0x143   : > { %1373 = vst.msk [vmem:[#allocation2 + $0x10] sm:$0xff] %vm1370_vm15, %v1348_v33 }
 0x145   : > { %v1480_v63 = vpop.permute.xlu1 %1479 }
 0x146   : > { %1501 = vst.msk [vmem:[#allocation2 + $0x30] sm:$0xff] %vm1494_vm0, %v1480_v63  ;;  %v1472_v62 = vpop.permute.xlu0 %1471 }
 0x147   : > { %1497 = vst.msk [vmem:[#allocation2 + $0x10] sm:$0xff] %vm1494_vm0, %v1472_v62 }
 0x149   : > { %v476_v48 = vpop.permute.xlu1 %475 }
 0x14a   : > { %496 = vst.msk [vmem:[#allocation2 + $0x38] sm:$0xff] %vm488_vm9, %v476_v48  ;;  %v468_v22 = vpop.permute.xlu0 %467 }
 0x14b   : > { %492 = vst.msk [vmem:[#allocation2 + $0x18] sm:$0xff] %vm488_vm9, %v468_v22 }
 0x14d   : > { %v600_v11 = vpop.permute.xlu1 %599  ;;  %v1510_v14 = vld [vmem:[#allocation2 + $0x30] sm:$0xff] }
 0x14e   : > { %620 = vst.msk [vmem:[#allocation2 + $0x38] sm:$0xff] %vm612_vm10, %v600_v11  ;;  %2087 = vmatmul.mubr.msk.bf16.gmra.mrb[4].mxu1 %vm1527_vm3, %v1510_v14  ;;  %v592_v49 = vpop.permute.xlu0 %591  ;;  %v1506_v23 = vld [vmem:[#allocation2 + $0x10] sm:$0xff] }
 0x14f   : > { %2090 = vmatprep.mubr.msk.bf16.mxu1 %vm2515_vm8, %v2513_v8  ;;  %616 = vst.msk [vmem:[#allocation2 + $0x18] sm:$0xff] %vm612_vm10, %v592_v49  ;;  %2071 = vmatmul.mubr.msk.bf16.gmra.mrb[8].mxu0 %vm1527_vm3, %v1506_v23 }
 0x150   : > { %2074 = vmatprep.mubr.msk.bf16.mxu0 %vm2515_vm8, %v2513_v8 }
 0x151   : > { %v723_v34 = vpop.permute.xlu1 %722 }
 0x152   : > { %743 = vst.msk [vmem:[#allocation2 + $0x38] sm:$0xff] %vm735_vm11, %v723_v34  ;;  %v715_v17 = vpop.permute.xlu0 %714 }
 0x153   : > { %739 = vst.msk [vmem:[#allocation2 + $0x18] sm:$0xff] %vm735_vm11, %v715_v17 }
 0x155   : > { %v917_v0 = vpop.permute.xlu1 %916 }
 0x156   : > { %937 = vst.msk [vmem:[#allocation2 + $0x38] sm:$0xff] %vm929_vm12, %v917_v0  ;;  %v909_v59 = vpop.permute.xlu0 %908 }
 0x157   : > { %933 = vst.msk [vmem:[#allocation2 + $0x18] sm:$0xff] %vm929_vm12, %v909_v59 }
 0x159   : > { %v1041_v24 = vpop.permute.xlu1 %1040 }
 0x15a   : > { %1061 = vst.msk [vmem:[#allocation2 + $0x38] sm:$0xff] %vm1053_vm13, %v1041_v24  ;;  %v1033_v27 = vpop.permute.xlu0 %1032 }
 0x15b   : > { %1057 = vst.msk [vmem:[#allocation2 + $0x18] sm:$0xff] %vm1053_vm13, %v1033_v27 }
 0x15d   : > { %v1164_v31 = vpop.permute.xlu1 %1163 }
 0x15e   : > { %1184 = vst.msk [vmem:[#allocation2 + $0x38] sm:$0xff] %vm1176_vm14, %v1164_v31  ;;  %v1156_v3 = vpop.permute.xlu0 %1155 }
 0x15f   : > { %1180 = vst.msk [vmem:[#allocation2 + $0x18] sm:$0xff] %vm1176_vm14, %v1156_v3 }
 0x161   : > { %v1358_v12 = vpop.permute.xlu1 %1357 }
 0x162   : > { %1378 = vst.msk [vmem:[#allocation2 + $0x38] sm:$0xff] %vm1370_vm15, %v1358_v12  ;;  %v1350_v56 = vpop.permute.xlu0 %1349 }
 0x163   : > { %1374 = vst.msk [vmem:[#allocation2 + $0x18] sm:$0xff] %vm1370_vm15, %v1350_v56 }
 0x165   : > { %v1482_v10 = vpop.permute.xlu1 %1481 }
 0x166   : > { %1502 = vst.msk [vmem:[#allocation2 + $0x38] sm:$0xff] %vm1494_vm0, %v1482_v10  ;;  %v1474_v52 = vpop.permute.xlu0 %1473 }
 0x167   : > { %1498 = vst.msk [vmem:[#allocation2 + $0x18] sm:$0xff] %vm1494_vm0, %v1474_v52 }
 0x169   : > { %v478_v54 = vpop.permute.xlu1 %477 }
 0x16a   : > { %497 = vst.msk [vmem:[#allocation2 + $0x40] sm:$0xff] %vm488_vm9, %v478_v54  ;;  %v470_v38 = vpop.permute.xlu0 %469 }
 0x16b   : > { %493 = vst.msk [vmem:[#allocation2 + $0x20] sm:$0xff] %vm488_vm9, %v470_v38 }
 0x16d   : > { %v602_v21 = vpop.permute.xlu1 %601  ;;  %v1511_v15 = vld [vmem:[#allocation2 + $0x38] sm:$0xff] }
 0x16e   : > { %621 = vst.msk [vmem:[#allocation2 + $0x40] sm:$0xff] %vm612_vm10, %v602_v21  ;;  %2091 = vmatmul.mubr.msk.bf16.gmra.mrb[8].mxu1 %vm1527_vm3, %v1511_v15  ;;  %v594_v20 = vpop.permute.xlu0 %593  ;;  %v1507_v41 = vld [vmem:[#allocation2 + $0x18] sm:$0xff] }
 0x16f   : > { %2094 = vmatprep.mubr.msk.bf16.mxu1 %vm2515_vm8, %v2513_v8  ;;  %617 = vst.msk [vmem:[#allocation2 + $0x20] sm:$0xff] %vm612_vm10, %v594_v20  ;;  %2075 = vmatmul.mubr.msk.bf16.gmra.mrb[12].mxu0 %vm1527_vm3, %v1507_v41 }
 0x170   : > { %2078 = vmatprep.mubr.msk.bf16.mxu0 %vm2515_vm8, %v2513_v8 }
 0x171   : > { %v725_v51 = vpop.permute.xlu1 %724 }
 0x172   : > { %744 = vst.msk [vmem:[#allocation2 + $0x40] sm:$0xff] %vm735_vm11, %v725_v51  ;;  %v717_v9 = vpop.permute.xlu0 %716 }
 0x173   : > { %740 = vst.msk [vmem:[#allocation2 + $0x20] sm:$0xff] %vm735_vm11, %v717_v9 }
 0x175   : > { %v919_v19 = vpop.permute.xlu1 %918 }
 0x176   : > { %938 = vst.msk [vmem:[#allocation2 + $0x40] sm:$0xff] %vm929_vm12, %v919_v19  ;;  %v911_v46 = vpop.permute.xlu0 %910 }
 0x177   : > { %934 = vst.msk [vmem:[#allocation2 + $0x20] sm:$0xff] %vm929_vm12, %v911_v46 }
 0x179   : > { %v1043_v57 = vpop.permute.xlu1 %1042 }
 0x17a   : > { %1062 = vst.msk [vmem:[#allocation2 + $0x40] sm:$0xff] %vm1053_vm13, %v1043_v57  ;;  %v1035_v7 = vpop.permute.xlu0 %1034 }
 0x17b   : > { %1058 = vst.msk [vmem:[#allocation2 + $0x20] sm:$0xff] %vm1053_vm13, %v1035_v7 }
 0x17d   : > { %v1166_v44 = vpop.permute.xlu1 %1165 }
 0x17e   : > { %1185 = vst.msk [vmem:[#allocation2 + $0x40] sm:$0xff] %vm1176_vm14, %v1166_v44  ;;  %v1158_v8 = vpop.permute.xlu0 %1157 }
 0x17f   : > { %1181 = vst.msk [vmem:[#allocation2 + $0x20] sm:$0xff] %vm1176_vm14, %v1158_v8 }
 0x181   : > { %v1360_v55 = vpop.permute.xlu1 %1359 }
 0x182   : > { %1379 = vst.msk [vmem:[#allocation2 + $0x40] sm:$0xff] %vm1370_vm15, %v1360_v55  ;;  %v1352_v39 = vpop.permute.xlu0 %1351 }
 0x183   : > { %1375 = vst.msk [vmem:[#allocation2 + $0x20] sm:$0xff] %vm1370_vm15, %v1352_v39 }
 0x185   : > { %v1484_v47 = vpop.permute.xlu1 %1483 }
 0x186   : > { %1503 = vst.msk [vmem:[#allocation2 + $0x40] sm:$0xff] %vm1494_vm0, %v1484_v47  ;;  %v1476_v37 = vpop.permute.xlu0 %1475 }
 0x187   : > { %1499 = vst.msk [vmem:[#allocation2 + $0x20] sm:$0xff] %vm1494_vm0, %v1476_v37 }
 0x18d   : > { %v1512_v53 = vld [vmem:[#allocation2 + $0x40] sm:$0xff] }
 0x18e   : > { %2095 = vmatmul.mubr.msk.bf16.gmra.mrb[12].mxu1 %vm1527_vm3, %v1512_v53  ;;  %v1508_v43 = vld [vmem:[#allocation2 + $0x20] sm:$0xff] }
 0x18f   : > { %2079 = vmatmul.mubr.msk.bf16.gmra.mrb[16].mxu0 %vm1527_vm3, %v1508_v43 }
 0x1e5   : > { %v1596_v4 = vpop.f32.mrb[0].mxu0 }
 0x1e6   : > { %v1597_v32 = vadd.f32 %v3500_v40, %v1596_v4  ;;  %v2064_v35 = vpop.f32.mrb[1].mxu0 }
 0x1e7   : > { %v1599_v25 = vpop.f32.mrb[2].mxu0 }
 0x1e8   : > { %v1667_v5 = vmax.f32 %v1597_v32, 0.0  ;;  %v1600_v26 = vadd.f32 %v3500_v40, %v1599_v25  ;;  %v2065_v2 = vpop.f32.mrb[3].mxu0 }
 0x1ea   : > { %v2032_v61 = vpack.c.bf16 %v1667_v5, %v1667_v5  ;;  %v1668_v58 = vmax.f32 %v1600_v26, 0.0 }
 0x1ec   : > { %1758 = vst.msk [vmem:[%s3505_s11] sm:$0xf] %vm1757_vm1, %v2032_v61  ;;  %v2033_v29 = vpack.c.bf16 %v1668_v58, %v1668_v58 }
 0x1ee   : > { %1759 = vst.msk [vmem:[%s3505_s11 + $0x4] sm:$0xf] %vm1757_vm1, %v2033_v29 }
 0x201   : > { %v1636_v60 = vpop.f32.mrb[0].mxu1 }
 0x202   : > { %v1637_v45 = vadd.f32 %v3500_v40, %v1636_v60  ;;  %v2084_v28 = vpop.f32.mrb[1].mxu1  ;;  %v1604_v1 = vpop.f32.mrb[4].mxu0 }
 0x203   : > { %v1639_v6 = vpop.f32.mrb[2].mxu1  ;;  %v1605_v18 = vadd.f32 %v3500_v40, %v1604_v1  ;;  %v2068_v13 = vpop.f32.mrb[5].mxu0 }
 0x204   : > { %v1677_v50 = vmax.f32 %v1637_v45, 0.0  ;;  %v1640_v36 = vadd.f32 %v3500_v40, %v1639_v6  ;;  %v2085_v16 = vpop.f32.mrb[3].mxu1  ;;  %v1607_v42 = vpop.f32.mrb[6].mxu0 }
 0x205   : > { %v1669_v30 = vmax.f32 %v1605_v18, 0.0  ;;  %v1608_v63 = vadd.f32 %v3500_v40, %v1607_v42  ;;  %v2069_v48 = vpop.f32.mrb[7].mxu0 }
 0x206   : > { %v2042_v33 = vpack.c.bf16 %v1677_v50, %v1677_v50  ;;  %v1678_v62 = vmax.f32 %v1640_v36, 0.0 }
 0x207   : > { %v2034_v22 = vpack.c.bf16 %v1669_v30, %v1669_v30  ;;  %v1670_v11 = vmax.f32 %v1608_v63, 0.0 }
 0x208   : > { %1768 = vst.msk [vmem:[%s3505_s11 + $0x28] sm:$0xf] %vm1757_vm1, %v2042_v33  ;;  %v2043_v14 = vpack.c.bf16 %v1678_v62, %v1678_v62 }
 0x209   : > { %1760 = vst.msk [vmem:[%s3505_s11 + $0x8] sm:$0xf] %vm1757_vm1, %v2034_v22  ;;  %v2035_v49 = vpack.c.bf16 %v1670_v11, %v1670_v11 }
 0x20a   : > { %1769 = vst.msk [vmem:[%s3505_s11 + $0x2c] sm:$0xf] %vm1757_vm1, %v2043_v14 }
 0x20b   : > { %1761 = vst.msk [vmem:[%s3505_s11 + $0xc] sm:$0xf] %vm1757_vm1, %v2035_v49 }
 0x221   : > { %v1644_v23 = vpop.f32.mrb[4].mxu1 }
 0x222   : > { %v1645_v34 = vadd.f32 %v3500_v40, %v1644_v23  ;;  %v2088_v17 = vpop.f32.mrb[5].mxu1  ;;  %v1612_v0 = vpop.f32.mrb[8].mxu0 }
 0x223   : > { %v1647_v59 = vpop.f32.mrb[6].mxu1  ;;  %v1613_v24 = vadd.f32 %v3500_v40, %v1612_v0  ;;  %v2072_v31 = vpop.f32.mrb[9].mxu0 }
 0x224   : > { %v1679_v27 = vmax.f32 %v1645_v34, 0.0  ;;  %v1648_v3 = vadd.f32 %v3500_v40, %v1647_v59  ;;  %v2089_v12 = vpop.f32.mrb[7].mxu1  ;;  %v1615_v56 = vpop.f32.mrb[10].mxu0 }
 0x225   : > { %v1671_v10 = vmax.f32 %v1613_v24, 0.0  ;;  %v1616_v54 = vadd.f32 %v3500_v40, %v1615_v56  ;;  %v2073_v21 = vpop.f32.mrb[11].mxu0 }
 0x226   : > { %v2044_v52 = vpack.c.bf16 %v1679_v27, %v1679_v27  ;;  %v1680_v38 = vmax.f32 %v1648_v3, 0.0 }
 0x227   : > { %v2036_v15 = vpack.c.bf16 %v1671_v10, %v1671_v10  ;;  %v1672_v20 = vmax.f32 %v1616_v54, 0.0 }
 0x228   : > { %1770 = vst.msk [vmem:[%s3505_s11 + $0x30] sm:$0xf] %vm1757_vm1, %v2044_v52  ;;  %v2045_v41 = vpack.c.bf16 %v1680_v38, %v1680_v38 }
 0x229   : > { %1762 = vst.msk [vmem:[%s3505_s11 + $0x10] sm:$0xf] %vm1757_vm1, %v2036_v15  ;;  %v2037_v51 = vpack.c.bf16 %v1672_v20, %v1672_v20 }
 0x22a   : > { %1771 = vst.msk [vmem:[%s3505_s11 + $0x34] sm:$0xf] %vm1757_vm1, %v2045_v41 }
 0x22b   : > { %1763 = vst.msk [vmem:[%s3505_s11 + $0x14] sm:$0xf] %vm1757_vm1, %v2037_v51 }
 0x241   : > { %v1652_v9 = vpop.f32.mrb[8].mxu1 }
 0x242   : > { %v1653_v19 = vadd.f32 %v3500_v40, %v1652_v9  ;;  %v2092_v46 = vpop.f32.mrb[9].mxu1  ;;  %v1620_v57 = vpop.f32.mrb[12].mxu0 }
 0x243   : > { %v1655_v7 = vpop.f32.mrb[10].mxu1  ;;  %v1621_v44 = vadd.f32 %v3500_v40, %v1620_v57  ;;  %v2076_v55 = vpop.f32.mrb[13].mxu0 }
 0x244   : > { %v1681_v8 = vmax.f32 %v1653_v19, 0.0  ;;  %v1656_v39 = vadd.f32 %v3500_v40, %v1655_v7  ;;  %v2093_v47 = vpop.f32.mrb[11].mxu1  ;;  %v1623_v37 = vpop.f32.mrb[14].mxu0 }
 0x245   : > { %v1673_v53 = vmax.f32 %v1621_v44, 0.0  ;;  %v1624_v4 = vadd.f32 %v3500_v40, %v1623_v37  ;;  %v2077_v35 = vpop.f32.mrb[15].mxu0 }
 0x246   : > { %v2046_v43 = vpack.c.bf16 %v1681_v8, %v1681_v8  ;;  %v1682_v32 = vmax.f32 %v1656_v39, 0.0 }
 0x247   : > { %v2038_v25 = vpack.c.bf16 %v1673_v53, %v1673_v53  ;;  %v1674_v5 = vmax.f32 %v1624_v4, 0.0 }
 0x248   : > { %1772 = vst.msk [vmem:[%s3505_s11 + $0x38] sm:$0xf] %vm1757_vm1, %v2046_v43  ;;  %v2047_v26 = vpack.c.bf16 %v1682_v32, %v1682_v32 }
 0x249   : > { %1764 = vst.msk [vmem:[%s3505_s11 + $0x18] sm:$0xf] %vm1757_vm1, %v2038_v25  ;;  %v2039_v2 = vpack.c.bf16 %v1674_v5, %v1674_v5 }
 0x24a   : > { %1773 = vst.msk [vmem:[%s3505_s11 + $0x3c] sm:$0xf] %vm1757_vm1, %v2047_v26 }
 0x24b   : > { %1765 = vst.msk [vmem:[%s3505_s11 + $0x1c] sm:$0xf] %vm1757_vm1, %v2039_v2 }
 0x261   : > { %v1660_v61 = vpop.f32.mrb[12].mxu1 }
 0x262   : > { %v1661_v58 = vadd.f32 %v3500_v40, %v1660_v61  ;;  %v2096_v29 = vpop.f32.mrb[13].mxu1  ;;  %v1628_v60 = vpop.f32.mrb[16].mxu0 }
 0x263   : > { %v1663_v45 = vpop.f32.mrb[14].mxu1  ;;  %v1629_v28 = vadd.f32 %v3500_v40, %v1628_v60  ;;  %v2080_v6 = vpop.f32.mrb[17].mxu0 }
 0x264   : > { %v1683_v1 = vmax.f32 %v1661_v58, 0.0  ;;  %v1664_v18 = vadd.f32 %v3500_v40, %v1663_v45  ;;  %v2097_v50 = vpop.f32.mrb[15].mxu1  ;;  %v1631_v13 = vpop.f32.mrb[18].mxu0 }
 0x265   : > { %v1675_v36 = vmax.f32 %v1629_v28, 0.0  ;;  %v1632_v42 = vadd.f32 %v3500_v40, %v1631_v13  ;;  %v2081_v33 = vpop.f32.mrb[19].mxu0 }
 0x266   : > { %v2048_v16 = vpack.c.bf16 %v1683_v1, %v1683_v1  ;;  %v1684_v30 = vmax.f32 %v1664_v18, 0.0 }
 0x267   : > { %v2040_v63 = vpack.c.bf16 %v1675_v36, %v1675_v36  ;;  %v1676_v62 = vmax.f32 %v1632_v42, 0.0 }
 0x268   : > { %1774 = vst.msk [vmem:[%s3505_s11 + $0x40] sm:$0xf] %vm1757_vm1, %v2048_v16  ;;  %v2049_v48 = vpack.c.bf16 %v1684_v30, %v1684_v30 }
 0x269   : > { %1766 = vst.msk [vmem:[%s3505_s11 + $0x20] sm:$0xf] %vm1757_vm1, %v2040_v63  ;;  %v2041_v22 = vpack.c.bf16 %v1676_v62, %v1676_v62 }
 0x26a   : > { %1775 = vst.msk [vmem:[%s3505_s11 + $0x44] sm:$0xf] %vm1757_vm1, %v2049_v48 }
 0x26b   : > { %1767 = vst.msk [vmem:[%s3505_s11 + $0x24] sm:$0xf] %vm1757_vm1, %v2041_v22 }
 0x26c   : > { %2409 = shalt.err (!%p2406_p7)
}
 0x26d   : > { %s2410_s27 = scalar_lea.hbm %s3559_s2, 1152  ;;  %s2414_s7 = scalar_lea.hbm %s3625_s3, 4608 }
 0x26e   : > { %p2411_p12 = scmp.ne.s32.totalorder %s3559_s2, %s2410_s27  ;;  %p2415_p5 = scmp.lt.u32.totalorder %s3559_s2, %s3625_s3 }
 0x26f   : > { %p2416_p9 = scmp.lt.u32.totalorder %s2414_s7, %s2410_s27  ;;  %p2418_p4 = scmp.lt.u32.totalorder %s2410_s27, %s3559_s2 }
 0x270   : > { %p2412_p1 = pnand %p2411_p12, %p2684_p8 }
 0x271   : > { %p2417_p0 = por %p2416_p9, %p2415_p5 }
 0x272   : > { %p2413_p2 = pneg %p2412_p1 }
 0x273   : > { %p2419_p10 = por %p2418_p4, %p2417_p0 }
 0x275   : > { %p2420_p6 = pnand %p2419_p10, %p2413_p2 }
 0x277   : > { %2423 = shalt.err (!%p2420_p6)
}
 0x278   : > { %s2517_s20 = smov 64  }
 0x279   : > { %2117 = dma.vmem_to_hbm [thread:$0]  (%p2684_p8), %s3565_s16, 1152, %s3559_s2, %s1777_s29, %s2517_s20, %s2517_s20, %s2511_s21  }
 0x27a PF: > { %p2139_p11 = scmp.ge.s32.totalorder %s2498_s19, 2  ;;  %s1807_s28 = sand.u32 1, %s2470_s12  }
 0x27b   : > { %p3657_p13 = scmp.ne.s32.totalorder %s3641_s25, 0  ;;  %s1808_s30 = scalar_lea.sflag [#allocation5], %s1807_s28 }
 0x27d   : > { %p2131_p3 = pnand %p2139_p11, %p3657_p13 }
 0x27f   : > { %2465 = dma.done.wait (!%p2131_p3), %s1808_s30, 1152  }
 0x280   : > { %2467 = vsyncadd (!%p2131_p3), %s1808_s30, 4294966144  ;;  %s20_s19 = sadd.s32 1, %s2498_s19   ;;  %s3658_s15 = sld [smem:[#allocation13_spill]] }
 0x281   : > { %p17_p7 = scmp.ge.s32.totalorder %s20_s19, 6   ;;  %s3659_s17 = sld [smem:[#allocation14_spill]] }
 0x282   : > { %s3660_s4 = sld [smem:[#allocation15_spill]]  ;;  %s3661_s12 = smov %s2474_s13 }
 0x283   : > { %s3662_s13 = smov %s2478_s14  ;;  %s3663_s14 = smov %s2703_s1 }
 0x284   : > { %s3664_s16 = smov %s2494_s18  ;;  %19 = sbr.rel (!%p17_p7) target bundleno = 11 (0xb), region = 85 }
 0x288   : > { %s3665_s18 = smov %s3660_s4 }
 0x28b   :  { %1813 = vsyncpa [#allocation4], 1 }
 0x28c   :  { %1815 = vsyncpa [#allocation4 + $0x1], 1 }
 0x28d   :  { %1816 = vsyncpa [#allocation7], 1 }
 0x28e   :  { %1817 = vsyncpa [#allocation5], 1 }
 0x28f   :  { %1819 = vsyncpa [#allocation5 + $0x1], 1 }

// kernel: encoder3_forward.8
= control target key start
LH: loop header
LB: loop body
LE: loop exit
PB: predicated region body
PF: predicated region fallthrough
CT: control target
= control target key end

     0   :  { %s3949_s0 = inlined_call_operand.hbm [shape: bf16[2,2,182,64], index: 0, kind: input, shape index: {}]   ;;  %s3950_s1 = inlined_call_operand.hbm [shape: bf16[576,64], index: 1, kind: input, shape index: {}]   ;;  %s3951_s2 = inlined_call_operand.hbm [shape: f32[1,64], index: 2, kind: input, shape index: {}]   ;;  %s3952_s3 = inlined_call_operand.hbm [shape: bf16[2,2,144,64], index: 3, kind: output, shape index: {}]  }
   0x1   :  { %3962 = sst [smem:[#allocation16_spill]] %s3950_s1 }
   0x2   :  { %3963 = sst [smem:[#allocation17_spill]] %s3951_s2 }
   0x3   :  { %8 = vsyncpa [#allocation4], 0 }
   0x4   :  { %10 = vsyncpa [#allocation4 + $0x1], 0 }
   0x5   :  { %11 = vsyncpa [#allocation7], 0 }
   0x6   :  { %12 = vsyncpa [#allocation5], 0 }
   0x7   :  { %14 = vsyncpa [#allocation5 + $0x1], 0  ;;  %s3195_s12 = smov 0   ;;  %s3197_s13 = smov 0  }
   0x8   :  { %s3199_s14 = smov 0   ;;  %s3201_s15 = smov 0  }
   0x9   :  { %s3203_s16 = smov 0   ;;  %s3205_s17 = smov 0  }
   0xa   :  { %s3207_s18 = smov 0   ;;  %s3209_s19 = smov 0  }
   0xb LB: > { %3964 = sst [smem:[#allocation13_spill]] %s3155_s17  ;;  %s2341_s20 = sadd.s32 4294967295, %s3163_s19   ;;  %s3163_s19 = sphi %s3209_s19, %s20_s19   ;;  %s3159_s18 = sphi %s3207_s18, %s3992_s18   ;;  %s3155_s17 = sphi %s3205_s17, %s3986_s17   ;;  %s3151_s16 = sphi %s3203_s16, %s3991_s16   ;;  %s3147_s15 = sphi %s3201_s15, %s3985_s15   ;;  %s3143_s14 = sphi %s3199_s14, %s3990_s14   ;;  %s3139_s13 = sphi %s3197_s13, %s3989_s13   ;;  %s3135_s12 = sphi %s3195_s12, %s3988_s12  }
   0xc   : > { %s2342_s21 = sadd.s32 4294967294, %s3163_s19   ;;  %p54_p0 = scmp.ne.s32.totalorder %s3139_s13, %s3135_s12 }
   0xd   : > { %p3239_p1 = scmp.eq.s32.totalorder %s2341_s20, 0  ;;  %p3243_p2 = scmp.eq.s32.totalorder %s2341_s20, 3 }
   0xe   : > { %p128_p3 = scmp.eq.s32.totalorder %s2342_s21, 3  ;;  %p2343_p5 = scmp.ge.s32.totalorder %s3163_s19, 1 }
   0xf   : > { %s3965_s22 = scalar_select %p3239_p1, 1, 0 }
  0x10   : > { %s3966_s23 = scalar_select %p3243_p2, 1, 0 }
  0x11   : > { %p3249_p4 = por %p3239_p1, %p54_p0  ;;  %p3254_p6 = por %p128_p3, %p54_p0 }
  0x12   : > { %p135_p7 = scmp.lt.s32.totalorder %s3163_s19, 5  ;;  %s3165_s27 = smov [#allocation6]  }
  0x13   : > { %s3967_s24 = scalar_select %p3249_p4, 1, 0 }
  0x14   : > { %s3968_s25 = scalar_select %p3254_p6, 1, 0 }
  0x15   : > { %p3259_p8 = pnand %p2343_p5, %p135_p7  ;;  %s147_s28 = sshll.u32 %s3165_s27, 4  ;;  %s148_s28 = int_to_ptr.vmem [resolvable:$true] %s147_s28 }
  0x16   : > { %s3166_s30 = smov [#allocation8]   ;;  %s3971_s1 = sld [smem:[#allocation16_spill]] }
  0x17   : > { %s3969_s26 = scalar_select %p3259_p8, 1, 0 }
  0x18   : > { %p2757_p9 = pneg %p3259_p8  ;;  %s161_s4 = sshll.u32 %s3166_s30, 4  ;;  %s3271_s4 = int_to_ptr.vmem [resolvable:$true] %s161_s4 }
  0x1a   : > { %p3267_p10 = pnand %p2757_p9, %p3239_p1 }
  0x1c   : > { %s2975_s7 = scalar_lea.hbm %s3971_s1, 4608  ;;  %p2977_p12 = pneg %p3267_p10 }
  0x1d   : > { %p2976_p11 = scmp.ne.s32.totalorder %s3971_s1, %s2975_s7  ;;  %p2982_p3 = scmp.lt.u32.totalorder %s2975_s7, %s3971_s1 }
  0x1f   : > { %p2978_p13 = pnand %p2977_p12, %p2976_p11 }
  0x21   : > { %p2979_p0 = pneg %p2978_p13 }
  0x23   : > { %p2984_p5 = pnand %p2982_p3, %p2979_p0 }
  0x25   : > { %2987 = shalt.err (!%p2984_p5)
}
  0x26   : > { %s2988_s20 = scalar_lea.vmem %s148_s28, 4608  ;;  %p2996_p1 = scmp.lt.s32.totalorder %s148_s28, %s148_s28 }
  0x27   : > { %p2989_p7 = scmp.ne.s32.totalorder %s148_s28, %s2988_s20  ;;  %p2997_p4 = scmp.lt.s32.totalorder %s2988_s20, %s2988_s20 }
  0x29   : > { %p2991_p9 = pnand %p2989_p7, %p2977_p12  ;;  %p2998_p8 = por %p2997_p4, %p2996_p1 }
  0x2b   : > { %p2992_p6 = pneg %p2991_p9 }
  0x2d   : > { %p2999_p2 = pnand %p2998_p8, %p2992_p6 }
  0x2f   : > { %3002 = shalt.err (!%p2999_p2)
}
  0x30   : > { %s3957_s21 = smov 64   ;;  %s3958_s27 = smov 4  }
  0x31   : > { %2760 = dma.hbm_to_vmem [thread:$0]  (!%p3267_p10), %s3971_s1, 4608, %s148_s28, [#allocation7], %s3957_s21, %s3957_s21, %s3958_s27  }
  0x32   : > { %s3972_s2 = sld [smem:[#allocation17_spill]] }
  0x38   : > { %s3003_s8 = scalar_lea.hbm %s3972_s2, 16 }
  0x39   : > { %p3004_p1 = scmp.ne.s32.totalorder %s3972_s2, %s3003_s8  ;;  %p3010_p6 = scmp.lt.u32.totalorder %s3003_s8, %s3972_s2 }
  0x3b   : > { %p3006_p2 = pnand %p3004_p1, %p2977_p12 }
  0x3d   : > { %p3007_p4 = pneg %p3006_p2 }
  0x3f   : > { %p3012_p8 = pnand %p3010_p6, %p3007_p4 }
  0x41   : > { %3015 = shalt.err (!%p3012_p8)
}
  0x42   : > { %s3016_s28 = scalar_lea.vmem %s3271_s4, 16  ;;  %s3023_s30 = scalar_lea.vmem %s3271_s4, 32 }
  0x43   : > { %p3017_p11 = scmp.ne.s32.totalorder %s3271_s4, %s3016_s28  ;;  %p3024_p3 = scmp.lt.s32.totalorder %s3271_s4, %s3271_s4 }
  0x44   : > { %p3025_p5 = scmp.lt.s32.totalorder %s3023_s30, %s3016_s28 }
  0x45   : > { %p3019_p13 = pnand %p3017_p11, %p2977_p12 }
  0x46   : > { %p3026_p7 = por %p3025_p5, %p3024_p3 }
  0x47   : > { %p3020_p0 = pneg %p3019_p13 }
  0x49   : > { %p3027_p9 = pnand %p3026_p7, %p3020_p0 }
  0x4b   : > { %3030 = shalt.err (!%p3027_p9)
}
  0x4c   : > { %2763 = dma.hbm_to_vmem [thread:$0]  (!%p3267_p10), %s3972_s2, 16, %s3271_s4, [#allocation7]  }
  0x4d   : > { %s29_s7 = sadd.s32 1, %s3155_s17  ;;  %s32_s8 = sadd.s32 1, %s3159_s18 }
  0x4e   : > { %p30_p12 = scmp.ge.s32.totalorder %s29_s7, 2  ;;  %s41_s29 = sadd.s32 1, %s3143_s14 }
  0x4f   : > { %p48_p1 = scmp.ne.s32.totalorder %s3143_s14, %s3139_s13  ;;  %p49_p2 = scmp.eq.s32.totalorder %s3163_s19, 0 }
  0x50   : > { %s3994_s7 = smov (%p30_p12, %s29_s7), 0  ;;  %s3996_s8 = smov (!%p30_p12, %s32_s8), %s3159_s18 }
  0x51   : > { %3973 = sst [smem:[#allocation14_spill]] %s3994_s7  ;;  %s37_s9 = ssub.s32 %s3155_s17, %s3994_s7 }
  0x52   : > { %p3335_p4 = por %p49_p2, %p48_p1  ;;  %p34_p10 = scmp.ge.s32.totalorder %s3996_s8, 2 }
  0x53   : > { %p3975_p6 = scmp.ne.s32.totalorder %s3966_s23, 0  ;;  %p2774_p11 = scmp.lt.s32.totalorder %s3163_s19, 4 }
  0x54   : > { %s172_s11 = sand.u32 1, %s3143_s14   ;;  %s3998_s8 = smov (%p34_p10, %s3996_s8), 0 }
  0x55   : > { %p3341_p8 = por %p3975_p6, %p48_p1  ;;  %3977 = sst [smem:[#allocation15_spill]] %s3998_s8 }
  0x56   : > { %s2738_s20 = smul.u32 92, %s172_s11  ;;  %s36_s28 = ssub.s32 %s3159_s18, %s3998_s8 }
  0x57   : > { %s2739_s30 = smul.u32 23, %s3155_s17  ;;  %s38_s5 = sor.u32 %s37_s9, %s36_s28 }
  0x58   : > { %p39_p13 = scmp.eq.s32.totalorder %s38_s5, 0  ;;  %s2740_s6 = smul.u32 46, %s3159_s18 }
  0x59   : > { %s176_s21 = scalar_lea.vmem [#allocation3], %s2738_s20  ;;  %p3355_p0 = pnand %p2774_p11, %p3335_p4 }
  0x5a   : > { %s185_s27 = sshll.u32 %s176_s21, 4  ;;  %s182_s2 = sadd.s32 %s2740_s6, %s2739_s30  ;;  %s3362_s27 = int_to_ptr.vmem [resolvable:$true] %s185_s27 }
  0x5b   : > { %s3360_s1 = scalar_select %p39_p13, %s3143_s14, %s41_s29  }
  0x5c   : > { %s2347_s7 = sshll.u32 %s182_s2, 6  ;;  %s3369_s21 = scalar_lea.sflag [#allocation4], %s172_s11 }
  0x5d   : > { %s3367_s9 = scalar_lea.hbm %s3949_s0, %s2347_s7  ;;  %p3033_p5 = pneg %p3355_p0 }
  0x5e   : > { %s3031_s10 = scalar_lea.hbm %s3367_s9, 1472  ;;  %s3036_s17 = scalar_lea.hbm %s3949_s0, 5888 }
  0x5f   : > { %p3032_p3 = scmp.ne.s32.totalorder %s3367_s9, %s3031_s10  ;;  %p3037_p12 = scmp.lt.u32.totalorder %s3367_s9, %s3949_s0 }
  0x60   : > { %p3038_p1 = scmp.lt.u32.totalorder %s3036_s17, %s3031_s10  ;;  %p3040_p4 = scmp.lt.u32.totalorder %s3031_s10, %s3367_s9 }
  0x61   : > { %p3034_p7 = pnand %p3033_p5, %p3032_p3 }
  0x62   : > { %p3039_p2 = por %p3038_p1, %p3037_p12 }
  0x63   : > { %p3035_p9 = pneg %p3034_p7 }
  0x64   : > { %p3041_p10 = por %p3040_p4, %p3039_p2 }
  0x66   : > { %p3042_p6 = pnand %p3041_p10, %p3035_p9 }
  0x68   : > { %3045 = shalt.err (!%p3042_p6)
}
  0x69   : > { %s3046_s11 = scalar_lea.vmem %s3362_s27, 1472  ;;  %s3169_s20 = smov [#allocation3]  }
  0x6a   : > { %p3047_p11 = scmp.ne.s32.totalorder %s3362_s27, %s3046_s11  ;;  %s3051_s28 = sshll.u32 %s3169_s20, 4  ;;  %s3052_s28 = int_to_ptr.vmem [resolvable:$false] %s3051_s28 }
  0x6b   : > { %s3053_s30 = scalar_lea.vmem %s3052_s28, 2944  ;;  %p3054_p7 = scmp.lt.s32.totalorder %s3362_s27, %s3052_s28 }
  0x6c   : > { %p3049_p13 = pnand %p3047_p11, %p3033_p5  ;;  %p3055_p12 = scmp.lt.s32.totalorder %s3053_s30, %s3046_s11 }
  0x6e   : > { %p3050_p3 = pneg %p3049_p13  ;;  %p3056_p1 = por %p3055_p12, %p3054_p7 }
  0x70   : > { %p3057_p2 = pnand %p3056_p1, %p3050_p3 }
  0x72   : > { %3060 = shalt.err (!%p3057_p2)
}
  0x73   : > { %s3979_s5 = smov 4   ;;  %s3980_s6 = smov 64  }
  0x74   : > { %2767 = dma.hbm_to_vmem [thread:$0]  (!%p3355_p0), %s3367_s9, 1472, %s3362_s27, %s3369_s21, %s3980_s6, %s3980_s6, %s3979_s5  }
  0x75   : > { %p3981_p5 = scmp.ne.s32.totalorder %s3969_s26, 0 }
  0x76   : > { %s3403_s10 = sand.u32 (!%p3981_p5), 1, %s3139_s13   ;;  %p3982_p9 = scmp.ne.s32.totalorder (!%p3981_p5), %s3967_s24, 0 }
  0x77   : > { %197 = sbr.rel (%p3981_p5) target bundleno = 603 (0x25b), region = 32  ;;  %s200_s29 = scalar_lea.sflag (!%p3981_p5), [#allocation4], %s3403_s10 }
  0x78   : > { %s2741_s2 = smul.u32 (!%p3981_p5), 92, %s3403_s10 }
  0x7a   : > { %s3407_s17 = scalar_lea.vmem (!%p3981_p5), [#allocation3], %s2741_s2 }
  0x7e   : > { %3122 = dma.done.wait (%p3982_p9), %s200_s29, 1472  }
  0x7f   : > { %3124 = vsyncadd (%p3982_p9), %s200_s29, 4294965824  ;;  %p3983_p0 = scmp.ne.s32.totalorder %s3965_s22, 0 }
  0x81   : > { %3126 = dma.done.wait (%p3983_p0), [#allocation7], 4624  }
  0x82   : > { %3128 = vsyncadd (%p3983_p0), [#allocation7], 4294962672  ;;  %vm565_vm0 = vcmask 1046528   ;;  %v3418_v0 = vld [vmem:[%s3407_s17 + $0x30] sm:$0xff]   ;;  %v3421_v1 = vld [vmem:[%s3407_s17 + $0x38] sm:$0xff]   ;;  %s3170_s22 = smov 64  }
  0x83   : > { %vm384_vm1 = vsmask.f32 7424  ;;  %v679_v2 = vrot.slane %v3418_v0, 1  ;;  %v681_v3 = vrot.slane %v3421_v1, 1  ;;  %v2852_v4 = vld [vmem:[%s3407_s17 + $0x8] sm:$0xfe]  }
  0x84   : > { %v2853_v5 = vld [vmem:[%s3407_s17 + $0x10] sm:$0xff]   ;;  %v670_v7 = vrot.slane %v2852_v4, 1  ;;  %v2854_v8 = vld [vmem:[%s3407_s17 + $0x28] sm:$0xff]   ;;  %v2856_v15 = vld [vmem:[%s3407_s17] sm:$0xff]   ;;  %vm967_vm2 = vcmask 1045504   ;;  %vm307_vm4 = vcmask 523264  }
  0x85   : > { %v682_v6 = vsel %vm565_vm0, %v679_v2, %v681_v3  ;;  %v671_v9 = vrot.slane %v2853_v5, 1  ;;  %v2855_v10 = vld [vmem:[%s3407_s17 + $0x30] sm:$0xff]   ;;  %v425_v11 = vshll.u32 %v2854_v8, 16  ;;  %v429_v12 = vshrl.u32 %v2854_v8, 16  ;;  %v2857_v16 = vld [vmem:[%s3407_s17 + $0x8] sm:$0xff]   ;;  %v2858_v18 = vld [vmem:[%s3407_s17 + $0x18] sm:$0xff]  }
  0x86   : > { %699 = vrot.lane.b32.xlu1 %v682_v6, %s3170_s22  ;;  %v433_v14 = vshll.u32 %v2855_v10, 16  ;;  %v386_v20 = vshrl.u32 %v2856_v15, 16  ;;  %v388_v21 = vshll.u32 %v2856_v15, 16  ;;  %v393_v22 = vshll.u32 %v2857_v16, 16  ;;  %v2859_v24 = vld [vmem:[%s3407_s17 + $0x10] sm:$0xff]   ;;  %v2860_v32 = vld [vmem:[%s3407_s17 + $0x40] sm:$0xff]  }
  0x87   : > { %v672_v13 = vsel %vm565_vm0, %v670_v7, %v671_v9  ;;  %v3437_v17 = vrot.slane %v425_v11, 1  ;;  %v397_v25 = vshrl.u32 %v2857_v16, 16  ;;  %v437_v26 = vshrl.u32 %v2855_v10, 16  ;;  %v2861_v33 = vld [vmem:[%s3407_s17 + $0x38] sm:$0xff]   ;;  %v2862_v47 = vld [vmem:[%s3407_s17 + $0x20] sm:$0xff]   ;;  %v2864_v55 = vld [vmem:[%s3407_s17 + $0x48] sm:$0xff]  }
  0x88   : > { %689 = vrot.lane.b32.xlu0 %v672_v13, %s3170_s22  ;;  %v435_v19 = vrot.slane %v433_v14, 1  ;;  %v390_v27 = vrot.slane %v388_v21, 1  ;;  %v395_v28 = vrot.slane %v393_v22, 1  ;;  %v673_v30 = vrot.slane %v2858_v18, 1  ;;  %v2863_v39 = vld [vmem:[%s3407_s17 + $0x18] sm:$0xff]   ;;  %v2865_v48 = vld [vmem:[%s3407_s17 + $0x40] sm:$0xff]  }
  0x89   : > { %v431_v23 = vor.u32 %v429_v12, %v3437_v17  ;;  %v401_v31 = vshll.u32 %v2859_v24, 16  ;;  %v441_v38 = vshll.u32 %v2861_v33, 16  ;;  %v405_v41 = vshrl.u32 %v2859_v24, 16  ;;  %v2867_v53 = vld [vmem:[%s3407_s17 + $0x20] sm:$0xff]   ;;  %v2871_v4 = vld [vmem:[%s3407_s17 + $0x18] sm:$0xff]   ;;  %v2873_v24 = vld [vmem:[%s3407_s17 + $0x10] sm:$0xff]  }
  0x8a   : > { %v391_v34 = vor.u32 %v390_v27, %v386_v20  ;;  %v399_v35 = vor.u32 %v397_v25, %v395_v28  ;;  %v439_v37 = vor.u32 %v437_v26, %v435_v19  ;;  %v409_v44 = vshll.u32 %v2863_v39, 16  ;;  %v2869_v63 = vld [vmem:[%s3407_s17 + $0x48] ss:$0 sps:$4 sm:$0x11]   ;;  %v2870_v12 = vld [vmem:[%s3407_s17 + $0x10] sm:$0xfc]  }
  0x8b   : > { %v436_v29 = vsel %vm384_vm1, %v431_v23, %v435_v19  ;;  %v403_v36 = vrot.slane %v401_v31, 1  ;;  %v443_v43 = vrot.slane %v441_v38, 1  ;;  %v674_v45 = vsel %vm565_vm0, %v671_v9, %v673_v30  ;;  %v2868_v6 = vld [vmem:[%s3407_s17 + $0x50] ss:$0 sps:$4 sm:$0x11]   ;;  %v2874_v25 = vld [vmem:[%s3407_s17 + $0x20] sm:$0xff]  }
  0x8c   : > { %471 = vrot.lane.b32.xlu1 %v436_v29, %s3170_s22  ;;  %v396_v40 = vsel %vm384_vm1, %v391_v34, %v395_v28  ;;  %v683_v46 = vrot.slane %v2860_v32, 1  ;;  %v445_v49 = vshrl.u32 %v2861_v33, 16  ;;  %v411_v52 = vrot.slane %v409_v44, 1  ;;  %v2872_v29 = vld [vmem:[%s3407_s17 + $0x8] sm:$0xfc]   ;;  %s2742_s24 = smul.u32 72, %s3403_s10 }
  0x8d   : > { %461 = vrot.lane.b32.xlu0 %v396_v40, %s3170_s22  ;;  %v404_v42 = vsel %vm384_vm1, %v399_v35, %v403_v36  ;;  %v444_v50 = vsel %vm384_vm1, %v439_v37, %v443_v43  ;;  %v407_v51 = vor.u32 %v405_v41, %v403_v36  ;;  %v449_v54 = vshll.u32 %v2865_v48, 16  ;;  %v2876_v33 = vld [vmem:[%s3407_s17 + $0x28] sm:$0xff]   ;;  %v2875_v35 = vld [vmem:[%s3407_s17 + $0x18] sm:$0xff]   ;;  %v2878_v36 = vld [vmem:[%s3407_s17 + $0x30] sm:$0xff]   ;;  %s2743_s27 = smul.u32 18, %s3147_s15  ;;  %s2217_s11 = scalar_lea.sflag [#allocation5], %s3403_s10 }
  0x8e   : > { %v684_v56 = vsel %vm565_vm0, %v681_v3, %v683_v46  ;;  %v675_v57 = vrot.slane %v2862_v47, 1  ;;  %v413_v58 = vshrl.u32 %v2863_v39, 16  ;;  %v417_v59 = vshll.u32 %v2867_v53, 16  ;;  %v2866_v3 = vld [vmem:[%s3407_s17 + $0x28] sm:$0xff]   ;;  %s3821_s26 = scalar_lea.vmem [#allocation9], %s2742_s24  ;;  %s2744_s23 = smul.u32 36, %s3151_s16 }
  0x8f   : > { %v412_v60 = vsel %vm384_vm1, %v407_v51, %v411_v52  ;;  %v447_v61 = vor.u32 %v445_v49, %v443_v43  ;;  %v451_v62 = vrot.slane %v449_v54, 1  ;;  %v685_v1 = vrot.slane %v2864_v55, 1  ;;  %v2880_v54 = vld [vmem:[%s3407_s17 + $0x38] sm:$0xff]   ;;  %s2232_s16 = sshll.u32 %s3821_s26, 4  ;;  %s3173_s28 = smov [#allocation9]   ;;  %s3891_s16 = int_to_ptr.vmem [resolvable:$true] %s2232_s16 }
  0x90   : > { %463 = vrot.lane.b32.xlu1 %v404_v42, %s3170_s22  ;;  %v676_v5 = vsel %vm565_vm0, %v673_v30, %v675_v57  ;;  %v453_v7 = vshrl.u32 %v2865_v48, 16  ;;  %v415_v9 = vor.u32 %v413_v58, %v411_v52  ;;  %v419_v10 = vrot.slane %v417_v59, 1  ;;  %v3504_v59 = vld [vmem:[%s3407_s17 + $0x30] sm:$0xff]   ;;  %s2229_s9 = sadd.s32 %s2744_s23, %s2743_s27  ;;  %s3061_s20 = scalar_lea.vmem %s3891_s16, 1152 }
  0x91   : > { %691 = vrot.lane.b32.xlu0 %v674_v45, %s3170_s22  ;;  %v452_v8 = vsel %vm384_vm1, %v447_v61, %v451_v62  ;;  %v457_v11 = vshll.u32 %v2869_v63, 16  ;;  %v1204_v13 = vshrl.u32 %v2871_v4, 16  ;;  %v686_v14 = vsel %vm565_vm0, %v683_v46, %v685_v1  ;;  %v3490_v46 = vld [vmem:[%s3407_s17 + $0x20] sm:$0xff]   ;;  %s2504_s15 = sshll.u32 %s2229_s9, 6  ;;  %p3062_p4 = scmp.ne.s32.totalorder %s3891_s16, %s3061_s20 }
  0x92   : > { %v677_v15 = vrot.slane %v2866_v3, 1  ;;  %v421_v16 = vshrl.u32 %v2867_v53, 16  ;;  %v420_v18 = vsel %vm384_vm1, %v415_v9, %v419_v10  ;;  %v455_v19 = vor.u32 %v453_v7, %v451_v62  ;;  %v3509_v62 = vld [vmem:[%s3407_s17 + $0x38] sm:$0xff]   ;;  %s3887_s8 = scalar_lea.hbm %s3952_s3, %s2504_s15  ;;  %s3065_s30 = sshll.u32 %s3173_s28, 4  ;;  %s3066_s30 = int_to_ptr.vmem [resolvable:$false] %s3065_s30 }
  0x93   : > { %v459_v20 = vrot.slane %v457_v11, 1  ;;  %v1207_v21 = vshll.u32 %v2871_v4, 16  ;;  %v687_v22 = vrot.slane %v2868_v6, 1  ;;  %v1196_v23 = vshrl.u32 %v2870_v12, 16  ;;  %v2888_v7 = vld [vmem:[#allocation6 + $0x40] sm:$0xff]   ;;  %v2890_v11 = vld [vmem:[#allocation6 + $0x48] sm:$0xff]   ;;  %p3063_p10 = pnand %p3062_p4, %p3341_p8  ;;  %p3068_p11 = scmp.lt.s32.totalorder %s3891_s16, %s3066_s30 }
  0x94   : > { %473 = vrot.lane.b32.xlu1 %v444_v50, %s3170_s22  ;;  %v1199_v26 = vshll.u32 %v2870_v12, 16  ;;  %v1206_v27 = vrot.slane %v1204_v13, 2  ;;  %v678_v28 = vsel %vm565_vm0, %v675_v57, %v677_v15  ;;  %v423_v31 = vor.u32 %v421_v16, %v419_v10  ;;  %v3501_v57 = vld [vmem:[%s3407_s17 + $0x28] sm:$0xff]   ;;  %v2889_v9 = vld [vmem:[#allocation6] sm:$0xff]   ;;  %2525 = vmatprep.subr.bf16.mxu0 %v2888_v7  ;;  %s3067_s5 = scalar_lea.vmem %s3066_s30, 2304 }
  0x95   : > { %701 = vrot.lane.b32.xlu0 %v684_v56, %s3170_s22  ;;  %v460_v30 = vsel %vm384_vm1, %v455_v19, %v459_v20  ;;  %v1209_v32 = vrot.slane %v1207_v21, 3  ;;  %v969_v34 = vrot.slane %v2873_v24, 2  ;;  %v1198_v37 = vrot.slane %v1196_v23, 2  ;;  %v3521_v16 = vld [vmem:[%s3407_s17 + $0x40] sm:$0xff]   ;;  %2722 = vmatprep.subr.bf16.mxu1 %v2888_v7  ;;  %p3064_p6 = pneg %p3063_p10  ;;  %p3069_p13 = scmp.lt.s32.totalorder %s3067_s5, %s3061_s20 }
  0x96   : > { %v1201_v38 = vrot.slane %v1199_v26, 3  ;;  %v688_v39 = vsel %vm565_vm0, %v685_v1, %v687_v22  ;;  %v1213_v40 = vshrl.u32 %v2874_v25, 16  ;;  %v1216_v41 = vshll.u32 %v2874_v25, 16  ;;  %2526 = vmatpush3.bf16.msra.mxu0 %v2889_v9  ;;  %2730 = vmatpush3.bf16.msra.mxu1 %v2889_v9  ;;  %v2891_v23 = vld [vmem:[#allocation6 + $0x8] sm:$0xff]   ;;  %v2894_v25 = vld [vmem:[#allocation6 + $0x50] sm:$0xff]  }
  0x97   : > { %v428_v42 = vsel %vm384_vm1, %v423_v31, %v3437_v17  ;;  %v968_v43 = vrot.slane %v2872_v29, 2  ;;  %v1222_v44 = vshrl.u32 %v2876_v33, 16  ;;  %v1225_v45 = vshll.u32 %v2876_v33, 16  ;;  %2527 = vmatprep.subr.bf16.mxu0 %v2890_v11  ;;  %2723 = vmatprep.subr.bf16.mxu1 %v2890_v11  ;;  %v2906_v9 = vld [vmem:[#allocation6 + $0x70] sm:$0xff]   ;;  %p3070_p3 = por %p3069_p13, %p3068_p11 }
  0x98   : > { %465 = vrot.lane.b32.xlu1 %v412_v60, %s3170_s22  ;;  %v1231_v47 = vshrl.u32 %v2878_v36, 16  ;;  %v680_v48 = vsel %vm565_vm0, %v677_v15, %v679_v2  ;;  %vm1194_vm3 = vsmask.f32 5376  ;;  %v1210_v49 = vor.u32 %v1209_v32, %v1206_v27  ;;  %v2882_v60 = vld [vmem:[%s3407_s17 + $0x40] sm:$0xff]  }
  0x99   : > { %693 = vrot.lane.b32.xlu0 %v676_v5, %s3170_s22  ;;  %v1234_v17 = vshll.u32 %v2878_v36, 16  ;;  %v1202_v50 = vor.u32 %v1201_v38, %v1198_v37  ;;  %v1215_v51 = vrot.slane %v1213_v40, 2  ;;  %v1218_v52 = vrot.slane %v1216_v41, 3  ;;  %v2884_v5 = vld [vmem:[%s3407_s17 + $0x48] sm:$0xff]   ;;  %v2896_v37 = vld [vmem:[#allocation6 + $0x58] sm:$0xff]   ;;  %p3071_p7 = pnand %p3070_p3, %p3064_p6 }
  0x9a   : > { %v971_v53 = vrot.slane %v2875_v35, 2  ;;  %v970_v55 = vsel %vm967_vm2, %v968_v43, %v969_v34  ;;  %v1224_v56 = vrot.slane %v1222_v44, 2  ;;  %v1227_v0 = vrot.slane %v1225_v45, 3  ;;  %v3531_v32 = vld [vmem:[%s3407_s17 + $0x58] ss:$0 sps:$4 sm:$0x77]   ;;  %2528 = vmatpush3.bf16.msra.mxu0 %v2891_v23  ;;  %2731 = vmatpush3.bf16.msra.mxu1 %v2891_v23 }
  0x9b   : > { %v973_v2 = vrot.slane %v3490_v46, 2  ;;  %v1233_v58 = vrot.slane %v1231_v47, 2  ;;  %v1236_v61 = vrot.slane %v1234_v17, 3  ;;  %v1211_v63 = vsel %vm1194_vm3, %v1202_v50, %v1210_v49  ;;  %v2895_v35 = vld [vmem:[#allocation6 + $0x10] sm:$0xff]   ;;  %2529 = vmatprep.subr.bf16.mxu0 %v2894_v25  ;;  %2724 = vmatprep.subr.bf16.mxu1 %v2894_v25  ;;  %v2897_v43 = vld [vmem:[#allocation6 + $0x18] sm:$0xff]   ;;  %v2898_v46 = vld [vmem:[#allocation6 + $0x60] sm:$0xff]  }
  0x9c   : > { %475 = vrot.lane.b32.xlu1 %v452_v8, %s3170_s22  ;;  %v1219_v1 = vor.u32 %v1218_v52, %v1215_v51  ;;  %v1240_v4 = vshrl.u32 %v2880_v54, 16  ;;  %v972_v3 = vsel %vm967_vm2, %v969_v34, %v971_v53  ;;  %v1243_v6 = vshll.u32 %v2880_v54, 16  ;;  %v3548_v50 = vld [vmem:[%s3407_s17 + $0x30] sm:$0xff]   ;;  %v2904_v54 = vld [vmem:[%s3407_s17 + $0x8] sm:$0xff]  }
  0x9d   : > { %703 = vrot.lane.b32.xlu0 %v686_v14, %s3170_s22  ;;  %v975_v8 = vrot.slane %v3501_v57, 2  ;;  %v1249_v10 = vshrl.u32 %v2882_v60, 16  ;;  %v1228_v13 = vor.u32 %v1227_v0, %v1224_v56  ;;  %v977_v15 = vrot.slane %v3504_v59, 2  ;;  %v2899_v56 = vld [vmem:[#allocation6 + $0x20] sm:$0xff]   ;;  %v2900_v57 = vld [vmem:[#allocation6 + $0x68] sm:$0xff]   ;;  %v2915_v25 = vld [vmem:[%s3407_s17 + $0x30] sm:$0xff]  }
  0x9e   : > { %v1220_v12 = vsel %vm1194_vm3, %v1210_v49, %v1219_v1  ;;  %v1242_v14 = vrot.slane %v1240_v4, 2  ;;  %v974_v19 = vsel %vm967_vm2, %v971_v53, %v973_v2  ;;  %v1245_v20 = vrot.slane %v1243_v6, 3  ;;  %2530 = vmatpush3.bf16.msra.mxu0 %v2895_v35  ;;  %2732 = vmatpush3.bf16.msra.mxu1 %v2895_v35  ;;  %v3544_v49 = vld [vmem:[%s3407_s17 + $0x48] sm:$0xff]   ;;  %v2893_v59 = vld [vmem:[%s3407_s17 + $0x50] ss:$0 sps:$4 sm:$0x33]  }
  0x9f   : > { %v1252_v21 = vshll.u32 %v2882_v60, 16  ;;  %v979_v22 = vrot.slane %v3509_v62, 2  ;;  %v1258_v24 = vshrl.u32 %v2884_v5, 16  ;;  %v1251_v26 = vrot.slane %v1249_v10, 2  ;;  %2531 = vmatprep.subr.bf16.mxu0 %v2896_v37  ;;  %2725 = vmatprep.subr.bf16.mxu1 %v2896_v37  ;;  %v2909_v10 = vld [vmem:[#allocation6 + $0x30] sm:$0xff]   ;;  %314 = vst.msk [vmem:[#allocation2 + $0xf0] sm:$0xff] %vm307_vm4, %v2915_v25 }
  0xa0   : > { %467 = vrot.lane.b32.xlu1 %v420_v18, %s3170_s22  ;;  %v2886_v18 = vld [vmem:[%s3407_s17 + $0x50] sm:$0xff]   ;;  %v1261_v27 = vshll.u32 %v2884_v5, 16  ;;  %v1237_v29 = vor.u32 %v1236_v61, %v1233_v58  ;;  %v976_v33 = vsel %vm967_vm2, %v973_v2, %v975_v8  ;;  %v1246_v41 = vor.u32 %v1245_v20, %v1242_v14  ;;  %v2903_v2 = vld [vmem:[%s3407_s17] sm:$0xfe]  }
  0xa1   : > { %695 = vrot.lane.b32.xlu0 %v678_v28, %s3170_s22  ;;  %v1229_v28 = vsel %vm1194_vm3, %v1219_v1, %v1228_v13  ;;  %v1267_v31 = vshrl.u32 %v2886_v18, 16  ;;  %v1270_v34 = vshll.u32 %v2886_v18, 16  ;;  %v1254_v36 = vrot.slane %v1252_v21, 3  ;;  %v2907_v1 = vld [vmem:[%s3407_s17 + $0x28] sm:$0xff]   ;;  %v2911_v14 = vld [vmem:[%s3407_s17 + $0x10] sm:$0xff]   ;;  %v2923_v37 = vld [vmem:[%s3407_s17 + $0x40] sm:$0xff]  }
  0xa2   : > { %v1260_v38 = vrot.slane %v1258_v24, 2  ;;  %v1238_v40 = vsel %vm1194_vm3, %v1228_v13, %v1237_v29  ;;  %v978_v44 = vsel %vm967_vm2, %v975_v8, %v977_v15  ;;  %v1276_v47 = vshrl.u32 %v3531_v32, 16  ;;  %2532 = vmatpush3.bf16.msra.mxu0 %v2897_v43  ;;  %2733 = vmatpush3.bf16.msra.mxu1 %v2897_v43  ;;  %313 = vst.msk [vmem:[#allocation2 + $0xc8] sm:$0xff] %vm307_vm4, %v2907_v1  ;;  %v2908_v8 = vld [vmem:[%s3407_s17] sm:$0xff]   ;;  %v2913_v21 = vld [vmem:[%s3407_s17 + $0x8] sm:$0xff]  }
  0xa3   : > { %v1272_v45 = vrot.slane %v1270_v34, 3  ;;  %v1279_v17 = vshll.u32 %v3531_v32, 16  ;;  %v1247_v51 = vsel %vm1194_vm3, %v1237_v29, %v1246_v41  ;;  %v1255_v52 = vor.u32 %v1254_v36, %v1251_v26  ;;  %2533 = vmatprep.subr.bf16.mxu0 %v2898_v46  ;;  %2726 = vmatprep.subr.bf16.mxu1 %v2898_v46  ;;  %308 = vst.msk [vmem:[#allocation2] sm:$0xff] %vm307_vm4, %v2908_v8  ;;  %v2917_v29 = vld [vmem:[#allocation6 + $0xc0] sm:$0xff]   ;;  %v2951_v8 = vld [vmem:[%s3407_s17 + $0x28] sm:$0xff]  }
  0xa4   : > { %477 = vrot.lane.b32.xlu1 %v460_v30, %s3170_s22  ;;  %v981_v30 = vrot.slane %v3521_v16, 2  ;;  %v577_v0 = vrot.slane %v3548_v50, 1  ;;  %v567_v58 = vrot.slane %v2904_v54, 1  ;;  %v566_v61 = vrot.slane %v2903_v2, 1  ;;  %309 = vst.msk [vmem:[#allocation2 + $0x28] sm:$0xff] %vm307_vm4, %v2913_v21  ;;  %v2919_v32 = vld [vmem:[%s3407_s17 + $0x18] sm:$0xff]  }
  0xa5   : > { %705 = vrot.lane.b32.xlu0 %v688_v39, %s3170_s22  ;;  %v1263_v39 = vrot.slane %v1261_v27, 3  ;;  %v1256_v4 = vsel %vm1194_vm3, %v1246_v41, %v1255_v52  ;;  %v983_v6 = vrot.slane %v3544_v49, 2  ;;  %v1278_v62 = vrot.slane %v1276_v47, 2  ;;  %v2912_v27 = vld [vmem:[#allocation6 + $0x38] sm:$0xff]   ;;  %v2928_v41 = vld [vmem:[%s3407_s17 + $0x20] sm:$0xff]  }
  0xa6   : > { %2534 = vmatpush3.bf16.msra.mxu0 %v2899_v56  ;;  %2734 = vmatpush3.bf16.msra.mxu1 %v2899_v56  ;;  %v568_v7 = vsel %vm565_vm0, %v566_v61, %v567_v58  ;;  %v1281_v13 = vrot.slane %v1279_v17, 3  ;;  %v985_v18 = vrot.slane %v2893_v59, 2  ;;  %v569_v20 = vrot.slane %v2911_v14, 1  ;;  %v2933_v46 = vld [vmem:[%s3407_s17 + $0x40] sm:$0xff]   ;;  %v2955_v14 = vld [vmem:[%s3407_s17 + $0x30] sm:$0xff]  }
  0xa7   : > { %v1264_v5 = vor.u32 %v1263_v39, %v1260_v38  ;;  %2535 = vmatprep.subr.bf16.mxu0 %v2900_v57  ;;  %594 = vst.msk [vmem:[#allocation2 + $0x8] sm:$0xff] %vm307_vm4, %v568_v7  ;;  %2727 = vmatprep.subr.bf16.mxu1 %v2900_v57  ;;  %v3171_v34 = vmov 0.0   ;;  %v571_v35 = vrot.slane %v2919_v32, 1  ;;  %v2924_v38 = vld [vmem:[%s3407_s17 + $0x38] sm:$0xff]   ;;  %v581_v39 = vrot.slane %v2923_v37, 1  ;;  %316 = vst.msk [vmem:[#allocation2 + $0x140] sm:$0xff] %vm307_vm4, %v2933_v46 }
  0xa8   : > { %469 = vrot.lane.b32.xlu1 %v428_v42, %s3170_s22  ;;  %v1269_v42 = vrot.slane %v1267_v31, 2  ;;  %v1282_v24 = vor.u32 %v1281_v13, %v1278_v62  ;;  %v570_v16 = vsel %vm565_vm0, %v567_v58, %v569_v20  ;;  %v986_v26 = vsel %vm967_vm2, %v983_v6, %v985_v18  ;;  %315 = vst.msk [vmem:[#allocation2 + $0x118] sm:$0xff] %vm307_vm4, %v2924_v38  ;;  %v2936_v50 = vld [vmem:[%s3407_s17 + $0x20] sm:$0xff]   ;;  %v2958_v37 = vld [vmem:[%s3407_s17 + $0x38] sm:$0xff]   ;;  %v2959_v38 = vld [vmem:[%s3407_s17 + $0x30] sm:$0xff]  }
  0xa9   : > { %697 = vrot.lane.b32.xlu0 %v680_v48, %s3170_s22  ;;  %v3540_v48 = vld [vmem:[%s3407_s17 + $0x28] sm:$0xff]   ;;  %v1265_v11 = vsel %vm1194_vm3, %v1255_v52, %v1264_v5  ;;  %595 = vst.msk [vmem:[#allocation2 + $0x30] sm:$0xff] %vm307_vm4, %v570_v16  ;;  %v572_v36 = vsel %vm565_vm0, %v569_v20, %v571_v35  ;;  %v573_v43 = vrot.slane %v2928_v41, 1  ;;  %312 = vst.msk [vmem:[#allocation2 + $0xa0] sm:$0xff] %vm307_vm4, %v2936_v50  ;;  %v2941_v52 = vld [vmem:[%s3407_s17 + $0x18] sm:$0xff]   ;;  %vm1387_vm6 = vcmask 1044480  }
  0xaa   : > { %v575_v53 = vrot.slane %v3540_v48, 1  ;;  %596 = vst.msk [vmem:[#allocation2 + $0x58] sm:$0xff] %vm307_vm4, %v572_v36  ;;  %v1091_v48 = vrot.slane %v2941_v52, 2  ;;  %vm792_vm5 = vsmask.f32 6400  ;;  %v1095_v13 = vrot.slane %v2951_v8, 2 }
  0xab   : > { %vm488_vm7 = vcmask 1048064   ;;  %v2957_v32 = vld [vmem:[%s3407_s17 + $0x20] sm:$0xff]   ;;  %v838_v46 = vshrl.u32 %v2959_v38, 16  ;;  %vm3172_vm8 = vmmov 0   ;;  %vm2197_vm9 = vcmask 519168  }
  0xac   : > { %987 = vrot.lane.b32.xlu1 %v970_v55, %s3170_s22  ;;  %v980_v55 = vsel %vm967_vm2, %v977_v15, %v979_v22  ;;  %v578_v60 = vsel %vm565_vm0, %v575_v53, %v577_v0  ;;  %v984_v15 = vsel %vm967_vm2, %v981_v30, %v983_v6  ;;  %v576_v47 = vsel %vm565_vm0, %v573_v43, %v575_v53  ;;  %v2942_v53 = vld [vmem:[%s3407_s17 + $0x8] sm:$0xfe]   ;;  %v2950_v6 = vld [vmem:[%s3407_s17 + $0x18] sm:$0xff]  }
  0xad   : > { %1284 = vrot.lane.b32.xlu0 %v1211_v63, %s3170_s22  ;;  %v2905_v63 = vld [vmem:[#allocation6 + $0x28] sm:$0xff]   ;;  %599 = vst.msk [vmem:[#allocation2 + $0xd0] sm:$0xff] %vm307_vm4, %v578_v60  ;;  %598 = vst.msk [vmem:[#allocation2 + $0xa8] sm:$0xff] %vm307_vm4, %v576_v47  ;;  %v797_v2 = vshll.u32 %v2942_v53, 16  ;;  %v814_v62 = vshll.u32 %v2950_v6, 16  ;;  %v1391_v41 = vrot.slane %v2957_v32, 3 }
  0xae   : > { %2536 = vmatpush3.bf16.msra.mxu0 %v2905_v63  ;;  %2735 = vmatpush3.bf16.msra.mxu1 %v2905_v63  ;;  %v2969_v32 = vld [vmem:[%s3407_s17 + $0x40] sm:$0xff]  }
  0xaf   : > { %2537 = vmatprep.subr.bf16.mxu0 %v2906_v9  ;;  %2728 = vmatprep.subr.bf16.mxu1 %v2906_v9  ;;  %v799_v60 = vrot.slane %v797_v2, 2  ;;  %v811_v9 = vshrl.u32 %v2950_v6, 16  ;;  %v816_v18 = vrot.slane %v814_v62, 2 }
  0xb0   : > { %989 = vrot.lane.b32.xlu1 %v972_v3, %s3170_s22  ;;  %v982_v3 = vsel %vm967_vm2, %v979_v22, %v981_v30  ;;  %v2914_v22 = vld [vmem:[%s3407_s17 + $0x38] sm:$0xff]  }
  0xb1   : > { %1286 = vrot.lane.b32.xlu0 %v1220_v12, %s3170_s22  ;;  %v1273_v12 = vor.u32 %v1272_v45, %v1269_v42  ;;  %v2929_v42 = vld [vmem:[%s3407_s17 + $0x18] sm:$0xff]   ;;  %v574_v45 = vsel %vm565_vm0, %v571_v35, %v573_v43 }
  0xb2   : > { %2538 = vmatpush3.bf16.msra.mxu0 %v2909_v10  ;;  %2736 = vmatpush3.bf16.msra.mxu1 %v2909_v10  ;;  %311 = vst.msk [vmem:[#allocation2 + $0x78] sm:$0xff] %vm307_vm4, %v2929_v42  ;;  %597 = vst.msk [vmem:[#allocation2 + $0x80] sm:$0xff] %vm307_vm4, %v574_v45  ;;  %v2952_v10 = vld [vmem:[%s3407_s17 + $0x20] sm:$0xff]   ;;  %v2960_v42 = vld [vmem:[%s3407_s17 + $0x28] sm:$0xff]   ;;  %v1099_v45 = vrot.slane %v2958_v37, 2 }
  0xb3   : > { %v1274_v23 = vsel %vm1194_vm3, %v1264_v5, %v1273_v12  ;;  %v1283_v31 = vsel %vm1194_vm3, %v1273_v12, %v1282_v24  ;;  %v2949_v5 = vld [vmem:[%s3407_s17 + $0x20] sm:$0xff]   ;;  %v823_v20 = vshll.u32 %v2952_v10, 16  ;;  %v1097_v24 = vrot.slane %v2955_v14, 2 }
  0xb4   : > { %991 = vrot.lane.b32.xlu1 %v974_v19, %s3170_s22  ;;  %v2910_v19 = vld [vmem:[#allocation6 + $0x78] sm:$0xff]   ;;  %v1093_v7 = vrot.slane %v2949_v5, 2  ;;  %v2916_v37 = vld [vmem:[#allocation6 + $0x100] sm:$0xff]  }
  0xb5   : > { %1288 = vrot.lane.b32.xlu0 %v1229_v28, %s3170_s22  ;;  %v579_v28 = vrot.slane %v2914_v22, 1  ;;  %2539 = vmatprep.subr.bf16.mxu0 %v2910_v19  ;;  %v2953_v22 = vld [vmem:[%s3407_s17 + $0x10] sm:$0xf8]   ;;  %v1100_v52 = vsel %vm967_vm2, %v1097_v24, %v1099_v45 }
  0xb6   : > { %2729 = vmatprep.subr.bf16.mxu1 %v2910_v19  ;;  %2540 = vmatpush3.bf16.msra.mxu0 %v2912_v27  ;;  %v1094_v12 = vsel %vm967_vm2, %v1091_v48, %v1093_v7  ;;  %v820_v19 = vshrl.u32 %v2952_v10, 16  ;;  %v1096_v21 = vsel %vm967_vm2, %v1093_v7, %v1095_v13  ;;  %1122 = vst.msk [vmem:[#allocation2 + $0xb8] sm:$0xff] %vm307_vm4, %v1100_v52 }
  0xb7   : > { %v580_v30 = vsel %vm565_vm0, %v577_v0, %v579_v28  ;;  %2737 = vmatpush3.bf16.msra.mxu1 %v2912_v27  ;;  %2678 = vmatprep.subr.bf16.mxu0 %v3171_v34  ;;  %v794_v0 = vshrl.u32 %v2942_v53, 16  ;;  %1119 = vst.msk [vmem:[#allocation2 + $0x40] sm:$0xff] %vm307_vm4, %v1094_v12  ;;  %1120 = vst.msk [vmem:[#allocation2 + $0x68] sm:$0xff] %vm307_vm4, %v1096_v21  ;;  %v1388_v27 = vrot.slane %v2953_v22, 3  ;;  %v2966_v12 = vld [vmem:[%s3407_s17 + $0x38] sm:$0xff]  }
  0xb8   : > { %993 = vrot.lane.b32.xlu1 %v976_v33, %s3170_s22  ;;  %600 = vst.msk [vmem:[#allocation2 + $0xf8] sm:$0xff] %vm307_vm4, %v580_v30  ;;  %v2920_v33 = vld [vmem:[%s3407_s17 + $0x10] sm:$0xff]   ;;  %2595 = vmatprep.subr.bf16.mxu1 %v2917_v29  ;;  %v822_v25 = vrot.slane %v820_v19, 1  ;;  %v2956_v29 = vld [vmem:[%s3407_s17 + $0x28] sm:$0xff]   ;;  %v1397_v22 = vrot.slane %v2966_v12, 3 }
  0xb9   : > { %1290 = vrot.lane.b32.xlu0 %v1238_v40, %s3170_s22  ;;  %310 = vst.msk [vmem:[#allocation2 + $0x50] sm:$0xff] %vm307_vm4, %v2920_v33  ;;  %v582_v40 = vsel %vm565_vm0, %v579_v28, %v581_v39  ;;  %v796_v59 = vrot.slane %v794_v0, 1  ;;  %v1098_v28 = vsel %vm967_vm2, %v1095_v13, %v1097_v24  ;;  %v829_v35 = vshrl.u32 %v2956_v29, 16  ;;  %v2967_v13 = vld [vmem:[%s3407_s17 + $0x50] sm:$0xff]   ;;  %v2968_v24 = vld [vmem:[%s3407_s17 + $0x48] sm:$0xff]  }
  0xba   : > { %601 = vst.msk [vmem:[#allocation2 + $0x120] sm:$0xff] %vm307_vm4, %v582_v40  ;;  %1121 = vst.msk [vmem:[#allocation2 + $0x90] sm:$0xff] %vm307_vm4, %v1098_v28  ;;  %v832_v36 = vshll.u32 %v2956_v29, 16  ;;  %v2937_v12 = vld [vmem:[#allocation6 + $0x110] sm:$0xff]  }
  0xbb   : > { %v800_v1 = vor.u32 %v799_v60, %v796_v59  ;;  %v831_v43 = vrot.slane %v829_v35, 1  ;;  %v2970_v35 = vld [vmem:[%s3407_s17 + $0x58] ss:$0 sps:$4 sm:$0x33]  }
  0xbc   : > { %995 = vrot.lane.b32.xlu1 %v978_v44, %s3170_s22  ;;  %v2932_v44 = vld [vmem:[%s3407_s17 + $0x48] ss:$0 sps:$4 sm:$0x11]  }
  0xbd   : > { %1292 = vrot.lane.b32.xlu0 %v1247_v51, %s3170_s22  ;;  %v583_v49 = vrot.slane %v2932_v44, 1  ;;  %v2940_v51 = vld [vmem:[%s3407_s17 + $0x10] sm:$0xfc]   ;;  %v834_v44 = vrot.slane %v832_v36, 2 }
  0xbe   : > { %v1090_v54 = vrot.slane %v2940_v51, 2 }
  0xbf   : > { %v584_v17 = vsel %vm565_vm0, %v581_v39, %v583_v49  ;;  %v841_v49 = vshll.u32 %v2959_v38, 16  ;;  %v835_v51 = vor.u32 %v834_v44, %v831_v43  ;;  %v2922_v43 = vld [vmem:[#allocation6 + $0x88] sm:$0xff]  }
  0xc0   : > { %997 = vrot.lane.b32.xlu1 %v980_v55, %s3170_s22  ;;  %602 = vst.msk [vmem:[#allocation2 + $0x148] sm:$0xff] %vm307_vm4, %v584_v17  ;;  %v2943_v55 = vld [vmem:[%s3407_s17 + $0x10] sm:$0xff]   ;;  %v1092_v56 = vsel %vm967_vm2, %v1090_v54, %v1091_v48  ;;  %v1393_v17 = vrot.slane %v2960_v42, 3  ;;  %v840_v54 = vrot.slane %v838_v46, 1  ;;  %v2961_v48 = vld [vmem:[%s3407_s17 + $0x40] sm:$0xff]  }
  0xc1   : > { %1294 = vrot.lane.b32.xlu0 %v1256_v4, %s3170_s22  ;;  %1118 = vst.msk [vmem:[#allocation2 + $0x18] sm:$0xff] %vm307_vm4, %v1092_v56  ;;  %v802_v57 = vshrl.u32 %v2943_v55, 16  ;;  %v805_v58 = vshll.u32 %v2943_v55, 16  ;;  %v843_v53 = vrot.slane %v841_v49, 2  ;;  %v2962_v56 = vld [vmem:[%s3407_s17 + $0x38] sm:$0xff]   ;;  %v1101_v2 = vrot.slane %v2961_v48, 2 }
  0xc2   : > { %v1394_v55 = vsel %vm1387_vm6, %v1391_v41, %v1393_v17  ;;  %v847_v59 = vshrl.u32 %v2962_v56, 16  ;;  %v850_v60 = vshll.u32 %v2962_v56, 16  ;;  %v2971_v46 = vld [vmem:[%s3407_s17 + $0x50] ss:$0 sps:$4 sm:$0x33]  }
  0xc3   : > { %v804_v61 = vrot.slane %v802_v57, 1  ;;  %v807_v63 = vrot.slane %v805_v58, 2  ;;  %1418 = vst.msk [vmem:[#allocation2 + $0x70] sm:$0xff] %vm307_vm4, %v1394_v55  ;;  %v2963_v57 = vld [vmem:[%s3407_s17 + $0x30] sm:$0xff]   ;;  %v844_v58 = vor.u32 %v843_v53, %v840_v54  ;;  %v874_v52 = vshrl.u32 %v2971_v46, 16 }
  0xc4   : > { %999 = vrot.lane.b32.xlu1 %v982_v3, %s3170_s22  ;;  %v849_v7 = vrot.slane %v847_v59, 1  ;;  %v852_v8 = vrot.slane %v850_v60, 2  ;;  %v877_v54 = vshll.u32 %v2971_v46, 16  ;;  %v2973_v56 = vld [vmem:[%s3407_s17 + $0x50] sm:$0xff]   ;;  %v2927_v60 = vld [vmem:[#allocation6 + $0x108] sm:$0xff]  }
  0xc5   : > { %1296 = vrot.lane.b32.xlu0 %v1265_v11, %s3170_s22  ;;  %v808_v4 = vor.u32 %v807_v63, %v804_v61  ;;  %v2954_v11 = vld [vmem:[%s3407_s17 + $0x18] sm:$0xff]   ;;  %v2964_v61 = vld [vmem:[%s3407_s17 + $0x48] sm:$0xff]   ;;  %v2965_v63 = vld [vmem:[%s3407_s17 + $0x40] sm:$0xff]   ;;  %v845_v6 = vsel %vm792_vm5, %v835_v51, %v844_v58 }
  0xc6   : > { %895 = vst.msk [vmem:[#allocation2 + $0xb0] sm:$0xff] %vm307_vm4, %v845_v6  ;;  %v856_v10 = vshrl.u32 %v2965_v63, 16  ;;  %v853_v14 = vor.u32 %v852_v8, %v849_v7  ;;  %v2974_v59 = vld [vmem:[%s3407_s17 + $0x58] ss:$0 sps:$4 sm:$0x77]  }
  0xc7   : > { %v809_v3 = vsel %vm792_vm5, %v800_v1, %v808_v4  ;;  %v1102_v1 = vsel %vm967_vm2, %v1099_v45, %v1101_v2  ;;  %v1107_v45 = vrot.slane %v2970_v35, 2  ;;  %v2930_v7 = vld [vmem:[#allocation6 + $0xd8] sm:$0xff]  }
  0xc8   : > { %1001 = vrot.lane.b32.xlu1 %v984_v15, %s3170_s22  ;;  %891 = vst.msk [vmem:[#allocation2 + $0x10] sm:$0xff] %vm307_vm4, %v809_v3  ;;  %v813_v15 = vrot.slane %v811_v9, 1  ;;  %1123 = vst.msk [vmem:[#allocation2 + $0xe0] sm:$0xff] %vm307_vm4, %v1102_v1  ;;  %v1103_v9 = vrot.slane %v2964_v61, 2  ;;  %v2926_v1 = vld [vmem:[#allocation6 + $0x90] sm:$0xff]  }
  0xc9   : > { %1298 = vrot.lane.b32.xlu0 %v1274_v23, %s3170_s22  ;;  %v1389_v23 = vrot.slane %v2954_v11, 3  ;;  %v859_v11 = vshll.u32 %v2965_v63, 16  ;;  %v1403_v63 = vrot.slane %v2973_v56, 3 }
  0xca   : > { %v817_v16 = vor.u32 %v816_v18, %v813_v15  ;;  %v1104_v15 = vsel %vm967_vm2, %v1101_v2, %v1103_v9 }
  0xcb   : > { %v1390_v33 = vsel %vm1387_vm6, %v1388_v27, %v1389_v23  ;;  %v1392_v47 = vsel %vm1387_vm6, %v1389_v23, %v1391_v41  ;;  %1124 = vst.msk [vmem:[#allocation2 + $0x108] sm:$0xff] %vm307_vm4, %v1104_v15  ;;  %v861_v21 = vrot.slane %v859_v11, 2  ;;  %v1105_v23 = vrot.slane %v2967_v13, 2  ;;  %v2921_v27 = vld [vmem:[#allocation6 + $0xc8] sm:$0xff]  }
  0xcc   : > { %1003 = vrot.lane.b32.xlu1 %v986_v26, %s3170_s22  ;;  %v825_v26 = vrot.slane %v823_v20, 2  ;;  %v818_v30 = vsel %vm792_vm5, %v808_v4, %v817_v16  ;;  %1416 = vst.msk [vmem:[#allocation2 + $0x20] sm:$0xff] %vm307_vm4, %v1390_v33  ;;  %1417 = vst.msk [vmem:[#allocation2 + $0x48] sm:$0xff] %vm307_vm4, %v1392_v47  ;;  %v1395_v4 = vrot.slane %v2963_v57, 3  ;;  %v858_v20 = vrot.slane %v856_v10, 1  ;;  %v2925_v47 = vld [vmem:[#allocation6 + $0xd0] sm:$0xff]  }
  0xcd   : > { %1300 = vrot.lane.b32.xlu0 %v1283_v31, %s3170_s22  ;;  %892 = vst.msk [vmem:[#allocation2 + $0x38] sm:$0xff] %vm307_vm4, %v818_v30  ;;  %v1106_v30 = vsel %vm967_vm2, %v1103_v9, %v1105_v23  ;;  %v868_v33 = vshll.u32 %v2968_v24, 16  ;;  %v876_v57 = vrot.slane %v874_v52, 1 }
  0xce   : > { %v826_v31 = vor.u32 %v825_v26, %v822_v25  ;;  %v1396_v62 = vsel %vm1387_vm6, %v1393_v17, %v1395_v4  ;;  %v2918_v25 = vld [vmem:[#allocation6 + $0x80] sm:$0xff]   ;;  %v854_v26 = vsel %vm792_vm5, %v844_v58, %v853_v14  ;;  %v862_v28 = vor.u32 %v861_v21, %v858_v20  ;;  %1125 = vst.msk [vmem:[#allocation2 + $0x130] sm:$0xff] %vm307_vm4, %v1106_v30  ;;  %v2972_v17 = vld [vmem:[%s3407_s17 + $0x48] sm:$0xff]   ;;  %v2948_v21 = vld [vmem:[#allocation6 + $0x118] sm:$0xff]  }
  0xcf   : > { %1419 = vst.msk [vmem:[#allocation2 + $0x98] sm:$0xff] %vm307_vm4, %v1396_v62  ;;  %896 = vst.msk [vmem:[#allocation2 + $0xd8] sm:$0xff] %vm307_vm4, %v854_v26  ;;  %v1398_v29 = vsel %vm1387_vm6, %v1395_v4, %v1397_v22  ;;  %v870_v44 = vrot.slane %v868_v33, 2  ;;  %v1401_v55 = vrot.slane %v2972_v17, 3  ;;  %v879_v58 = vrot.slane %v877_v54, 2  ;;  %v2945_v33 = vld [vmem:[#allocation6 + $0xb0] sm:$0xff]  }
  0xd0   : > { %v827_v40 = vsel %vm792_vm5, %v817_v16, %v826_v31  ;;  %v836_v0 = vsel %vm792_vm5, %v826_v31, %v835_v51  ;;  %v865_v31 = vshrl.u32 %v2968_v24, 16  ;;  %1420 = vst.msk [vmem:[#allocation2 + $0xc0] sm:$0xff] %vm307_vm4, %v1398_v29  ;;  %v863_v38 = vsel %vm792_vm5, %v853_v14, %v862_v28  ;;  %v2931_v14 = vld [vmem:[#allocation6 + $0x98] sm:$0xff]  }
  0xd1   : > { %893 = vst.msk [vmem:[#allocation2 + $0x60] sm:$0xff] %vm307_vm4, %v827_v40  ;;  %894 = vst.msk [vmem:[#allocation2 + $0x88] sm:$0xff] %vm307_vm4, %v836_v0  ;;  %v1399_v40 = vrot.slane %v2969_v32, 3  ;;  %v1108_v51 = vsel %vm967_vm2, %v1105_v23, %v1107_v45  ;;  %v880_v4 = vor.u32 %v879_v58, %v876_v57  ;;  %v1404_v8 = vsel %vm1387_vm6, %v1401_v55, %v1403_v63 }
  0xd2   : > { %897 = vst.msk [vmem:[#allocation2 + $0x100] sm:$0xff] %vm307_vm4, %v863_v38  ;;  %1126 = vst.msk [vmem:[#allocation2 + $0x158] sm:$0xff] %vm307_vm4, %v1108_v51 }
  0xd3   : > { %v1400_v49 = vsel %vm1387_vm6, %v1397_v22, %v1399_v40  ;;  %v1402_v61 = vsel %vm1387_vm6, %v1399_v40, %v1401_v55  ;;  %1423 = vst.msk [vmem:[#allocation2 + $0x138] sm:$0xff] %vm307_vm4, %v1404_v8  ;;  %v2935_v22 = vld [vmem:[#allocation6 + $0xa0] sm:$0xff]  }
  0xd4   : > { %1421 = vst.msk [vmem:[#allocation2 + $0xe8] sm:$0xff] %vm307_vm4, %v1400_v49  ;;  %1422 = vst.msk [vmem:[#allocation2 + $0x110] sm:$0xff] %vm307_vm4, %v1402_v61  ;;  %v1429_v55 = vld [vmem:[#allocation2 + $0x20] sm:$0xff] }
  0xf8   : > { %v700_v39 = vpop.permute.xlu1 %699 }
  0xf9   : > { %721 = vst.msk [vmem:[#allocation2 + $0xd0] sm:$0xff] %vm488_vm7, %v700_v39  ;;  %v867_v39 = vrot.slane %v865_v31, 1  ;;  %v2944_v31 = vld [vmem:[#allocation6 + $0xf0] sm:$0xff]  }
  0xfa   : > { %v690_v50 = vpop.permute.xlu0 %689 }
  0xfb   : > { %716 = vst.msk [vmem:[#allocation2 + $0x8] sm:$0xff] %vm488_vm7, %v690_v50  ;;  %v871_v50 = vor.u32 %v870_v44, %v867_v39 }
  0xfd   : > { %v872_v2 = vsel %vm792_vm5, %v862_v28, %v871_v50  ;;  %v881_v62 = vsel %vm792_vm5, %v871_v50, %v880_v4  ;;  %v2939_v28 = vld [vmem:[#allocation6 + $0xa8] sm:$0xff]  }
  0xfe   : > { %v472_v5 = vpop.permute.xlu1 %471  ;;  %898 = vst.msk [vmem:[#allocation2 + $0x128] sm:$0xff] %vm307_vm4, %v872_v2  ;;  %899 = vst.msk [vmem:[#allocation2 + $0x150] sm:$0xff] %vm307_vm4, %v881_v62  ;;  %v1444_v62 = vld [vmem:[#allocation2 + $0x98] sm:$0xff] }
  0xff   : > { %494 = vst.msk [vmem:[#allocation2 + $0xc8] sm:$0xff] %vm488_vm7, %v472_v5  ;;  %v462_v18 = vpop.permute.xlu0 %461  ;;  %v1405_v5 = vrot.slane %v2974_v59, 3 }
 0x100   : > { %v1451_v3 = vld [vmem:[#allocation2 + $0xd0] sm:$0xff]  ;;  %489 = vst.msk [vmem:[#allocation2] sm:$0xff] %vm488_vm7, %v462_v18 }
 0x101   : > { %1864 = vmatprep.mubr.bf16.mxu1 %v1451_v3  ;;  %v1406_v10 = vsel %vm1387_vm6, %v1403_v63, %v1405_v5 }
 0x102   : > { %v1426_v19 = vld [vmem:[#allocation2 + $0x8] sm:$0xff]  ;;  %v464_v16 = vpop.permute.xlu1 %463  ;;  %1424 = vst.msk [vmem:[#allocation2 + $0x160] sm:$0xff] %vm307_vm4, %v1406_v10 }
 0x103   : > { %1824 = vmatprep.mubr.bf16.mxu0 %v1426_v19  ;;  %490 = vst.msk [vmem:[#allocation2 + $0x28] sm:$0xff] %vm488_vm7, %v464_v16  ;;  %v692_v36 = vpop.permute.xlu0 %691  ;;  %v2934_v19 = vld [vmem:[#allocation6 + $0xe0] sm:$0xff]   ;;  %v2938_v16 = vld [vmem:[#allocation6 + $0xe8] sm:$0xff]  }
 0x104   : > { %717 = vst.msk [vmem:[#allocation2 + $0x30] sm:$0xff] %vm488_vm7, %v692_v36 }
 0x106   : > { %v474_v41 = vpop.permute.xlu1 %473  ;;  %v1450_v42 = vld [vmem:[#allocation2 + $0xc8] sm:$0xff] }
 0x107   : > { %495 = vst.msk [vmem:[#allocation2 + $0xf0] sm:$0xff] %vm488_vm7, %v474_v41  ;;  %1865 = vmatmul.mubr.bf16.vlgmr.msra.gmra.mrb[0].mxu1 %v1450_v42  ;;  %v702_v48 = vpop.permute.xlu0 %701  ;;  %v1425_v53 = vld [vmem:[#allocation2] sm:$0xff]  ;;  %v2947_v41 = vld [vmem:[#allocation6 + $0xb8] sm:$0xff]  }
 0x108   : > { %2596 = vmatpush3.bf16.msra.mxu1 %v2918_v25  ;;  %722 = vst.msk [vmem:[#allocation2 + $0xf8] sm:$0xff] %vm488_vm7, %v702_v48  ;;  %1825 = vmatmul.mubr.bf16.vlgmr.msra.gmra.mrb[0].mxu0 %v1425_v53 }
 0x109   : > { %2597 = vmatprep.subr.bf16.mxu1 %v2921_v27  ;;  %2679 = vmatpush3.bf16.msra.mxu0 %v2916_v37  ;;  %v2946_v37 = vld [vmem:[#allocation6 + $0xf8] sm:$0xff]  }
 0x10a   : > { %v466_v0 = vpop.permute.xlu1 %465  ;;  %2680 = vmatprep.subr.bf16.mxu0 %v3171_v34  ;;  %v1430_v11 = vld [vmem:[#allocation2 + $0x28] sm:$0xff] }
 0x10b   : > { %491 = vst.msk [vmem:[#allocation2 + $0x50] sm:$0xff] %vm488_vm7, %v466_v0  ;;  %v694_v3 = vpop.permute.xlu0 %693  ;;  %v1431_v6 = vld [vmem:[#allocation2 + $0x30] sm:$0xff] }
 0x10c   : > { %2598 = vmatpush3.bf16.msra.mxu1 %v2922_v43  ;;  %718 = vst.msk [vmem:[#allocation2 + $0x58] sm:$0xff] %vm488_vm7, %v694_v3  ;;  %1832 = vmatprep.mubr.bf16.mxu0 %v1431_v6  ;;  %v1439_v6 = vld [vmem:[#allocation2 + $0x70] sm:$0xff] }
 0x10d   : > { %2599 = vmatprep.subr.bf16.mxu1 %v2925_v47  ;;  %2681 = vmatpush3.bf16.msra.mxu0 %v2927_v60  ;;  %v1434_v60 = vld [vmem:[#allocation2 + $0x48] sm:$0xff] }
 0x10e   : > { %v476_v9 = vpop.permute.xlu1 %475  ;;  %v1455_v13 = vld [vmem:[#allocation2 + $0xf0] sm:$0xff]  ;;  %2682 = vmatprep.subr.bf16.mxu0 %v3171_v34 }
 0x10f   : > { %496 = vst.msk [vmem:[#allocation2 + $0x118] sm:$0xff] %vm488_vm7, %v476_v9  ;;  %v704_v15 = vpop.permute.xlu0 %703  ;;  %v1456_v18 = vld [vmem:[#allocation2 + $0xf8] sm:$0xff] }
 0x110   : > { %2600 = vmatpush3.bf16.msra.mxu1 %v2926_v1  ;;  %723 = vst.msk [vmem:[#allocation2 + $0x120] sm:$0xff] %vm488_vm7, %v704_v15  ;;  %1833 = vmatmul.mubr.bf16.gmra.mrb[4].mxu0 %v1430_v11  ;;  %v1454_v15 = vld [vmem:[#allocation2 + $0xe8] sm:$0xff] }
 0x111   : > { %2601 = vmatprep.subr.bf16.mxu1 %v2930_v7  ;;  %1872 = vmatprep.mubr.bf16.mxu1 %v1456_v18 }
 0x112   : > { %v468_v20 = vpop.permute.xlu1 %467  ;;  %1873 = vmatmul.mubr.bf16.gmra.mrb[4].mxu1 %v1455_v13  ;;  %2683 = vmatpush3.bf16.msra.mxu0 %v2937_v12  ;;  %v1435_v26 = vld [vmem:[#allocation2 + $0x50] sm:$0xff]  ;;  %v1449_v12 = vld [vmem:[#allocation2 + $0xc0] sm:$0xff] }
 0x113   : > { %492 = vst.msk [vmem:[#allocation2 + $0x78] sm:$0xff] %vm488_vm7, %v468_v20  ;;  %2684 = vmatprep.subr.bf16.mxu0 %v3171_v34  ;;  %v696_v23 = vpop.permute.xlu0 %695  ;;  %v1436_v24 = vld [vmem:[#allocation2 + $0x58] sm:$0xff]  ;;  %v1459_v20 = vld [vmem:[#allocation2 + $0x110] sm:$0xff] }
 0x114   : > { %2602 = vmatpush3.bf16.msra.mxu1 %v2931_v14  ;;  %719 = vst.msk [vmem:[#allocation2 + $0x80] sm:$0xff] %vm488_vm7, %v696_v23  ;;  %1840 = vmatprep.mubr.bf16.mxu0 %v1436_v24  ;;  %v1464_v23 = vld [vmem:[#allocation2 + $0x138] sm:$0xff] }
 0x115   : > { %2603 = vmatprep.subr.bf16.mxu1 %v2934_v19 }
 0x116   : > { %v478_v25 = vpop.permute.xlu1 %477  ;;  %2685 = vmatpush3.bf16.msra.mxu0 %v2948_v21  ;;  %v1460_v27 = vld [vmem:[#allocation2 + $0x118] sm:$0xff] }
 0x117   : > { %497 = vst.msk [vmem:[#allocation2 + $0x140] sm:$0xff] %vm488_vm7, %v478_v25  ;;  %v706_v29 = vpop.permute.xlu0 %705  ;;  %v1461_v30 = vld [vmem:[#allocation2 + $0x120] sm:$0xff] }
 0x118   : > { %2604 = vmatpush3.bf16.msra.mxu1 %v2935_v22  ;;  %724 = vst.msk [vmem:[#allocation2 + $0x148] sm:$0xff] %vm488_vm7, %v706_v29  ;;  %1841 = vmatmul.mubr.bf16.gmra.mrb[8].mxu0 %v1435_v26 }
 0x119   : > { %2605 = vmatprep.subr.bf16.mxu1 %v2938_v16  ;;  %1880 = vmatprep.mubr.bf16.mxu1 %v1461_v30  ;;  %v1469_v16 = vld [vmem:[#allocation2 + $0x160] sm:$0xff] }
 0x11a   : > { %v470_v32 = vpop.permute.xlu1 %469  ;;  %1881 = vmatmul.mubr.bf16.gmra.mrb[8].mxu1 %v1460_v27  ;;  %v1440_v39 = vld [vmem:[#allocation2 + $0x78] sm:$0xff] }
 0x11b   : > { %493 = vst.msk [vmem:[#allocation2 + $0xa0] sm:$0xff] %vm488_vm7, %v470_v32  ;;  %v698_v35 = vpop.permute.xlu0 %697  ;;  %v1441_v36 = vld [vmem:[#allocation2 + $0x80] sm:$0xff] }
 0x11c   : > { %2606 = vmatpush3.bf16.msra.mxu1 %v2939_v28  ;;  %720 = vst.msk [vmem:[#allocation2 + $0xa8] sm:$0xff] %vm488_vm7, %v698_v35  ;;  %1848 = vmatprep.mubr.bf16.mxu0 %v1441_v36 }
 0x11d   : > { %2607 = vmatprep.subr.bf16.mxu1 %v2944_v31 }
 0x11e   : > { %v988_v38 = vpop.permute.xlu1 %987  ;;  %v1465_v40 = vld [vmem:[#allocation2 + $0x140] sm:$0xff] }
 0x11f   : > { %1014 = vst.msk [vmem:[#allocation2 + $0x10] sm:$0xff] %vm488_vm7, %v988_v38  ;;  %v1285_v42 = vpop.permute.xlu0 %1284  ;;  %v1466_v43 = vld [vmem:[#allocation2 + $0x148] sm:$0xff] }
 0x120   : > { %2608 = vmatpush3.bf16.msra.mxu1 %v2945_v33  ;;  %1311 = vst.msk [vmem:[#allocation2 + $0x18] sm:$0xff] %vm488_vm7, %v1285_v42  ;;  %1849 = vmatmul.mubr.bf16.gmra.mrb[12].mxu0 %v1440_v39 }
 0x121   : > { %2609 = vmatprep.subr.bf16.mxu1 %v2946_v37  ;;  %1888 = vmatprep.mubr.bf16.mxu1 %v1466_v43 }
 0x122   : > { %v990_v44 = vpop.permute.xlu1 %989  ;;  %1889 = vmatmul.mubr.bf16.gmra.mrb[12].mxu1 %v1465_v40  ;;  %v1445_v49 = vld [vmem:[#allocation2 + $0xa0] sm:$0xff] }
 0x123   : > { %1015 = vst.msk [vmem:[#allocation2 + $0x38] sm:$0xff] %vm488_vm7, %v990_v44  ;;  %v1446_v45 = vld [vmem:[#allocation2 + $0xa8] sm:$0xff]  ;;  %v1287_v46 = vpop.permute.xlu0 %1286 }
 0x124   : > { %2610 = vmatpush3.bf16.msra.mxu1 %v2947_v41  ;;  %1856 = vmatprep.mubr.bf16.mxu0 %v1446_v45  ;;  %1312 = vst.msk [vmem:[#allocation2 + $0x40] sm:$0xff] %vm488_vm7, %v1287_v46 }
 0x126   : > { %v992_v47 = vpop.permute.xlu1 %991  ;;  %v1427_v17 = vld [vmem:[#allocation2 + $0x10] sm:$0xff] }
 0x127   : > { %1016 = vst.msk [vmem:[#allocation2 + $0x60] sm:$0xff] %vm488_vm7, %v992_v47  ;;  %v1428_v50 = vld [vmem:[#allocation2 + $0x18] sm:$0xff]  ;;  %v1289_v51 = vpop.permute.xlu0 %1288 }
 0x128   : > { %1857 = vmatmul.mubr.bf16.gmra.mrb[16].mxu0 %v1445_v49  ;;  %1929 = vmatprep.mubr.bf16.mxu1 %v1428_v50  ;;  %1313 = vst.msk [vmem:[#allocation2 + $0x68] sm:$0xff] %vm488_vm7, %v1289_v51 }
 0x129   : > { %2686 = vmatprep.mubr.msk.bf16.mxu0 %vm3172_vm8, %v3171_v34 }
 0x12a   : > { %v994_v52 = vpop.permute.xlu1 %993  ;;  %1930 = vmatmul.mubr.bf16.vlgmr.msra.gmra.mrb[16].mxu1 %v1427_v17  ;;  %v1432_v56 = vld [vmem:[#allocation2 + $0x38] sm:$0xff] }
 0x12b   : > { %1017 = vst.msk [vmem:[#allocation2 + $0x88] sm:$0xff] %vm488_vm7, %v994_v52  ;;  %v1433_v54 = vld [vmem:[#allocation2 + $0x40] sm:$0xff]  ;;  %v1291_v48 = vpop.permute.xlu0 %1290 }
 0x12c   : > { %1937 = vmatprep.mubr.bf16.mxu1 %v1433_v54  ;;  %1314 = vst.msk [vmem:[#allocation2 + $0x90] sm:$0xff] %vm488_vm7, %v1291_v48 }
 0x12e   : > { %v996_v53 = vpop.permute.xlu1 %995  ;;  %v1437_v61 = vld [vmem:[#allocation2 + $0x60] sm:$0xff] }
 0x12f   : > { %1018 = vst.msk [vmem:[#allocation2 + $0xb0] sm:$0xff] %vm488_vm7, %v996_v53  ;;  %v1438_v0 = vld [vmem:[#allocation2 + $0x68] sm:$0xff]  ;;  %v1293_v2 = vpop.permute.xlu0 %1292 }
 0x130   : > { %2687 = vmatmul.mubr.msk.bf16.vlgmr.msra.gmra.mrb[20].mxu0 %vm307_vm4, %v1429_v55  ;;  %1315 = vst.msk [vmem:[#allocation2 + $0xb8] sm:$0xff] %vm488_vm7, %v1293_v2 }
 0x131   : > { %2690 = vmatprep.mubr.msk.bf16.mxu0 %vm3172_vm8, %v3171_v34 }
 0x132   : > { %v998_v57 = vpop.permute.xlu1 %997  ;;  %1938 = vmatmul.mubr.bf16.gmra.mrb[20].mxu1 %v1432_v56  ;;  %v1442_v7 = vld [vmem:[#allocation2 + $0x88] sm:$0xff] }
 0x133   : > { %1019 = vst.msk [vmem:[#allocation2 + $0xd8] sm:$0xff] %vm488_vm7, %v998_v57  ;;  %1945 = vmatprep.mubr.bf16.mxu1 %v1438_v0  ;;  %v1295_v58 = vpop.permute.xlu0 %1294  ;;  %v1443_v63 = vld [vmem:[#allocation2 + $0x90] sm:$0xff] }
 0x134   : > { %1316 = vst.msk [vmem:[#allocation2 + $0xe0] sm:$0xff] %vm488_vm7, %v1295_v58 }
 0x136   : > { %v1000_v59 = vpop.permute.xlu1 %999  ;;  %v1447_v10 = vld [vmem:[#allocation2 + $0xb0] sm:$0xff] }
 0x137   : > { %1020 = vst.msk [vmem:[#allocation2 + $0x100] sm:$0xff] %vm488_vm7, %v1000_v59  ;;  %v1297_v1 = vpop.permute.xlu0 %1296  ;;  %v1448_v8 = vld [vmem:[#allocation2 + $0xb8] sm:$0xff] }
 0x138   : > { %2691 = vmatmul.mubr.msk.bf16.gmra.mrb[24].mxu0 %vm307_vm4, %v1434_v60  ;;  %1317 = vst.msk [vmem:[#allocation2 + $0x108] sm:$0xff] %vm488_vm7, %v1297_v1 }
 0x139   : > { %2694 = vmatprep.mubr.msk.bf16.mxu0 %vm3172_vm8, %v3171_v34 }
 0x13a   : > { %v1002_v4 = vpop.permute.xlu1 %1001  ;;  %1946 = vmatmul.mubr.bf16.gmra.mrb[24].mxu1 %v1437_v61  ;;  %v1452_v13 = vld [vmem:[#allocation2 + $0xd8] sm:$0xff] }
 0x13b   : > { %1021 = vst.msk [vmem:[#allocation2 + $0x128] sm:$0xff] %vm488_vm7, %v1002_v4  ;;  %1953 = vmatprep.mubr.bf16.mxu1 %v1443_v63  ;;  %v1299_v5 = vpop.permute.xlu0 %1298  ;;  %v1453_v11 = vld [vmem:[#allocation2 + $0xe0] sm:$0xff] }
 0x13c   : > { %1318 = vst.msk [vmem:[#allocation2 + $0x130] sm:$0xff] %vm488_vm7, %v1299_v5 }
 0x13e   : > { %v1004_v3 = vpop.permute.xlu1 %1003  ;;  %v1457_v18 = vld [vmem:[#allocation2 + $0x100] sm:$0xff] }
 0x13f   : > { %1022 = vst.msk [vmem:[#allocation2 + $0x150] sm:$0xff] %vm488_vm7, %v1004_v3  ;;  %v1301_v9 = vpop.permute.xlu0 %1300  ;;  %v1458_v14 = vld [vmem:[#allocation2 + $0x108] sm:$0xff] }
 0x140   : > { %2695 = vmatmul.mubr.msk.bf16.gmra.mrb[28].mxu0 %vm307_vm4, %v1439_v6  ;;  %1319 = vst.msk [vmem:[#allocation2 + $0x158] sm:$0xff] %vm488_vm7, %v1301_v9  ;;  %v3802_v6 = vld [vmem:[#allocation8] ss:$0 sm:$0xff] }
 0x141   : > { %2698 = vmatprep.mubr.msk.bf16.mxu0 %vm3172_vm8, %v3171_v34 }
 0x142   : > { %1954 = vmatmul.mubr.bf16.gmra.mrb[28].mxu1 %v1442_v7  ;;  %v1462_v21 = vld [vmem:[#allocation2 + $0x128] sm:$0xff] }
 0x143   : > { %1961 = vmatprep.mubr.bf16.mxu1 %v1448_v8  ;;  %v1463_v19 = vld [vmem:[#allocation2 + $0x130] sm:$0xff] }
 0x146   : > { %v1467_v24 = vld [vmem:[#allocation2 + $0x150] sm:$0xff] }
 0x147   : > { %v1468_v22 = vld [vmem:[#allocation2 + $0x158] sm:$0xff] }
 0x148   : > { %2699 = vmatmul.mubr.msk.bf16.gmra.mrb[32].mxu0 %vm307_vm4, %v1444_v62 }
 0x149   : > { %2702 = vmatprep.mubr.msk.bf16.mxu0 %vm3172_vm8, %v3171_v34 }
 0x14a   : > { %1962 = vmatmul.mubr.bf16.gmra.mrb[32].mxu1 %v1447_v10 }
 0x14b   : > { %1969 = vmatprep.mubr.bf16.mxu1 %v1453_v11 }
 0x150   : > { %2703 = vmatmul.mubr.msk.bf16.gmra.mrb[36].mxu0 %vm307_vm4, %v1449_v12 }
 0x151   : > { %2706 = vmatprep.mubr.msk.bf16.mxu0 %vm3172_vm8, %v3171_v34 }
 0x152   : > { %1970 = vmatmul.mubr.bf16.gmra.mrb[36].mxu1 %v1452_v13 }
 0x153   : > { %1977 = vmatprep.mubr.bf16.mxu1 %v1458_v14 }
 0x158   : > { %2707 = vmatmul.mubr.msk.bf16.gmra.mrb[40].mxu0 %vm307_vm4, %v1454_v15 }
 0x159   : > { %2710 = vmatprep.mubr.msk.bf16.mxu0 %vm3172_vm8, %v3171_v34 }
 0x15a   : > { %1978 = vmatmul.mubr.bf16.gmra.mrb[40].mxu1 %v1457_v18 }
 0x15b   : > { %1985 = vmatprep.mubr.bf16.mxu1 %v1463_v19 }
 0x160   : > { %2711 = vmatmul.mubr.msk.bf16.gmra.mrb[44].mxu0 %vm307_vm4, %v1459_v20 }
 0x161   : > { %2714 = vmatprep.mubr.msk.bf16.mxu0 %vm3172_vm8, %v3171_v34 }
 0x162   : > { %1986 = vmatmul.mubr.bf16.gmra.mrb[44].mxu1 %v1462_v21 }
 0x163   : > { %1993 = vmatprep.mubr.bf16.mxu1 %v1468_v22 }
 0x168   : > { %2715 = vmatmul.mubr.msk.bf16.gmra.mrb[48].mxu0 %vm307_vm4, %v1464_v23 }
 0x169   : > { %2718 = vmatprep.mubr.msk.bf16.mxu0 %vm3172_vm8, %v3171_v34 }
 0x16a   : > { %1994 = vmatmul.mubr.bf16.gmra.mrb[48].mxu1 %v1467_v24 }
 0x170   : > { %2719 = vmatmul.mubr.msk.bf16.gmra.mrb[52].mxu0 %vm307_vm4, %v1469_v16 }
 0x1da   : > { %v2571_v25 = vpop.f32.mrb[0].mxu1 }
 0x1db   : > { %v2572_v26 = vpop.f32.mrb[1].mxu1  ;;  %v2541_v29 = vpop.f32.mrb[0].mxu0 }
 0x1dc   : > { %v3784_v27 = vadd.f32 %v2572_v26, %v2571_v25  ;;  %v2574_v28 = vpop.f32.mrb[2].mxu1  ;;  %v2542_v31 = vpop.f32.mrb[1].mxu0 }
 0x1dd   : > { %v2575_v30 = vpop.f32.mrb[3].mxu1  ;;  %v2543_v33 = vadd.f32 %v2542_v31, %v2541_v29  ;;  %v2544_v35 = vpop.f32.mrb[2].mxu0 }
 0x1de   : > { %v3786_v32 = vadd.f32 %v2575_v30, %v2574_v28  ;;  %v2545_v36 = vpop.f32.mrb[3].mxu0 }
 0x1df   : > { %v2546_v37 = vadd.f32 %v2545_v36, %v2544_v35  ;;  %v1827_v19 = vadd.f32 %v2543_v33, %v3802_v6 }
 0x1e1   : > { %v1830_v16 = vadd.f32 %v2546_v37, %v3802_v6 }
 0x1e3   : > { %v2547_v38 = vpop.f32.mrb[4].mxu0 }
 0x1e4   : > { %v2548_v39 = vpop.f32.mrb[5].mxu0 }
 0x1e5   : > { %v2577_v34 = vpop.f32.mrb[4].mxu1  ;;  %v2549_v40 = vadd.f32 %v2548_v39, %v2547_v38  ;;  %v2550_v41 = vpop.f32.mrb[6].mxu0 }
 0x1e6   : > { %v2578_v42 = vpop.f32.mrb[5].mxu1  ;;  %v2551_v44 = vpop.f32.mrb[7].mxu0 }
 0x1e7   : > { %v3788_v43 = vadd.f32 %v2578_v42, %v2577_v34  ;;  %v2580_v45 = vpop.f32.mrb[6].mxu1  ;;  %v2552_v46 = vadd.f32 %v2551_v44, %v2550_v41  ;;  %v1835_v33 = vadd.f32 %v2549_v40, %v3802_v6 }
 0x1e8   : > { %v2581_v47 = vpop.f32.mrb[7].mxu1 }
 0x1e9   : > { %v3790_v49 = vadd.f32 %v2581_v47, %v2580_v45  ;;  %v1838_v45 = vadd.f32 %v2552_v46, %v3802_v6 }
 0x1eb   : > { %v2553_v17 = vpop.f32.mrb[8].mxu0 }
 0x1ec   : > { %v2554_v50 = vpop.f32.mrb[9].mxu0 }
 0x1ed   : > { %v2583_v51 = vpop.f32.mrb[8].mxu1  ;;  %v3792_v52 = vadd.f32 %v2554_v50, %v2553_v17  ;;  %v2556_v54 = vpop.f32.mrb[10].mxu0 }
 0x1ee   : > { %v2584_v48 = vpop.f32.mrb[9].mxu1  ;;  %v2557_v55 = vpop.f32.mrb[11].mxu0 }
 0x1ef   : > { %v3794_v53 = vadd.f32 %v2584_v48, %v2583_v51  ;;  %v2586_v56 = vpop.f32.mrb[10].mxu1  ;;  %v3796_v0 = vadd.f32 %v2557_v55, %v2556_v54 }
 0x1f0   : > { %v2587_v2 = vpop.f32.mrb[11].mxu1 }
 0x1f1   : > { %v3798_v57 = vadd.f32 %v2587_v2, %v2586_v56 }
 0x1f3   : > { %v2559_v58 = vpop.f32.mrb[12].mxu0 }
 0x1f4   : > { %v2560_v59 = vpop.f32.mrb[13].mxu0 }
 0x1f5   : > { %v2589_v60 = vpop.f32.mrb[12].mxu1  ;;  %v3800_v61 = vadd.f32 %v2560_v59, %v2559_v58  ;;  %v2562_v63 = vpop.f32.mrb[14].mxu0  ;;  %v1843_v59 = vadd.f32 %v3792_v52, %v3802_v6 }
 0x1f6   : > { %v2590_v1 = vpop.f32.mrb[13].mxu1  ;;  %v2563_v5 = vpop.f32.mrb[15].mxu0 }
 0x1f7   : > { %v2591_v4 = vadd.f32 %v2590_v1, %v2589_v60  ;;  %v2592_v3 = vpop.f32.mrb[14].mxu1  ;;  %v3804_v7 = vadd.f32 %v2563_v5, %v2562_v63 }
 0x1f8   : > { %v2593_v8 = vpop.f32.mrb[15].mxu1 }
 0x1f9   : > { %v3807_v9 = vadd.f32 %v2591_v4, %v3802_v6  ;;  %v2594_v62 = vadd.f32 %v2593_v8, %v2592_v3  ;;  %v1846_v3 = vadd.f32 %v3796_v0, %v3802_v6  ;;  %v1851_v0 = vadd.f32 %v3800_v61, %v3802_v6 }
 0x1fb   : > { %v3810_v10 = vadd.f32 %v2594_v62, %v3802_v6  ;;  %v2565_v11 = vpop.f32.mrb[16].mxu0 }
 0x1fc   : > { %v2566_v12 = vpop.f32.mrb[17].mxu0 }
 0x1fd   : > { %v2611_v13 = vpop.f32.mrb[16].mxu1  ;;  %v3812_v14 = vadd.f32 %v2566_v12, %v2565_v11  ;;  %v2568_v15 = vpop.f32.mrb[18].mxu0 }
 0x1fe   : > { %v2612_v18 = vpop.f32.mrb[17].mxu1  ;;  %v2569_v21 = vpop.f32.mrb[19].mxu0 }
 0x1ff   : > { %v2613_v20 = vadd.f32 %v2612_v18, %v2611_v13  ;;  %v2614_v22 = vpop.f32.mrb[18].mxu1  ;;  %v3815_v23 = vadd.f32 %v2569_v21, %v2568_v15 }
 0x200   : > { %v2615_v24 = vpop.f32.mrb[19].mxu1 }
 0x201   : > { %v2616_v25 = vadd.f32 %v2615_v24, %v2614_v22  ;;  %v1932_v26 = vadd.f32 %v2613_v20, %v1827_v19 }
 0x203   : > { %v1935_v28 = vadd.f32 %v2616_v25, %v1830_v16  ;;  %v2036_v29 = vpop.f32.mrb[20].mxu0 }
 0x204   : > { %v2037_v30 = vadd.f32 %v2036_v29, %v1932_v26  ;;  %v2688_v35 = vpop.f32.mrb[21].mxu0 }
 0x205   : > { %v2617_v31 = vpop.f32.mrb[20].mxu1  ;;  %v2039_v38 = vpop.f32.mrb[22].mxu0 }
 0x206   : > { %v2618_v36 = vpop.f32.mrb[21].mxu1  ;;  %v2107_v39 = vmax.f32 %v2037_v30, 0.0  ;;  %v2040_v41 = vadd.f32 %v2039_v38, %v1935_v28  ;;  %v2689_v44 = vpop.f32.mrb[23].mxu0  ;;  %v1854_v30 = vadd.f32 %v3804_v7, %v3802_v6  ;;  %v1859_v7 = vadd.f32 %v3812_v14, %v3802_v6 }
 0x207   : > { %v2619_v34 = vadd.f32 %v2618_v36, %v2617_v31  ;;  %v2620_v42 = vpop.f32.mrb[22].mxu1 }
 0x208   : > { %v2621_v37 = vpop.f32.mrb[23].mxu1  ;;  %v2507_v47 = vpack.c.bf16 %v2107_v39, %v2107_v39  ;;  %v2108_v17 = vmax.f32 %v2040_v41, 0.0 }
 0x209   : > { %v2622_v50 = vadd.f32 %v2621_v37, %v2620_v42  ;;  %v1940_v51 = vadd.f32 %v2619_v34, %v1835_v33 }
 0x20a   : > { %2198 = vst.msk [vmem:[%s3821_s26] sm:$0xf] %vm2197_vm9, %v2507_v47  ;;  %v2508_v40 = vpack.c.bf16 %v2108_v17, %v2108_v17 }
 0x20b   : > { %v1943_v54 = vadd.f32 %v2622_v50, %v1838_v45  ;;  %v2044_v48 = vpop.f32.mrb[24].mxu0 }
 0x20c   : > { %2199 = vst.msk [vmem:[%s3821_s26 + $0x4] sm:$0xf] %vm2197_vm9, %v2508_v40  ;;  %v2045_v55 = vadd.f32 %v2044_v48, %v1940_v51  ;;  %v2692_v46 = vpop.f32.mrb[25].mxu0 }
 0x20d   : > { %v2623_v56 = vpop.f32.mrb[24].mxu1  ;;  %v2047_v58 = vpop.f32.mrb[26].mxu0 }
 0x20e   : > { %v2624_v2 = vpop.f32.mrb[25].mxu1  ;;  %v2109_v60 = vmax.f32 %v2045_v55, 0.0  ;;  %v2048_v1 = vadd.f32 %v2047_v58, %v1943_v54  ;;  %v2693_v5 = vpop.f32.mrb[27].mxu0  ;;  %v1862_v54 = vadd.f32 %v3815_v23, %v3802_v6  ;;  %v1867_v23 = vadd.f32 %v3784_v27, %v3802_v6 }
 0x20f   : > { %v2625_v63 = vadd.f32 %v2624_v2, %v2623_v56  ;;  %v2626_v4 = vpop.f32.mrb[26].mxu1 }
 0x210   : > { %v2627_v8 = vpop.f32.mrb[27].mxu1  ;;  %v2509_v62 = vpack.c.bf16 %v2109_v60, %v2109_v60  ;;  %v2110_v11 = vmax.f32 %v2048_v1, 0.0 }
 0x211   : > { %v2628_v12 = vadd.f32 %v2627_v8, %v2626_v4  ;;  %v1948_v13 = vadd.f32 %v2625_v63, %v1843_v59 }
 0x212   : > { %2200 = vst.msk [vmem:[%s3821_s26 + $0x8] sm:$0xf] %vm2197_vm9, %v2509_v62  ;;  %v2510_v15 = vpack.c.bf16 %v2110_v11, %v2110_v11 }
 0x213   : > { %v1951_v18 = vadd.f32 %v2628_v12, %v1846_v3  ;;  %v2052_v19 = vpop.f32.mrb[28].mxu0 }
 0x214   : > { %2201 = vst.msk [vmem:[%s3821_s26 + $0xc] sm:$0xf] %vm2197_vm9, %v2510_v15  ;;  %v2053_v52 = vadd.f32 %v2052_v19, %v1948_v13  ;;  %v2696_v21 = vpop.f32.mrb[29].mxu0  ;;  %v1870_v13 = vadd.f32 %v3786_v32, %v3802_v6  ;;  %v1875_v32 = vadd.f32 %v3788_v43, %v3802_v6 }
 0x215   : > { %v2629_v20 = vpop.f32.mrb[28].mxu1  ;;  %v2055_v24 = vpop.f32.mrb[30].mxu0 }
 0x216   : > { %v2630_v22 = vpop.f32.mrb[29].mxu1  ;;  %v2111_v16 = vmax.f32 %v2053_v52, 0.0  ;;  %v2056_v26 = vadd.f32 %v2055_v24, %v1951_v18  ;;  %v2697_v29 = vpop.f32.mrb[31].mxu0 }
 0x217   : > { %v2631_v25 = vadd.f32 %v2630_v22, %v2629_v20  ;;  %v2632_v28 = vpop.f32.mrb[30].mxu1 }
 0x218   : > { %v2633_v31 = vpop.f32.mrb[31].mxu1  ;;  %v2511_v35 = vpack.c.bf16 %v2111_v16, %v2111_v16  ;;  %v2112_v36 = vmax.f32 %v2056_v26, 0.0 }
 0x219   : > { %v2634_v38 = vadd.f32 %v2633_v31, %v2632_v28  ;;  %v1956_v33 = vadd.f32 %v2631_v25, %v1851_v0 }
 0x21a   : > { %2202 = vst.msk [vmem:[%s3821_s26 + $0x10] sm:$0xf] %vm2197_vm9, %v2511_v35  ;;  %v2512_v39 = vpack.c.bf16 %v2112_v36, %v2112_v36  ;;  %v1878_v36 = vadd.f32 %v3790_v49, %v3802_v6  ;;  %v1883_v49 = vadd.f32 %v3794_v53, %v3802_v6 }
 0x21b   : > { %v1959_v34 = vadd.f32 %v2634_v38, %v1854_v30  ;;  %v2060_v41 = vpop.f32.mrb[32].mxu0 }
 0x21c   : > { %2203 = vst.msk [vmem:[%s3821_s26 + $0x14] sm:$0xf] %vm2197_vm9, %v2512_v39  ;;  %v2061_v61 = vadd.f32 %v2060_v41, %v1956_v33  ;;  %v2700_v44 = vpop.f32.mrb[33].mxu0 }
 0x21d   : > { %v2635_v42 = vpop.f32.mrb[32].mxu1  ;;  %v2063_v37 = vpop.f32.mrb[34].mxu0 }
 0x21e   : > { %v2636_v45 = vpop.f32.mrb[33].mxu1  ;;  %v2113_v47 = vmax.f32 %v2061_v61, 0.0  ;;  %v2064_v50 = vadd.f32 %v2063_v37, %v1959_v34  ;;  %v2701_v40 = vpop.f32.mrb[35].mxu0 }
 0x21f   : > { %v2637_v17 = vadd.f32 %v2636_v45, %v2635_v42  ;;  %v2638_v51 = vpop.f32.mrb[34].mxu1 }
 0x220   : > { %v2639_v48 = vpop.f32.mrb[35].mxu1  ;;  %v2513_v55 = vpack.c.bf16 %v2113_v47, %v2113_v47  ;;  %v2114_v56 = vmax.f32 %v2064_v50, 0.0 }
 0x221   : > { %v2640_v46 = vadd.f32 %v2639_v48, %v2638_v51  ;;  %v1964_v2 = vadd.f32 %v2637_v17, %v1859_v7  ;;  %v1886_v48 = vadd.f32 %v3798_v57, %v3802_v6 }
 0x222   : > { %2204 = vst.msk [vmem:[%s3821_s26 + $0x18] sm:$0xf] %vm2197_vm9, %v2513_v55  ;;  %v2514_v58 = vpack.c.bf16 %v2114_v56, %v2114_v56 }
 0x223   : > { %v1967_v59 = vadd.f32 %v2640_v46, %v1862_v54  ;;  %v2068_v60 = vpop.f32.mrb[36].mxu0 }
 0x224   : > { %2205 = vst.msk [vmem:[%s3821_s26 + $0x1c] sm:$0xf] %vm2197_vm9, %v2514_v58  ;;  %v2069_v14 = vadd.f32 %v2068_v60, %v1964_v2  ;;  %v2704_v1 = vpop.f32.mrb[37].mxu0 }
 0x225   : > { %v2641_v63 = vpop.f32.mrb[36].mxu1  ;;  %v2071_v5 = vpop.f32.mrb[38].mxu0 }
 0x226   : > { %v2642_v4 = vpop.f32.mrb[37].mxu1  ;;  %v2115_v3 = vmax.f32 %v2069_v14, 0.0  ;;  %v2072_v62 = vadd.f32 %v2071_v5, %v1967_v59  ;;  %v2705_v12 = vpop.f32.mrb[39].mxu0 }
 0x227   : > { %v2643_v8 = vadd.f32 %v2642_v4, %v2641_v63  ;;  %v2644_v11 = vpop.f32.mrb[38].mxu1 }
 0x228   : > { %v2645_v15 = vpop.f32.mrb[39].mxu1  ;;  %v2515_v18 = vpack.c.bf16 %v2115_v3, %v2115_v3  ;;  %v2116_v19 = vmax.f32 %v2072_v62, 0.0 }
 0x229   : > { %v2646_v52 = vadd.f32 %v2645_v15, %v2644_v11  ;;  %v1972_v20 = vadd.f32 %v2643_v8, %v1867_v23 }
 0x22a   : > { %2206 = vst.msk [vmem:[%s3821_s26 + $0x20] sm:$0xf] %vm2197_vm9, %v2515_v18  ;;  %v2516_v21 = vpack.c.bf16 %v2116_v19, %v2116_v19 }
 0x22b   : > { %v1975_v22 = vadd.f32 %v2646_v52, %v1870_v13  ;;  %v2076_v24 = vpop.f32.mrb[40].mxu0 }
 0x22c   : > { %2207 = vst.msk [vmem:[%s3821_s26 + $0x24] sm:$0xf] %vm2197_vm9, %v2516_v21  ;;  %v2077_v27 = vadd.f32 %v2076_v24, %v1972_v20  ;;  %v2708_v16 = vpop.f32.mrb[41].mxu0 }
 0x22d   : > { %v2647_v0 = vpop.f32.mrb[40].mxu1  ;;  %v2079_v26 = vpop.f32.mrb[42].mxu0 }
 0x22e   : > { %v2648_v25 = vpop.f32.mrb[41].mxu1  ;;  %v2117_v28 = vmax.f32 %v2077_v27, 0.0  ;;  %v2080_v30 = vadd.f32 %v2079_v26, %v1975_v22  ;;  %v2709_v35 = vpop.f32.mrb[43].mxu0 }
 0x22f   : > { %v2649_v29 = vadd.f32 %v2648_v25, %v2647_v0  ;;  %v2650_v31 = vpop.f32.mrb[42].mxu1 }
 0x230   : > { %v2651_v38 = vpop.f32.mrb[43].mxu1  ;;  %v2517_v33 = vpack.c.bf16 %v2117_v28, %v2117_v28  ;;  %v2118_v39 = vmax.f32 %v2080_v30, 0.0 }
 0x231   : > { %v2652_v34 = vadd.f32 %v2651_v38, %v2650_v31  ;;  %v1980_v41 = vadd.f32 %v2649_v29, %v1875_v32 }
 0x232   : > { %2208 = vst.msk [vmem:[%s3821_s26 + $0x28] sm:$0xf] %vm2197_vm9, %v2517_v33  ;;  %v2518_v61 = vpack.c.bf16 %v2118_v39, %v2118_v39 }
 0x233   : > { %v1983_v42 = vadd.f32 %v2652_v34, %v1878_v36  ;;  %v2084_v44 = vpop.f32.mrb[44].mxu0 }
 0x234   : > { %2209 = vst.msk [vmem:[%s3821_s26 + $0x2c] sm:$0xf] %vm2197_vm9, %v2518_v61  ;;  %v2085_v43 = vadd.f32 %v2084_v44, %v1980_v41  ;;  %v2712_v37 = vpop.f32.mrb[45].mxu0 }
 0x235   : > { %v2653_v45 = vpop.f32.mrb[44].mxu1  ;;  %v2087_v47 = vpop.f32.mrb[46].mxu0 }
 0x236   : > { %v2654_v7 = vpop.f32.mrb[45].mxu1  ;;  %v2119_v17 = vmax.f32 %v2085_v43, 0.0  ;;  %v2088_v51 = vadd.f32 %v2087_v47, %v1983_v42  ;;  %v2713_v54 = vpop.f32.mrb[47].mxu0 }
 0x237   : > { %v2655_v50 = vadd.f32 %v2654_v7, %v2653_v45  ;;  %v2656_v40 = vpop.f32.mrb[46].mxu1 }
 0x238   : > { %v2657_v55 = vpop.f32.mrb[47].mxu1  ;;  %v2519_v56 = vpack.c.bf16 %v2119_v17, %v2119_v17  ;;  %v2120_v46 = vmax.f32 %v2088_v51, 0.0 }
 0x239   : > { %v2658_v2 = vadd.f32 %v2657_v55, %v2656_v40  ;;  %v1988_v58 = vadd.f32 %v2655_v50, %v1883_v49 }
 0x23a   : > { %2210 = vst.msk [vmem:[%s3821_s26 + $0x30] sm:$0xf] %vm2197_vm9, %v2519_v56  ;;  %v2520_v59 = vpack.c.bf16 %v2120_v46, %v2120_v46 }
 0x23b   : > { %v1991_v53 = vadd.f32 %v2658_v2, %v1886_v48  ;;  %v2092_v60 = vpop.f32.mrb[48].mxu0 }
 0x23c   : > { %2211 = vst.msk [vmem:[%s3821_s26 + $0x34] sm:$0xf] %vm2197_vm9, %v2520_v59  ;;  %v2093_v14 = vadd.f32 %v2092_v60, %v1988_v58  ;;  %v2716_v1 = vpop.f32.mrb[49].mxu0 }
 0x23d   : > { %v2659_v63 = vpop.f32.mrb[48].mxu1  ;;  %v2095_v57 = vpop.f32.mrb[50].mxu0 }
 0x23e   : > { %v2660_v4 = vpop.f32.mrb[49].mxu1  ;;  %v2121_v6 = vmax.f32 %v2093_v14, 0.0  ;;  %v2096_v23 = vadd.f32 %v2095_v57, %v1991_v53  ;;  %v2717_v8 = vpop.f32.mrb[51].mxu0 }
 0x23f   : > { %v2661_v5 = vadd.f32 %v2660_v4, %v2659_v63  ;;  %v2662_v3 = vpop.f32.mrb[50].mxu1 }
 0x240   : > { %v2663_v62 = vpop.f32.mrb[51].mxu1  ;;  %v2521_v11 = vpack.c.bf16 %v2121_v6, %v2121_v6  ;;  %v2122_v12 = vmax.f32 %v2096_v23, 0.0 }
 0x241   : > { %v2664_v13 = vadd.f32 %v2663_v62, %v2662_v3  ;;  %v1996_v15 = vadd.f32 %v2661_v5, %v3807_v9 }
 0x242   : > { %2212 = vst.msk [vmem:[%s3821_s26 + $0x38] sm:$0xf] %vm2197_vm9, %v2521_v11  ;;  %v2522_v18 = vpack.c.bf16 %v2122_v12, %v2122_v12 }
 0x243   : > { %v1999_v19 = vadd.f32 %v2664_v13, %v3810_v10  ;;  %v2100_v52 = vpop.f32.mrb[52].mxu0 }
 0x244   : > { %2213 = vst.msk [vmem:[%s3821_s26 + $0x3c] sm:$0xf] %vm2197_vm9, %v2522_v18  ;;  %v2101_v20 = vadd.f32 %v2100_v52, %v1996_v15  ;;  %v2720_v21 = vpop.f32.mrb[53].mxu0 }
 0x245   : > { %v2103_v22 = vpop.f32.mrb[54].mxu0 }
 0x246   : > { %v2123_v24 = vmax.f32 %v2101_v20, 0.0  ;;  %v2104_v27 = vadd.f32 %v2103_v22, %v1999_v19  ;;  %v2721_v0 = vpop.f32.mrb[55].mxu0 }
 0x248   : > { %v2523_v9 = vpack.c.bf16 %v2123_v24, %v2123_v24  ;;  %v2124_v16 = vmax.f32 %v2104_v27, 0.0 }
 0x24a   : > { %2214 = vst.msk [vmem:[%s3821_s26 + $0x40] sm:$0xf] %vm2197_vm9, %v2523_v9  ;;  %v2524_v10 = vpack.c.bf16 %v2124_v16, %v2124_v16 }
 0x24c   : > { %2215 = vst.msk [vmem:[%s3821_s26 + $0x44] sm:$0xf] %vm2197_vm9, %v2524_v10 }
 0x24d   : > { %3074 = shalt.err (!%p3071_p7)
}
 0x24e   : > { %s3075_s6 = scalar_lea.hbm %s3887_s8, 1152  ;;  %s3079_s17 = scalar_lea.hbm %s3952_s3, 4608 }
 0x24f   : > { %p3076_p12 = scmp.ne.s32.totalorder %s3887_s8, %s3075_s6  ;;  %p3080_p5 = scmp.lt.u32.totalorder %s3887_s8, %s3952_s3 }
 0x250   : > { %p3081_p9 = scmp.lt.u32.totalorder %s3079_s17, %s3075_s6  ;;  %p3083_p4 = scmp.lt.u32.totalorder %s3075_s6, %s3887_s8 }
 0x251   : > { %p3077_p1 = pnand %p3076_p12, %p3341_p8 }
 0x252   : > { %p3082_p0 = por %p3081_p9, %p3080_p5 }
 0x253   : > { %p3078_p2 = pneg %p3077_p1 }
 0x254   : > { %p3084_p10 = por %p3083_p4, %p3082_p0 }
 0x256   : > { %p3085_p6 = pnand %p3084_p10, %p3078_p2 }
 0x258   : > { %3088 = shalt.err (!%p3085_p6)
}
 0x259   : > { %s3174_s27 = smov 4  }
 0x25a   : > { %2755 = dma.vmem_to_hbm [thread:$0]  (%p3341_p8), %s3891_s16, 1152, %s3887_s8, %s2217_s11, %s3170_s22, %s3170_s22, %s3174_s27  }
 0x25b PF: > { %p2777_p11 = scmp.ge.s32.totalorder %s3163_s19, 2  ;;  %s2247_s23 = sand.u32 1, %s3135_s12  }
 0x25c   : > { %p3984_p13 = scmp.ne.s32.totalorder %s3968_s25, 0  ;;  %s2248_s9 = scalar_lea.sflag [#allocation5], %s2247_s23 }
 0x25e   : > { %p2769_p3 = pnand %p2777_p11, %p3984_p13 }
 0x260   : > { %3130 = dma.done.wait (!%p2769_p3), %s2248_s9, 1152  }
 0x261   : > { %3132 = vsyncadd (!%p2769_p3), %s2248_s9, 4294966144  ;;  %s20_s19 = sadd.s32 1, %s3163_s19   ;;  %s3985_s15 = sld [smem:[#allocation13_spill]] }
 0x262   : > { %p17_p7 = scmp.ge.s32.totalorder %s20_s19, 6   ;;  %s3986_s17 = sld [smem:[#allocation14_spill]] }
 0x263   : > { %s3987_s4 = sld [smem:[#allocation15_spill]]  ;;  %s3988_s12 = smov %s3139_s13 }
 0x264   : > { %s3989_s13 = smov %s3143_s14  ;;  %s3990_s14 = smov %s3360_s1 }
 0x265   : > { %s3991_s16 = smov %s3159_s18  ;;  %19 = sbr.rel (!%p17_p7) target bundleno = 11 (0xb), region = 85 }
 0x269   : > { %s3992_s18 = smov %s3987_s4 }
 0x26c   :  { %2253 = vsyncpa [#allocation4], 1 }
 0x26d   :  { %2255 = vsyncpa [#allocation4 + $0x1], 1 }
 0x26e   :  { %2256 = vsyncpa [#allocation7], 1 }
 0x26f   :  { %2257 = vsyncpa [#allocation5], 1 }
 0x270   :  { %2259 = vsyncpa [#allocation5 + $0x1], 1 }

// kernel: encoder3_forward.9
= control target key start
LH: loop header
LB: loop body
LE: loop exit
PB: predicated region body
PF: predicated region fallthrough
CT: control target
= control target key end

     0   :  { %8 = vsyncpa [#allocation4], 0  ;;  %s2841_s0 = inlined_call_operand.hbm [shape: bf16[2,1,102,64], index: 0, kind: input, shape index: {}]   ;;  %s2842_s1 = inlined_call_operand.hbm [shape: bf16[576,128], index: 1, kind: input, shape index: {}]   ;;  %s2843_s2 = inlined_call_operand.hbm [shape: f32[1,128], index: 2, kind: input, shape index: {}]   ;;  %s2844_s3 = inlined_call_operand.hbm [shape: bf16[2,1,80,128], index: 3, kind: output, shape index: {}]  }
   0x1   :  { %10 = vsyncpa [#allocation4 + $0x1], 0 }
   0x2   :  { %11 = vsyncpa [#allocation7], 0 }
   0x3   :  { %12 = vsyncpa [#allocation5], 0 }
   0x4   :  { %14 = vsyncpa [#allocation5 + $0x1], 0  ;;  %s2342_s12 = smov 0   ;;  %s2344_s13 = smov 0  }
   0x5   :  { %s2346_s14 = smov 0   ;;  %s2348_s15 = smov 0  }
   0x6   :  { %s2350_s16 = smov 0   ;;  %s2352_s17 = smov 0  }
   0x7 LB: > { %s1661_s18 = sadd.s32 4294967295, %s2310_s17   ;;  %s1662_s19 = sadd.s32 4294967294, %s2310_s17   ;;  %s2310_s17 = sphi %s2352_s17, %s20_s17   ;;  %s2306_s16 = sphi %s2350_s16, %s2866_s16   ;;  %s2302_s15 = sphi %s2348_s15, %s2865_s15   ;;  %s2298_s14 = sphi %s2346_s14, %s2864_s14   ;;  %s2294_s13 = sphi %s2344_s13, %s2863_s13   ;;  %s2290_s12 = sphi %s2342_s12, %s2862_s12  }
   0x8   : > { %p54_p0 = scmp.ne.s32.totalorder %s2294_s13, %s2290_s12  ;;  %p2376_p1 = scmp.eq.s32.totalorder %s1661_s18, 0 }
   0x9   : > { %p2380_p2 = scmp.eq.s32.totalorder %s1661_s18, 1  ;;  %p128_p3 = scmp.eq.s32.totalorder %s1662_s19, 1 }
   0xa   : > { %s2849_s20 = scalar_select %p2376_p1, 1, 0 }
   0xb   : > { %p2386_p4 = por %p2376_p1, %p54_p0  ;;  %p1663_p5 = scmp.ge.s32.totalorder %s2310_s17, 1 }
   0xc   : > { %p2391_p6 = por %p128_p3, %p54_p0  ;;  %p135_p7 = scmp.lt.s32.totalorder %s2310_s17, 3 }
   0xd   : > { %s2851_s22 = scalar_select %p2386_p4, 1, 0 }
   0xe   : > { %s2852_s23 = scalar_select %p2391_p6, 1, 0 }
   0xf   : > { %p2396_p8 = pnand %p1663_p5, %p135_p7  ;;  %s2312_s25 = smov [#allocation6]  }
  0x10   : > { %s147_s26 = sshll.u32 %s2312_s25, 4  ;;  %s2313_s28 = smov [#allocation8]   ;;  %s2400_s26 = int_to_ptr.vmem [resolvable:$true] %s147_s26 }
  0x11   : > { %p1972_p9 = pneg %p2396_p8  ;;  %s161_s29 = sshll.u32 %s2313_s28, 4  ;;  %s2411_s29 = int_to_ptr.vmem [resolvable:$true] %s161_s29 }
  0x12   : > { %s2138_s5 = scalar_lea.hbm %s2842_s1, 4608 }
  0x13   : > { %p2407_p11 = pnand %p1972_p9, %p2376_p1  ;;  %p2139_p12 = scmp.ne.s32.totalorder %s2842_s1, %s2138_s5 }
  0x14   : > { %p2145_p5 = scmp.lt.u32.totalorder %s2138_s5, %s2842_s1 }
  0x15   : > { %p2140_p13 = pneg %p2407_p11 }
  0x17   : > { %p2141_p0 = pnand %p2140_p13, %p2139_p12 }
  0x19   : > { %p2142_p3 = pneg %p2141_p0 }
  0x1b   : > { %p2147_p7 = pnand %p2145_p5, %p2142_p3 }
  0x1d   : > { %2150 = shalt.err (!%p2147_p7)
}
  0x1e   : > { %s2151_s10 = scalar_lea.vmem %s2400_s26, 4608  ;;  %p2159_p1 = scmp.lt.s32.totalorder %s2400_s26, %s2400_s26 }
  0x1f   : > { %p2152_p9 = scmp.ne.s32.totalorder %s2400_s26, %s2151_s10  ;;  %p2160_p12 = scmp.lt.s32.totalorder %s2151_s10, %s2151_s10 }
  0x21   : > { %p2154_p10 = pnand %p2152_p9, %p2140_p13  ;;  %p2161_p0 = por %p2160_p12, %p2159_p1 }
  0x23   : > { %p2155_p6 = pneg %p2154_p10 }
  0x25   : > { %p2162_p4 = pnand %p2161_p0, %p2155_p6 }
  0x27   : > { %2165 = shalt.err (!%p2162_p4)
}
  0x28   : > { %s2314_s11 = smov 64   ;;  %s2315_s18 = smov 4  }
  0x29   : > { %1975 = dma.hbm_to_vmem [thread:$0]  (!%p2407_p11), %s2842_s1, 4608, %s2400_s26, [#allocation7], %s2314_s11, %s2314_s11, %s2315_s18  }
  0x2a   : > { %s2166_s4 = scalar_lea.hbm %s2843_s2, 16 }
  0x2b   : > { %p2167_p1 = scmp.ne.s32.totalorder %s2843_s2, %s2166_s4  ;;  %p2173_p10 = scmp.lt.u32.totalorder %s2166_s4, %s2843_s2 }
  0x2d   : > { %p2169_p4 = pnand %p2167_p1, %p2140_p13 }
  0x2f   : > { %p2170_p6 = pneg %p2169_p4 }
  0x31   : > { %p2175_p3 = pnand %p2173_p10, %p2170_p6 }
  0x33   : > { %2178 = shalt.err (!%p2175_p3)
}
  0x34   : > { %s2179_s26 = scalar_lea.vmem %s2411_s29, 16  ;;  %s2186_s9 = scalar_lea.vmem %s2411_s29, 32 }
  0x35   : > { %p2180_p5 = scmp.ne.s32.totalorder %s2411_s29, %s2179_s26  ;;  %p2187_p12 = scmp.lt.s32.totalorder %s2411_s29, %s2411_s29 }
  0x36   : > { %p2188_p0 = scmp.lt.s32.totalorder %s2186_s9, %s2179_s26 }
  0x37   : > { %p2182_p7 = pnand %p2180_p5, %p2140_p13 }
  0x38   : > { %p2189_p1 = por %p2188_p0, %p2187_p12 }
  0x39   : > { %p2183_p9 = pneg %p2182_p7 }
  0x3b   : > { %p2190_p4 = pnand %p2189_p1, %p2183_p9 }
  0x3d   : > { %2193 = shalt.err (!%p2190_p4)
}
  0x3e   : > { %1978 = dma.hbm_to_vmem [thread:$0]  (!%p2407_p11), %s2843_s2, 16, %s2411_s29, [#allocation7]  }
  0x3f   : > { %s32_s25 = sadd.s32 1, %s2306_s16  ;;  %s41_s28 = sadd.s32 1, %s2298_s14 }
  0x40   : > { %p34_p13 = scmp.ge.s32.totalorder %s32_s25, 2  ;;  %p48_p6 = scmp.ne.s32.totalorder %s2298_s14, %s2294_s13 }
  0x41   : > { %p49_p10 = scmp.eq.s32.totalorder %s2310_s17, 0  ;;  %p1989_p3 = scmp.lt.s32.totalorder %s2310_s17, 2 }
  0x42   : > { %s2868_s25 = smov (%p34_p13, %s32_s25), 0  ;;  %p2479_p7 = por %p2380_p2, %p48_p6 }
  0x43   : > { %p50_p5 = por %p49_p10, %p48_p6  ;;  %s36_s30 = ssub.s32 %s2306_s16, %s2868_s25 }
  0x44   : > { %s2855_s27 = scalar_select %p2479_p7, 1, 0 }
  0x45   : > { %s172_s4 = sand.u32 1, %s2298_s14   ;;  %p39_p9 = scmp.eq.s32.totalorder %s36_s30, 0 }
  0x46   : > { %s1955_s29 = smul.u32 52, %s172_s4  ;;  %p2486_p11 = pnand %p1989_p3, %p50_p5 }
  0x47   : > { %s2491_s6 = scalar_select %p39_p9, %s2298_s14, %s41_s28  }
  0x48   : > { %s1956_s7 = smul.u32 832, %s2306_s16  ;;  %s176_s8 = scalar_lea.vmem [#allocation3], %s1955_s29 }
  0x49   : > { %s185_s26 = sshll.u32 %s176_s8, 4  ;;  %s2501_s19 = scalar_lea.sflag [#allocation4], %s172_s4  ;;  %s2499_s26 = int_to_ptr.vmem [resolvable:$true] %s185_s26 }
  0x4a   : > { %s2497_s10 = scalar_lea.hbm %s2841_s0, %s1956_s7  ;;  %p2196_p12 = pneg %p2486_p11 }
  0x4b   : > { %s2194_s30 = scalar_lea.hbm %s2497_s10, 832  ;;  %s2199_s7 = scalar_lea.hbm %s2841_s0, 1664 }
  0x4c   : > { %p2195_p2 = scmp.ne.s32.totalorder %s2497_s10, %s2194_s30  ;;  %p2200_p4 = scmp.lt.u32.totalorder %s2497_s10, %s2841_s0 }
  0x4d   : > { %p2201_p13 = scmp.lt.u32.totalorder %s2199_s7, %s2194_s30  ;;  %p2203_p10 = scmp.lt.u32.totalorder %s2194_s30, %s2497_s10 }
  0x4e   : > { %p2197_p0 = pnand %p2196_p12, %p2195_p2 }
  0x4f   : > { %p2202_p6 = por %p2201_p13, %p2200_p4 }
  0x50   : > { %p2198_p1 = pneg %p2197_p0 }
  0x51   : > { %p2204_p3 = por %p2203_p10, %p2202_p6 }
  0x53   : > { %p2205_p5 = pnand %p2204_p3, %p2198_p1 }
  0x55   : > { %2208 = shalt.err (!%p2205_p5)
}
  0x56   : > { %s2209_s4 = scalar_lea.vmem %s2499_s26, 832  ;;  %s2316_s9 = smov [#allocation3]  }
  0x57   : > { %p2210_p9 = scmp.ne.s32.totalorder %s2499_s26, %s2209_s4  ;;  %s2214_s28 = sshll.u32 %s2316_s9, 4  ;;  %s2215_s28 = int_to_ptr.vmem [resolvable:$false] %s2214_s28 }
  0x58   : > { %s2216_s29 = scalar_lea.vmem %s2215_s28, 1664  ;;  %p2217_p7 = scmp.lt.s32.totalorder %s2499_s26, %s2215_s28 }
  0x59   : > { %p2212_p2 = pnand %p2210_p9, %p2196_p12  ;;  %p2218_p4 = scmp.lt.s32.totalorder %s2216_s29, %s2209_s4 }
  0x5b   : > { %p2213_p0 = pneg %p2212_p2  ;;  %p2219_p13 = por %p2218_p4, %p2217_p7 }
  0x5d   : > { %p2220_p6 = pnand %p2219_p13, %p2213_p0 }
  0x5f   : > { %2223 = shalt.err (!%p2220_p6)
}
  0x60   : > { %1982 = dma.hbm_to_vmem [thread:$0]  (!%p2486_p11), %s2497_s10, 832, %s2499_s26, %s2501_s19, %s2314_s11, %s2314_s11, %s2315_s18  }
  0x61   : > { %197 = sbr.rel (%p2396_p8) target bundleno = 533 (0x215), region = 32  ;;  %s2535_s30 = sand.u32 (!%p2396_p8), 1, %s2294_s13  }
  0x62   : > { %s1957_s7 = smul.u32 (!%p2396_p8), 52, %s2535_s30  ;;  %s200_s8 = scalar_lea.sflag (!%p2396_p8), [#allocation4], %s2535_s30 }
  0x63   : > { %p2857_p7 = scmp.ne.s32.totalorder (!%p2396_p8), %s2851_s22, 0 }
  0x64   : > { %s2539_s21 = scalar_lea.vmem (!%p2396_p8), [#allocation3], %s1957_s7 }
  0x68   : > { %2277 = dma.done.wait (%p2857_p7), %s200_s8, 832  }
  0x69   : > { %2279 = vsyncadd (%p2857_p7), %s200_s8, 4294966464  ;;  %p2858_p11 = scmp.ne.s32.totalorder %s2849_s20, 0 }
  0x6b   : > { %2281 = dma.done.wait (%p2858_p11), [#allocation7], 4624  }
  0x6c   : > { %2283 = vsyncadd (%p2858_p11), [#allocation7], 4294962672  ;;  %vm425_vm0 = vcmask 1046528   ;;  %v2049_v0 = vld [vmem:[%s2539_s21 + $0xc] sm:$0xff]   ;;  %v2551_v1 = vld [vmem:[%s2539_s21 + $0x14] sm:$0xff]   ;;  %vm659_vm3 = vcmask 1045504  }
  0x6d   : > { %v2051_v2 = vld [vmem:[%s2539_s21 + $0x4] sm:$0xfe]   ;;  %vm790_vm1 = vsmask.f32 5376  ;;  %v487_v3 = vrot.slane %v2049_v0, 1  ;;  %v489_v4 = vrot.slane %v2551_v1, 1 }
  0x6e   : > { %v486_v5 = vrot.slane %v2051_v2, 1  ;;  %v2053_v6 = vld [vmem:[%s2539_s21 + $0x10] sm:$0xff]   ;;  %vm320_vm2 = vsmask.f32 7424  ;;  %v2052_v8 = vld [vmem:[%s2539_s21 + $0x8] sm:$0xfc]  }
  0x6f   : > { %v490_v7 = vsel %vm425_vm0, %v487_v3, %v489_v4  ;;  %s2317_s20 = smov 64   ;;  %v800_v10 = vshrl.u32 %v2053_v6, 16  ;;  %v803_v11 = vshll.u32 %v2053_v6, 16  ;;  %v792_v12 = vshrl.u32 %v2052_v8, 16  ;;  %v2054_v14 = vld [vmem:[%s2539_s21] sm:$0xff]   ;;  %v2055_v15 = vld [vmem:[%s2539_s21 + $0x8] sm:$0xff]  }
  0x70   : > { %499 = vrot.lane.b32.xlu1 %v490_v7, %s2317_s20  ;;  %v488_v9 = vsel %vm425_vm0, %v486_v5, %v487_v3  ;;  %v795_v13 = vshll.u32 %v2052_v8, 16  ;;  %v322_v20 = vshrl.u32 %v2054_v14, 16  ;;  %v324_v21 = vshll.u32 %v2054_v14, 16  ;;  %v2056_v24 = vld [vmem:[%s2539_s21 + $0x4] sm:$0xfc]   ;;  %v2057_v25 = vld [vmem:[%s2539_s21 + $0xc] sm:$0xff]  }
  0x71   : > { %497 = vrot.lane.b32.xlu0 %v488_v9, %s2317_s20  ;;  %v802_v16 = vrot.slane %v800_v10, 2  ;;  %v805_v17 = vrot.slane %v803_v11, 3  ;;  %v794_v18 = vrot.slane %v792_v12, 2  ;;  %v329_v23 = vshll.u32 %v2055_v15, 16  ;;  %v2058_v28 = vld [vmem:[%s2539_s21 + $0x10] sm:$0xff]   ;;  %v2059_v30 = vld [vmem:[%s2539_s21 + $0x18] sm:$0xff]  }
  0x72   : > { %v797_v19 = vrot.slane %v795_v13, 3  ;;  %v326_v27 = vrot.slane %v324_v21, 1  ;;  %v333_v29 = vshrl.u32 %v2055_v15, 16  ;;  %v660_v32 = vrot.slane %v2056_v24, 2  ;;  %v2060_v34 = vld [vmem:[%s2539_s21 + $0x1c] sm:$0xff]   ;;  %v2061_v45 = vld [vmem:[%s2539_s21 + $0x14] sm:$0xff]  }
  0x73   : > { %v806_v22 = vor.u32 %v805_v17, %v802_v16  ;;  %v331_v31 = vrot.slane %v329_v23, 1  ;;  %v661_v33 = vrot.slane %v2057_v25, 2  ;;  %v337_v37 = vshll.u32 %v2058_v28, 16  ;;  %v2062_v46 = vld [vmem:[%s2539_s21 + $0x18] sm:$0xff]   ;;  %v2063_v53 = vld [vmem:[%s2539_s21 + $0x20] sm:$0xff]   ;;  %v2067_v0 = vld [vmem:[%s2539_s21 + $0x28] sm:$0xff]  }
  0x74   : > { %v798_v26 = vor.u32 %v797_v19, %v794_v18  ;;  %v327_v36 = vor.u32 %v326_v27, %v322_v20  ;;  %v809_v38 = vshrl.u32 %v2059_v30, 16  ;;  %v812_v40 = vshll.u32 %v2059_v30, 16  ;;  %v2581_v55 = vld [vmem:[%s2539_s21 + $0x24] sm:$0xff]   ;;  %v2586_v59 = vld [vmem:[%s2539_s21 + $0x1c] sm:$0xff]   ;;  %s1958_s22 = smul.u32 40, %s2535_s30  ;;  %s1540_s19 = scalar_lea.sflag [#allocation5], %s2535_s30 }
  0x75   : > { %v335_v39 = vor.u32 %v333_v29, %v331_v31  ;;  %v662_v42 = vsel %vm659_vm3, %v660_v32, %v661_v33  ;;  %v339_v43 = vrot.slane %v337_v37, 1  ;;  %v491_v48 = vrot.slane %v2060_v34, 1  ;;  %v2066_v60 = vld [vmem:[%s2539_s21 + $0x20] sm:$0xff]   ;;  %v2068_v13 = vld [vmem:[%s2539_s21 + $0x2c] ss:$0 sps:$4 sm:$0x11]  }
  0x76   : > { %v807_v35 = vsel %vm790_vm1, %v798_v26, %v806_v22  ;;  %v332_v41 = vsel %vm320_vm2, %v327_v36, %v331_v31  ;;  %v811_v44 = vrot.slane %v809_v38, 2  ;;  %v814_v47 = vrot.slane %v812_v40, 3  ;;  %v2070_v16 = vld [vmem:[%s2539_s21 + $0x28] ss:$0 sps:$4 sm:$0x11]   ;;  %v2075_v30 = vld [vmem:[#allocation6 + $0x48] sm:$0xff]  }
  0x77   : > { %844 = vrot.lane.b32.xlu1 %v807_v35, %s2317_s20  ;;  %365 = vrot.lane.b32.xlu0 %v332_v41, %s2317_s20  ;;  %v340_v49 = vsel %vm320_vm2, %v335_v39, %v339_v43  ;;  %v341_v50 = vshrl.u32 %v2058_v28, 16  ;;  %v345_v51 = vshll.u32 %v2062_v46, 16  ;;  %v663_v54 = vrot.slane %v2061_v45, 2  ;;  %v2071_v17 = vld [vmem:[%s2539_s21 + $0x30] ss:$0 sps:$4 sm:$0x77]  }
  0x78   : > { %v815_v52 = vor.u32 %v814_v47, %v811_v44  ;;  %v818_v57 = vshrl.u32 %v2063_v53, 16  ;;  %v821_v58 = vshll.u32 %v2063_v53, 16  ;;  %v492_v61 = vsel %vm425_vm0, %v489_v4, %v491_v48  ;;  %v2073_v21 = vld [vmem:[#allocation6 + $0x40] sm:$0xff]   ;;  %v2076_v34 = vld [vmem:[#allocation6 + $0x8] sm:$0xff]   ;;  %v2079_v41 = vld [vmem:[#allocation6 + $0x50] sm:$0xff]   ;;  %s2772_s24 = scalar_lea.vmem [#allocation9], %s1958_s22 }
  0x79   : > { %v343_v62 = vor.u32 %v341_v50, %v339_v43  ;;  %v347_v63 = vrot.slane %v345_v51, 1  ;;  %v664_v5 = vsel %vm659_vm3, %v661_v33, %v663_v54  ;;  %v827_v6 = vshrl.u32 %v2067_v0, 16  ;;  %v2069_v23 = vld [vmem:[%s2539_s21 + $0x24] sm:$0xff]   ;;  %1818 = vmatprep.subr.bf16.mxu0 %v2073_v21  ;;  %v2072_v33 = vld [vmem:[%s2539_s21 + $0x2c] ss:$0 sps:$4 sm:$0x33]  }
  0x7a   : > { %v816_v56 = vsel %vm790_vm1, %v806_v22, %v815_v52  ;;  %v820_v2 = vrot.slane %v818_v57, 2  ;;  %v823_v3 = vrot.slane %v821_v58, 3  ;;  %v830_v7 = vshll.u32 %v2067_v0, 16  ;;  %v2074_v22 = vld [vmem:[#allocation6] sm:$0xff]   ;;  %v2080_v45 = vld [vmem:[#allocation6 + $0x10] sm:$0xff]   ;;  %v2083_v50 = vld [vmem:[#allocation6 + $0x58] sm:$0xff]  }
  0x7b   : > { %671 = vrot.lane.b32.xlu1 %v662_v42, %s2317_s20  ;;  %367 = vrot.lane.b32.xlu0 %v340_v49, %s2317_s20  ;;  %v349_v1 = vshrl.u32 %v2062_v46, 16  ;;  %v348_v4 = vsel %vm320_vm2, %v343_v62, %v347_v63  ;;  %v493_v9 = vrot.slane %v2581_v55, 1  ;;  %v665_v10 = vrot.slane %v2586_v59, 2  ;;  %v2077_v36 = vld [vmem:[#allocation6 + $0xc0] sm:$0xff]   ;;  %v2081_v46 = vld [vmem:[#allocation6 + $0xc8] sm:$0xff]   ;;  %v2084_v53 = vld [vmem:[#allocation6 + $0x18] sm:$0xff]  }
  0x7c   : > { %v824_v8 = vor.u32 %v823_v3, %v820_v2  ;;  %v353_v11 = vshll.u32 %v2066_v60, 16  ;;  %v829_v12 = vrot.slane %v827_v6, 2  ;;  %v832_v15 = vrot.slane %v830_v7, 3  ;;  %1819 = vmatpush3.bf16.msra.mxu0 %v2074_v22  ;;  %v2078_v39 = vld [vmem:[#allocation6 + $0x80] sm:$0xff]   ;;  %1864 = vmatprep.subr.bf16.mxu1 %v2077_v36  ;;  %v2082_v49 = vld [vmem:[#allocation6 + $0x88] sm:$0xff]   ;;  %s1555_s11 = sshll.u32 %s2772_s24, 4  ;;  %s2784_s11 = int_to_ptr.vmem [resolvable:$true] %s1555_s11 }
  0x7d   : > { %v494_v18 = vsel %vm425_vm0, %v491_v48, %v493_v9  ;;  %v351_v19 = vor.u32 %v349_v1, %v347_v63  ;;  %v357_v24 = vshrl.u32 %v2066_v60, 16  ;;  %v666_v25 = vsel %vm659_vm3, %v663_v54, %v665_v10  ;;  %1820 = vmatprep.subr.bf16.mxu0 %v2075_v30  ;;  %1865 = vmatpush3.bf16.msra.mxu1 %v2078_v39  ;;  %v2085_v54 = vld [vmem:[#allocation6 + $0xd0] sm:$0xff]   ;;  %v2087_v57 = vld [vmem:[#allocation6 + $0x60] sm:$0xff]   ;;  %v2089_v60 = vld [vmem:[#allocation6 + $0xd8] sm:$0xff]   ;;  %s1959_s18 = smul.u32 640, %s2302_s15  ;;  %s2224_s4 = scalar_lea.vmem %s2784_s11, 640 }
  0x7e   : > { %v825_v14 = vsel %vm790_vm1, %v815_v52, %v824_v8  ;;  %v355_v20 = vrot.slane %v353_v11, 1  ;;  %v833_v26 = vor.u32 %v832_v15, %v829_v12  ;;  %v495_v27 = vrot.slane %v2068_v13, 1  ;;  %1866 = vmatprep.subr.bf16.mxu1 %v2081_v46  ;;  %v2088_v59 = vld [vmem:[#allocation6 + $0x20] sm:$0xff]   ;;  %v2091_v62 = vld [vmem:[#allocation6 + $0x68] sm:$0xff]   ;;  %v2113_v39 = vld [vmem:[#allocation6 + $0xf8] sm:$0xff]   ;;  %p2225_p8 = scmp.ne.s32.totalorder %s2784_s11, %s2224_s4  ;;  %p2859_p12 = scmp.ne.s32.totalorder %s2855_s27, 0 }
  0x7f   : > { %846 = vrot.lane.b32.xlu1 %v816_v56, %s2317_s20  ;;  %501 = vrot.lane.b32.xlu0 %v492_v61, %s2317_s20  ;;  %v361_v28 = vshll.u32 %v2070_v16, 16  ;;  %v836_v29 = vshrl.u32 %v2071_v17, 16  ;;  %v839_v32 = vshll.u32 %v2071_v17, 16  ;;  %v667_v35 = vrot.slane %v2069_v23, 2  ;;  %v2086_v56 = vld [vmem:[#allocation6 + $0x90] sm:$0xff]   ;;  %v2090_v61 = vld [vmem:[#allocation6 + $0x98] sm:$0xff]   ;;  %s2789_s10 = scalar_lea.hbm %s2844_s3, %s1959_s18 }
  0x80   : > { %v356_v31 = vsel %vm320_vm2, %v351_v19, %v355_v20  ;;  %v834_v37 = vsel %vm790_vm1, %v824_v8, %v833_v26  ;;  %1821 = vmatpush3.bf16.msra.mxu0 %v2076_v34  ;;  %v496_v42 = vsel %vm425_vm0, %v493_v9, %v495_v27  ;;  %v359_v43 = vor.u32 %v357_v24, %v355_v20  ;;  %v2092_v63 = vld [vmem:[%s2539_s21 + $0x8] sm:$0xff]   ;;  %v2628_v0 = vld [vmem:[%s2539_s21 + $0x10] sm:$0xff]   ;;  %v2094_v3 = vld [vmem:[%s2539_s21] sm:$0xfe]   ;;  %p2226_p1 = pnand %p2225_p8, %p2859_p12  ;;  %s2320_s15 = smov [#allocation9]  }
  0x81   : > { %v363_v38 = vrot.slane %v361_v28, 1  ;;  %v838_v40 = vrot.slane %v836_v29, 2  ;;  %v841_v44 = vrot.slane %v839_v32, 3  ;;  %v668_v47 = vsel %vm659_vm3, %v665_v10, %v667_v35  ;;  %1822 = vmatprep.subr.bf16.mxu0 %v2079_v41  ;;  %1867 = vmatpush3.bf16.msra.mxu1 %v2082_v49  ;;  %v2096_v7 = vld [vmem:[#allocation6 + $0xe0] sm:$0xff]   ;;  %v2098_v10 = vld [vmem:[#allocation6 + $0x70] sm:$0xff]   ;;  %v2103_v17 = vld [vmem:[#allocation6 + $0xe8] sm:$0xff]  }
  0x82   : > { %v669_v48 = vrot.slane %v2072_v33, 2  ;;  %1868 = vmatprep.subr.bf16.mxu1 %v2085_v54  ;;  %vm275_vm4 = vcmask 523264   ;;  %v427_v2 = vrot.slane %v2092_v63, 1  ;;  %v429_v6 = vrot.slane %v2628_v0, 1  ;;  %v2097_v1 = vld [vmem:[#allocation6 + $0xa0] sm:$0xff]   ;;  %v2102_v16 = vld [vmem:[#allocation6 + $0x30] sm:$0xff]   ;;  %p2227_p10 = pneg %p2226_p1 }
  0x83   : > { %673 = vrot.lane.b32.xlu1 %v664_v5, %s2317_s20  ;;  %369 = vrot.lane.b32.xlu0 %v348_v4, %s2317_s20  ;;  %v364_v51 = vsel %vm320_vm2, %v359_v43, %v363_v38  ;;  %v842_v52 = vor.u32 %v841_v44, %v838_v40  ;;  %v2095_v5 = vld [vmem:[#allocation6 + $0x28] sm:$0xff]   ;;  %v426_v8 = vrot.slane %v2094_v3, 1  ;;  %v2099_v11 = vld [vmem:[%s2539_s21 + $0x8] sm:$0xfc]   ;;  %vm556_vm5 = vsmask.f32 6400 }
  0x84   : > { %1823 = vmatpush3.bf16.msra.mxu0 %v2080_v45  ;;  %v670_v55 = vsel %vm659_vm3, %v667_v35, %v669_v48  ;;  %v430_v4 = vsel %vm425_vm0, %v427_v2, %v429_v6  ;;  %v2100_v12 = vld [vmem:[%s2539_s21 + $0x10] sm:$0xff]   ;;  %v730_v13 = vrot.slane %v2099_v11, 2  ;;  %v2106_v21 = vld [vmem:[%s2539_s21 + $0x4] sm:$0xfe]   ;;  %v2318_v32 = vmov 0.0   ;;  %v2112_v38 = vld [vmem:[%s2539_s21 + $0x18] sm:$0xff]  }
  0x85   : > { %1824 = vmatprep.subr.bf16.mxu0 %v2083_v50  ;;  %v843_v58 = vsel %vm790_vm1, %v833_v26, %v842_v52  ;;  %1869 = vmatpush3.bf16.msra.mxu1 %v2086_v56  ;;  %443 = vst.msk [vmem:[#allocation2 + $0x30] sm:$0xff] %vm275_vm4, %v430_v4  ;;  %v428_v9 = vsel %vm425_vm0, %v426_v8, %v427_v2  ;;  %v731_v15 = vrot.slane %v2100_v12, 2  ;;  %v2104_v19 = vld [vmem:[#allocation6 + $0xa8] sm:$0xff]   ;;  %v2105_v20 = vld [vmem:[#allocation6 + $0x78] sm:$0xff]   ;;  %v558_v24 = vshrl.u32 %v2106_v21, 16  ;;  %v2109_v28 = vld [vmem:[#allocation6 + $0xf0] sm:$0xff]  }
  0x86   : > { %1870 = vmatprep.subr.bf16.mxu1 %v2089_v60  ;;  %442 = vst.msk [vmem:[#allocation2 + $0x8] sm:$0xff] %vm275_vm4, %v428_v9  ;;  %v2107_v22 = vld [vmem:[%s2539_s21 + $0xc] sm:$0xff]   ;;  %v2110_v29 = vld [vmem:[#allocation6 + $0xb0] sm:$0xff]   ;;  %v733_v41 = vrot.slane %v2112_v38, 2  ;;  %vm903_vm6 = vcmask 1044480   ;;  %vm380_vm7 = vcmask 1048064  }
  0x87   : > { %848 = vrot.lane.b32.xlu1 %v825_v14, %s2317_s20  ;;  %503 = vrot.lane.b32.xlu0 %v494_v18, %s2317_s20  ;;  %v2101_v14 = vld [vmem:[%s2539_s21] sm:$0xff]   ;;  %v732_v18 = vsel %vm659_vm3, %v730_v13, %v731_v15  ;;  %v566_v26 = vshrl.u32 %v2107_v22, 16  ;;  %v569_v27 = vshll.u32 %v2107_v22, 16  ;;  %v560_v30 = vrot.slane %v558_v24, 1  ;;  %v2111_v36 = vld [vmem:[%s2539_s21 + $0x8] sm:$0xff]   ;;  %s2228_s9 = sshll.u32 %s2320_s15, 4  ;;  %s2229_s9 = int_to_ptr.vmem [resolvable:$false] %s2228_s9 }
  0x88   : > { %1825 = vmatpush3.bf16.msra.mxu0 %v2084_v53  ;;  %276 = vst.msk [vmem:[#allocation2] sm:$0xff] %vm275_vm4, %v2101_v14  ;;  %746 = vst.msk [vmem:[#allocation2 + $0x18] sm:$0xff] %vm275_vm4, %v732_v18  ;;  %v2108_v23 = vld [vmem:[#allocation6 + $0x38] sm:$0xff]   ;;  %v734_v43 = vsel %vm659_vm3, %v731_v15, %v733_v41  ;;  %v2116_v44 = vld [vmem:[%s2539_s21 + $0x18] sm:$0xff]   ;;  %vm2319_vm8 = vmmov 0   ;;  %s2230_s28 = scalar_lea.vmem %s2229_s9, 1280  ;;  %p2231_p3 = scmp.lt.s32.totalorder %s2784_s11, %s2229_s9 }
  0x89   : > { %1826 = vmatprep.subr.bf16.mxu0 %v2087_v57  ;;  %1871 = vmatpush3.bf16.msra.mxu1 %v2090_v61  ;;  %v568_v33 = vrot.slane %v566_v26, 1  ;;  %v571_v34 = vrot.slane %v569_v27, 2  ;;  %277 = vst.msk [vmem:[#allocation2 + $0x28] sm:$0xff] %vm275_vm4, %v2111_v36  ;;  %747 = vst.msk [vmem:[#allocation2 + $0x40] sm:$0xff] %vm275_vm4, %v734_v43  ;;  %v2117_v45 = vld [vmem:[%s2539_s21 + $0x14] sm:$0xff]   ;;  %v431_v46 = vrot.slane %v2116_v44, 1  ;;  %p2232_p5 = scmp.lt.s32.totalorder %s2230_s28, %s2224_s4 }
  0x8a   : > { %1872 = vmatprep.subr.bf16.mxu1 %v2096_v7  ;;  %v575_v48 = vshrl.u32 %v2117_v45, 16  ;;  %v578_v49 = vshll.u32 %v2117_v45, 16  ;;  %v2119_v50 = vld [vmem:[%s2539_s21 + $0x20] sm:$0xff]   ;;  %v2124_v0 = vld [vmem:[%s2539_s21 + $0x28] sm:$0xff]   ;;  %v2133_v26 = vld [vmem:[%s2539_s21 + $0x10] sm:$0xff]  }
  0x8b   : > { %675 = vrot.lane.b32.xlu1 %v666_v25, %s2317_s20  ;;  %371 = vrot.lane.b32.xlu0 %v356_v31, %s2317_s20  ;;  %v561_v25 = vshll.u32 %v2106_v21, 16  ;;  %v432_v52 = vsel %vm425_vm0, %v429_v6, %v431_v46  ;;  %v2122_v57 = vld [vmem:[%s2539_s21 + $0x1c] sm:$0xff]   ;;  %v737_v7 = vrot.slane %v2124_v0, 2  ;;  %v2126_v8 = vld [vmem:[%s2539_s21 + $0x24] sm:$0xff]   ;;  %p2233_p9 = por %p2232_p5, %p2231_p3 }
  0x8c   : > { %1827 = vmatpush3.bf16.msra.mxu0 %v2088_v59  ;;  %444 = vst.msk [vmem:[#allocation2 + $0x58] sm:$0xff] %vm275_vm4, %v432_v52  ;;  %v577_v53 = vrot.slane %v575_v48, 1  ;;  %v580_v54 = vrot.slane %v578_v49, 2  ;;  %v584_v61 = vshrl.u32 %v2122_v57, 16  ;;  %v587_v63 = vshll.u32 %v2122_v57, 16  ;;  %v2128_v4 = vld [vmem:[%s2539_s21 + $0x20] sm:$0xff]  }
  0x8d   : > { %1828 = vmatprep.subr.bf16.mxu0 %v2091_v62  ;;  %1873 = vmatpush3.bf16.msra.mxu1 %v2097_v1  ;;  %v563_v31 = vrot.slane %v561_v25, 2  ;;  %v2123_v62 = vld [vmem:[%s2539_s21 + $0x18] sm:$0xff]   ;;  %v593_v11 = vshrl.u32 %v2126_v8, 16  ;;  %v596_v12 = vshll.u32 %v2126_v8, 16  ;;  %280 = vst.msk [vmem:[#allocation2 + $0xa0] sm:$0xff] %vm275_vm4, %v2128_v4  ;;  %v2131_v4 = vld [vmem:[#allocation6 + $0x118] sm:$0xff]   ;;  %p2234_p2 = pnand %p2233_p9, %p2227_p10 }
  0x8e   : > { %1874 = vmatprep.subr.bf16.mxu1 %v2103_v17  ;;  %v586_v3 = vrot.slane %v584_v61, 1  ;;  %279 = vst.msk [vmem:[#allocation2 + $0x78] sm:$0xff] %vm275_vm4, %v2123_v62  ;;  %v589_v6 = vrot.slane %v587_v63, 2  ;;  %v2129_v14 = vld [vmem:[%s2539_s21 + $0x30] ss:$0 sps:$4 sm:$0x33]  }
  0x8f   : > { %850 = vrot.lane.b32.xlu1 %v834_v37, %s2317_s20  ;;  %505 = vrot.lane.b32.xlu0 %v496_v42, %s2317_s20  ;;  %v564_v35 = vor.u32 %v563_v31, %v560_v30  ;;  %v572_v37 = vor.u32 %v571_v34, %v568_v33  ;;  %v2115_v42 = vld [vmem:[#allocation6 + $0xb8] sm:$0xff]   ;;  %v598_v17 = vrot.slane %v596_v12, 2  ;;  %v739_v18 = vrot.slane %v2129_v14, 2  ;;  %v2136_v36 = vld [vmem:[%s2539_s21 + $0x18] sm:$0xff]  }
  0x90   : > { %1829 = vmatpush3.bf16.msra.mxu0 %v2095_v5  ;;  %v2125_v5 = vld [vmem:[%s2539_s21 + $0x28] ss:$0 sps:$4 sm:$0x11]   ;;  %v590_v9 = vor.u32 %v589_v6, %v586_v3  ;;  %v2132_v24 = vld [vmem:[%s2539_s21 + $0x8] sm:$0xf8]   ;;  %v2134_v30 = vld [vmem:[%s2539_s21 + $0x20] sm:$0xff]  }
  0x91   : > { %1830 = vmatprep.subr.bf16.mxu0 %v2098_v10  ;;  %1875 = vmatpush3.bf16.msra.mxu1 %v2104_v19  ;;  %v573_v40 = vsel %vm556_vm5, %v564_v35, %v572_v37  ;;  %v435_v1 = vrot.slane %v2125_v5, 1  ;;  %v2130_v19 = vld [vmem:[%s2539_s21 + $0x2c] ss:$0 sps:$4 sm:$0x33]   ;;  %v740_v21 = vsel %vm659_vm3, %v737_v7, %v739_v18  ;;  %v905_v31 = vrot.slane %v2133_v26, 3  ;;  %v2121_v62 = vld [vmem:[#allocation6 + $0x108] sm:$0xff]  }
  0x92   : > { %1876 = vmatprep.subr.bf16.mxu1 %v2109_v28  ;;  %615 = vst.msk [vmem:[#allocation2 + $0x10] sm:$0xff] %vm275_vm4, %v573_v40  ;;  %v602_v22 = vshrl.u32 %v2130_v19, 16  ;;  %750 = vst.msk [vmem:[#allocation2 + $0xb8] sm:$0xff] %vm275_vm4, %v740_v21  ;;  %v2135_v33 = vld [vmem:[%s2539_s21 + $0x28] sm:$0xff]   ;;  %v909_v35 = vrot.slane %v2134_v30, 3 }
  0x93   : > { %677 = vrot.lane.b32.xlu1 %v668_v47, %s2317_s20  ;;  %373 = vrot.lane.b32.xlu0 %v364_v51, %s2317_s20  ;;  %v2118_v47 = vld [vmem:[%s2539_s21 + $0x10] sm:$0xff]   ;;  %v2120_v51 = vld [vmem:[%s2539_s21 + $0x20] sm:$0xff]   ;;  %v911_v38 = vrot.slane %v2135_v33, 3 }
  0x94   : > { %1831 = vmatpush3.bf16.msra.mxu0 %v2102_v16  ;;  %278 = vst.msk [vmem:[#allocation2 + $0x50] sm:$0xff] %vm275_vm4, %v2118_v47  ;;  %v433_v56 = vrot.slane %v2120_v51, 1  ;;  %v595_v16 = vrot.slane %v593_v11, 1  ;;  %v604_v27 = vrot.slane %v602_v22, 1  ;;  %v2127_v5 = vld [vmem:[#allocation6 + $0x110] sm:$0xff]  }
  0x95   : > { %1832 = vmatprep.subr.bf16.mxu0 %v2105_v20  ;;  %1877 = vmatpush3.bf16.msra.mxu1 %v2110_v29  ;;  %v904_v29 = vrot.slane %v2132_v24, 3 }
  0x96   : > { %1878 = vmatprep.subr.bf16.mxu1 %v2113_v39  ;;  %v434_v60 = vsel %vm425_vm0, %v431_v46, %v433_v56  ;;  %v436_v13 = vsel %vm425_vm0, %v433_v56, %v435_v1  ;;  %v599_v20 = vor.u32 %v598_v17, %v595_v16  ;;  %v2137_v39 = vld [vmem:[%s2539_s21 + $0x30] ss:$0 sps:$4 sm:$0x77]  }
  0x97   : > { %679 = vrot.lane.b32.xlu1 %v670_v55, %s2317_s20  ;;  %852 = vrot.lane.b32.xlu0 %v843_v58, %s2317_s20  ;;  %v735_v55 = vrot.slane %v2119_v50, 2  ;;  %v581_v58 = vor.u32 %v580_v54, %v577_v53  ;;  %445 = vst.msk [vmem:[#allocation2 + $0x80] sm:$0xff] %vm275_vm4, %v434_v60  ;;  %446 = vst.msk [vmem:[#allocation2 + $0xa8] sm:$0xff] %vm275_vm4, %v436_v13  ;;  %v913_v43 = vrot.slane %v2137_v39, 3 }
  0x98   : > { %1833 = vmatpush3.bf16.msra.mxu0 %v2108_v23  ;;  %v605_v23 = vshll.u32 %v2130_v19, 16  ;;  %v600_v25 = vsel %vm556_vm5, %v590_v9, %v599_v20 }
  0x99   : > { %1919 = vmatprep.subr.bf16.mxu0 %v2318_v32  ;;  %1879 = vmatpush3.bf16.msra.mxu1 %v2115_v42  ;;  %v736_v59 = vsel %vm659_vm3, %v733_v41, %v735_v55  ;;  %v582_v2 = vsel %vm556_vm5, %v572_v37, %v581_v58  ;;  %v738_v10 = vsel %vm659_vm3, %v735_v55, %v737_v7  ;;  %v907_v41 = vrot.slane %v2136_v36, 3  ;;  %v2114_v55 = vld [vmem:[#allocation6 + $0x100] sm:$0xff]  }
  0x9a   : > { %1947 = vmatprep.subr.bf16.mxu1 %v2318_v32  ;;  %748 = vst.msk [vmem:[#allocation2 + $0x68] sm:$0xff] %vm275_vm4, %v736_v59  ;;  %616 = vst.msk [vmem:[#allocation2 + $0x38] sm:$0xff] %vm275_vm4, %v582_v2  ;;  %v591_v15 = vsel %vm556_vm5, %v581_v58, %v590_v9  ;;  %v607_v28 = vrot.slane %v605_v23, 2  ;;  %v906_v37 = vsel %vm903_vm6, %v904_v29, %v905_v31 }
  0x9b   : > { %749 = vst.msk [vmem:[#allocation2 + $0x90] sm:$0xff] %vm275_vm4, %v738_v10  ;;  %617 = vst.msk [vmem:[#allocation2 + $0x60] sm:$0xff] %vm275_vm4, %v591_v15  ;;  %v912_v42 = vsel %vm903_vm6, %v909_v35, %v911_v38  ;;  %v908_v44 = vsel %vm903_vm6, %v905_v31, %v907_v41  ;;  %v910_v45 = vsel %vm903_vm6, %v907_v41, %v909_v35 }
  0x9c   : > { %618 = vst.msk [vmem:[#allocation2 + $0x88] sm:$0xff] %vm275_vm4, %v600_v25  ;;  %v608_v34 = vor.u32 %v607_v28, %v604_v27  ;;  %920 = vst.msk [vmem:[#allocation2 + $0x20] sm:$0xff] %vm275_vm4, %v906_v37  ;;  %v914_v46 = vsel %vm903_vm6, %v911_v38, %v913_v43 }
  0x9d   : > { %923 = vst.msk [vmem:[#allocation2 + $0x98] sm:$0xff] %vm275_vm4, %v912_v42  ;;  %921 = vst.msk [vmem:[#allocation2 + $0x48] sm:$0xff] %vm275_vm4, %v908_v44 }
  0x9e   : > { %v609_v40 = vsel %vm556_vm5, %v599_v20, %v608_v34  ;;  %922 = vst.msk [vmem:[#allocation2 + $0x70] sm:$0xff] %vm275_vm4, %v910_v45  ;;  %924 = vst.msk [vmem:[#allocation2 + $0xc0] sm:$0xff] %vm275_vm4, %v914_v46  ;;  %v2745_v34 = vld [vmem:[#allocation8] ss:$0 sm:$0xff] }
  0x9f   : > { %619 = vst.msk [vmem:[#allocation2 + $0xb0] sm:$0xff] %vm275_vm4, %v609_v40 }
  0xa3   : > { %v929_v27 = vld [vmem:[#allocation2 + $0x20] sm:$0xff] }
  0xa4   : > { %v944_v28 = vld [vmem:[#allocation2 + $0x98] sm:$0xff]  ;;  %v934_v29 = vld [vmem:[#allocation2 + $0x48] sm:$0xff] }
  0xa5   : > { %v949_v30 = vld [vmem:[#allocation2 + $0xc0] sm:$0xff]  ;;  %v939_v31 = vld [vmem:[#allocation2 + $0x70] sm:$0xff] }
  0xe2   : > { %v500_v47 = vpop.permute.xlu1 %499 }
  0xe3   : > { %513 = vst.msk [vmem:[#allocation2 + $0x30] sm:$0xff] %vm380_vm7, %v500_v47  ;;  %v498_v48 = vpop.permute.xlu0 %497 }
  0xe4   : > { %512 = vst.msk [vmem:[#allocation2 + $0x8] sm:$0xff] %vm380_vm7, %v498_v48 }
  0xe9   : > { %v845_v49 = vpop.permute.xlu1 %844  ;;  %v366_v51 = vpop.permute.xlu0 %365 }
  0xea   : > { %859 = vst.msk [vmem:[#allocation2 + $0x18] sm:$0xff] %vm380_vm7, %v845_v49  ;;  %381 = vst.msk [vmem:[#allocation2] sm:$0xff] %vm380_vm7, %v366_v51  ;;  %v931_v57 = vld [vmem:[#allocation2 + $0x30] sm:$0xff] }
  0xeb   : > { %v926_v50 = vld [vmem:[#allocation2 + $0x8] sm:$0xff] }
  0xec   : > { %1292 = vmatprep.mubr.bf16.mxu0 %v926_v50 }
  0xed   : > { %v672_v52 = vpop.permute.xlu1 %671  ;;  %v368_v53 = vpop.permute.xlu0 %367 }
  0xee   : > { %686 = vst.msk [vmem:[#allocation2 + $0x10] sm:$0xff] %vm380_vm7, %v672_v52  ;;  %382 = vst.msk [vmem:[#allocation2 + $0x28] sm:$0xff] %vm380_vm7, %v368_v53 }
  0xf1   : > { %v847_v54 = vpop.permute.xlu1 %846  ;;  %v928_v56 = vld [vmem:[#allocation2 + $0x18] sm:$0xff]  ;;  %v925_v58 = vld [vmem:[#allocation2] sm:$0xff]  ;;  %v502_v59 = vpop.permute.xlu0 %501 }
  0xf2   : > { %860 = vst.msk [vmem:[#allocation2 + $0x40] sm:$0xff] %vm380_vm7, %v847_v54  ;;  %1365 = vmatprep.mubr.bf16.mxu1 %v928_v56  ;;  %1293 = vmatmul.mubr.bf16.vlgmr.msra.gmra.mrb[0].mxu0 %v925_v58  ;;  %514 = vst.msk [vmem:[#allocation2 + $0x58] sm:$0xff] %vm380_vm7, %v502_v59 }
  0xf3   : > { %1920 = vmatpush3.bf16.msra.mxu0 %v2114_v55  ;;  %1300 = vmatprep.mubr.bf16.mxu0 %v931_v57 }
  0xf4   : > { %1921 = vmatprep.subr.bf16.mxu0 %v2318_v32 }
  0xf5   : > { %v674_v60 = vpop.permute.xlu1 %673  ;;  %v927_v61 = vld [vmem:[#allocation2 + $0x10] sm:$0xff]  ;;  %v370_v63 = vpop.permute.xlu0 %369  ;;  %v930_v2 = vld [vmem:[#allocation2 + $0x28] sm:$0xff] }
  0xf6   : > { %687 = vst.msk [vmem:[#allocation2 + $0x38] sm:$0xff] %vm380_vm7, %v674_v60  ;;  %1366 = vmatmul.mubr.bf16.vlgmr.msra.gmra.mrb[0].mxu1 %v927_v61  ;;  %383 = vst.msk [vmem:[#allocation2 + $0x50] sm:$0xff] %vm380_vm7, %v370_v63 }
  0xf7   : > { %1951 = vmatpush3.bf16.msra.mxu1 %v2114_v55  ;;  %1922 = vmatpush3.bf16.msra.mxu0 %v2121_v62 }
  0xf8   : > { %1948 = vmatprep.subr.bf16.mxu1 %v2318_v32  ;;  %1923 = vmatprep.subr.bf16.mxu0 %v2318_v32 }
  0xf9   : > { %v849_v0 = vpop.permute.xlu1 %848  ;;  %v933_v3 = vld [vmem:[#allocation2 + $0x40] sm:$0xff]  ;;  %v504_v6 = vpop.permute.xlu0 %503  ;;  %v936_v7 = vld [vmem:[#allocation2 + $0x58] sm:$0xff] }
  0xfa   : > { %861 = vst.msk [vmem:[#allocation2 + $0x68] sm:$0xff] %vm380_vm7, %v849_v0  ;;  %1373 = vmatprep.mubr.bf16.mxu1 %v933_v3  ;;  %1301 = vmatmul.mubr.bf16.gmra.mrb[4].mxu0 %v930_v2  ;;  %515 = vst.msk [vmem:[#allocation2 + $0x80] sm:$0xff] %vm380_vm7, %v504_v6 }
  0xfb   : > { %1952 = vmatpush3.bf16.msra.mxu1 %v2121_v62  ;;  %1308 = vmatprep.mubr.bf16.mxu0 %v936_v7 }
  0xfc   : > { %1949 = vmatprep.subr.bf16.mxu1 %v2318_v32  ;;  %1924 = vmatpush3.bf16.msra.mxu0 %v2127_v5 }
  0xfd   : > { %v676_v8 = vpop.permute.xlu1 %675  ;;  %v932_v1 = vld [vmem:[#allocation2 + $0x38] sm:$0xff]  ;;  %1925 = vmatprep.subr.bf16.mxu0 %v2318_v32  ;;  %v372_v9 = vpop.permute.xlu0 %371  ;;  %v935_v11 = vld [vmem:[#allocation2 + $0x50] sm:$0xff] }
  0xfe   : > { %688 = vst.msk [vmem:[#allocation2 + $0x60] sm:$0xff] %vm380_vm7, %v676_v8  ;;  %1374 = vmatmul.mubr.bf16.gmra.mrb[4].mxu1 %v932_v1  ;;  %384 = vst.msk [vmem:[#allocation2 + $0x78] sm:$0xff] %vm380_vm7, %v372_v9 }
  0xff   : > { %1953 = vmatpush3.bf16.msra.mxu1 %v2127_v5 }
 0x100   : > { %1950 = vmatprep.subr.bf16.mxu1 %v2318_v32  ;;  %1926 = vmatpush3.bf16.msra.mxu0 %v2131_v4 }
 0x101   : > { %v851_v10 = vpop.permute.xlu1 %850  ;;  %v938_v12 = vld [vmem:[#allocation2 + $0x68] sm:$0xff]  ;;  %v506_v13 = vpop.permute.xlu0 %505  ;;  %v941_v14 = vld [vmem:[#allocation2 + $0x80] sm:$0xff] }
 0x102   : > { %862 = vst.msk [vmem:[#allocation2 + $0x90] sm:$0xff] %vm380_vm7, %v851_v10  ;;  %1381 = vmatprep.mubr.bf16.mxu1 %v938_v12  ;;  %1309 = vmatmul.mubr.bf16.gmra.mrb[8].mxu0 %v935_v11  ;;  %516 = vst.msk [vmem:[#allocation2 + $0xa8] sm:$0xff] %vm380_vm7, %v506_v13 }
 0x103   : > { %1954 = vmatpush3.bf16.msra.mxu1 %v2131_v4  ;;  %1316 = vmatprep.mubr.bf16.mxu0 %v941_v14 }
 0x105   : > { %v678_v15 = vpop.permute.xlu1 %677  ;;  %v937_v16 = vld [vmem:[#allocation2 + $0x60] sm:$0xff]  ;;  %v374_v17 = vpop.permute.xlu0 %373  ;;  %v940_v18 = vld [vmem:[#allocation2 + $0x78] sm:$0xff] }
 0x106   : > { %689 = vst.msk [vmem:[#allocation2 + $0x88] sm:$0xff] %vm380_vm7, %v678_v15  ;;  %1382 = vmatmul.mubr.bf16.gmra.mrb[8].mxu1 %v937_v16  ;;  %385 = vst.msk [vmem:[#allocation2 + $0xa0] sm:$0xff] %vm380_vm7, %v374_v17 }
 0x109   : > { %v943_v19 = vld [vmem:[#allocation2 + $0x90] sm:$0xff]  ;;  %v680_v20 = vpop.permute.xlu1 %679  ;;  %v853_v21 = vpop.permute.xlu0 %852  ;;  %v946_v22 = vld [vmem:[#allocation2 + $0xa8] sm:$0xff] }
 0x10a   : > { %1389 = vmatprep.mubr.bf16.mxu1 %v943_v19  ;;  %690 = vst.msk [vmem:[#allocation2 + $0xb0] sm:$0xff] %vm380_vm7, %v680_v20  ;;  %1317 = vmatmul.mubr.bf16.gmra.mrb[12].mxu0 %v940_v18  ;;  %863 = vst.msk [vmem:[#allocation2 + $0xb8] sm:$0xff] %vm380_vm7, %v853_v21 }
 0x10b   : > { %1324 = vmatprep.mubr.bf16.mxu0 %v946_v22 }
 0x10d   : > { %v942_v23 = vld [vmem:[#allocation2 + $0x88] sm:$0xff]  ;;  %v945_v24 = vld [vmem:[#allocation2 + $0xa0] sm:$0xff] }
 0x10e   : > { %1390 = vmatmul.mubr.bf16.gmra.mrb[12].mxu1 %v942_v23 }
 0x111   : > { %v948_v25 = vld [vmem:[#allocation2 + $0xb8] sm:$0xff]  ;;  %v947_v26 = vld [vmem:[#allocation2 + $0xb0] sm:$0xff] }
 0x112   : > { %1325 = vmatmul.mubr.bf16.gmra.mrb[16].mxu0 %v945_v24  ;;  %1397 = vmatprep.mubr.bf16.mxu1 %v948_v25 }
 0x113   : > { %1927 = vmatprep.mubr.msk.bf16.mxu0 %vm2319_vm8, %v2318_v32 }
 0x116   : > { %1398 = vmatmul.mubr.bf16.gmra.mrb[16].mxu1 %v947_v26 }
 0x117   : > { %1939 = vmatprep.mubr.msk.bf16.mxu1 %vm2319_vm8, %v2318_v32 }
 0x11a   : > { %1928 = vmatmul.mubr.msk.bf16.vlgmr.msra.gmra.mrb[20].mxu0 %vm275_vm4, %v929_v27 }
 0x11b   : > { %1931 = vmatprep.mubr.msk.bf16.mxu0 %vm2319_vm8, %v2318_v32 }
 0x11e   : > { %1940 = vmatmul.mubr.msk.bf16.vlgmr.msra.gmra.mrb[20].mxu1 %vm275_vm4, %v944_v28 }
 0x11f   : > { %1943 = vmatprep.mubr.msk.bf16.mxu1 %vm2319_vm8, %v2318_v32 }
 0x122   : > { %1932 = vmatmul.mubr.msk.bf16.gmra.mrb[24].mxu0 %vm275_vm4, %v934_v29 }
 0x123   : > { %1935 = vmatprep.mubr.msk.bf16.mxu0 %vm2319_vm8, %v2318_v32 }
 0x126   : > { %1944 = vmatmul.mubr.msk.bf16.gmra.mrb[24].mxu1 %vm275_vm4, %v949_v30 }
 0x12a   : > { %1936 = vmatmul.mubr.msk.bf16.gmra.mrb[28].mxu0 %vm275_vm4, %v939_v31 }
 0x1c5   : > { %v1834_v33 = vpop.f32.mrb[0].mxu0 }
 0x1c6   : > { %v1835_v35 = vpop.f32.mrb[1].mxu0 }
 0x1c7   : > { %v1836_v36 = vadd.f32 %v1835_v35, %v1834_v33  ;;  %v1837_v37 = vpop.f32.mrb[2].mxu0 }
 0x1c8   : > { %v1838_v39 = vpop.f32.mrb[3].mxu0 }
 0x1c9   : > { %v1880_v38 = vpop.f32.mrb[0].mxu1  ;;  %v1295_v41 = vadd.f32 %v1836_v36, %v2745_v34  ;;  %v1839_v42 = vadd.f32 %v1838_v39, %v1837_v37 }
 0x1ca   : > { %v1881_v40 = vpop.f32.mrb[1].mxu1 }
 0x1cb   : > { %v1882_v43 = vadd.f32 %v1881_v40, %v1880_v38  ;;  %v1883_v44 = vpop.f32.mrb[2].mxu1  ;;  %v1298_v45 = vadd.f32 %v1839_v42, %v2745_v34 }
 0x1cc   : > { %v1884_v32 = vpop.f32.mrb[3].mxu1 }
 0x1cd   : > { %v1885_v46 = vadd.f32 %v1884_v32, %v1883_v44  ;;  %v2749_v47 = vadd.f32 %v1882_v43, %v1295_v41  ;;  %v1840_v48 = vpop.f32.mrb[4].mxu0 }
 0x1ce   : > { %v1841_v50 = vpop.f32.mrb[5].mxu0 }
 0x1cf   : > { %v2751_v49 = vadd.f32 %v1885_v46, %v1298_v45  ;;  %v1842_v51 = vadd.f32 %v1841_v50, %v1840_v48  ;;  %v1843_v52 = vpop.f32.mrb[6].mxu0 }
 0x1d0   : > { %v1844_v54 = vpop.f32.mrb[7].mxu0 }
 0x1d1   : > { %v1886_v53 = vpop.f32.mrb[4].mxu1  ;;  %v1303_v56 = vadd.f32 %v1842_v51, %v2745_v34  ;;  %v1845_v57 = vadd.f32 %v1844_v54, %v1843_v52 }
 0x1d2   : > { %v1887_v55 = vpop.f32.mrb[5].mxu1 }
 0x1d3   : > { %v1888_v58 = vadd.f32 %v1887_v55, %v1886_v53  ;;  %v1889_v59 = vpop.f32.mrb[6].mxu1  ;;  %v1306_v61 = vadd.f32 %v1845_v57, %v2745_v34 }
 0x1d4   : > { %v1890_v60 = vpop.f32.mrb[7].mxu1 }
 0x1d5   : > { %v1891_v62 = vadd.f32 %v1890_v60, %v1889_v59  ;;  %v2755_v63 = vadd.f32 %v1888_v58, %v1303_v56  ;;  %v1846_v0 = vpop.f32.mrb[8].mxu0 }
 0x1d6   : > { %v1847_v3 = vpop.f32.mrb[9].mxu0 }
 0x1d7   : > { %v2757_v2 = vadd.f32 %v1891_v62, %v1306_v61  ;;  %v1848_v5 = vadd.f32 %v1847_v3, %v1846_v0  ;;  %v1849_v6 = vpop.f32.mrb[10].mxu0 }
 0x1d8   : > { %v1850_v8 = vpop.f32.mrb[11].mxu0 }
 0x1d9   : > { %v1892_v7 = vpop.f32.mrb[8].mxu1  ;;  %v1311_v4 = vadd.f32 %v1848_v5, %v2745_v34  ;;  %v1851_v9 = vadd.f32 %v1850_v8, %v1849_v6 }
 0x1da   : > { %v1893_v1 = vpop.f32.mrb[9].mxu1 }
 0x1db   : > { %v1894_v10 = vadd.f32 %v1893_v1, %v1892_v7  ;;  %v1895_v11 = vpop.f32.mrb[10].mxu1  ;;  %v1314_v13 = vadd.f32 %v1851_v9, %v2745_v34 }
 0x1dc   : > { %v1896_v12 = vpop.f32.mrb[11].mxu1 }
 0x1dd   : > { %v1897_v14 = vadd.f32 %v1896_v12, %v1895_v11  ;;  %v2761_v15 = vadd.f32 %v1894_v10, %v1311_v4  ;;  %v1852_v16 = vpop.f32.mrb[12].mxu0 }
 0x1de   : > { %v1853_v18 = vpop.f32.mrb[13].mxu0 }
 0x1df   : > { %v2763_v17 = vadd.f32 %v1897_v14, %v1314_v13  ;;  %v1854_v19 = vadd.f32 %v1853_v18, %v1852_v16  ;;  %v1855_v20 = vpop.f32.mrb[14].mxu0 }
 0x1e0   : > { %v1856_v22 = vpop.f32.mrb[15].mxu0 }
 0x1e1   : > { %v1898_v21 = vpop.f32.mrb[12].mxu1  ;;  %v1319_v24 = vadd.f32 %v1854_v19, %v2745_v34  ;;  %v1857_v25 = vadd.f32 %v1856_v22, %v1855_v20 }
 0x1e2   : > { %v1899_v23 = vpop.f32.mrb[13].mxu1 }
 0x1e3   : > { %v1900_v26 = vadd.f32 %v1899_v23, %v1898_v21  ;;  %v1901_v27 = vpop.f32.mrb[14].mxu1  ;;  %v1322_v29 = vadd.f32 %v1857_v25, %v2745_v34 }
 0x1e4   : > { %v1902_v28 = vpop.f32.mrb[15].mxu1 }
 0x1e5   : > { %v1903_v30 = vadd.f32 %v1902_v28, %v1901_v27  ;;  %v1392_v31 = vadd.f32 %v1900_v26, %v1319_v24  ;;  %v1858_v33 = vpop.f32.mrb[16].mxu0 }
 0x1e6   : > { %v1859_v36 = vpop.f32.mrb[17].mxu0 }
 0x1e7   : > { %v1395_v35 = vadd.f32 %v1903_v30, %v1322_v29  ;;  %v1860_v37 = vadd.f32 %v1859_v36, %v1858_v33  ;;  %v1861_v38 = vpop.f32.mrb[18].mxu0 }
 0x1e8   : > { %v1862_v40 = vpop.f32.mrb[19].mxu0 }
 0x1e9   : > { %v1904_v39 = vpop.f32.mrb[16].mxu1  ;;  %v1327_v42 = vadd.f32 %v1860_v37, %v2745_v34  ;;  %v1863_v43 = vadd.f32 %v1862_v40, %v1861_v38 }
 0x1ea   : > { %v1905_v41 = vpop.f32.mrb[17].mxu1 }
 0x1eb   : > { %v1906_v44 = vadd.f32 %v1905_v41, %v1904_v39  ;;  %v1907_v32 = vpop.f32.mrb[18].mxu1  ;;  %v1330_v46 = vadd.f32 %v1863_v43, %v2745_v34 }
 0x1ec   : > { %v1908_v45 = vpop.f32.mrb[19].mxu1 }
 0x1ed   : > { %v1909_v48 = vadd.f32 %v1908_v45, %v1907_v32  ;;  %v1400_v50 = vadd.f32 %v1906_v44, %v1327_v42  ;;  %v1440_v51 = vpop.f32.mrb[20].mxu0 }
 0x1ee   : > { %v1441_v53 = vadd.f32 %v1440_v51, %v2749_v47  ;;  %v1929_v54 = vpop.f32.mrb[21].mxu0 }
 0x1ef   : > { %v1403_v52 = vadd.f32 %v1909_v48, %v1330_v46  ;;  %v1443_v55 = vpop.f32.mrb[22].mxu0 }
 0x1f0   : > { %v1444_v57 = vadd.f32 %v1443_v55, %v2751_v49  ;;  %v1930_v58 = vpop.f32.mrb[23].mxu0  ;;  %v1479_v62 = vmax.f32 %v1441_v53, 0.0 }
 0x1f1   : > { %v1464_v56 = vpop.f32.mrb[20].mxu1 }
 0x1f2   : > { %v1465_v59 = vadd.f32 %v1464_v56, %v1392_v31  ;;  %v1941_v60 = vpop.f32.mrb[21].mxu1  ;;  %v1480_v0 = vmax.f32 %v1444_v57, 0.0 }
 0x1f3   : > { %v1467_v61 = vpop.f32.mrb[22].mxu1 }
 0x1f4   : > { %v1468_v3 = vadd.f32 %v1467_v61, %v1395_v35  ;;  %v1942_v34 = vpop.f32.mrb[23].mxu1  ;;  %v1792_v5 = vpack.c.bf16 %v1480_v0, %v1479_v62  ;;  %v1485_v6 = vmax.f32 %v1465_v59, 0.0 }
 0x1f5   : > { %v1448_v8 = vpop.f32.mrb[24].mxu0 }
 0x1f6   : > { %v1486_v7 = vmax.f32 %v1468_v3, 0.0  ;;  %1793 = vst [vmem:[%s2772_s24] sm:$0xff] %v1792_v5   ;;  %v1449_v49 = vadd.f32 %v1448_v8, %v2755_v63  ;;  %v1933_v1 = vpop.f32.mrb[25].mxu0 }
 0x1f7   : > { %v1451_v4 = vpop.f32.mrb[26].mxu0 }
 0x1f8   : > { %v1807_v47 = vpack.c.bf16 %v1486_v7, %v1485_v6  ;;  %v1452_v10 = vadd.f32 %v1451_v4, %v2757_v2  ;;  %v1934_v11 = vpop.f32.mrb[27].mxu0  ;;  %v1481_v16 = vmax.f32 %v1449_v49, 0.0 }
 0x1f9   : > { %v1472_v9 = vpop.f32.mrb[24].mxu1 }
 0x1fa   : > { %1816 = vst [vmem:[%s2772_s24 + $0x18] sm:$0xff] %v1807_v47   ;;  %v1473_v12 = vadd.f32 %v1472_v9, %v1400_v50  ;;  %v1945_v13 = vpop.f32.mrb[25].mxu1  ;;  %v1482_v18 = vmax.f32 %v1452_v10, 0.0 }
 0x1fb   : > { %v1475_v14 = vpop.f32.mrb[26].mxu1 }
 0x1fc   : > { %v1476_v19 = vadd.f32 %v1475_v14, %v1403_v52  ;;  %v1946_v20 = vpop.f32.mrb[27].mxu1  ;;  %v1797_v21 = vpack.c.bf16 %v1482_v18, %v1481_v16  ;;  %v1487_v63 = vmax.f32 %v1473_v12, 0.0 }
 0x1fd   : > { %v1456_v23 = vpop.f32.mrb[28].mxu0 }
 0x1fe   : > { %v1488_v22 = vmax.f32 %v1476_v19, 0.0  ;;  %1814 = vst [vmem:[%s2772_s24 + $0x8] sm:$0xff] %v1797_v21   ;;  %v1457_v2 = vadd.f32 %v1456_v23, %v2761_v15  ;;  %v1937_v25 = vpop.f32.mrb[29].mxu0 }
 0x1ff   : > { %v1459_v26 = vpop.f32.mrb[30].mxu0 }
 0x200   : > { %v1812_v24 = vpack.c.bf16 %v1488_v22, %v1487_v63  ;;  %v1460_v27 = vadd.f32 %v1459_v26, %v2763_v17  ;;  %v1938_v28 = vpop.f32.mrb[31].mxu0  ;;  %v1483_v29 = vmax.f32 %v1457_v2, 0.0 }
 0x202   : > { %1817 = vst [vmem:[%s2772_s24 + $0x20] sm:$0xff] %v1812_v24   ;;  %v1484_v30 = vmax.f32 %v1460_v27, 0.0 }
 0x204   : > { %v1802_v31 = vpack.c.bf16 %v1484_v30, %v1483_v29 }
 0x206   : > { %1815 = vst [vmem:[%s2772_s24 + $0x10] sm:$0xff] %v1802_v31  }
 0x207   : > { %2237 = shalt.err (!%p2234_p2)
}
 0x208   : > { %s2238_s29 = scalar_lea.hbm %s2789_s10, 640  ;;  %s2242_s21 = scalar_lea.hbm %s2844_s3, 1280 }
 0x209   : > { %p2239_p0 = scmp.ne.s32.totalorder %s2789_s10, %s2238_s29  ;;  %p2243_p6 = scmp.lt.u32.totalorder %s2789_s10, %s2844_s3 }
 0x20a   : > { %p2244_p7 = scmp.lt.u32.totalorder %s2242_s21, %s2238_s29  ;;  %p2246_p8 = scmp.lt.u32.totalorder %s2238_s29, %s2789_s10 }
 0x20b   : > { %p2240_p4 = pnand %p2239_p0, %p2859_p12 }
 0x20c   : > { %p2245_p11 = por %p2244_p7, %p2243_p6 }
 0x20d   : > { %p2241_p13 = pneg %p2240_p4 }
 0x20e   : > { %p2247_p1 = por %p2246_p8, %p2245_p11 }
 0x210   : > { %p2248_p10 = pnand %p2247_p1, %p2241_p13 }
 0x212   : > { %2251 = shalt.err (!%p2248_p10)
}
 0x213   : > { %s2321_s18 = smov 4  }
 0x214   : > { %1970 = dma.vmem_to_hbm [thread:$0]  (%p2859_p12), %s2784_s11, 640, %s2789_s10, %s1540_s19, %s2317_s20, %s2317_s20, %s2321_s18  }
 0x215 PF: > { %s1570_s5 = sand.u32 1, %s2290_s12   ;;  %p2860_p3 = scmp.ne.s32.totalorder %s2852_s23, 0 }
 0x216   : > { %p2861_p5 = scmp.ge.s32.totalorder %s2310_s17, 2  ;;  %s1571_s26 = scalar_lea.sflag [#allocation5], %s1570_s5 }
 0x218   : > { %p1984_p9 = pnand %p2861_p5, %p2860_p3 }
 0x21a   : > { %2285 = dma.done.wait (!%p1984_p9), %s1571_s26, 640  }
 0x21b   : > { %2287 = vsyncadd (!%p1984_p9), %s1571_s26, 4294966656  ;;  %s20_s17 = sadd.s32 1, %s2310_s17   ;;  %s2862_s12 = smov %s2294_s13 }
 0x21c   : > { %p17_p2 = scmp.ge.s32.totalorder %s20_s17, 4   ;;  %s2863_s13 = smov %s2298_s14 }
 0x21d   : > { %s2864_s14 = smov %s2491_s6  ;;  %s2865_s15 = smov %s2306_s16 }
 0x21e   : > { %s2866_s16 = smov %s2868_s25  ;;  %19 = sbr.rel (!%p17_p2) target bundleno = 7 (0x7), region = 85 }
 0x225   :  { %1576 = vsyncpa [#allocation4], 1 }
 0x226   :  { %1578 = vsyncpa [#allocation4 + $0x1], 1 }
 0x227   :  { %1579 = vsyncpa [#allocation7], 1 }
 0x228   :  { %1580 = vsyncpa [#allocation5], 1 }
 0x229   :  { %1582 = vsyncpa [#allocation5 + $0x1], 1 }

// kernel: encoder3_forward.11
= control target key start
LH: loop header
LB: loop body
LE: loop exit
PB: predicated region body
PF: predicated region fallthrough
CT: control target
= control target key end

     0   :  { %8 = vsyncpa [#allocation4], 0  ;;  %s3017_s0 = inlined_call_operand.hbm [shape: bf16[2,1,38,128], index: 0, kind: input, shape index: {}]   ;;  %s3018_s1 = inlined_call_operand.hbm [shape: bf16[1152,256], index: 1, kind: input, shape index: {}]   ;;  %s3019_s2 = inlined_call_operand.hbm [shape: f32[1,256], index: 2, kind: input, shape index: {}]   ;;  %s3020_s3 = inlined_call_operand.hbm [shape: f32[2,1,24,256], index: 3, kind: output, shape index: {}]  }
   0x1   :  { %10 = vsyncpa [#allocation4 + $0x1], 0 }
   0x2   :  { %11 = vsyncpa [#allocation7], 0 }
   0x3   :  { %12 = vsyncpa [#allocation5], 0 }
   0x4   :  { %14 = vsyncpa [#allocation5 + $0x1], 0  ;;  %s2620_s12 = smov 0   ;;  %s2622_s13 = smov 0  }
   0x5   :  { %s2624_s14 = smov 0   ;;  %s2626_s15 = smov 0  }
   0x6   :  { %s2628_s16 = smov 0   ;;  %s2630_s17 = smov 0  }
   0x7 LB: > { %s1852_s18 = sadd.s32 4294967295, %s2587_s17   ;;  %s1853_s19 = sadd.s32 4294967294, %s2587_s17   ;;  %s2587_s17 = sphi %s2630_s17, %s20_s17   ;;  %s2583_s16 = sphi %s2628_s16, %s3054_s16   ;;  %s2579_s15 = sphi %s2626_s15, %s3053_s15   ;;  %s2575_s14 = sphi %s2624_s14, %s3052_s14   ;;  %s2571_s13 = sphi %s2622_s13, %s3051_s13   ;;  %s2567_s12 = sphi %s2620_s12, %s3050_s12  }
   0x8   : > { %p54_p0 = scmp.ne.s32.totalorder %s2571_s13, %s2567_s12  ;;  %p2654_p1 = scmp.eq.s32.totalorder %s1852_s18, 0 }
   0x9   : > { %p2658_p2 = scmp.eq.s32.totalorder %s1852_s18, 1  ;;  %p128_p3 = scmp.eq.s32.totalorder %s1853_s19, 1 }
   0xa   : > { %s3025_s20 = scalar_select %p2654_p1, 1, 0 }
   0xb   : > { %p2664_p4 = por %p2654_p1, %p54_p0  ;;  %p1854_p5 = scmp.ge.s32.totalorder %s2587_s17, 1 }
   0xc   : > { %p2669_p6 = por %p128_p3, %p54_p0  ;;  %p135_p7 = scmp.lt.s32.totalorder %s2587_s17, 3 }
   0xd   : > { %s3027_s22 = scalar_select %p2664_p4, 1, 0 }
   0xe   : > { %s3028_s23 = scalar_select %p2669_p6, 1, 0 }
   0xf   : > { %p2674_p8 = pnand %p1854_p5, %p135_p7  ;;  %s2589_s25 = smov [#allocation6]  }
  0x10   : > { %s147_s26 = sshll.u32 %s2589_s25, 4  ;;  %s2590_s28 = smov [#allocation8]   ;;  %s2678_s26 = int_to_ptr.vmem [resolvable:$true] %s147_s26 }
  0x11   : > { %p2099_p9 = pneg %p2674_p8  ;;  %s161_s29 = sshll.u32 %s2590_s28, 4  ;;  %s2689_s29 = int_to_ptr.vmem [resolvable:$true] %s161_s29 }
  0x12   : > { %s2415_s5 = scalar_lea.hbm %s3018_s1, 18432 }
  0x13   : > { %p2685_p11 = pnand %p2099_p9, %p2654_p1  ;;  %p2416_p12 = scmp.ne.s32.totalorder %s3018_s1, %s2415_s5 }
  0x14   : > { %p2422_p5 = scmp.lt.u32.totalorder %s2415_s5, %s3018_s1 }
  0x15   : > { %p2417_p13 = pneg %p2685_p11 }
  0x17   : > { %p2418_p0 = pnand %p2417_p13, %p2416_p12 }
  0x19   : > { %p2419_p3 = pneg %p2418_p0 }
  0x1b   : > { %p2424_p7 = pnand %p2422_p5, %p2419_p3 }
  0x1d   : > { %2427 = shalt.err (!%p2424_p7)
}
  0x1e   : > { %s2428_s10 = scalar_lea.vmem %s2678_s26, 18432  ;;  %p2436_p1 = scmp.lt.s32.totalorder %s2678_s26, %s2678_s26 }
  0x1f   : > { %p2429_p9 = scmp.ne.s32.totalorder %s2678_s26, %s2428_s10  ;;  %p2437_p12 = scmp.lt.s32.totalorder %s2428_s10, %s2428_s10 }
  0x21   : > { %p2431_p10 = pnand %p2429_p9, %p2417_p13  ;;  %p2438_p0 = por %p2437_p12, %p2436_p1 }
  0x23   : > { %p2432_p6 = pneg %p2431_p10 }
  0x25   : > { %p2439_p4 = pnand %p2438_p0, %p2432_p6 }
  0x27   : > { %2442 = shalt.err (!%p2439_p4)
}
  0x28   : > { %s2591_s11 = smov 128   ;;  %s2592_s18 = smov 8  }
  0x29   : > { %2102 = dma.hbm_to_vmem [thread:$0]  (!%p2685_p11), %s3018_s1, 18432, %s2678_s26, [#allocation7], %s2591_s11, %s2591_s11, %s2592_s18  }
  0x2a   : > { %s2443_s4 = scalar_lea.hbm %s3019_s2, 32 }
  0x2b   : > { %p2444_p1 = scmp.ne.s32.totalorder %s3019_s2, %s2443_s4  ;;  %p2450_p10 = scmp.lt.u32.totalorder %s2443_s4, %s3019_s2 }
  0x2d   : > { %p2446_p4 = pnand %p2444_p1, %p2417_p13 }
  0x2f   : > { %p2447_p6 = pneg %p2446_p4 }
  0x31   : > { %p2452_p3 = pnand %p2450_p10, %p2447_p6 }
  0x33   : > { %2455 = shalt.err (!%p2452_p3)
}
  0x34   : > { %s2456_s26 = scalar_lea.vmem %s2689_s29, 32  ;;  %p2464_p12 = scmp.lt.s32.totalorder %s2689_s29, %s2689_s29 }
  0x35   : > { %p2457_p5 = scmp.ne.s32.totalorder %s2689_s29, %s2456_s26  ;;  %p2465_p0 = scmp.lt.s32.totalorder %s2456_s26, %s2456_s26 }
  0x37   : > { %p2459_p7 = pnand %p2457_p5, %p2417_p13  ;;  %p2466_p1 = por %p2465_p0, %p2464_p12 }
  0x39   : > { %p2460_p9 = pneg %p2459_p7 }
  0x3b   : > { %p2467_p4 = pnand %p2466_p1, %p2460_p9 }
  0x3d   : > { %2470 = shalt.err (!%p2467_p4)
}
  0x3e   : > { %2105 = dma.hbm_to_vmem [thread:$0]  (!%p2685_p11), %s3019_s2, 32, %s2689_s29, [#allocation7]  }
  0x3f   : > { %s32_s11 = sadd.s32 1, %s2583_s16  ;;  %s41_s18 = sadd.s32 1, %s2575_s14 }
  0x40   : > { %p34_p13 = scmp.ge.s32.totalorder %s32_s11, 2  ;;  %p48_p6 = scmp.ne.s32.totalorder %s2575_s14, %s2571_s13 }
  0x41   : > { %p49_p10 = scmp.eq.s32.totalorder %s2587_s17, 0  ;;  %p2116_p3 = scmp.lt.s32.totalorder %s2587_s17, 2 }
  0x42   : > { %s3056_s11 = smov (%p34_p13, %s32_s11), 0  ;;  %p2753_p7 = por %p2658_p2, %p48_p6 }
  0x43   : > { %p50_p5 = por %p49_p10, %p48_p6  ;;  %s36_s19 = ssub.s32 %s2583_s16, %s3056_s11 }
  0x44   : > { %s3031_s27 = scalar_select %p2753_p7, 1, 0 }
  0x45   : > { %s172_s25 = sand.u32 1, %s2575_s14   ;;  %p39_p9 = scmp.eq.s32.totalorder %s36_s19, 0 }
  0x46   : > { %s2082_s29 = smul.u32 20, %s172_s25  ;;  %p2760_p11 = pnand %p2116_p3, %p50_p5 }
  0x47   : > { %s2765_s30 = scalar_select %p39_p9, %s2575_s14, %s41_s18  }
  0x48   : > { %s2083_s4 = smul.u32 320, %s2583_s16  ;;  %s176_s5 = scalar_lea.vmem [#allocation3], %s2082_s29 }
  0x49   : > { %s185_s6 = sshll.u32 %s176_s5, 4  ;;  %s2775_s26 = scalar_lea.sflag [#allocation4], %s172_s25  ;;  %s2773_s6 = int_to_ptr.vmem [resolvable:$true] %s185_s6 }
  0x4a   : > { %s2771_s8 = scalar_lea.hbm %s3017_s0, %s2083_s4  ;;  %p2473_p12 = pneg %p2760_p11 }
  0x4b   : > { %s2471_s9 = scalar_lea.hbm %s2771_s8, 320  ;;  %s2476_s19 = scalar_lea.hbm %s3017_s0, 640 }
  0x4c   : > { %p2472_p2 = scmp.ne.s32.totalorder %s2771_s8, %s2471_s9  ;;  %p2477_p4 = scmp.lt.u32.totalorder %s2771_s8, %s3017_s0 }
  0x4d   : > { %p2478_p13 = scmp.lt.u32.totalorder %s2476_s19, %s2471_s9  ;;  %p2480_p10 = scmp.lt.u32.totalorder %s2471_s9, %s2771_s8 }
  0x4e   : > { %p2474_p0 = pnand %p2473_p12, %p2472_p2 }
  0x4f   : > { %p2479_p6 = por %p2478_p13, %p2477_p4 }
  0x50   : > { %p2475_p1 = pneg %p2474_p0 }
  0x51   : > { %p2481_p3 = por %p2480_p10, %p2479_p6 }
  0x53   : > { %p2482_p5 = pnand %p2481_p3, %p2475_p1 }
  0x55   : > { %2485 = shalt.err (!%p2482_p5)
}
  0x56   : > { %s2486_s25 = scalar_lea.vmem %s2773_s6, 320  ;;  %s2593_s5 = smov [#allocation3]  }
  0x57   : > { %p2487_p9 = scmp.ne.s32.totalorder %s2773_s6, %s2486_s25  ;;  %s2491_s21 = sshll.u32 %s2593_s5, 4  ;;  %s2492_s21 = int_to_ptr.vmem [resolvable:$false] %s2491_s21 }
  0x58   : > { %s2493_s7 = scalar_lea.vmem %s2492_s21, 640  ;;  %p2494_p7 = scmp.lt.s32.totalorder %s2773_s6, %s2492_s21 }
  0x59   : > { %p2489_p2 = pnand %p2487_p9, %p2473_p12  ;;  %p2495_p4 = scmp.lt.s32.totalorder %s2493_s7, %s2486_s25 }
  0x5b   : > { %p2490_p0 = pneg %p2489_p2  ;;  %p2496_p13 = por %p2495_p4, %p2494_p7 }
  0x5d   : > { %p2497_p6 = pnand %p2496_p13, %p2490_p0 }
  0x5f   : > { %2500 = shalt.err (!%p2497_p6)
}
  0x60   : > { %s2594_s9 = smov 64   ;;  %s2595_s10 = smov 4  }
  0x61   : > { %2109 = dma.hbm_to_vmem [thread:$0]  (!%p2760_p11), %s2771_s8, 320, %s2773_s6, %s2775_s26, %s2594_s9, %s2594_s9, %s2595_s10  }
  0x62   : > { %197 = sbr.rel (%p2674_p8) target bundleno = 505 (0x1f9), region = 32  ;;  %s2806_s18 = sand.u32 (!%p2674_p8), 1, %s2571_s13  }
  0x63   : > { %s2084_s19 = smul.u32 (!%p2674_p8), 20, %s2806_s18  ;;  %s200_s29 = scalar_lea.sflag (!%p2674_p8), [#allocation4], %s2806_s18 }
  0x64   : > { %p3033_p7 = scmp.ne.s32.totalorder (!%p2674_p8), %s3027_s22, 0 }
  0x65   : > { %s2810_s4 = scalar_lea.vmem (!%p2674_p8), [#allocation3], %s2084_s19 }
  0x69   : > { %2554 = dma.done.wait (%p3033_p7), %s200_s29, 320  }
  0x6a   : > { %2556 = vsyncadd (%p3033_p7), %s200_s29, 4294966976  ;;  %p3034_p11 = scmp.ne.s32.totalorder %s3025_s20, 0 }
  0x6c   : > { %2558 = dma.done.wait (%p3034_p11), [#allocation7], 18464  }
  0x6d   : > { %2560 = vsyncadd (%p3034_p11), [#allocation7], 4294948832  ;;  %v2177_v0 = vld [vmem:[#allocation6 + $0x4] ss:$8 sps:$4 sm:$0xff]   ;;  %v2181_v2 = vld [vmem:[#allocation6] ss:$8 sps:$4 sm:$0xff]  }
  0x6e   : > { %v2179_v1 = vld [vmem:[#allocation6 + $0x204] ss:$8 sps:$4 sm:$0xff]   ;;  %1463 = vmatprep.subr.bf16.mxu1 %v2177_v0  ;;  %v2182_v3 = vld [vmem:[#allocation6 + $0x200] ss:$8 sps:$4 sm:$0xff]   ;;  %v2183_v4 = vld [vmem:[#allocation6 + $0x14] ss:$8 sps:$4 sm:$0xff]  }
  0x6f   : > { %1565 = vmatprep.subr.bf16.mxu0 %v2179_v1  ;;  %1464 = vmatpush1.bf16.msra.mxu1 %v2181_v2  ;;  %v2185_v5 = vld [vmem:[#allocation6 + $0x214] ss:$8 sps:$4 sm:$0xff]   ;;  %v2187_v6 = vld [vmem:[#allocation6 + $0x10] ss:$8 sps:$4 sm:$0xff]   ;;  %v2189_v8 = vld [vmem:[#allocation6 + $0x24] ss:$8 sps:$4 sm:$0xff]  }
  0x70   : > { %1566 = vmatpush1.bf16.msra.mxu0 %v2182_v3  ;;  %1465 = vmatprep.subr.bf16.mxu1 %v2183_v4  ;;  %v2188_v7 = vld [vmem:[#allocation6 + $0x210] ss:$8 sps:$4 sm:$0xff]   ;;  %v2191_v9 = vld [vmem:[#allocation6 + $0x224] ss:$8 sps:$4 sm:$0xff]   ;;  %v2193_v10 = vld [vmem:[#allocation6 + $0x20] ss:$8 sps:$4 sm:$0xff]  }
  0x71   : > { %1567 = vmatprep.subr.bf16.mxu0 %v2185_v5  ;;  %v2194_v11 = vld [vmem:[#allocation6 + $0x220] ss:$8 sps:$4 sm:$0xff]   ;;  %v2195_v12 = vld [vmem:[#allocation6 + $0x34] ss:$8 sps:$4 sm:$0xff]   ;;  %v2199_v14 = vld [vmem:[#allocation6 + $0x30] ss:$8 sps:$4 sm:$0xff]  }
  0x72   : > { %v2197_v13 = vld [vmem:[#allocation6 + $0x234] ss:$8 sps:$4 sm:$0xff]   ;;  %v2200_v15 = vld [vmem:[#allocation6 + $0x230] ss:$8 sps:$4 sm:$0xff]   ;;  %v2201_v16 = vld [vmem:[#allocation6 + $0x44] ss:$8 sps:$4 sm:$0xff]  }
  0x73   : > { %1466 = vmatpush1.bf16.msra.mxu1 %v2187_v6  ;;  %v2203_v17 = vld [vmem:[#allocation6 + $0x244] ss:$8 sps:$4 sm:$0xff]   ;;  %v2205_v18 = vld [vmem:[#allocation6 + $0x40] ss:$8 sps:$4 sm:$0xff]   ;;  %v2207_v20 = vld [vmem:[#allocation6 + $0x54] ss:$8 sps:$4 sm:$0xff]  }
  0x74   : > { %1568 = vmatpush1.bf16.msra.mxu0 %v2188_v7  ;;  %1467 = vmatprep.subr.bf16.mxu1 %v2189_v8  ;;  %v2206_v19 = vld [vmem:[#allocation6 + $0x240] ss:$8 sps:$4 sm:$0xff]   ;;  %v2209_v21 = vld [vmem:[#allocation6 + $0x254] ss:$8 sps:$4 sm:$0xff]   ;;  %v2211_v22 = vld [vmem:[#allocation6 + $0x50] ss:$8 sps:$4 sm:$0xff]  }
  0x75   : > { %1569 = vmatprep.subr.bf16.mxu0 %v2191_v9  ;;  %v2212_v23 = vld [vmem:[#allocation6 + $0x250] ss:$8 sps:$4 sm:$0xff]   ;;  %v2213_v24 = vld [vmem:[#allocation6 + $0x64] ss:$8 sps:$4 sm:$0xff]   ;;  %v2217_v26 = vld [vmem:[#allocation6 + $0x60] ss:$8 sps:$4 sm:$0xff]  }
  0x76   : > { %v2215_v25 = vld [vmem:[#allocation6 + $0x264] ss:$8 sps:$4 sm:$0xff]   ;;  %v2218_v27 = vld [vmem:[#allocation6 + $0x260] ss:$8 sps:$4 sm:$0xff]   ;;  %v2219_v28 = vld [vmem:[#allocation6 + $0x74] ss:$8 sps:$4 sm:$0xff]  }
  0x77   : > { %1468 = vmatpush1.bf16.msra.mxu1 %v2193_v10  ;;  %v2221_v29 = vld [vmem:[#allocation6 + $0x274] ss:$8 sps:$4 sm:$0xff]   ;;  %v2223_v30 = vld [vmem:[#allocation6 + $0x70] ss:$8 sps:$4 sm:$0xff]   ;;  %v2225_v32 = vld [vmem:[#allocation6 + $0x84] ss:$8 sps:$4 sm:$0xff]  }
  0x78   : > { %1570 = vmatpush1.bf16.msra.mxu0 %v2194_v11  ;;  %1469 = vmatprep.subr.bf16.mxu1 %v2195_v12  ;;  %v2224_v31 = vld [vmem:[#allocation6 + $0x270] ss:$8 sps:$4 sm:$0xff]   ;;  %v2227_v33 = vld [vmem:[#allocation6 + $0x284] ss:$8 sps:$4 sm:$0xff]   ;;  %v2229_v34 = vld [vmem:[#allocation6 + $0x80] ss:$8 sps:$4 sm:$0xff]  }
  0x79   : > { %1571 = vmatprep.subr.bf16.mxu0 %v2197_v13  ;;  %v2230_v35 = vld [vmem:[#allocation6 + $0x280] ss:$8 sps:$4 sm:$0xff]   ;;  %v2231_v36 = vld [vmem:[#allocation6 + $0x94] ss:$8 sps:$4 sm:$0xff]   ;;  %v2235_v38 = vld [vmem:[#allocation6 + $0x90] ss:$8 sps:$4 sm:$0xff]  }
  0x7a   : > { %v2233_v37 = vld [vmem:[#allocation6 + $0x294] ss:$8 sps:$4 sm:$0xff]   ;;  %v2236_v39 = vld [vmem:[#allocation6 + $0x290] ss:$8 sps:$4 sm:$0xff]   ;;  %v2237_v40 = vld [vmem:[#allocation6 + $0xa4] ss:$8 sps:$4 sm:$0xff]  }
  0x7b   : > { %1470 = vmatpush1.bf16.msra.mxu1 %v2199_v14  ;;  %v2239_v41 = vld [vmem:[#allocation6 + $0x2a4] ss:$8 sps:$4 sm:$0xff]   ;;  %vm245_vm0 = vsmask.f32 3328  ;;  %v2241_v42 = vld [vmem:[#allocation6 + $0xa0] ss:$8 sps:$4 sm:$0xff]  }
  0x7c   : > { %1572 = vmatpush1.bf16.msra.mxu0 %v2200_v15  ;;  %1471 = vmatprep.subr.bf16.mxu1 %v2201_v16  ;;  %v2242_v43 = vld [vmem:[#allocation6 + $0x2a0] ss:$8 sps:$4 sm:$0xff]   ;;  %vm246_vm1 = vsmask.f32 7440  ;;  %v2243_v44 = vld [vmem:[#allocation6 + $0xb4] ss:$8 sps:$4 sm:$0xff]  }
  0x7d   : > { %1573 = vmatprep.subr.bf16.mxu0 %v2203_v17  ;;  %vm346_vm2 = vsmask.f32 256  ;;  %v2245_v45 = vld [vmem:[#allocation6 + $0x2b4] ss:$8 sps:$4 sm:$0xff]   ;;  %vm347_vm3 = vsmask.f32 4368  ;;  %vm2836_vm4 = vmor %vm245_vm0, %vm246_vm1 }
  0x7e   : > { %v2247_v46 = vld [vmem:[#allocation6 + $0xb0] ss:$8 sps:$4 sm:$0xff]   ;;  %v2249_v49 = vld [vmem:[#allocation6 + $0xc4] ss:$8 sps:$4 sm:$0xff]   ;;  %v2825_v53 = vld [vmem:[%s2810_s4 + $0x8] sm:$0xf] }
  0x7f   : > { %1472 = vmatpush1.bf16.msra.mxu1 %v2205_v18  ;;  %v2248_v47 = vld [vmem:[#allocation6 + $0x2b0] ss:$8 sps:$4 sm:$0xff]   ;;  %v2251_v58 = vld [vmem:[#allocation6 + $0x2c4] ss:$8 sps:$4 sm:$0xff]   ;;  %v268_v59 = vshll.u32 %v2825_v53, 16  ;;  %vm2843_vm5 = vmor %vm346_vm2, %vm347_vm3  ;;  %vm296_vm6 = vcmask 1042432  }
  0x80   : > { %1574 = vmatpush1.bf16.msra.mxu0 %v2206_v19  ;;  %1473 = vmatprep.subr.bf16.mxu1 %v2207_v20  ;;  %v235_v48 = vld [vmem:[%s2810_s4] sm:$0xf]  ;;  %v236_v50 = vld [vmem:[%s2810_s4 + $0x4] sm:$0xf]  ;;  %v2253_v60 = vld [vmem:[#allocation6 + $0xc0] ss:$8 sps:$4 sm:$0xff]  }
  0x81   : > { %1575 = vmatprep.subr.bf16.mxu0 %v2209_v21  ;;  %238 = vst [vmem:[#allocation2] sm:$0xf] %v235_v48  ;;  %v241_v51 = vld [vmem:[%s2810_s4] sm:$0xf]  ;;  %v242_v52 = vld [vmem:[%s2810_s4 + $0x4] sm:$0xf] }
  0x82   : > { %239 = vst [vmem:[#allocation2 + $0x24] sm:$0xf] %v236_v50  ;;  %v249_v54 = vshrl.u32 %v241_v51, 16  ;;  %v252_v55 = vshll.u32 %v241_v51, 16  ;;  %v258_v56 = vshll.u32 %v242_v52, 16  ;;  %v262_v57 = vshrl.u32 %v242_v52, 16 }
  0x83   : > { %1474 = vmatpush1.bf16.msra.mxu1 %v2211_v22  ;;  %v2254_v61 = vld [vmem:[#allocation6 + $0x2c0] ss:$8 sps:$4 sm:$0xff]   ;;  %v2255_v2 = vld [vmem:[#allocation6 + $0xd4] ss:$8 sps:$4 sm:$0xff]   ;;  %v2828_v4 = vrot.slane %v268_v59, 5  ;;  %vm297_vm7 = vcmask 1046532  }
  0x84   : > { %1576 = vmatpush1.bf16.msra.mxu0 %v2212_v23  ;;  %1475 = vmatprep.subr.bf16.mxu1 %v2213_v24  ;;  %v251_v62 = vrot.slane %v249_v54, 4  ;;  %v254_v63 = vrot.slane %v252_v55, 5  ;;  %v260_v0 = vrot.slane %v258_v56, 5  ;;  %v264_v1 = vrot.slane %v262_v57, 4  ;;  %v2257_v3 = vld [vmem:[#allocation6 + $0x2d4] ss:$8 sps:$4 sm:$0xff]   ;;  %vm2867_vm8 = vmor %vm296_vm6, %vm297_vm7 }
  0x85   : > { %1577 = vmatprep.subr.bf16.mxu0 %v2215_v25  ;;  %v342_v5 = vld [vmem:[%s2810_s4] sm:$0x8]  ;;  %v343_v6 = vld [vmem:[%s2810_s4 + $0x4] sm:$0xf]  ;;  %v344_v9 = vld [vmem:[%s2810_s4 + $0x8] sm:$0xf] }
  0x86   : > { %v255_v7 = vor.u32 %v254_v63, %v251_v62  ;;  %v265_v8 = vor.u32 %v264_v1, %v260_v0  ;;  %v350_v10 = vshrl.u32 %v342_v5, 16  ;;  %v355_v11 = vshrl.u32 %v343_v6, 16  ;;  %v386_v12 = vld [vmem:[%s2810_s4 + $0x4] sm:$0xf]  ;;  %v387_v17 = vld [vmem:[%s2810_s4 + $0x8] sm:$0xf] }
  0x87   : > { %1476 = vmatpush1.bf16.msra.mxu1 %v2217_v26  ;;  %v358_v14 = vshll.u32 %v343_v6, 16  ;;  %v364_v15 = vshrl.u32 %v344_v9, 16  ;;  %v367_v16 = vshll.u32 %v344_v9, 16  ;;  %389 = vst [vmem:[#allocation2 + $0x14] sm:$0xf] %v386_v12  ;;  %vm323_vm9 = vcmask 1040384  }
  0x88   : > { %1578 = vmatpush1.bf16.msra.mxu0 %v2218_v27  ;;  %1477 = vmatprep.subr.bf16.mxu1 %v2219_v28  ;;  %v256_v18 = vrot.slane %v255_v7, 4  ;;  %v266_v19 = vrot.slane %v265_v8, 4  ;;  %v1864_v20 = vrot.slane %v350_v10, 11  ;;  %v357_v21 = vrot.slane %v355_v11, 7  ;;  %390 = vst [vmem:[#allocation2 + $0x38] sm:$0xf] %v387_v17 }
  0x89   : > { %1579 = vmatprep.subr.bf16.mxu0 %v2221_v29  ;;  %v2259_v22 = vld [vmem:[#allocation6 + $0xd0] ss:$8 sps:$4 sm:$0xff]   ;;  %v2847_v24 = vrot.slane %v364_v15, 7  ;;  %v2261_v26 = vld [vmem:[#allocation6 + $0xe4] ss:$8 sps:$4 sm:$0xff]   ;;  %vm324_vm10 = vcmask 1044484  }
  0x8a   : > { %v2260_v25 = vld [vmem:[#allocation6 + $0x2d0] ss:$8 sps:$4 sm:$0xff]   ;;  %v261_v27 = vsel %vm2836_vm4, %v256_v18, %v260_v0  ;;  %v271_v28 = vsel %vm2836_vm4, %v266_v19, %v2828_v4  ;;  %v360_v29 = vor.u32 %v358_v14, %v357_v21  ;;  %v2282_v48 = vld [vmem:[#allocation6 + $0x300] ss:$8 sps:$4 sm:$0xff]   ;;  %v2290_v50 = vld [vmem:[#allocation6 + $0x314] ss:$8 sps:$4 sm:$0xff]  }
  0x8b   : > { %1478 = vmatpush1.bf16.msra.mxu1 %v2223_v30  ;;  %v362_v30 = vrot.slane %v357_v21, 4  ;;  %285 = vst [vmem:[#allocation2 + $0x4] sm:$0xf] %v261_v27  ;;  %286 = vst [vmem:[#allocation2 + $0x28] sm:$0xf] %v271_v28  ;;  %v371_v28 = vrot.slane %v2847_v24, 4 }
  0x8c   : > { %1580 = vmatpush1.bf16.msra.mxu0 %v2224_v31  ;;  %1479 = vmatprep.subr.bf16.mxu1 %v2225_v32  ;;  %v2263_v31 = vld [vmem:[#allocation6 + $0x2e4] ss:$8 sps:$4 sm:$0xff]   ;;  %v369_v32 = vor.u32 %v367_v16, %v2847_v24  ;;  %v2285_v51 = vld [vmem:[#allocation6 + $0x110] ss:$8 sps:$4 sm:$0xff]   ;;  %v2291_v56 = vld [vmem:[#allocation6 + $0x120] ss:$8 sps:$4 sm:$0xff]  }
  0x8d   : > { %1581 = vmatprep.subr.bf16.mxu0 %v2227_v33  ;;  %v361_v33 = vsel %vm2843_vm5, %v1864_v20, %v360_v29  ;;  %v2288_v52 = vld [vmem:[#allocation6 + $0x310] ss:$8 sps:$4 sm:$0xff]   ;;  %v2293_v54 = vld [vmem:[#allocation6 + $0x124] ss:$8 sps:$4 sm:$0xff]   ;;  %v2294_v57 = vld [vmem:[#allocation6 + $0x320] ss:$8 sps:$4 sm:$0xff]  }
  0x8e   : > { %383 = vst [vmem:[#allocation2 + $0x10] sm:$0xf] %v361_v33  ;;  %v2296_v55 = vld [vmem:[#allocation6 + $0x324] ss:$8 sps:$4 sm:$0xff]   ;;  %v2302_v59 = vld [vmem:[#allocation6 + $0x334] ss:$8 sps:$4 sm:$0xff]   ;;  %vm2885_vm13 = vmor %vm323_vm9, %vm324_vm10 }
  0x8f   : > { %1480 = vmatpush1.bf16.msra.mxu1 %v2229_v34  ;;  %v2265_v34 = vld [vmem:[#allocation6 + $0xe0] ss:$8 sps:$4 sm:$0xff]   ;;  %v2300_v62 = vld [vmem:[#allocation6 + $0x330] ss:$8 sps:$4 sm:$0xff]   ;;  %v2305_v63 = vld [vmem:[#allocation6 + $0x144] ss:$8 sps:$4 sm:$0xff]  }
  0x90   : > { %1582 = vmatpush1.bf16.msra.mxu0 %v2230_v35  ;;  %1481 = vmatprep.subr.bf16.mxu1 %v2231_v36  ;;  %v370_v35 = vsel %vm2843_vm5, %v362_v30, %v369_v32  ;;  %v2266_v36 = vld [vmem:[#allocation6 + $0x2e0] ss:$8 sps:$4 sm:$0xff]   ;;  %v2308_v0 = vld [vmem:[#allocation6 + $0x344] ss:$8 sps:$4 sm:$0xff]   ;;  %v2311_v5 = vld [vmem:[#allocation6 + $0x154] ss:$8 sps:$4 sm:$0xff]  }
  0x91   : > { %1583 = vmatprep.subr.bf16.mxu0 %v2233_v37  ;;  %v2267_v37 = vld [vmem:[#allocation6 + $0xf4] ss:$8 sps:$4 sm:$0xff]   ;;  %384 = vst [vmem:[#allocation2 + $0x34] sm:$0xf] %v370_v35  ;;  %v2303_v1 = vld [vmem:[#allocation6 + $0x140] ss:$8 sps:$4 sm:$0xff]  }
  0x92   : > { %v2314_v6 = vld [vmem:[#allocation6 + $0x354] ss:$8 sps:$4 sm:$0xff]   ;;  %v2309_v7 = vld [vmem:[#allocation6 + $0x150] ss:$8 sps:$4 sm:$0xff]   ;;  %v2317_v9 = vld [vmem:[#allocation6 + $0x164] ss:$8 sps:$4 sm:$0xff]  }
  0x93   : > { %1482 = vmatpush1.bf16.msra.mxu1 %v2235_v38  ;;  %v2269_v38 = vld [vmem:[#allocation6 + $0x2f4] ss:$8 sps:$4 sm:$0xff]   ;;  %v2320_v10 = vld [vmem:[#allocation6 + $0x364] ss:$8 sps:$4 sm:$0xff]   ;;  %v2315_v11 = vld [vmem:[#allocation6 + $0x160] ss:$8 sps:$4 sm:$0xff]  }
  0x94   : > { %1584 = vmatpush1.bf16.msra.mxu0 %v2236_v39  ;;  %1483 = vmatprep.subr.bf16.mxu1 %v2237_v40  ;;  %v2271_v39 = vld [vmem:[#allocation6 + $0xf0] ss:$8 sps:$4 sm:$0xff]   ;;  %v2318_v12 = vld [vmem:[#allocation6 + $0x360] ss:$8 sps:$4 sm:$0xff]   ;;  %v2323_v15 = vld [vmem:[#allocation6 + $0x174] ss:$8 sps:$4 sm:$0xff]  }
  0x95   : > { %1585 = vmatprep.subr.bf16.mxu0 %v2239_v41  ;;  %v2272_v40 = vld [vmem:[#allocation6 + $0x2f0] ss:$8 sps:$4 sm:$0xff]   ;;  %v2278_v41 = vld [vmem:[#allocation6 + $0x104] ss:$8 sps:$4 sm:$0xff]   ;;  %v237_v16 = vld [vmem:[%s2810_s4 + $0x8] sm:$0xf] }
  0x96   : > { %v244_v17 = vld [vmem:[%s2810_s4 + $0xc] sm:$0x1]  ;;  %240 = vst [vmem:[#allocation2 + $0x48] sm:$0xf] %v237_v16  ;;  %v2327_v33 = vld [vmem:[#allocation6 + $0x180] ss:$8 sps:$4 sm:$0xff]  }
  0x97   : > { %1484 = vmatpush1.bf16.msra.mxu1 %v2241_v42  ;;  %v2275_v42 = vld [vmem:[#allocation2 + $0x4] ss:$36 sps:$4 sm:$0xff]   ;;  %v345_v18 = vld [vmem:[%s2810_s4 + $0xc] sm:$0xf]  ;;  %v278_v19 = vshll.u32 %v244_v17, 16  ;;  %vm400_vm11 = vcmask 1041408  }
  0x98   : > { %1586 = vmatpush1.bf16.msra.mxu0 %v2242_v43  ;;  %1485 = vmatprep.subr.bf16.mxu1 %v2243_v44  ;;  %v2284_v43 = vld [vmem:[#allocation6 + $0x304] ss:$8 sps:$4 sm:$0xff]   ;;  %v373_v20 = vshrl.u32 %v345_v18, 16  ;;  %v376_v21 = vshll.u32 %v345_v18, 16  ;;  %v2324_v27 = vld [vmem:[#allocation6 + $0x370] ss:$8 sps:$4 sm:$0xff]  }
  0x99   : > { %1587 = vmatprep.subr.bf16.mxu0 %v2245_v45  ;;  %v2273_v44 = vld [vmem:[#allocation2] ss:$36 sps:$4 sm:$0xff]   ;;  %v2276_v45 = vld [vmem:[#allocation6 + $0x100] ss:$8 sps:$4 sm:$0xff]   ;;  %1495 = vmatprep.mubr.bf16.mxu1 %v2275_v42  ;;  %v280_v30 = vrot.slane %v278_v19, 5  ;;  %vm401_vm12 = vcmask 1045508  }
  0x9a   : > { %v2329_v29 = vld [vmem:[#allocation6 + $0x184] ss:$8 sps:$4 sm:$0xff]   ;;  %vm423_vm14 = vsmask.f32 1280  ;;  %vm424_vm15 = vsmask.f32 5392  ;;  %vm2899_vm0 = vmor %vm400_vm11, %vm401_vm12 }
  0x9b   : > { %1486 = vmatpush1.bf16.msra.mxu1 %v2247_v46  ;;  %v2279_v46 = vld [vmem:[#allocation2 + $0x10] ss:$36 sps:$4 sm:$0xff]   ;;  %v2332_v32 = vld [vmem:[#allocation6 + $0x384] ss:$8 sps:$4 sm:$0xff]   ;;  %vm2933_vm1 = vmor %vm423_vm14, %vm424_vm15  ;;  %s2085_s20 = smul.u32 48, %s2806_s18  ;;  %s1731_s26 = scalar_lea.sflag [#allocation5], %s2806_s18 }
  0x9c   : > { %1588 = vmatpush1.bf16.msra.mxu0 %v2248_v47  ;;  %1487 = vmatprep.subr.bf16.mxu1 %v2249_v49  ;;  %v2281_v47 = vld [vmem:[#allocation2 + $0x14] ss:$36 sps:$4 sm:$0xff]   ;;  %v2287_v49 = vld [vmem:[#allocation6 + $0x114] ss:$8 sps:$4 sm:$0xff]   ;;  %v2388_v23 = vld [vmem:[#allocation6 + $0x410] ss:$8 sps:$4 sm:$0xff]  }
  0x9d   : > { %1589 = vmatprep.subr.bf16.mxu0 %v2251_v58  ;;  %1597 = vmatprep.mubr.bf16.mxu0 %v2281_v47  ;;  %v2299_v58 = vld [vmem:[#allocation6 + $0x134] ss:$8 sps:$4 sm:$0xff]   ;;  %s233_s22 = scalar_lea.vmem [#allocation9], %s2085_s20  ;;  %s2086_s28 = smul.u32 768, %s2579_s15 }
  0x9e   : > { %v316_v47 = vld [vmem:[%s2810_s4 + $0x4] sm:$0xf]  ;;  %s1746_s24 = sshll.u32 %s233_s22, 4  ;;  %p3047_p12 = scmp.ne.s32.totalorder %s3031_s27, 0  ;;  %s2963_s24 = int_to_ptr.vmem [resolvable:$true] %s1746_s24 }
  0x9f   : > { %1488 = vmatpush1.bf16.msra.mxu1 %v2253_v60  ;;  %v2297_v60 = vld [vmem:[#allocation6 + $0x130] ss:$8 sps:$4 sm:$0xff]   ;;  %s2968_s8 = scalar_lea.hbm %s3020_s3, %s2086_s28  ;;  %s2501_s25 = scalar_lea.vmem %s2963_s24, 768 }
  0xa0   : > { %1590 = vmatpush1.bf16.msra.mxu0 %v2254_v61  ;;  %1489 = vmatprep.subr.bf16.mxu1 %v2255_v2  ;;  %v272_v61 = vshrl.u32 %v2825_v53, 16  ;;  %v2312_v53 = vld [vmem:[#allocation6 + $0x350] ss:$8 sps:$4 sm:$0xff]   ;;  %p2502_p8 = scmp.ne.s32.totalorder %s2963_s24, %s2501_s25  ;;  %s2597_s5 = smov [#allocation9]  }
  0xa1   : > { %1591 = vmatprep.subr.bf16.mxu0 %v2257_v3  ;;  %v2306_v3 = vld [vmem:[#allocation6 + $0x340] ss:$8 sps:$4 sm:$0xff]   ;;  %s2505_s21 = sshll.u32 %s2597_s5, 4  ;;  %s2506_s21 = int_to_ptr.vmem [resolvable:$false] %s2505_s21 }
  0xa2   : > { %v274_v2 = vrot.slane %v272_v61, 4  ;;  %p2503_p1 = pnand %p2502_p8, %p3047_p12  ;;  %s2507_s7 = scalar_lea.vmem %s2506_s21, 1536 }
  0xa3   : > { %1490 = vmatpush1.bf16.msra.mxu1 %v2259_v22  ;;  %v388_v22 = vld [vmem:[%s2810_s4 + $0xc] sm:$0xf]  ;;  %p2508_p3 = scmp.lt.s32.totalorder %s2963_s24, %s2506_s21  ;;  %p2509_p5 = scmp.lt.s32.totalorder %s2507_s7, %s2501_s25 }
  0xa4   : > { %1592 = vmatpush1.bf16.msra.mxu0 %v2260_v25  ;;  %1491 = vmatprep.subr.bf16.mxu1 %v2261_v26  ;;  %v275_v8 = vor.u32 %v274_v2, %v2828_v4  ;;  %v2326_v4 = vld [vmem:[#allocation6 + $0x374] ss:$8 sps:$4 sm:$0xff]   ;;  %v2321_v26 = vld [vmem:[#allocation6 + $0x170] ss:$8 sps:$4 sm:$0xff]   ;;  %391 = vst [vmem:[#allocation2 + $0x5c] sm:$0xf] %v388_v22  ;;  %p2504_p10 = pneg %p2503_p1 }
  0xa5   : > { %1593 = vmatprep.subr.bf16.mxu0 %v2263_v31  ;;  %v375_v31 = vrot.slane %v373_v20, 7  ;;  %v419_v2 = vld [vmem:[%s2810_s4 + $0x4] sm:$0xc]  ;;  %p2510_p9 = por %p2509_p5, %p2508_p3 }
  0xa6   : > { %v276_v14 = vrot.slane %v275_v8, 4  ;;  %v427_v8 = vshrl.u32 %v419_v2, 16 }
  0xa7   : > { %1492 = vmatpush1.bf16.msra.mxu1 %v2265_v34  ;;  %v2330_v34 = vld [vmem:[#allocation6 + $0x380] ss:$8 sps:$4 sm:$0xff]   ;;  %v378_v24 = vor.u32 %v376_v21, %v375_v31  ;;  %v2350_v21 = vld [vmem:[#allocation6 + $0x3b4] ss:$8 sps:$4 sm:$0xff]   ;;  %v2348_v31 = vld [vmem:[#allocation6 + $0x3b0] ss:$8 sps:$4 sm:$0xff]   ;;  %p2511_p2 = pnand %p2510_p9, %p2504_p10 }
  0xa8   : > { %1594 = vmatpush1.bf16.msra.mxu0 %v2266_v36  ;;  %1493 = vmatprep.subr.bf16.mxu1 %v2267_v37  ;;  %v281_v35 = vsel %vm2836_vm4, %v276_v14, %v280_v30  ;;  %v2335_v36 = vld [vmem:[#allocation6 + $0x194] ss:$8 sps:$4 sm:$0xff]   ;;  %v429_v18 = vrot.slane %v427_v8, 6  ;;  %v2345_v30 = vld [vmem:[#allocation6 + $0x1b0] ss:$8 sps:$4 sm:$0xff]  }
  0xa9   : > { %1595 = vmatprep.subr.bf16.mxu0 %v2269_v38  ;;  %v2338_v37 = vld [vmem:[#allocation6 + $0x394] ss:$8 sps:$4 sm:$0xff]   ;;  %287 = vst [vmem:[#allocation2 + $0x4c] sm:$0xf] %v281_v35  ;;  %v379_v38 = vsel %vm2843_vm5, %v371_v28, %v378_v24  ;;  %v318_v24 = vld [vmem:[%s2810_s4 + $0xc] sm:$0x7] }
  0xaa   : > { %385 = vst [vmem:[#allocation2 + $0x58] sm:$0xf] %v379_v38 }
  0xab   : > { %1494 = vmatpush1.bf16.msra.mxu1 %v2271_v39  ;;  %v288_v39 = vld [vmem:[%s2810_s4] sm:$0xe] }
  0xac   : > { %1596 = vmatpush1.bf16.msra.mxu0 %v2272_v40  ;;  %1514 = vmatprep.subr.bf16.mxu1 %v2278_v41  ;;  %v289_v40 = vld [vmem:[%s2810_s4 + $0x4] sm:$0xf]  ;;  %v2879_v41 = vld [vmem:[%s2810_s4 + $0x8] sm:$0xf]  ;;  %v1862_v13 = vrot.slane %v288_v39, 9 }
  0xad   : > { %1616 = vmatprep.subr.bf16.mxu0 %v2284_v43  ;;  %v301_v42 = vrot.slane %v289_v40, 5  ;;  %v304_v43 = vrot.slane %v2879_v41, 5  ;;  %v2356_v41 = vld [vmem:[#allocation6 + $0x3c4] ss:$8 sps:$4 sm:$0xff]  }
  0xae   : > { %1496 = vmatmul.mubr.bf16.vlgmr.msra.gmra.mrb[0].mxu1 %v2273_v44  ;;  %v315_v44 = vld [vmem:[%s2810_s4] sm:$0x8] }
  0xaf   : > { %1598 = vmatmul.mubr.bf16.vlgmr.msra.gmra.mrb[0].mxu0 %v2279_v46  ;;  %1515 = vmatpush1.bf16.msra.mxu1 %v2276_v45  ;;  %v2333_v45 = vld [vmem:[#allocation6 + $0x190] ss:$8 sps:$4 sm:$0xff]   ;;  %v306_v40 = vrot.slane %v304_v43, 4 }
  0xb0   : > { %1617 = vmatpush1.bf16.msra.mxu0 %v2282_v48  ;;  %1516 = vmatprep.subr.bf16.mxu1 %v2287_v49  ;;  %v2336_v46 = vld [vmem:[#allocation6 + $0x390] ss:$8 sps:$4 sm:$0xff]   ;;  %v2891_v48 = vld [vmem:[%s2810_s4 + $0x8] sm:$0xf]  ;;  %v1863_v49 = vrot.slane %v315_v44, 11 }
  0xb1   : > { %1618 = vmatprep.subr.bf16.mxu0 %v2290_v50  ;;  %v2341_v50 = vld [vmem:[#allocation6 + $0x1a4] ss:$8 sps:$4 sm:$0xff]  }
  0xb2   : > { %v506_v16 = vld [vmem:[#allocation2 + $0x58] sm:$0xff] }
  0xb3   : > { %1517 = vmatpush1.bf16.msra.mxu1 %v2285_v51  ;;  %v2344_v51 = vld [vmem:[#allocation6 + $0x3a4] ss:$8 sps:$4 sm:$0xff]   ;;  %v1881_v22 = vcombine.high %v506_v16, %v506_v16 }
  0xb4   : > { %1619 = vmatpush1.bf16.msra.mxu0 %v2288_v52  ;;  %1518 = vmatprep.subr.bf16.mxu1 %v2293_v54  ;;  %v302_v52 = vsel %vm2867_vm8, %v1862_v13, %v301_v42  ;;  %v303_v54 = vrot.slane %v301_v42, 4  ;;  %v422_v42 = vld [vmem:[%s2810_s4 + $0x10] sm:$0x7] }
  0xb5   : > { %1620 = vmatprep.subr.bf16.mxu0 %v2296_v55  ;;  %v328_v55 = vrot.slane %v316_v47, 7  ;;  %312 = vst [vmem:[#allocation2 + $0x8] sm:$0xf] %v302_v52  ;;  %1607 = vmatprep.mubr.bf16.mxu0 %v1881_v22 }
  0xb7   : > { %1519 = vmatpush1.bf16.msra.mxu1 %v2291_v56  ;;  %v331_v56 = vrot.slane %v2891_v48, 7  ;;  %v2351_v48 = vld [vmem:[#allocation6 + $0x1c0] ss:$8 sps:$4 sm:$0xff]  }
  0xb8   : > { %1621 = vmatpush1.bf16.msra.mxu0 %v2294_v57  ;;  %1520 = vmatprep.subr.bf16.mxu1 %v2299_v58  ;;  %v392_v57 = vld [vmem:[%s2810_s4 + $0x4] sm:$0xc] }
  0xb9   : > { %1622 = vmatprep.subr.bf16.mxu0 %v2302_v59  ;;  %v393_v59 = vld [vmem:[%s2810_s4 + $0x8] sm:$0xf]  ;;  %v1865_v61 = vrot.slane %v392_v57, 10  ;;  %v333_v47 = vrot.slane %v331_v56, 4  ;;  %v456_v57 = vshrl.u32 %v422_v42, 16 }
  0xbb   : > { %1521 = vmatpush1.bf16.msra.mxu1 %v2297_v60  ;;  %v2905_v60 = vld [vmem:[%s2810_s4 + $0xc] sm:$0xf] }
  0xbc   : > { %1623 = vmatpush1.bf16.msra.mxu0 %v2300_v62  ;;  %1522 = vmatprep.subr.bf16.mxu1 %v2305_v63  ;;  %v305_v62 = vsel %vm2867_vm8, %v303_v54, %v304_v43  ;;  %v329_v63 = vsel %vm2885_vm13, %v1863_v49, %v328_v55  ;;  %v334_v49 = vrot.slane %v318_v24, 7 }
  0xbd   : > { %1624 = vmatprep.subr.bf16.mxu0 %v2308_v0  ;;  %v330_v0 = vrot.slane %v328_v55, 4  ;;  %313 = vst [vmem:[#allocation2 + $0x2c] sm:$0xf] %v305_v62  ;;  %339 = vst [vmem:[#allocation2 + $0xc] sm:$0xf] %v329_v63 }
  0xbe   : > { %v335_v55 = vsel %vm2885_vm13, %v333_v47, %v334_v49  ;;  %v2354_v62 = vld [vmem:[#allocation6 + $0x3c0] ss:$8 sps:$4 sm:$0xff]   ;;  %v2398_v47 = vld [vmem:[#allocation6 + $0x430] ss:$8 sps:$4 sm:$0xff]   ;;  %v2403_v49 = vld [vmem:[#allocation6 + $0x444] ss:$8 sps:$4 sm:$0xff]  }
  0xbf   : > { %1523 = vmatpush1.bf16.msra.mxu1 %v2303_v1  ;;  %v405_v1 = vrot.slane %v393_v59, 6  ;;  %v459_v59 = vshll.u32 %v422_v42, 16  ;;  %341 = vst [vmem:[#allocation2 + $0x54] sm:$0xf] %v335_v55  ;;  %v2412_v55 = vld [vmem:[#allocation6 + $0x474] ss:$8 sps:$4 sm:$0xff]  }
  0xc0   : > { %1625 = vmatpush1.bf16.msra.mxu0 %v2306_v3  ;;  %1524 = vmatprep.subr.bf16.mxu1 %v2311_v5  ;;  %v420_v3 = vld [vmem:[%s2810_s4 + $0x8] sm:$0xf] }
  0xc1   : > { %1626 = vmatprep.subr.bf16.mxu0 %v2314_v6  ;;  %v504_v5 = vld [vmem:[#allocation2 + $0x48] sm:$0xff]  ;;  %v408_v6 = vrot.slane %v2905_v60, 6  ;;  %v407_v17 = vrot.slane %v405_v1, 4  ;;  %v436_v20 = vshrl.u32 %v420_v3, 16 }
  0xc2   : > { %v1876_v14 = vcombine.low %v504_v5, %v504_v5 }
  0xc3   : > { %1525 = vmatpush1.bf16.msra.mxu1 %v2309_v7  ;;  %v421_v7 = vld [vmem:[%s2810_s4 + $0xc] sm:$0xf] }
  0xc4   : > { %1627 = vmatpush1.bf16.msra.mxu0 %v2312_v53  ;;  %1526 = vmatprep.subr.bf16.mxu1 %v2317_v9  ;;  %v430_v53 = vshll.u32 %v419_v2, 16  ;;  %v2339_v9 = vld [vmem:[#allocation6 + $0x1a0] ss:$8 sps:$4 sm:$0xff]   ;;  %v446_v28 = vshrl.u32 %v421_v7, 16  ;;  %v449_v35 = vshll.u32 %v421_v7, 16 }
  0xc5   : > { %1628 = vmatprep.subr.bf16.mxu0 %v2320_v10  ;;  %v2342_v10 = vld [vmem:[#allocation6 + $0x3a0] ss:$8 sps:$4 sm:$0xff]   ;;  %v2359_v2 = vld [vmem:[#allocation6 + $0x1d4] ss:$8 sps:$4 sm:$0xff]   ;;  %v2360_v7 = vld [vmem:[#allocation6 + $0x3d0] ss:$8 sps:$4 sm:$0xff]  }
  0xc6   : > { %v432_v19 = vrot.slane %v430_v53, 7  ;;  %v448_v39 = vrot.slane %v446_v28, 6  ;;  %v2368_v53 = vld [vmem:[#allocation6 + $0x1e4] ss:$8 sps:$4 sm:$0xff]  }
  0xc7   : > { %1527 = vmatpush1.bf16.msra.mxu1 %v2315_v11  ;;  %v2347_v11 = vld [vmem:[#allocation6 + $0x1b4] ss:$8 sps:$4 sm:$0xff]  }
  0xc8   : > { %1629 = vmatpush1.bf16.msra.mxu0 %v2318_v12  ;;  %1528 = vmatprep.subr.bf16.mxu1 %v2323_v15  ;;  %v1877_v12 = vcombine.high %v504_v5, %v504_v5  ;;  %v332_v15 = vsel %vm2885_vm13, %v330_v0, %v331_v56  ;;  %v458_v0 = vrot.slane %v456_v57, 6  ;;  %v2410_v57 = vld [vmem:[#allocation6 + $0x470] ss:$8 sps:$4 sm:$0xff]  }
  0xc9   : > { %1630 = vmatprep.subr.bf16.mxu0 %v2326_v4  ;;  %v406_v4 = vsel %vm2899_vm0, %v1865_v61, %v405_v1  ;;  %340 = vst [vmem:[#allocation2 + $0x30] sm:$0xf] %v332_v15  ;;  %v461_v1 = vrot.slane %v459_v59, 7  ;;  %v472_v15 = vld [vmem:[%s2810_s4 + $0xc] sm:$0xf] }
  0xca   : > { %416 = vst [vmem:[#allocation2 + $0x18] sm:$0xf] %v406_v4  ;;  %1505 = vmatprep.mubr.bf16.mxu1 %v1877_v12  ;;  %v470_v12 = vld [vmem:[%s2810_s4 + $0x4] sm:$0x8] }
  0xcb   : > { %1529 = vmatpush1.bf16.msra.mxu1 %v2321_v26  ;;  %v1880_v26 = vcombine.low %v506_v16, %v506_v16  ;;  %v462_v58 = vor.u32 %v461_v1, %v458_v0  ;;  %v1866_v4 = vrot.slane %v470_v12, 11  ;;  %v653_v1 = vld [vmem:[#allocation8] sm:$0x3] }
  0xcc   : > { %1631 = vmatpush1.bf16.msra.mxu0 %v2324_v27  ;;  %1530 = vmatprep.subr.bf16.mxu1 %v2329_v29  ;;  %v439_v27 = vshll.u32 %v420_v3, 16  ;;  %v291_v29 = vld [vmem:[%s2810_s4 + $0xc] sm:$0x1]  ;;  %v2362_v3 = vld [vmem:[#allocation6 + $0x3d4] ss:$8 sps:$4 sm:$0xff]  }
  0xcd   : > { %1632 = vmatprep.subr.bf16.mxu0 %v2332_v32  ;;  %v409_v32 = vsel %vm2899_vm0, %v407_v17, %v408_v6  ;;  %1506 = vmatmul.mubr.bf16.gmra.mrb[4].mxu1 %v1876_v14  ;;  %v307_v13 = vrot.slane %v291_v29, 5  ;;  %v471_v14 = vld [vmem:[%s2810_s4 + $0x8] sm:$0xf] }
  0xce   : > { %417 = vst [vmem:[#allocation2 + $0x3c] sm:$0xf] %v409_v32  ;;  %v441_v38 = vrot.slane %v439_v27, 7  ;;  %1608 = vmatmul.mubr.bf16.gmra.mrb[4].mxu0 %v1880_v26  ;;  %v480_v16 = vrot.slane %v471_v14, 7  ;;  %v2375_v17 = vld [vmem:[#allocation6 + $0x1f4] ss:$8 sps:$4 sm:$0xff]  }
  0xcf   : > { %1531 = vmatpush1.bf16.msra.mxu1 %v2327_v33  ;;  %v433_v33 = vor.u32 %v432_v19, %v429_v18  ;;  %v483_v18 = vrot.slane %v472_v15, 7  ;;  %v473_v19 = vld [vmem:[%s2810_s4 + $0x10] sm:$0x7] }
  0xd0   : > { %1633 = vmatpush1.bf16.msra.mxu0 %v2330_v34  ;;  %1532 = vmatprep.subr.bf16.mxu1 %v2335_v36  ;;  %v438_v34 = vrot.slane %v436_v20, 6  ;;  %v395_v36 = vld [vmem:[%s2810_s4 + $0x10] sm:$0x3]  ;;  %v481_v22 = vsel %vm2885_vm13, %v1866_v4, %v480_v16  ;;  %v482_v26 = vrot.slane %v480_v16, 4  ;;  %v486_v28 = vrot.slane %v473_v19, 7 }
  0xd1   : > { %1634 = vmatprep.subr.bf16.mxu0 %v2338_v37  ;;  %v2353_v37 = vld [vmem:[#allocation6 + $0x1c4] ss:$8 sps:$4 sm:$0xff]   ;;  %v411_v52 = vrot.slane %v395_v36, 6  ;;  %v2381_v56 = vld [vmem:[#allocation2 + $0xc] ss:$36 sps:$4 sm:$0xff]   ;;  %v485_v27 = vrot.slane %v483_v18, 4 }
  0xd2   : > { %v442_v43 = vor.u32 %v441_v38, %v438_v34  ;;  %1546 = vmatprep.mubr.bf16.mxu1 %v2381_v56  ;;  %v2378_v20 = vld [vmem:[#allocation6 + $0x3f4] ss:$8 sps:$4 sm:$0xff]   ;;  %491 = vst [vmem:[#allocation2 + $0x20] sm:$0xf] %v481_v22  ;;  %v484_v29 = vsel %vm2885_vm13, %v482_v26, %v483_v18  ;;  %v655_v56 = vlaneseq }
  0xd3   : > { %1533 = vmatpush1.bf16.msra.mxu1 %v2333_v45  ;;  %v434_v45 = vrot.slane %v433_v33, 4  ;;  %492 = vst [vmem:[#allocation2 + $0x44] sm:$0xf] %v484_v29  ;;  %v487_v32 = vsel %vm2885_vm13, %v485_v27, %v486_v28  ;;  %v2387_v33 = vld [vmem:[#allocation6 + $0x404] ss:$8 sps:$4 sm:$0xff]  }
  0xd4   : > { %1635 = vmatpush1.bf16.msra.mxu0 %v2336_v46  ;;  %1534 = vmatprep.subr.bf16.mxu1 %v2341_v50  ;;  %v451_v46 = vrot.slane %v449_v35, 7  ;;  %v308_v50 = vsel %vm2867_vm8, %v306_v40, %v307_v13  ;;  %v444_v61 = vrot.slane %v442_v43, 4  ;;  %493 = vst [vmem:[#allocation2 + $0x68] sm:$0xf] %v487_v32  ;;  %v2379_v34 = vld [vmem:[#allocation2 + $0x8] ss:$36 sps:$4 sm:$0xff]  }
  0xd5   : > { %1636 = vmatprep.subr.bf16.mxu0 %v2344_v51  ;;  %v410_v51 = vrot.slane %v408_v6, 4  ;;  %314 = vst [vmem:[#allocation2 + $0x50] sm:$0xf] %v308_v50  ;;  %v443_v60 = vsel %vm2933_vm1, %v434_v45, %v442_v43  ;;  %v2357_v6 = vld [vmem:[#allocation6 + $0x1d0] ss:$8 sps:$4 sm:$0xff]  }
  0xd6   : > { %v452_v54 = vor.u32 %v451_v46, %v448_v39  ;;  %467 = vst [vmem:[#allocation2 + $0x1c] sm:$0xf] %v443_v60  ;;  %v2382_v35 = vld [vmem:[#allocation2 + $0x18] ss:$36 sps:$4 sm:$0xff]   ;;  %v2390_v38 = vld [vmem:[#allocation6 + $0x414] ss:$8 sps:$4 sm:$0xff]  }
  0xd7   : > { %1535 = vmatpush1.bf16.msra.mxu1 %v2339_v9  ;;  %v412_v25 = vsel %vm2899_vm0, %v410_v51, %v411_v52  ;;  %v2372_v9 = vld [vmem:[#allocation6 + $0x3e4] ss:$8 sps:$4 sm:$0xff]   ;;  %v2395_v45 = vld [vmem:[#allocation6 + $0x420] ss:$8 sps:$4 sm:$0xff]   ;;  %v2400_v46 = vld [vmem:[#allocation6 + $0x434] ss:$8 sps:$4 sm:$0xff]  }
  0xd8   : > { %1637 = vmatpush1.bf16.msra.mxu0 %v2342_v10  ;;  %1536 = vmatprep.subr.bf16.mxu1 %v2347_v11  ;;  %418 = vst [vmem:[#allocation2 + $0x60] sm:$0xf] %v412_v25  ;;  %v454_v63 = vrot.slane %v452_v54, 4  ;;  %v453_v5 = vsel %vm2933_vm1, %v444_v61, %v452_v54  ;;  %v2366_v10 = vld [vmem:[#allocation6 + $0x1e0] ss:$8 sps:$4 sm:$0xff]   ;;  %v656_v60 = vshrl.u32 %v655_v56, 7 }
  0xd9   : > { %1638 = vmatprep.subr.bf16.mxu0 %v2350_v21  ;;  %468 = vst [vmem:[#allocation2 + $0x40] sm:$0xf] %v453_v5  ;;  %v2370_v11 = vld [vmem:[#allocation6 + $0x3e0] ss:$8 sps:$4 sm:$0xff]   ;;  %v2397_v13 = vld [vmem:[#allocation6 + $0x424] ss:$8 sps:$4 sm:$0xff]  }
  0xda   : > { %v463_v8 = vsel %vm2933_vm1, %v454_v63, %v462_v58  ;;  %v2401_v43 = vld [vmem:[#allocation6 + $0x440] ss:$8 sps:$4 sm:$0xff]   ;;  %v2406_v50 = vld [vmem:[#allocation6 + $0x454] ss:$8 sps:$4 sm:$0xff]   ;;  %v2404_v51 = vld [vmem:[#allocation6 + $0x450] ss:$8 sps:$4 sm:$0xff]  }
  0xdb   : > { %1537 = vmatpush1.bf16.msra.mxu1 %v2345_v30  ;;  %469 = vst [vmem:[#allocation2 + $0x64] sm:$0xf] %v463_v8  ;;  %v2373_v30 = vld [vmem:[#allocation6 + $0x1f0] ss:$8 sps:$4 sm:$0xff]   ;;  %v2409_v52 = vld [vmem:[#allocation6 + $0x464] ss:$8 sps:$4 sm:$0xff]  }
  0xdc   : > { %1639 = vmatpush1.bf16.msra.mxu0 %v2348_v31  ;;  %1538 = vmatprep.subr.bf16.mxu1 %v2353_v37  ;;  %v2376_v31 = vld [vmem:[#allocation6 + $0x3f0] ss:$8 sps:$4 sm:$0xff]   ;;  %v505_v24 = vld [vmem:[#allocation2 + $0x50] sm:$0xff]  ;;  %v657_v63 = vsub.s32 0, %v656_v60 }
  0xdd   : > { %1640 = vmatprep.subr.bf16.mxu0 %v2356_v41  ;;  %v2385_v37 = vld [vmem:[#allocation6 + $0x400] ss:$8 sps:$4 sm:$0xff]   ;;  %v1879_v39 = vcombine.high %v505_v24, %v505_v24  ;;  %v1878_v42 = vcombine.low %v505_v24, %v505_v24  ;;  %v2596_v41 = vmov 0   ;;  %v2413_v59 = vld [vmem:[#allocation2 + $0x20] ss:$36 sps:$4 sm:$0xff]  }
  0xde   : > { %v2407_v54 = vld [vmem:[#allocation6 + $0x460] ss:$8 sps:$4 sm:$0xff]  }
  0xdf   : > { %1539 = vmatpush1.bf16.msra.mxu1 %v2351_v48  ;;  %v2414_v48 = vld [vmem:[#allocation2 + $0x68] ss:$0 sps:$4 sm:$0xff]  }
  0xe0   : > { %1641 = vmatpush1.bf16.msra.mxu0 %v2354_v62  ;;  %1540 = vmatprep.subr.bf16.mxu1 %v2359_v2  ;;  %v2384_v21 = vld [vmem:[#allocation2 + $0x1c] ss:$36 sps:$4 sm:$0xff]   ;;  %v661_v2 = vsub.s32 1, %v656_v60 }
  0xe1   : > { %1642 = vmatprep.subr.bf16.mxu0 %v2362_v3  ;;  %1648 = vmatprep.mubr.bf16.mxu0 %v2384_v21  ;;  %v658_v3 = vrot.slane %v653_v1, %v657_v63 }
  0xe2   : > { %v507_v36 = vld [vmem:[#allocation2 + $0x60] sm:$0xff]  ;;  %v662_v5 = vrot.slane %v653_v1, %v661_v2 }
  0xe3   : > { %1541 = vmatpush1.bf16.msra.mxu1 %v2357_v6  ;;  %v1883_v40 = vcombine.high %v507_v36, %v507_v36  ;;  %v1882_v44 = vcombine.low %v507_v36, %v507_v36 }
  0xe4   : > { %1643 = vmatpush1.bf16.msra.mxu0 %v2360_v7  ;;  %1542 = vmatprep.subr.bf16.mxu1 %v2368_v53 }
  0xe5   : > { %1644 = vmatprep.subr.bf16.mxu0 %v2372_v9 }
  0xe7   : > { %1543 = vmatpush1.bf16.msra.mxu1 %v2366_v10 }
  0xe8   : > { %1645 = vmatpush1.bf16.msra.mxu0 %v2370_v11  ;;  %1544 = vmatprep.subr.bf16.mxu1 %v2375_v17 }
  0xe9   : > { %1646 = vmatprep.subr.bf16.mxu0 %v2378_v20 }
  0xeb   : > { %1545 = vmatpush1.bf16.msra.mxu1 %v2373_v30 }
  0xec   : > { %1647 = vmatpush1.bf16.msra.mxu0 %v2376_v31  ;;  %2032 = vmatprep.subr.bf16.mxu1 %v2387_v33 }
  0xed   : > { %1667 = vmatprep.subr.bf16.mxu0 %v2387_v33 }
  0xee   : > { %1547 = vmatmul.mubr.bf16.vlgmr.msra.gmra.mrb[0].mxu1 %v2379_v34 }
  0xef   : > { %1649 = vmatmul.mubr.bf16.vlgmr.msra.gmra.mrb[0].mxu0 %v2382_v35  ;;  %2040 = vmatpush1.bf16.msra.mxu1 %v2385_v37 }
  0xf0   : > { %1668 = vmatpush1.bf16.msra.mxu0 %v2385_v37  ;;  %2033 = vmatprep.subr.bf16.mxu1 %v2390_v38 }
  0xf1   : > { %1669 = vmatprep.subr.bf16.mxu0 %v2390_v38  ;;  %1556 = vmatprep.mubr.bf16.mxu1 %v1879_v39 }
  0xf2   : > { %1658 = vmatprep.mubr.bf16.mxu0 %v1883_v40 }
  0xf3   : > { %2041 = vmatpush1.bf16.msra.mxu1 %v2388_v23 }
  0xf4   : > { %1670 = vmatpush1.bf16.msra.mxu0 %v2388_v23  ;;  %2034 = vmatprep.subr.bf16.mxu1 %v2397_v13 }
  0xf5   : > { %1671 = vmatprep.subr.bf16.mxu0 %v2397_v13 }
  0xf6   : > { %1557 = vmatmul.mubr.bf16.gmra.mrb[4].mxu1 %v1878_v42 }
  0xf7   : > { %1659 = vmatmul.mubr.bf16.gmra.mrb[4].mxu0 %v1882_v44  ;;  %2042 = vmatpush1.bf16.msra.mxu1 %v2395_v45 }
  0xf8   : > { %1672 = vmatpush1.bf16.msra.mxu0 %v2395_v45  ;;  %2035 = vmatprep.subr.bf16.mxu1 %v2400_v46 }
  0xf9   : > { %1673 = vmatprep.subr.bf16.mxu0 %v2400_v46  ;;  %1699 = vmatprep.mubr.bf16.mxu0 %v2596_v41 }
  0xfa   : > { %1709 = vmatprep.mubr.bf16.mxu1 %v2596_v41 }
  0xfb   : > { %2043 = vmatpush1.bf16.msra.mxu1 %v2398_v47 }
  0xfc   : > { %1674 = vmatpush1.bf16.msra.mxu0 %v2398_v47  ;;  %2036 = vmatprep.subr.bf16.mxu1 %v2403_v49 }
  0xfd   : > { %1675 = vmatprep.subr.bf16.mxu0 %v2403_v49 }
  0xff   : > { %2044 = vmatpush1.bf16.msra.mxu1 %v2401_v43 }
 0x100   : > { %1676 = vmatpush1.bf16.msra.mxu0 %v2401_v43  ;;  %2037 = vmatprep.subr.bf16.mxu1 %v2406_v50 }
 0x101   : > { %1677 = vmatprep.subr.bf16.mxu0 %v2406_v50 }
 0x103   : > { %2045 = vmatpush1.bf16.msra.mxu1 %v2404_v51 }
 0x104   : > { %1678 = vmatpush1.bf16.msra.mxu0 %v2404_v51  ;;  %2038 = vmatprep.subr.bf16.mxu1 %v2409_v52 }
 0x105   : > { %1679 = vmatprep.subr.bf16.mxu0 %v2409_v52 }
 0x107   : > { %2046 = vmatpush1.bf16.msra.mxu1 %v2407_v54 }
 0x108   : > { %1680 = vmatpush1.bf16.msra.mxu0 %v2407_v54  ;;  %2039 = vmatprep.subr.bf16.mxu1 %v2412_v55 }
 0x109   : > { %1681 = vmatprep.subr.bf16.mxu0 %v2412_v55 }
 0x10b   : > { %2047 = vmatpush1.bf16.msra.mxu1 %v2410_v57 }
 0x10c   : > { %1682 = vmatpush1.bf16.msra.mxu0 %v2410_v57 }
 0x10e   : > { %1710 = vmatmul.mubr.bf16.vlgmr.msra.gmra.mrb[8].mxu1 %v2414_v48 }
 0x10f   : > { %1700 = vmatmul.mubr.bf16.vlgmr.msra.gmra.mrb[0].mxu0 %v2413_v59 }
 0x1c1   : > { %v1548_v61 = vpop.f32.mrb[0].mxu1 }
 0x1c2   : > { %v1550_v25 = vpop.f32.mrb[1].mxu1  ;;  %v2048_v16 = vadd.f32 %v1548_v61, %v658_v3 }
 0x1c3   : > { %v1552_v62 = vpop.f32.mrb[2].mxu1  ;;  %v2050_v17 = vadd.f32 %v1550_v25, %v662_v5 }
 0x1c4   : > { %v1554_v0 = vpop.f32.mrb[3].mxu1  ;;  %v2052_v20 = vadd.f32 %v1552_v62, %v658_v3 }
 0x1c5   : > { %v2054_v28 = vadd.f32 %v1554_v0, %v662_v5 }
 0x1c9   : > { %v1558_v58 = vpop.f32.mrb[4].mxu1 }
 0x1ca   : > { %v1660_v6 = vpop.f32.mrb[4].mxu0  ;;  %v2056_v7 = vadd.f32 %v1558_v58, %v658_v3  ;;  %v1560_v8 = vpop.f32.mrb[5].mxu1 }
 0x1cb   : > { %v1662_v53 = vpop.f32.mrb[5].mxu0  ;;  %v2059_v9 = vadd.f32 %v1560_v8, %v662_v5  ;;  %v1562_v10 = vpop.f32.mrb[6].mxu1 }
 0x1cc   : > { %v1664_v11 = vpop.f32.mrb[6].mxu0  ;;  %v2057_v12 = vadd.f32 %v2056_v7, %v1660_v6  ;;  %v1563_v14 = vpop.f32.mrb[7].mxu1 }
 0x1cd   : > { %v1665_v15 = vpop.f32.mrb[7].mxu0  ;;  %v2060_v4 = vadd.f32 %v2059_v9, %v1662_v53 }
 0x1e1   : > { %v1711_v19 = vpop.f32.mrb[8].mxu1 }
 0x1e2   : > { %v1701_v18 = vpop.f32.mrb[0].mxu0  ;;  %v2058_v22 = vadd.f32 %v2057_v12, %v1711_v19  ;;  %v1713_v27 = vpop.f32.mrb[9].mxu1 }
 0x1e3   : > { %v2049_v21 = vadd.f32 %v2048_v16, %v1701_v18  ;;  %v1703_v26 = vpop.f32.mrb[1].mxu0  ;;  %v2061_v30 = vadd.f32 %v2060_v4, %v1713_v27  ;;  %v1715_v32 = vpop.f32.mrb[10].mxu1 }
 0x1e4   : > { %v2051_v29 = vadd.f32 %v2050_v17, %v1703_v26  ;;  %v1705_v31 = vpop.f32.mrb[2].mxu0  ;;  %v1722_v34 = vmax.f32 %v2058_v22, 0.0  ;;  %v1716_v36 = vpop.f32.mrb[11].mxu1 }
 0x1e5   : > { %v1718_v33 = vmax.f32 %v2049_v21, 0.0  ;;  %v2053_v35 = vadd.f32 %v2052_v20, %v1705_v31  ;;  %v1707_v24 = vpop.f32.mrb[3].mxu0  ;;  %v1723_v38 = vmax.f32 %v2061_v30, 0.0 }
 0x1e6   : > { %v1719_v37 = vmax.f32 %v2051_v29, 0.0  ;;  %v2055_v39 = vadd.f32 %v2054_v28, %v1707_v24  ;;  %1728 = vst [vmem:[%s233_s22 + $0x20] sm:$0xff] %v1722_v34 }
 0x1e7   : > { %1724 = vst [vmem:[%s233_s22] sm:$0xff] %v1718_v33  ;;  %v1720_v40 = vmax.f32 %v2053_v35, 0.0  ;;  %1729 = vst [vmem:[%s233_s22 + $0x28] sm:$0xff] %v1723_v38 }
 0x1e8   : > { %1725 = vst [vmem:[%s233_s22 + $0x8] sm:$0xff] %v1719_v37  ;;  %v1721_v23 = vmax.f32 %v2055_v39, 0.0 }
 0x1e9   : > { %1726 = vst [vmem:[%s233_s22 + $0x10] sm:$0xff] %v1720_v40 }
 0x1ea   : > { %1727 = vst [vmem:[%s233_s22 + $0x18] sm:$0xff] %v1721_v23 }
 0x1eb   : > { %2514 = shalt.err (!%p2511_p2)
}
 0x1ec   : > { %s2515_s9 = scalar_lea.hbm %s2968_s8, 768  ;;  %s2519_s29 = scalar_lea.hbm %s3020_s3, 1536 }
 0x1ed   : > { %p2516_p0 = scmp.ne.s32.totalorder %s2968_s8, %s2515_s9  ;;  %p2520_p6 = scmp.lt.u32.totalorder %s2968_s8, %s3020_s3 }
 0x1ee   : > { %p2521_p7 = scmp.lt.u32.totalorder %s2519_s29, %s2515_s9  ;;  %p2523_p8 = scmp.lt.u32.totalorder %s2515_s9, %s2968_s8 }
 0x1ef   : > { %p2517_p4 = pnand %p2516_p0, %p3047_p12 }
 0x1f0   : > { %p2522_p11 = por %p2521_p7, %p2520_p6 }
 0x1f1   : > { %p2518_p13 = pneg %p2517_p4 }
 0x1f2   : > { %p2524_p1 = por %p2523_p8, %p2522_p11 }
 0x1f4   : > { %p2525_p10 = pnand %p2524_p1, %p2518_p13 }
 0x1f6   : > { %2528 = shalt.err (!%p2525_p10)
}
 0x1f7   : > { %s2598_s22 = smov 256   ;;  %s2599_s28 = smov 16  }
 0x1f8   : > { %2097 = dma.vmem_to_hbm [thread:$0]  (%p3047_p12), %s2963_s24, 768, %s2968_s8, %s1731_s26, %s2598_s22, %s2598_s22, %s2599_s28  }
 0x1f9 PF: > { %s1761_s15 = sand.u32 1, %s2567_s12   ;;  %p3048_p3 = scmp.ne.s32.totalorder %s3028_s23, 0 }
 0x1fa   : > { %p3049_p5 = scmp.ge.s32.totalorder %s2587_s17, 2  ;;  %s1762_s6 = scalar_lea.sflag [#allocation5], %s1761_s15 }
 0x1fc   : > { %p2111_p9 = pnand %p3049_p5, %p3048_p3 }
 0x1fe   : > { %2562 = dma.done.wait (!%p2111_p9), %s1762_s6, 768  }
 0x1ff   : > { %2564 = vsyncadd (!%p2111_p9), %s1762_s6, 4294966528  ;;  %s20_s17 = sadd.s32 1, %s2587_s17   ;;  %s3050_s12 = smov %s2571_s13 }
 0x200   : > { %p17_p2 = scmp.ge.s32.totalorder %s20_s17, 4   ;;  %s3051_s13 = smov %s2575_s14 }
 0x201   : > { %s3052_s14 = smov %s2765_s30  ;;  %s3053_s15 = smov %s2583_s16 }
 0x202   : > { %s3054_s16 = smov %s3056_s11  ;;  %19 = sbr.rel (!%p17_p2) target bundleno = 7 (0x7), region = 85 }
 0x209   :  { %1767 = vsyncpa [#allocation4], 1 }
 0x20a   :  { %1769 = vsyncpa [#allocation4 + $0x1], 1 }
 0x20b   :  { %1770 = vsyncpa [#allocation7], 1 }
 0x20c   :  { %1771 = vsyncpa [#allocation5], 1 }
 0x20d   :  { %1773 = vsyncpa [#allocation5 + $0x1], 1 }

// kernel: encoder3_forward.10
= control target key start
LH: loop header
LB: loop body
LE: loop exit
PB: predicated region body
PF: predicated region fallthrough
CT: control target
= control target key end

     0   :  { %8 = vsyncpa [#allocation4], 0  ;;  %s3371_s0 = inlined_call_operand.hbm [shape: bf16[2,1,102,128], index: 0, kind: input, shape index: {}]   ;;  %s3372_s1 = inlined_call_operand.hbm [shape: bf16[1152,128], index: 1, kind: input, shape index: {}]   ;;  %s3373_s2 = inlined_call_operand.hbm [shape: f32[1,128], index: 2, kind: input, shape index: {}]   ;;  %s3374_s3 = inlined_call_operand.hbm [shape: bf16[2,1,80,128], index: 3, kind: output, shape index: {}]  }
   0x1   :  { %10 = vsyncpa [#allocation4 + $0x1], 0 }
   0x2   :  { %11 = vsyncpa [#allocation7], 0 }
   0x3   :  { %12 = vsyncpa [#allocation5], 0 }
   0x4   :  { %14 = vsyncpa [#allocation5 + $0x1], 0  ;;  %s2918_s12 = smov 0   ;;  %s2920_s13 = smov 0  }
   0x5   :  { %s2922_s14 = smov 0   ;;  %s2924_s15 = smov 0  }
   0x6   :  { %s2926_s16 = smov 0   ;;  %s2928_s17 = smov 0  }
   0x7 LB: > { %s2058_s18 = sadd.s32 4294967295, %s2886_s17   ;;  %s2059_s19 = sadd.s32 4294967294, %s2886_s17   ;;  %s2886_s17 = sphi %s2928_s17, %s20_s17   ;;  %s2882_s16 = sphi %s2926_s16, %s3396_s16   ;;  %s2878_s15 = sphi %s2924_s15, %s3395_s15   ;;  %s2874_s14 = sphi %s2922_s14, %s3394_s14   ;;  %s2870_s13 = sphi %s2920_s13, %s3393_s13   ;;  %s2866_s12 = sphi %s2918_s12, %s3392_s12  }
   0x8   : > { %p54_p0 = scmp.ne.s32.totalorder %s2870_s13, %s2866_s12  ;;  %p2952_p1 = scmp.eq.s32.totalorder %s2058_s18, 0 }
   0x9   : > { %p2956_p2 = scmp.eq.s32.totalorder %s2058_s18, 1  ;;  %p128_p3 = scmp.eq.s32.totalorder %s2059_s19, 1 }
   0xa   : > { %s3379_s20 = scalar_select %p2952_p1, 1, 0 }
   0xb   : > { %p2962_p4 = por %p2952_p1, %p54_p0  ;;  %p2060_p5 = scmp.ge.s32.totalorder %s2886_s17, 1 }
   0xc   : > { %p2967_p6 = por %p128_p3, %p54_p0  ;;  %p135_p7 = scmp.lt.s32.totalorder %s2886_s17, 3 }
   0xd   : > { %s3381_s22 = scalar_select %p2962_p4, 1, 0 }
   0xe   : > { %s3382_s23 = scalar_select %p2967_p6, 1, 0 }
   0xf   : > { %p2972_p8 = pnand %p2060_p5, %p135_p7  ;;  %s2888_s25 = smov [#allocation6]  }
  0x10   : > { %s147_s26 = sshll.u32 %s2888_s25, 4  ;;  %s2889_s28 = smov [#allocation8]   ;;  %s2976_s26 = int_to_ptr.vmem [resolvable:$true] %s147_s26 }
  0x11   : > { %p2512_p9 = pneg %p2972_p8  ;;  %s161_s29 = sshll.u32 %s2889_s28, 4  ;;  %s2987_s29 = int_to_ptr.vmem [resolvable:$true] %s161_s29 }
  0x12   : > { %s2714_s5 = scalar_lea.hbm %s3372_s1, 9216 }
  0x13   : > { %p2983_p11 = pnand %p2512_p9, %p2952_p1  ;;  %p2715_p12 = scmp.ne.s32.totalorder %s3372_s1, %s2714_s5 }
  0x14   : > { %p2721_p5 = scmp.lt.u32.totalorder %s2714_s5, %s3372_s1 }
  0x15   : > { %p2716_p13 = pneg %p2983_p11 }
  0x17   : > { %p2717_p0 = pnand %p2716_p13, %p2715_p12 }
  0x19   : > { %p2718_p3 = pneg %p2717_p0 }
  0x1b   : > { %p2723_p7 = pnand %p2721_p5, %p2718_p3 }
  0x1d   : > { %2726 = shalt.err (!%p2723_p7)
}
  0x1e   : > { %s2727_s10 = scalar_lea.vmem %s2976_s26, 9216  ;;  %p2735_p1 = scmp.lt.s32.totalorder %s2976_s26, %s2976_s26 }
  0x1f   : > { %p2728_p9 = scmp.ne.s32.totalorder %s2976_s26, %s2727_s10  ;;  %p2736_p12 = scmp.lt.s32.totalorder %s2727_s10, %s2727_s10 }
  0x21   : > { %p2730_p10 = pnand %p2728_p9, %p2716_p13  ;;  %p2737_p0 = por %p2736_p12, %p2735_p1 }
  0x23   : > { %p2731_p6 = pneg %p2730_p10 }
  0x25   : > { %p2738_p4 = pnand %p2737_p0, %p2731_p6 }
  0x27   : > { %2741 = shalt.err (!%p2738_p4)
}
  0x28   : > { %s2890_s11 = smov 64   ;;  %s2891_s18 = smov 4  }
  0x29   : > { %2515 = dma.hbm_to_vmem [thread:$0]  (!%p2983_p11), %s3372_s1, 9216, %s2976_s26, [#allocation7], %s2890_s11, %s2890_s11, %s2891_s18  }
  0x2a   : > { %s2742_s4 = scalar_lea.hbm %s3373_s2, 16 }
  0x2b   : > { %p2743_p1 = scmp.ne.s32.totalorder %s3373_s2, %s2742_s4  ;;  %p2749_p10 = scmp.lt.u32.totalorder %s2742_s4, %s3373_s2 }
  0x2d   : > { %p2745_p4 = pnand %p2743_p1, %p2716_p13 }
  0x2f   : > { %p2746_p6 = pneg %p2745_p4 }
  0x31   : > { %p2751_p3 = pnand %p2749_p10, %p2746_p6 }
  0x33   : > { %2754 = shalt.err (!%p2751_p3)
}
  0x34   : > { %s2755_s26 = scalar_lea.vmem %s2987_s29, 16  ;;  %s2762_s9 = scalar_lea.vmem %s2987_s29, 32 }
  0x35   : > { %p2756_p5 = scmp.ne.s32.totalorder %s2987_s29, %s2755_s26  ;;  %p2763_p12 = scmp.lt.s32.totalorder %s2987_s29, %s2987_s29 }
  0x36   : > { %p2764_p0 = scmp.lt.s32.totalorder %s2762_s9, %s2755_s26 }
  0x37   : > { %p2758_p7 = pnand %p2756_p5, %p2716_p13 }
  0x38   : > { %p2765_p1 = por %p2764_p0, %p2763_p12 }
  0x39   : > { %p2759_p9 = pneg %p2758_p7 }
  0x3b   : > { %p2766_p4 = pnand %p2765_p1, %p2759_p9 }
  0x3d   : > { %2769 = shalt.err (!%p2766_p4)
}
  0x3e   : > { %2518 = dma.hbm_to_vmem [thread:$0]  (!%p2983_p11), %s3373_s2, 16, %s2987_s29, [#allocation7]  }
  0x3f   : > { %s32_s25 = sadd.s32 1, %s2882_s16  ;;  %s41_s28 = sadd.s32 1, %s2874_s14 }
  0x40   : > { %p34_p13 = scmp.ge.s32.totalorder %s32_s25, 2  ;;  %p48_p6 = scmp.ne.s32.totalorder %s2874_s14, %s2870_s13 }
  0x41   : > { %p49_p10 = scmp.eq.s32.totalorder %s2886_s17, 0  ;;  %p2529_p3 = scmp.lt.s32.totalorder %s2886_s17, 2 }
  0x42   : > { %s3398_s25 = smov (%p34_p13, %s32_s25), 0  ;;  %p3055_p7 = por %p2956_p2, %p48_p6 }
  0x43   : > { %p50_p5 = por %p49_p10, %p48_p6  ;;  %s36_s30 = ssub.s32 %s2882_s16, %s3398_s25 }
  0x44   : > { %s3385_s27 = scalar_select %p3055_p7, 1, 0 }
  0x45   : > { %s172_s4 = sand.u32 1, %s2874_s14   ;;  %p39_p9 = scmp.eq.s32.totalorder %s36_s30, 0 }
  0x46   : > { %s2495_s29 = smul.u32 52, %s172_s4  ;;  %p3062_p11 = pnand %p2529_p3, %p50_p5 }
  0x47   : > { %s3067_s6 = scalar_select %p39_p9, %s2874_s14, %s41_s28  }
  0x48   : > { %s2496_s7 = smul.u32 832, %s2882_s16  ;;  %s176_s8 = scalar_lea.vmem [#allocation3], %s2495_s29 }
  0x49   : > { %s185_s26 = sshll.u32 %s176_s8, 4  ;;  %s3077_s19 = scalar_lea.sflag [#allocation4], %s172_s4  ;;  %s3075_s26 = int_to_ptr.vmem [resolvable:$true] %s185_s26 }
  0x4a   : > { %s3073_s10 = scalar_lea.hbm %s3371_s0, %s2496_s7  ;;  %p2772_p12 = pneg %p3062_p11 }
  0x4b   : > { %s2770_s30 = scalar_lea.hbm %s3073_s10, 832  ;;  %s2775_s7 = scalar_lea.hbm %s3371_s0, 1664 }
  0x4c   : > { %p2771_p2 = scmp.ne.s32.totalorder %s3073_s10, %s2770_s30  ;;  %p2776_p4 = scmp.lt.u32.totalorder %s3073_s10, %s3371_s0 }
  0x4d   : > { %p2777_p13 = scmp.lt.u32.totalorder %s2775_s7, %s2770_s30  ;;  %p2779_p10 = scmp.lt.u32.totalorder %s2770_s30, %s3073_s10 }
  0x4e   : > { %p2773_p0 = pnand %p2772_p12, %p2771_p2 }
  0x4f   : > { %p2778_p6 = por %p2777_p13, %p2776_p4 }
  0x50   : > { %p2774_p1 = pneg %p2773_p0 }
  0x51   : > { %p2780_p3 = por %p2779_p10, %p2778_p6 }
  0x53   : > { %p2781_p5 = pnand %p2780_p3, %p2774_p1 }
  0x55   : > { %2784 = shalt.err (!%p2781_p5)
}
  0x56   : > { %s2785_s4 = scalar_lea.vmem %s3075_s26, 832  ;;  %s2892_s9 = smov [#allocation3]  }
  0x57   : > { %p2786_p9 = scmp.ne.s32.totalorder %s3075_s26, %s2785_s4  ;;  %s2790_s28 = sshll.u32 %s2892_s9, 4  ;;  %s2791_s28 = int_to_ptr.vmem [resolvable:$false] %s2790_s28 }
  0x58   : > { %s2792_s29 = scalar_lea.vmem %s2791_s28, 1664  ;;  %p2793_p7 = scmp.lt.s32.totalorder %s3075_s26, %s2791_s28 }
  0x59   : > { %p2788_p2 = pnand %p2786_p9, %p2772_p12  ;;  %p2794_p4 = scmp.lt.s32.totalorder %s2792_s29, %s2785_s4 }
  0x5b   : > { %p2789_p0 = pneg %p2788_p2  ;;  %p2795_p13 = por %p2794_p4, %p2793_p7 }
  0x5d   : > { %p2796_p6 = pnand %p2795_p13, %p2789_p0 }
  0x5f   : > { %2799 = shalt.err (!%p2796_p6)
}
  0x60   : > { %2522 = dma.hbm_to_vmem [thread:$0]  (!%p3062_p11), %s3073_s10, 832, %s3075_s26, %s3077_s19, %s2890_s11, %s2890_s11, %s2891_s18  }
  0x61   : > { %197 = sbr.rel (%p2972_p8) target bundleno = 473 (0x1d9), region = 32  ;;  %s3111_s30 = sand.u32 (!%p2972_p8), 1, %s2870_s13  }
  0x62   : > { %s2497_s7 = smul.u32 (!%p2972_p8), 52, %s3111_s30  ;;  %s200_s8 = scalar_lea.sflag (!%p2972_p8), [#allocation4], %s3111_s30 }
  0x63   : > { %p3387_p7 = scmp.ne.s32.totalorder (!%p2972_p8), %s3381_s22, 0 }
  0x64   : > { %s3115_s21 = scalar_lea.vmem (!%p2972_p8), [#allocation3], %s2497_s7 }
  0x68   : > { %2853 = dma.done.wait (%p3387_p7), %s200_s8, 832  }
  0x69   : > { %2855 = vsyncadd (%p3387_p7), %s200_s8, 4294966464  ;;  %p3388_p11 = scmp.ne.s32.totalorder %s3379_s20, 0 }
  0x6b   : > { %2857 = dma.done.wait (%p3388_p11), [#allocation7], 9232  }
  0x6c   : > { %2859 = vsyncadd (%p3388_p11), [#allocation7], 4294958064  ;;  %v2589_v0 = vld [vmem:[#allocation6 + $0x40] sm:$0xff]   ;;  %v2593_v4 = vld [vmem:[#allocation6 + $0x48] sm:$0xff]   ;;  %vm319_vm0 = vsmask.f32 7424 }
  0x6d   : > { %v2590_v1 = vld [vmem:[#allocation6 + $0xc0] sm:$0xff]   ;;  %2246 = vmatprep.subr.bf16.mxu0 %v2589_v0  ;;  %v2594_v5 = vld [vmem:[#allocation6 + $0xc8] sm:$0xff]   ;;  %v2597_v8 = vld [vmem:[#allocation6 + $0x50] sm:$0xff]   ;;  %vm413_vm1 = vcmask 1046528   ;;  %vm637_vm2 = vcmask 1045504   ;;  %vm2894_vm5 = vmmov 0  }
  0x6e   : > { %v2591_v2 = vld [vmem:[#allocation6] sm:$0xff]   ;;  %2292 = vmatprep.subr.bf16.mxu1 %v2590_v1  ;;  %v2595_v6 = vld [vmem:[#allocation6 + $0x8] sm:$0xff]   ;;  %v2598_v9 = vld [vmem:[#allocation6 + $0xd0] sm:$0xff]   ;;  %vm758_vm3 = vsmask.f32 5376  ;;  %vm861_vm6 = vcmask 1044480  }
  0x6f   : > { %v2592_v3 = vld [vmem:[#allocation6 + $0x80] sm:$0xff]   ;;  %2247 = vmatpush3.bf16.msra.mxu0 %v2591_v2  ;;  %v2596_v7 = vld [vmem:[#allocation6 + $0x88] sm:$0xff]   ;;  %v2599_v10 = vld [vmem:[#allocation6 + $0x10] sm:$0xff]   ;;  %vm534_vm4 = vsmask.f32 6400  ;;  %s2498_s20 = smul.u32 40, %s3111_s30 }
  0x70   : > { %2293 = vmatpush3.bf16.msra.mxu1 %v2592_v3  ;;  %2248 = vmatprep.subr.bf16.mxu0 %v2593_v4  ;;  %v2600_v11 = vld [vmem:[#allocation6 + $0x90] sm:$0xff]   ;;  %v2601_v12 = vld [vmem:[#allocation6 + $0x58] sm:$0xff]   ;;  %v2605_v16 = vld [vmem:[#allocation6 + $0x60] sm:$0xff]   ;;  %s2499_s11 = smul.u32 640, %s2878_s15  ;;  %s1937_s10 = scalar_lea.sflag [#allocation5], %s3111_s30 }
  0x71   : > { %2294 = vmatprep.subr.bf16.mxu1 %v2594_v5  ;;  %v2602_v13 = vld [vmem:[#allocation6 + $0xd8] sm:$0xff]   ;;  %v2606_v17 = vld [vmem:[#allocation6 + $0xe0] sm:$0xff]   ;;  %v2609_v20 = vld [vmem:[#allocation6 + $0x68] sm:$0xff]   ;;  %s3304_s22 = scalar_lea.vmem [#allocation9], %s2498_s20  ;;  %p3389_p12 = scmp.ne.s32.totalorder %s3385_s27, 0 }
  0x72   : > { %v2603_v14 = vld [vmem:[#allocation6 + $0x18] sm:$0xff]   ;;  %v2607_v18 = vld [vmem:[#allocation6 + $0x20] sm:$0xff]   ;;  %v2610_v21 = vld [vmem:[#allocation6 + $0xe8] sm:$0xff]   ;;  %s1952_s24 = sshll.u32 %s3304_s22, 4  ;;  %s3321_s26 = scalar_lea.hbm %s3374_s3, %s2499_s11  ;;  %s3316_s24 = int_to_ptr.vmem [resolvable:$true] %s1952_s24 }
  0x73   : > { %2249 = vmatpush3.bf16.msra.mxu0 %v2595_v6  ;;  %v2604_v15 = vld [vmem:[#allocation6 + $0x98] sm:$0xff]   ;;  %v2608_v19 = vld [vmem:[#allocation6 + $0xa0] sm:$0xff]   ;;  %v2611_v22 = vld [vmem:[#allocation6 + $0x28] sm:$0xff]   ;;  %s2800_s19 = scalar_lea.vmem %s3316_s24, 640  ;;  %s2895_s15 = smov [#allocation9]  }
  0x74   : > { %2295 = vmatpush3.bf16.msra.mxu1 %v2596_v7  ;;  %2250 = vmatprep.subr.bf16.mxu0 %v2597_v8  ;;  %v2612_v23 = vld [vmem:[#allocation6 + $0xa8] sm:$0xff]   ;;  %v2613_v24 = vld [vmem:[#allocation6 + $0x70] sm:$0xff]   ;;  %v2617_v28 = vld [vmem:[#allocation6 + $0x78] sm:$0xff]   ;;  %p2801_p8 = scmp.ne.s32.totalorder %s3316_s24, %s2800_s19  ;;  %s2804_s4 = sshll.u32 %s2895_s15, 4  ;;  %s2805_s4 = int_to_ptr.vmem [resolvable:$false] %s2804_s4 }
  0x75   : > { %2296 = vmatprep.subr.bf16.mxu1 %v2598_v9  ;;  %v2614_v25 = vld [vmem:[#allocation6 + $0xf0] sm:$0xff]   ;;  %v2618_v29 = vld [vmem:[#allocation6 + $0xf8] sm:$0xff]   ;;  %v2628_v49 = vld [vmem:[#allocation6 + $0x140] sm:$0xff]   ;;  %s2806_s9 = scalar_lea.vmem %s2805_s4, 1280  ;;  %p2807_p3 = scmp.lt.s32.totalorder %s3316_s24, %s2805_s4 }
  0x76   : > { %v2615_v26 = vld [vmem:[#allocation6 + $0x30] sm:$0xff]   ;;  %v2619_v30 = vld [vmem:[#allocation6 + $0x38] sm:$0xff]   ;;  %v2629_v52 = vld [vmem:[#allocation6 + $0x100] sm:$0xff]   ;;  %p2802_p1 = pnand %p2801_p8, %p3389_p12  ;;  %p2808_p5 = scmp.lt.s32.totalorder %s2806_s9, %s2800_s19 }
  0x77   : > { %2251 = vmatpush3.bf16.msra.mxu0 %v2599_v10  ;;  %v2616_v27 = vld [vmem:[#allocation6 + $0xb0] sm:$0xff]   ;;  %v2620_v31 = vld [vmem:[#allocation6 + $0xb8] sm:$0xff]   ;;  %v2630_v53 = vld [vmem:[#allocation6 + $0x148] sm:$0xff]  }
  0x78   : > { %2297 = vmatpush3.bf16.msra.mxu1 %v2600_v11  ;;  %2252 = vmatprep.subr.bf16.mxu0 %v2601_v12  ;;  %v2621_v32 = vld [vmem:[%s3115_s21] sm:$0xff]   ;;  %v2622_v33 = vld [vmem:[%s3115_s21 + $0x8] sm:$0xff]   ;;  %v2632_v57 = vld [vmem:[%s3115_s21 + $0x10] sm:$0xff]   ;;  %p2803_p10 = pneg %p2802_p1  ;;  %p2809_p9 = por %p2808_p5, %p2807_p3 }
  0x79   : > { %2298 = vmatprep.subr.bf16.mxu1 %v2602_v13  ;;  %v321_v34 = vshrl.u32 %v2621_v32, 16  ;;  %v323_v35 = vshll.u32 %v2621_v32, 16  ;;  %v328_v36 = vshll.u32 %v2622_v33, 16  ;;  %v2624_v37 = vld [vmem:[%s3115_s21 + $0xc] sm:$0xff]   ;;  %v2623_v38 = vld [vmem:[%s3115_s21 + $0x4] sm:$0xfe]  }
  0x7a   : > { %v475_v41 = vrot.slane %v2624_v37, 1  ;;  %v2625_v42 = vld [vmem:[%s3115_s21] sm:$0xff]   ;;  %v474_v43 = vrot.slane %v2623_v38, 1  ;;  %v2627_v44 = vld [vmem:[%s3115_s21 + $0x8] sm:$0xff]   ;;  %v332_v54 = vshrl.u32 %v2622_v33, 16  ;;  %v2633_v58 = vld [vmem:[%s3115_s21 + $0x14] sm:$0xff]   ;;  %p2810_p2 = pnand %p2809_p9, %p2803_p10 }
  0x7b   : > { %2253 = vmatpush3.bf16.msra.mxu0 %v2603_v14  ;;  %v325_v39 = vrot.slane %v323_v35, 1  ;;  %v330_v40 = vrot.slane %v328_v36, 1  ;;  %v2626_v46 = vld [vmem:[%s3115_s21] sm:$0xfe]   ;;  %v415_v48 = vrot.slane %v2627_v44, 1  ;;  %v336_v60 = vshll.u32 %v2632_v57, 16 }
  0x7c   : > { %2299 = vmatpush3.bf16.msra.mxu1 %v2604_v15  ;;  %2254 = vmatprep.subr.bf16.mxu0 %v2605_v16  ;;  %v476_v47 = vsel %vm413_vm1, %v474_v43, %v475_v41  ;;  %v414_v51 = vrot.slane %v2626_v46, 1  ;;  %v2631_v56 = vld [vmem:[#allocation6 + $0x108] sm:$0xff]   ;;  %v2634_v61 = vld [vmem:[%s3115_s21 + $0x8] sm:$0xff]   ;;  %v477_v62 = vrot.slane %v2633_v58, 1  ;;  %v340_v10 = vshrl.u32 %v2632_v57, 16 }
  0x7d   : > { %2300 = vmatprep.subr.bf16.mxu1 %v2606_v17  ;;  %v326_v45 = vor.u32 %v325_v39, %v321_v34  ;;  %1616 = vmatprep.mubr.bf16.mxu1 %v476_v47  ;;  %v334_v59 = vor.u32 %v332_v54, %v330_v40  ;;  %v2635_v63 = vld [vmem:[%s3115_s21 + $0x10] sm:$0xff]   ;;  %v338_v0 = vrot.slane %v336_v60, 1  ;;  %v2638_v6 = vld [vmem:[#allocation6 + $0x150] sm:$0xff]  }
  0x7e   : > { %v416_v55 = vsel %vm413_vm1, %v414_v51, %v415_v48  ;;  %v2636_v1 = vld [vmem:[#allocation6 + $0x1c0] sm:$0xff]   ;;  %v478_v2 = vsel %vm413_vm1, %v475_v41, %v477_v62  ;;  %v417_v3 = vrot.slane %v2635_v63, 1  ;;  %v2639_v8 = vld [vmem:[#allocation6 + $0x110] sm:$0xff]   ;;  %v2640_v9 = vld [vmem:[#allocation6 + $0x1c8] sm:$0xff]  }
  0x7f   : > { %2255 = vmatpush3.bf16.msra.mxu0 %v2607_v18  ;;  %v331_v50 = vsel %vm319_vm0, %v326_v45, %v330_v40  ;;  %v2637_v4 = vld [vmem:[#allocation6 + $0x180] sm:$0xff]   ;;  %v339_v5 = vsel %vm319_vm0, %v334_v59, %v338_v0  ;;  %v2641_v11 = vld [vmem:[#allocation6 + $0x188] sm:$0xff]   ;;  %v342_v14 = vor.u32 %v340_v10, %v338_v0  ;;  %v2644_v16 = vld [vmem:[#allocation6 + $0x158] sm:$0xff]  }
  0x80   : > { %2301 = vmatpush3.bf16.msra.mxu1 %v2608_v19  ;;  %2256 = vmatprep.subr.bf16.mxu0 %v2609_v20  ;;  %v418_v7 = vsel %vm413_vm1, %v415_v48, %v417_v3  ;;  %v2642_v12 = vld [vmem:[%s3115_s21 + $0x18] sm:$0xff]   ;;  %v2645_v18 = vld [vmem:[%s3115_s21 + $0x10] sm:$0xff]   ;;  %v2654_v33 = vld [vmem:[%s3115_s21 + $0x20] sm:$0xff]  }
  0x81   : > { %2302 = vmatprep.subr.bf16.mxu1 %v2610_v21  ;;  %1543 = vmatprep.mubr.bf16.mxu0 %v331_v50  ;;  %v2643_v13 = vld [vmem:[%s3115_s21 + $0x1c] sm:$0xff]   ;;  %v344_v15 = vshll.u32 %v2642_v12, 16  ;;  %v2655_v34 = vld [vmem:[%s3115_s21 + $0x24] sm:$0xff]   ;;  %v352_v36 = vshll.u32 %v2654_v33, 16  ;;  %v356_v51 = vshrl.u32 %v2654_v33, 16  ;;  %v2677_v10 = vld [vmem:[%s3115_s21 + $0xc] sm:$0xff]  }
  0x82   : > { %v479_v17 = vrot.slane %v2643_v13, 1  ;;  %v2646_v20 = vld [vmem:[%s3115_s21 + $0x18] sm:$0xff]   ;;  %v2653_v32 = vld [vmem:[#allocation6 + $0x198] sm:$0xff]   ;;  %v481_v38 = vrot.slane %v2655_v34, 1 }
  0x83   : > { %2257 = vmatpush3.bf16.msra.mxu0 %v2611_v22  ;;  %v346_v19 = vrot.slane %v344_v15, 1  ;;  %v2647_v22 = vld [vmem:[#allocation6 + $0x118] sm:$0xff]   ;;  %v2656_v37 = vld [vmem:[%s3115_s21 + $0x18] sm:$0xff]   ;;  %v354_v40 = vrot.slane %v352_v36, 1 }
  0x84   : > { %2303 = vmatpush3.bf16.msra.mxu1 %v2612_v23  ;;  %2258 = vmatprep.subr.bf16.mxu0 %v2613_v24  ;;  %v480_v21 = vsel %vm413_vm1, %v477_v62, %v479_v17  ;;  %v419_v24 = vrot.slane %v2646_v20, 1  ;;  %v2657_v39 = vld [vmem:[%s3115_s21 + $0x20] sm:$0xff]   ;;  %v2658_v41 = vld [vmem:[#allocation6 + $0x1e0] sm:$0xff]  }
  0x85   : > { %2304 = vmatprep.subr.bf16.mxu1 %v2614_v25  ;;  %v347_v23 = vsel %vm319_vm0, %v342_v14, %v346_v19  ;;  %v2648_v25 = vld [vmem:[#allocation6 + $0x1d0] sm:$0xff]   ;;  %v421_v43 = vrot.slane %v2657_v39, 1  ;;  %v2659_v44 = vld [vmem:[#allocation6 + $0x168] sm:$0xff]   ;;  %v2660_v46 = vld [vmem:[#allocation6 + $0x1a0] sm:$0xff]  }
  0x86   : > { %v2661_v48 = vld [vmem:[#allocation6 + $0x128] sm:$0xff]   ;;  %v2667_v54 = vld [vmem:[#allocation6 + $0x130] sm:$0xff]  }
  0x87   : > { %2259 = vmatpush3.bf16.msra.mxu0 %v2615_v26  ;;  %v2649_v26 = vld [vmem:[#allocation6 + $0x190] sm:$0xff]   ;;  %v422_v47 = vsel %vm413_vm1, %v419_v24, %v421_v43  ;;  %v2663_v50 = vld [vmem:[#allocation6 + $0x1a8] sm:$0xff]  }
  0x88   : > { %2305 = vmatpush3.bf16.msra.mxu1 %v2616_v27  ;;  %2260 = vmatprep.subr.bf16.mxu0 %v2617_v28  ;;  %v420_v27 = vsel %vm413_vm1, %v417_v3, %v419_v24  ;;  %v2650_v28 = vld [vmem:[#allocation6 + $0x160] sm:$0xff]   ;;  %v2668_v58 = vld [vmem:[%s3115_s21 + $0x20] sm:$0xff]  }
  0x89   : > { %2306 = vmatprep.subr.bf16.mxu1 %v2618_v29  ;;  %v2651_v29 = vld [vmem:[#allocation6 + $0x1d8] sm:$0xff]   ;;  %v2670_v59 = vld [vmem:[#allocation6 + $0x1f0] sm:$0xff]  }
  0x8a   : > { %v2669_v63 = vld [vmem:[%s3115_s21 + $0x28] ss:$0 sps:$4 sm:$0x11]   ;;  %v2672_v3 = vld [vmem:[#allocation6 + $0x178] sm:$0xff]  }
  0x8b   : > { %2261 = vmatpush3.bf16.msra.mxu0 %v2619_v30  ;;  %v2652_v30 = vld [vmem:[#allocation6 + $0x120] sm:$0xff]  }
  0x8c   : > { %2307 = vmatpush3.bf16.msra.mxu1 %v2620_v31  ;;  %2338 = vmatprep.subr.bf16.mxu0 %v2628_v49  ;;  %v348_v31 = vshrl.u32 %v2642_v12, 16  ;;  %v2662_v49 = vld [vmem:[#allocation6 + $0x1e8] sm:$0xff]   ;;  %v639_v12 = vrot.slane %v2677_v10, 2  ;;  %v2678_v13 = vld [vmem:[%s3115_s21 + $0x8] sm:$0xfc]  }
  0x8d   : > { %2384 = vmatprep.subr.bf16.mxu1 %v2636_v1  ;;  %v2679_v14 = vld [vmem:[%s3115_s21 + $0x10] sm:$0xff]   ;;  %v2680_v20 = vld [vmem:[%s3115_s21 + $0x4] sm:$0xfe]  }
  0x8e   : > { %1544 = vmatmul.mubr.bf16.vlgmr.msra.gmra.mrb[0].mxu0 %v2625_v42  ;;  %v350_v35 = vor.u32 %v348_v31, %v346_v19  ;;  %v482_v42 = vsel %vm413_vm1, %v479_v17, %v481_v38  ;;  %v763_v17 = vshll.u32 %v2678_v13, 16  ;;  %v771_v19 = vshll.u32 %v2679_v14, 16 }
  0x8f   : > { %1617 = vmatmul.mubr.bf16.vlgmr.msra.gmra.mrb[0].mxu1 %v416_v55  ;;  %2339 = vmatpush3.bf16.msra.mxu0 %v2629_v52  ;;  %v2664_v52 = vld [vmem:[#allocation6 + $0x170] sm:$0xff]   ;;  %v2666_v55 = vld [vmem:[%s3115_s21 + $0x2c] ss:$0 sps:$4 sm:$0x11]  }
  0x90   : > { %2340 = vmatprep.subr.bf16.mxu0 %v2630_v53  ;;  %1624 = vmatprep.mubr.bf16.mxu1 %v478_v2  ;;  %v355_v45 = vsel %vm319_vm0, %v350_v35, %v354_v40  ;;  %v2665_v53 = vld [vmem:[%s3115_s21 + $0x28] ss:$0 sps:$4 sm:$0x11]   ;;  %v483_v60 = vrot.slane %v2666_v55, 1  ;;  %v423_v2 = vrot.slane %v2669_v63, 1  ;;  %v765_v24 = vrot.slane %v763_v17, 3 }
  0x91   : > { %1551 = vmatprep.mubr.bf16.mxu0 %v339_v5  ;;  %2385 = vmatpush3.bf16.msra.mxu1 %v2637_v4  ;;  %v360_v57 = vshll.u32 %v2665_v53, 16  ;;  %v2673_v4 = vld [vmem:[#allocation6 + $0x138] sm:$0xff]   ;;  %v2689_v53 = vld [vmem:[%s3115_s21 + $0x18] sm:$0xff]  }
  0x92   : > { %2386 = vmatprep.subr.bf16.mxu1 %v2640_v9  ;;  %v484_v0 = vsel %vm413_vm1, %v481_v38, %v483_v60  ;;  %v424_v5 = vsel %vm413_vm1, %v421_v43, %v423_v2  ;;  %v2676_v9 = vld [vmem:[%s3115_s21 + $0x4] sm:$0xfc]   ;;  %v701_v60 = vrot.slane %v2689_v53, 2  ;;  %v2706_v53 = vld [vmem:[%s3115_s21 + $0x30] ss:$0 sps:$4 sm:$0x33]  }
  0x93   : > { %2341 = vmatpush3.bf16.msra.mxu0 %v2631_v56  ;;  %v358_v56 = vor.u32 %v356_v51, %v354_v40  ;;  %v362_v62 = vrot.slane %v360_v57, 1  ;;  %v2684_v40 = vld [vmem:[#allocation6 + $0x200] sm:$0xff]   ;;  %v2690_v57 = vld [vmem:[#allocation6 + $0x210] sm:$0xff]  }
  0x94   : > { %2342 = vmatprep.subr.bf16.mxu0 %v2638_v6  ;;  %v2674_v6 = vld [vmem:[#allocation6 + $0x1f8] sm:$0xff]  }
  0x95   : > { %2387 = vmatpush3.bf16.msra.mxu1 %v2641_v11  ;;  %v363_v1 = vsel %vm319_vm0, %v358_v56, %v362_v62  ;;  %v638_v11 = vrot.slane %v2676_v9, 2  ;;  %v2692_v2 = vld [vmem:[%s3115_s21 + $0x20] sm:$0xff]  }
  0x96   : > { %1552 = vmatmul.mubr.bf16.gmra.mrb[4].mxu0 %v2634_v61  ;;  %2388 = vmatprep.subr.bf16.mxu1 %v2648_v25  ;;  %v2671_v61 = vld [vmem:[#allocation6 + $0x1b0] sm:$0xff]   ;;  %v786_v9 = vshrl.u32 %v2692_v2, 16  ;;  %v789_v10 = vshll.u32 %v2692_v2, 16 }
  0x97   : > { %1625 = vmatmul.mubr.bf16.gmra.mrb[4].mxu1 %v418_v7  ;;  %2343 = vmatpush3.bf16.msra.mxu0 %v2639_v8  ;;  %v2675_v7 = vld [vmem:[#allocation6 + $0x1b8] sm:$0xff]   ;;  %v2893_v8 = vmov 0.0   ;;  %v640_v15 = vsel %vm637_vm2, %v638_v11, %v639_v12 }
  0x98   : > { %2344 = vmatprep.subr.bf16.mxu0 %v2644_v16  ;;  %1632 = vmatprep.mubr.bf16.mxu1 %v480_v21  ;;  %v760_v16 = vshrl.u32 %v2678_v13, 16  ;;  %v2681_v21 = vld [vmem:[%s3115_s21 + $0xc] sm:$0xff]   ;;  %v3193_v11 = vld [vmem:[%s3115_s21 + $0x20] sm:$0xff]   ;;  %v791_v17 = vrot.slane %v789_v10, 3 }
  0x99   : > { %1559 = vmatprep.mubr.bf16.mxu0 %v347_v23  ;;  %2389 = vmatpush3.bf16.msra.mxu1 %v2649_v26  ;;  %v773_v26 = vrot.slane %v771_v19, 3  ;;  %v547_v31 = vshll.u32 %v2681_v21, 16  ;;  %v2711_v10 = vld [vmem:[%s3115_s21 + $0x28] sm:$0xff]  }
  0x9a   : > { %2390 = vmatprep.subr.bf16.mxu1 %v2651_v29  ;;  %v762_v23 = vrot.slane %v760_v16, 2  ;;  %v788_v16 = vrot.slane %v786_v9, 2  ;;  %v2710_v9 = vld [vmem:[%s3115_s21 + $0x20] sm:$0xff]  }
  0x9b   : > { %2345 = vmatpush3.bf16.msra.mxu0 %v2647_v22  ;;  %v2683_v22 = vld [vmem:[%s3115_s21 + $0x10] sm:$0xff]   ;;  %v549_v38 = vrot.slane %v547_v31, 2 }
  0x9c   : > { %2346 = vmatprep.subr.bf16.mxu0 %v2650_v28  ;;  %v539_v28 = vshll.u32 %v2680_v20, 16  ;;  %v766_v29 = vor.u32 %v765_v24, %v762_v23  ;;  %v699_v36 = vrot.slane %v2683_v22, 2  ;;  %v792_v22 = vor.u32 %v791_v17, %v788_v16  ;;  %v2697_v23 = vld [vmem:[%s3115_s21 + $0x24] sm:$0xff]   ;;  %v2712_v17 = vld [vmem:[%s3115_s21 + $0x18] sm:$0xff]  }
  0x9d   : > { %2391 = vmatpush3.bf16.msra.mxu1 %v2653_v32  ;;  %v2682_v32 = vld [vmem:[%s3115_s21 + $0x8] sm:$0xfc]  }
  0x9e   : > { %1560 = vmatmul.mubr.bf16.gmra.mrb[8].mxu0 %v2645_v18  ;;  %2392 = vmatprep.subr.bf16.mxu1 %v2658_v41  ;;  %v768_v18 = vshrl.u32 %v2679_v14, 16  ;;  %v541_v35 = vrot.slane %v539_v28, 2  ;;  %v698_v39 = vrot.slane %v2682_v32, 2  ;;  %v2699_v28 = vld [vmem:[%s3115_s21 + $0x24] sm:$0xff]  }
  0x9f   : > { %1633 = vmatmul.mubr.bf16.gmra.mrb[8].mxu1 %v420_v27  ;;  %2347 = vmatpush3.bf16.msra.mxu0 %v2652_v30  ;;  %v536_v27 = vshrl.u32 %v2680_v20, 16  ;;  %v544_v30 = vshrl.u32 %v2681_v21, 16  ;;  %v2696_v21 = vld [vmem:[#allocation6 + $0x220] sm:$0xff]  }
  0xa0   : > { %1640 = vmatprep.mubr.bf16.mxu1 %v482_v42  ;;  %1567 = vmatprep.mubr.bf16.mxu0 %v355_v45  ;;  %v770_v25 = vrot.slane %v768_v18, 2  ;;  %v2685_v45 = vld [vmem:[#allocation6 + $0x208] sm:$0xff]   ;;  %v703_v18 = vrot.slane %v3193_v11, 2 }
  0xa1   : > { %2348 = vmatprep.subr.bf16.mxu0 %v2659_v44  ;;  %2393 = vmatpush3.bf16.msra.mxu1 %v2660_v46  ;;  %v538_v34 = vrot.slane %v536_v27, 1  ;;  %v700_v44 = vsel %vm637_vm2, %v698_v39, %v699_v36  ;;  %v2686_v46 = vld [vmem:[%s3115_s21 + $0x14] sm:$0xff]   ;;  %v645_v27 = vrot.slane %v2697_v23, 2 }
  0xa2   : > { %2394 = vmatprep.subr.bf16.mxu1 %v2662_v49  ;;  %v774_v33 = vor.u32 %v773_v26, %v770_v25  ;;  %v641_v49 = vrot.slane %v2686_v46, 2  ;;  %v2698_v25 = vld [vmem:[%s3115_s21 + $0x28] sm:$0xff]   ;;  %v2701_v39 = vld [vmem:[#allocation6 + $0x228] sm:$0xff]  }
  0xa3   : > { %2349 = vmatpush3.bf16.msra.mxu0 %v2661_v48  ;;  %v542_v42 = vor.u32 %v541_v35, %v538_v34  ;;  %v795_v31 = vshrl.u32 %v2698_v25, 16  ;;  %v798_v32 = vshll.u32 %v2698_v25, 16  ;;  %v571_v35 = vshrl.u32 %v2699_v28, 16  ;;  %v3247_v25 = vld [vmem:[#allocation8] ss:$0 sm:$0xff] }
  0xa4   : > { %2350 = vmatprep.subr.bf16.mxu0 %v2664_v52  ;;  %v775_v41 = vsel %vm758_vm3, %v766_v29, %v774_v33 }
  0xa5   : > { %2395 = vmatpush3.bf16.msra.mxu1 %v2663_v50  ;;  %v2688_v50 = vld [vmem:[%s3115_s21 + $0x14] sm:$0xff]  }
  0xa6   : > { %1568 = vmatmul.mubr.bf16.gmra.mrb[12].mxu0 %v2656_v37  ;;  %2396 = vmatprep.subr.bf16.mxu1 %v2670_v59  ;;  %v546_v37 = vrot.slane %v544_v30, 1  ;;  %v553_v55 = vshrl.u32 %v2688_v50, 16  ;;  %v556_v56 = vshll.u32 %v2688_v50, 16  ;;  %v704_v30 = vsel %vm637_vm2, %v701_v60, %v703_v18 }
  0xa7   : > { %1641 = vmatmul.mubr.bf16.gmra.mrb[12].mxu1 %v422_v47  ;;  %2351 = vmatpush3.bf16.msra.mxu0 %v2667_v54  ;;  %v2687_v47 = vld [vmem:[%s3115_s21 + $0x18] sm:$0xff]   ;;  %v642_v54 = vsel %vm637_vm2, %v639_v12, %v641_v49  ;;  %v2695_v12 = vld [vmem:[#allocation6 + $0x218] sm:$0xff]  }
  0xa8   : > { %1648 = vmatprep.mubr.bf16.mxu1 %v484_v0  ;;  %1575 = vmatprep.mubr.bf16.mxu0 %v363_v1  ;;  %v550_v43 = vor.u32 %v549_v38, %v546_v37  ;;  %v777_v51 = vshrl.u32 %v2687_v47, 16  ;;  %v780_v52 = vshll.u32 %v2687_v47, 16  ;;  %v555_v62 = vrot.slane %v553_v55, 1 }
  0xa9   : > { %2397 = vmatpush3.bf16.msra.mxu1 %v2671_v61  ;;  %2352 = vmatprep.subr.bf16.mxu0 %v2672_v3  ;;  %v2691_v61 = vld [vmem:[%s3115_s21 + $0x1c] sm:$0xff]   ;;  %v558_v63 = vrot.slane %v556_v56, 2  ;;  %v797_v37 = vrot.slane %v795_v31, 2  ;;  %v800_v38 = vrot.slane %v798_v32, 3 }
  0xaa   : > { %2398 = vmatprep.subr.bf16.mxu1 %v2674_v6  ;;  %v551_v48 = vsel %vm534_vm4, %v542_v42, %v550_v43  ;;  %v782_v59 = vrot.slane %v780_v52, 3  ;;  %v643_v1 = vrot.slane %v2691_v61, 2  ;;  %v2702_v42 = vld [vmem:[%s3115_s21 + $0x2c] ss:$0 sps:$4 sm:$0x33]  }
  0xab   : > { %2353 = vmatpush3.bf16.msra.mxu0 %v2673_v4  ;;  %v559_v3 = vor.u32 %v558_v63, %v555_v62  ;;  %v702_v4 = vsel %vm637_vm2, %v699_v36, %v701_v60  ;;  %v574_v36 = vshll.u32 %v2699_v28, 16  ;;  %v647_v47 = vrot.slane %v2702_v42, 2  ;;  %v2705_v52 = vld [vmem:[%s3115_s21 + $0x2c] ss:$0 sps:$4 sm:$0x33]  }
  0xac   : > { %2443 = vmatprep.subr.bf16.mxu0 %v2893_v8  ;;  %v646_v34 = vsel %vm637_vm2, %v643_v1, %v645_v27  ;;  %v583_v60 = vshll.u32 %v2705_v52, 16 }
  0xad   : > { %2399 = vmatpush3.bf16.msra.mxu1 %v2675_v7  ;;  %v644_v7 = vsel %vm637_vm2, %v641_v49, %v643_v1  ;;  %v560_v13 = vsel %vm534_vm4, %v550_v43, %v559_v3  ;;  %v801_v43 = vor.u32 %v800_v38, %v797_v37  ;;  %v2707_v1 = vld [vmem:[#allocation6 + $0x238] sm:$0xff]  }
  0xae   : > { %1576 = vmatmul.mubr.bf16.gmra.mrb[16].mxu0 %v2668_v58  ;;  %2479 = vmatprep.subr.bf16.mxu1 %v2893_v8  ;;  %v779_v58 = vrot.slane %v777_v51, 2  ;;  %v585_v63 = vrot.slane %v583_v60, 2 }
  0xaf   : > { %1649 = vmatmul.mubr.bf16.gmra.mrb[16].mxu1 %v424_v5  ;;  %1689 = vmatprep.mubr.bf16.mxu0 %v640_v15  ;;  %v2693_v5 = vld [vmem:[%s3115_s21 + $0x1c] sm:$0xff]   ;;  %v802_v49 = vsel %vm758_vm3, %v792_v22, %v801_v43 }
  0xb0   : > { %1762 = vmatprep.mubr.bf16.mxu1 %v775_v41  ;;  %v783_v0 = vor.u32 %v782_v59, %v779_v58  ;;  %v562_v14 = vshrl.u32 %v2693_v5, 16  ;;  %v565_v15 = vshll.u32 %v2693_v5, 16  ;;  %v576_v41 = vrot.slane %v574_v36, 2 }
  0xb1   : > { %v648_v58 = vsel %vm637_vm2, %v645_v27, %v647_v47  ;;  %v580_v59 = vshrl.u32 %v2705_v52, 16 }
  0xb2   : > { %v784_v6 = vsel %vm758_vm3, %v774_v33, %v783_v0  ;;  %v564_v19 = vrot.slane %v562_v14, 1  ;;  %v567_v20 = vrot.slane %v565_v15, 2  ;;  %v793_v26 = vsel %vm758_vm3, %v783_v0, %v792_v22  ;;  %v2700_v33 = vld [vmem:[%s3115_s21 + $0x28] sm:$0xff]  }
  0xb3   : > { %v582_v62 = vrot.slane %v580_v59, 1  ;;  %v707_v0 = vrot.slane %v2706_v53, 2  ;;  %v869_v14 = vrot.slane %v2711_v10, 3 }
  0xb4   : > { %v568_v24 = vor.u32 %v567_v20, %v564_v19  ;;  %v865_v19 = vrot.slane %v2712_v17, 3 }
  0xb6   : > { %1690 = vmatmul.mubr.bf16.vlgmr.msra.gmra.mrb[20].mxu0 %v551_v48  ;;  %v569_v29 = vsel %vm534_vm4, %v559_v3, %v568_v24  ;;  %v2704_v48 = vld [vmem:[#allocation6 + $0x230] sm:$0xff]   ;;  %v586_v3 = vor.u32 %v585_v63, %v582_v62 }
  0xb7   : > { %1763 = vmatmul.mubr.bf16.vlgmr.msra.gmra.mrb[20].mxu1 %v700_v44  ;;  %2444 = vmatpush3.bf16.msra.mxu0 %v2684_v40  ;;  %v705_v44 = vrot.slane %v2700_v33, 2 }
  0xb8   : > { %2487 = vmatpush3.bf16.msra.mxu1 %v2684_v40  ;;  %2445 = vmatprep.subr.bf16.mxu0 %v2893_v8  ;;  %v573_v40 = vrot.slane %v571_v35, 1 }
  0xb9   : > { %2480 = vmatprep.subr.bf16.mxu1 %v2893_v8  ;;  %1697 = vmatprep.mubr.bf16.mxu0 %v642_v54  ;;  %v706_v55 = vsel %vm637_vm2, %v703_v18, %v705_v44  ;;  %v2713_v18 = vld [vmem:[%s3115_s21 + $0x30] ss:$0 sps:$4 sm:$0x77]  }
  0xba   : > { %1770 = vmatprep.mubr.bf16.mxu1 %v784_v6  ;;  %v577_v46 = vor.u32 %v576_v41, %v573_v40  ;;  %v708_v6 = vsel %vm637_vm2, %v705_v44, %v707_v0  ;;  %v871_v20 = vrot.slane %v2713_v18, 3 }
  0xbb   : > { %2446 = vmatpush3.bf16.msra.mxu0 %v2685_v45 }
  0xbc   : > { %2488 = vmatpush3.bf16.msra.mxu1 %v2685_v45  ;;  %2447 = vmatprep.subr.bf16.mxu0 %v2893_v8  ;;  %v2703_v45 = vld [vmem:[%s3115_s21 + $0x30] ss:$0 sps:$4 sm:$0x77]   ;;  %v578_v54 = vsel %vm534_vm4, %v568_v24, %v577_v46  ;;  %v587_v5 = vsel %vm534_vm4, %v577_v46, %v586_v3  ;;  %v872_v22 = vsel %vm861_vm6, %v869_v14, %v871_v20 }
  0xbd   : > { %2481 = vmatprep.subr.bf16.mxu1 %v2893_v8  ;;  %v804_v50 = vshrl.u32 %v2703_v45, 16  ;;  %v807_v51 = vshll.u32 %v2703_v45, 16 }
  0xbe   : > { %1698 = vmatmul.mubr.bf16.gmra.mrb[24].mxu0 %v560_v13  ;;  %v867_v13 = vrot.slane %v2710_v9, 3 }
  0xbf   : > { %1771 = vmatmul.mubr.bf16.gmra.mrb[24].mxu1 %v702_v4  ;;  %2448 = vmatpush3.bf16.msra.mxu0 %v2690_v57  ;;  %v806_v56 = vrot.slane %v804_v50, 2  ;;  %v2709_v4 = vld [vmem:[%s3115_s21 + $0x10] sm:$0xff]  }
  0xc0   : > { %2489 = vmatpush3.bf16.msra.mxu1 %v2690_v57  ;;  %1705 = vmatprep.mubr.bf16.mxu0 %v644_v7  ;;  %v809_v57 = vrot.slane %v807_v51, 3  ;;  %v2708_v7 = vld [vmem:[%s3115_s21 + $0x8] sm:$0xf8]   ;;  %v870_v16 = vsel %vm861_vm6, %v867_v13, %v869_v14  ;;  %v868_v23 = vsel %vm861_vm6, %v865_v19, %v867_v13 }
  0xc1   : > { %2449 = vmatprep.subr.bf16.mxu0 %v2893_v8  ;;  %2482 = vmatprep.subr.bf16.mxu1 %v2893_v8  ;;  %v862_v11 = vrot.slane %v2708_v7, 3 }
  0xc2   : > { %1778 = vmatprep.mubr.bf16.mxu1 %v793_v26  ;;  %v810_v61 = vor.u32 %v809_v57, %v806_v56 }
  0xc3   : > { %2450 = vmatpush3.bf16.msra.mxu0 %v2695_v12 }
  0xc4   : > { %2490 = vmatpush3.bf16.msra.mxu1 %v2695_v12  ;;  %2451 = vmatprep.subr.bf16.mxu0 %v2893_v8  ;;  %v811_v2 = vsel %vm758_vm3, %v801_v43, %v810_v61  ;;  %v863_v12 = vrot.slane %v2709_v4, 3 }
  0xc5   : > { %2483 = vmatprep.subr.bf16.mxu1 %v2893_v8 }
  0xc6   : > { %1706 = vmatmul.mubr.bf16.gmra.mrb[28].mxu0 %v569_v29  ;;  %v864_v15 = vsel %vm861_vm6, %v862_v11, %v863_v12 }
  0xc7   : > { %1779 = vmatmul.mubr.bf16.gmra.mrb[28].mxu1 %v704_v30  ;;  %2452 = vmatpush3.bf16.msra.mxu0 %v2696_v21 }
  0xc8   : > { %2491 = vmatpush3.bf16.msra.mxu1 %v2696_v21  ;;  %1713 = vmatprep.mubr.bf16.mxu0 %v646_v34  ;;  %v866_v21 = vsel %vm861_vm6, %v863_v12, %v865_v19 }
  0xc9   : > { %2453 = vmatprep.subr.bf16.mxu0 %v2893_v8  ;;  %2484 = vmatprep.subr.bf16.mxu1 %v2893_v8 }
  0xca   : > { %1786 = vmatprep.mubr.bf16.mxu1 %v802_v49 }
  0xcb   : > { %2454 = vmatpush3.bf16.msra.mxu0 %v2701_v39 }
  0xcc   : > { %2492 = vmatpush3.bf16.msra.mxu1 %v2701_v39  ;;  %2455 = vmatprep.subr.bf16.mxu0 %v2893_v8 }
  0xcd   : > { %2485 = vmatprep.subr.bf16.mxu1 %v2893_v8 }
  0xce   : > { %1714 = vmatmul.mubr.bf16.gmra.mrb[32].mxu0 %v578_v54 }
  0xcf   : > { %1787 = vmatmul.mubr.bf16.gmra.mrb[32].mxu1 %v706_v55  ;;  %1721 = vmatprep.mubr.bf16.mxu0 %v648_v58 }
  0xd0   : > { %2493 = vmatpush3.bf16.msra.mxu1 %v2704_v48  ;;  %2456 = vmatpush3.bf16.msra.mxu0 %v2704_v48 }
  0xd1   : > { %1794 = vmatprep.mubr.bf16.mxu1 %v811_v2  ;;  %2457 = vmatprep.subr.bf16.mxu0 %v2893_v8 }
  0xd2   : > { %2486 = vmatprep.subr.bf16.mxu1 %v2893_v8 }
  0xd4   : > { %2494 = vmatpush3.bf16.msra.mxu1 %v2707_v1  ;;  %2458 = vmatpush3.bf16.msra.mxu0 %v2707_v1 }
  0xd6   : > { %1722 = vmatmul.mubr.bf16.gmra.mrb[36].mxu0 %v587_v5 }
  0xd7   : > { %1795 = vmatmul.mubr.bf16.gmra.mrb[36].mxu1 %v708_v6  ;;  %2459 = vmatprep.mubr.msk.bf16.mxu0 %vm2894_vm5, %v2893_v8 }
  0xd8   : > { %2471 = vmatprep.mubr.msk.bf16.mxu1 %vm2894_vm5, %v2893_v8 }
  0xde   : > { %2460 = vmatmul.mubr.bf16.vlgmr.msra.gmra.mrb[40].mxu0 %v864_v15 }
  0xdf   : > { %2472 = vmatmul.mubr.bf16.vlgmr.msra.gmra.mrb[40].mxu1 %v870_v16  ;;  %2463 = vmatprep.mubr.msk.bf16.mxu0 %vm2894_vm5, %v2893_v8 }
  0xe0   : > { %2475 = vmatprep.mubr.msk.bf16.mxu1 %vm2894_vm5, %v2893_v8 }
  0xe6   : > { %2464 = vmatmul.mubr.bf16.gmra.mrb[44].mxu0 %v866_v21 }
  0xe7   : > { %2476 = vmatmul.mubr.bf16.gmra.mrb[44].mxu1 %v872_v22  ;;  %2467 = vmatprep.mubr.msk.bf16.mxu0 %vm2894_vm5, %v2893_v8 }
  0xee   : > { %2468 = vmatmul.mubr.bf16.gmra.mrb[48].mxu0 %v868_v23 }
 0x161   : > { %v2262_v24 = vpop.f32.mrb[0].mxu0 }
 0x162   : > { %v2263_v26 = vpop.f32.mrb[1].mxu0  ;;  %v2308_v27 = vpop.f32.mrb[0].mxu1 }
 0x163   : > { %v2264_v28 = vadd.f32 %v2263_v26, %v2262_v24  ;;  %v2265_v29 = vpop.f32.mrb[2].mxu0  ;;  %v2309_v30 = vpop.f32.mrb[1].mxu1 }
 0x164   : > { %v2266_v31 = vpop.f32.mrb[3].mxu0  ;;  %v2310_v32 = vadd.f32 %v2309_v30, %v2308_v27  ;;  %v2311_v33 = vpop.f32.mrb[2].mxu1 }
 0x165   : > { %v1546_v34 = vadd.f32 %v2264_v28, %v3247_v25  ;;  %v2267_v35 = vadd.f32 %v2266_v31, %v2265_v29  ;;  %v2312_v36 = vpop.f32.mrb[3].mxu1 }
 0x166   : > { %v2313_v37 = vadd.f32 %v2312_v36, %v2311_v33 }
 0x167   : > { %v1549_v8 = vadd.f32 %v2267_v35, %v3247_v25  ;;  %v3251_v38 = vadd.f32 %v2310_v32, %v1546_v34 }
 0x169   : > { %v3253_v39 = vadd.f32 %v2313_v37, %v1549_v8  ;;  %v2268_v40 = vpop.f32.mrb[4].mxu0 }
 0x16a   : > { %v2314_v41 = vpop.f32.mrb[4].mxu1  ;;  %v2269_v42 = vpop.f32.mrb[5].mxu0 }
 0x16b   : > { %v2315_v43 = vpop.f32.mrb[5].mxu1  ;;  %v2270_v44 = vadd.f32 %v2269_v42, %v2268_v40  ;;  %v2271_v45 = vpop.f32.mrb[6].mxu0 }
 0x16c   : > { %v2316_v46 = vadd.f32 %v2315_v43, %v2314_v41  ;;  %v2317_v47 = vpop.f32.mrb[6].mxu1  ;;  %v2272_v48 = vpop.f32.mrb[7].mxu0 }
 0x16d   : > { %v2318_v49 = vpop.f32.mrb[7].mxu1  ;;  %v1554_v50 = vadd.f32 %v2270_v44, %v3247_v25  ;;  %v2273_v51 = vadd.f32 %v2272_v48, %v2271_v45 }
 0x16e   : > { %v2319_v52 = vadd.f32 %v2318_v49, %v2317_v47 }
 0x16f   : > { %v1557_v53 = vadd.f32 %v2273_v51, %v3247_v25  ;;  %v3257_v54 = vadd.f32 %v2316_v46, %v1554_v50 }
 0x171   : > { %v3259_v55 = vadd.f32 %v2319_v52, %v1557_v53  ;;  %v2274_v56 = vpop.f32.mrb[8].mxu0 }
 0x172   : > { %v2275_v57 = vpop.f32.mrb[9].mxu0  ;;  %v2320_v58 = vpop.f32.mrb[8].mxu1 }
 0x173   : > { %v2276_v59 = vadd.f32 %v2275_v57, %v2274_v56  ;;  %v2277_v60 = vpop.f32.mrb[10].mxu0  ;;  %v2321_v61 = vpop.f32.mrb[9].mxu1 }
 0x174   : > { %v2278_v62 = vpop.f32.mrb[11].mxu0  ;;  %v2322_v63 = vadd.f32 %v2321_v61, %v2320_v58  ;;  %v2323_v0 = vpop.f32.mrb[10].mxu1 }
 0x175   : > { %v1562_v1 = vadd.f32 %v2276_v59, %v3247_v25  ;;  %v2279_v2 = vadd.f32 %v2278_v62, %v2277_v60  ;;  %v2324_v3 = vpop.f32.mrb[11].mxu1 }
 0x176   : > { %v2325_v4 = vadd.f32 %v2324_v3, %v2323_v0 }
 0x177   : > { %v1565_v5 = vadd.f32 %v2279_v2, %v3247_v25  ;;  %v3263_v6 = vadd.f32 %v2322_v63, %v1562_v1 }
 0x179   : > { %v3265_v7 = vadd.f32 %v2325_v4, %v1565_v5  ;;  %v2280_v9 = vpop.f32.mrb[12].mxu0 }
 0x17a   : > { %v2326_v10 = vpop.f32.mrb[12].mxu1  ;;  %v2281_v11 = vpop.f32.mrb[13].mxu0 }
 0x17b   : > { %v2327_v12 = vpop.f32.mrb[13].mxu1  ;;  %v2282_v13 = vadd.f32 %v2281_v11, %v2280_v9  ;;  %v2283_v14 = vpop.f32.mrb[14].mxu0 }
 0x17c   : > { %v2328_v15 = vadd.f32 %v2327_v12, %v2326_v10  ;;  %v2329_v16 = vpop.f32.mrb[14].mxu1  ;;  %v2284_v17 = vpop.f32.mrb[15].mxu0 }
 0x17d   : > { %v2330_v18 = vpop.f32.mrb[15].mxu1  ;;  %v1570_v19 = vadd.f32 %v2282_v13, %v3247_v25  ;;  %v2285_v20 = vadd.f32 %v2284_v17, %v2283_v14 }
 0x17e   : > { %v2331_v21 = vadd.f32 %v2330_v18, %v2329_v16 }
 0x17f   : > { %v1573_v22 = vadd.f32 %v2285_v20, %v3247_v25  ;;  %v3269_v23 = vadd.f32 %v2328_v15, %v1570_v19 }
 0x181   : > { %v3271_v24 = vadd.f32 %v2331_v21, %v1573_v22  ;;  %v2286_v26 = vpop.f32.mrb[16].mxu0 }
 0x182   : > { %v2287_v27 = vpop.f32.mrb[17].mxu0  ;;  %v2332_v28 = vpop.f32.mrb[16].mxu1 }
 0x183   : > { %v2288_v29 = vadd.f32 %v2287_v27, %v2286_v26  ;;  %v2289_v30 = vpop.f32.mrb[18].mxu0  ;;  %v2333_v31 = vpop.f32.mrb[17].mxu1 }
 0x184   : > { %v2290_v32 = vpop.f32.mrb[19].mxu0  ;;  %v2334_v33 = vadd.f32 %v2333_v31, %v2332_v28  ;;  %v2335_v34 = vpop.f32.mrb[18].mxu1 }
 0x185   : > { %v1578_v35 = vadd.f32 %v2288_v29, %v3247_v25  ;;  %v2291_v36 = vadd.f32 %v2290_v32, %v2289_v30  ;;  %v2336_v37 = vpop.f32.mrb[19].mxu1 }
 0x186   : > { %v2337_v8 = vadd.f32 %v2336_v37, %v2335_v34 }
 0x187   : > { %v1581_v40 = vadd.f32 %v2291_v36, %v3247_v25  ;;  %v3275_v41 = vadd.f32 %v2334_v33, %v1578_v35 }
 0x189   : > { %v3277_v42 = vadd.f32 %v2337_v8, %v1581_v40  ;;  %v2354_v45 = vpop.f32.mrb[20].mxu0 }
 0x18a   : > { %v2400_v43 = vpop.f32.mrb[20].mxu1  ;;  %v2355_v48 = vpop.f32.mrb[21].mxu0 }
 0x18b   : > { %v2401_v44 = vpop.f32.mrb[21].mxu1  ;;  %v2356_v50 = vadd.f32 %v2355_v48, %v2354_v45  ;;  %v2357_v51 = vpop.f32.mrb[22].mxu0 }
 0x18c   : > { %v2402_v46 = vadd.f32 %v2401_v44, %v2400_v43  ;;  %v2403_v47 = vpop.f32.mrb[22].mxu1  ;;  %v2358_v53 = vpop.f32.mrb[23].mxu0 }
 0x18d   : > { %v2404_v49 = vpop.f32.mrb[23].mxu1  ;;  %v1692_v56 = vadd.f32 %v2356_v50, %v3251_v38  ;;  %v2359_v57 = vadd.f32 %v2358_v53, %v2357_v51 }
 0x18e   : > { %v2405_v52 = vadd.f32 %v2404_v49, %v2403_v47 }
 0x18f   : > { %v1695_v25 = vadd.f32 %v2359_v57, %v3253_v39  ;;  %v3281_v58 = vadd.f32 %v2402_v46, %v1692_v56 }
 0x191   : > { %v2360_v59 = vpop.f32.mrb[24].mxu0  ;;  %v3283_v61 = vadd.f32 %v2405_v52, %v1695_v25 }
 0x192   : > { %v2406_v60 = vpop.f32.mrb[24].mxu1  ;;  %v2361_v62 = vpop.f32.mrb[25].mxu0 }
 0x193   : > { %v2407_v63 = vpop.f32.mrb[25].mxu1  ;;  %v2362_v0 = vadd.f32 %v2361_v62, %v2360_v59  ;;  %v2363_v1 = vpop.f32.mrb[26].mxu0 }
 0x194   : > { %v2408_v2 = vadd.f32 %v2407_v63, %v2406_v60  ;;  %v2409_v3 = vpop.f32.mrb[26].mxu1  ;;  %v2364_v4 = vpop.f32.mrb[27].mxu0 }
 0x195   : > { %v2410_v5 = vpop.f32.mrb[27].mxu1  ;;  %v1700_v9 = vadd.f32 %v2362_v0, %v3257_v54  ;;  %v2365_v38 = vadd.f32 %v2364_v4, %v2363_v1 }
 0x196   : > { %v2411_v10 = vadd.f32 %v2410_v5, %v2409_v3 }
 0x197   : > { %v1703_v39 = vadd.f32 %v2365_v38, %v3259_v55  ;;  %v3287_v11 = vadd.f32 %v2408_v2, %v1700_v9 }
 0x199   : > { %v2366_v12 = vpop.f32.mrb[28].mxu0  ;;  %v3289_v14 = vadd.f32 %v2411_v10, %v1703_v39 }
 0x19a   : > { %v2412_v13 = vpop.f32.mrb[28].mxu1  ;;  %v2367_v15 = vpop.f32.mrb[29].mxu0 }
 0x19b   : > { %v2413_v16 = vpop.f32.mrb[29].mxu1  ;;  %v2368_v17 = vadd.f32 %v2367_v15, %v2366_v12  ;;  %v2369_v18 = vpop.f32.mrb[30].mxu0 }
 0x19c   : > { %v2414_v19 = vadd.f32 %v2413_v16, %v2412_v13  ;;  %v2415_v20 = vpop.f32.mrb[30].mxu1  ;;  %v2370_v21 = vpop.f32.mrb[31].mxu0 }
 0x19d   : > { %v2416_v22 = vpop.f32.mrb[31].mxu1  ;;  %v1708_v54 = vadd.f32 %v2368_v17, %v3263_v6  ;;  %v2371_v26 = vadd.f32 %v2370_v21, %v2369_v18 }
 0x19e   : > { %v2417_v27 = vadd.f32 %v2416_v22, %v2415_v20 }
 0x19f   : > { %v1711_v55 = vadd.f32 %v2371_v26, %v3265_v7  ;;  %v3293_v28 = vadd.f32 %v2414_v19, %v1708_v54 }
 0x1a1   : > { %v2372_v29 = vpop.f32.mrb[32].mxu0  ;;  %v3295_v31 = vadd.f32 %v2417_v27, %v1711_v55 }
 0x1a2   : > { %v2418_v30 = vpop.f32.mrb[32].mxu1  ;;  %v2373_v32 = vpop.f32.mrb[33].mxu0 }
 0x1a3   : > { %v2419_v33 = vpop.f32.mrb[33].mxu1  ;;  %v2374_v34 = vadd.f32 %v2373_v32, %v2372_v29  ;;  %v2375_v35 = vpop.f32.mrb[34].mxu0 }
 0x1a4   : > { %v2420_v36 = vadd.f32 %v2419_v33, %v2418_v30  ;;  %v2421_v37 = vpop.f32.mrb[34].mxu1  ;;  %v2376_v8 = vpop.f32.mrb[35].mxu0 }
 0x1a5   : > { %v2422_v40 = vpop.f32.mrb[35].mxu1  ;;  %v1716_v6 = vadd.f32 %v2374_v34, %v3269_v23  ;;  %v2377_v43 = vadd.f32 %v2376_v8, %v2375_v35 }
 0x1a6   : > { %v2423_v44 = vadd.f32 %v2422_v40, %v2421_v37 }
 0x1a7   : > { %v1719_v7 = vadd.f32 %v2377_v43, %v3271_v24  ;;  %v1789_v45 = vadd.f32 %v2420_v36, %v1716_v6 }
 0x1a9   : > { %v2378_v46 = vpop.f32.mrb[36].mxu0  ;;  %v1792_v48 = vadd.f32 %v2423_v44, %v1719_v7 }
 0x1aa   : > { %v2424_v47 = vpop.f32.mrb[36].mxu1  ;;  %v2379_v49 = vpop.f32.mrb[37].mxu0 }
 0x1ab   : > { %v2425_v50 = vpop.f32.mrb[37].mxu1  ;;  %v2380_v51 = vadd.f32 %v2379_v49, %v2378_v46  ;;  %v2381_v52 = vpop.f32.mrb[38].mxu0 }
 0x1ac   : > { %v2426_v53 = vadd.f32 %v2425_v50, %v2424_v47  ;;  %v2427_v56 = vpop.f32.mrb[38].mxu1  ;;  %v2382_v57 = vpop.f32.mrb[39].mxu0 }
 0x1ad   : > { %v2428_v25 = vpop.f32.mrb[39].mxu1  ;;  %v1724_v59 = vadd.f32 %v2380_v51, %v3275_v41  ;;  %v2383_v23 = vadd.f32 %v2382_v57, %v2381_v52 }
 0x1ae   : > { %v2429_v60 = vadd.f32 %v2428_v25, %v2427_v56 }
 0x1af   : > { %v1727_v62 = vadd.f32 %v2383_v23, %v3277_v42  ;;  %v1797_v24 = vadd.f32 %v2426_v53, %v1724_v59 }
 0x1b1   : > { %v1837_v63 = vpop.f32.mrb[40].mxu0  ;;  %v1800_v1 = vadd.f32 %v2429_v60, %v1727_v62 }
 0x1b2   : > { %v1861_v0 = vpop.f32.mrb[40].mxu1  ;;  %v1838_v2 = vadd.f32 %v1837_v63, %v3281_v58  ;;  %v2461_v4 = vpop.f32.mrb[41].mxu0 }
 0x1b3   : > { %v1862_v3 = vadd.f32 %v1861_v0, %v1789_v45  ;;  %v2473_v5 = vpop.f32.mrb[41].mxu1  ;;  %v1840_v9 = vpop.f32.mrb[42].mxu0 }
 0x1b4   : > { %v1864_v38 = vpop.f32.mrb[42].mxu1  ;;  %v1841_v10 = vadd.f32 %v1840_v9, %v3283_v61  ;;  %v2462_v41 = vpop.f32.mrb[43].mxu0  ;;  %v1876_v13 = vmax.f32 %v1838_v2, 0.0 }
 0x1b5   : > { %v1865_v39 = vadd.f32 %v1864_v38, %v1792_v48  ;;  %v2474_v12 = vpop.f32.mrb[43].mxu1  ;;  %v1882_v15 = vmax.f32 %v1862_v3, 0.0 }
 0x1b6   : > { %v1877_v42 = vmax.f32 %v1841_v10, 0.0 }
 0x1b7   : > { %v1883_v16 = vmax.f32 %v1865_v39, 0.0 }
 0x1b8   : > { %v2220_v17 = vpack.c.bf16 %v1877_v42, %v1876_v13 }
 0x1b9   : > { %v2235_v18 = vpack.c.bf16 %v1883_v16, %v1882_v15  ;;  %v1845_v19 = vpop.f32.mrb[44].mxu0 }
 0x1ba   : > { %v1869_v20 = vpop.f32.mrb[44].mxu1  ;;  %2221 = vst [vmem:[%s3304_s22] sm:$0xff] %v2220_v17   ;;  %v1846_v58 = vadd.f32 %v1845_v19, %v3287_v11  ;;  %v2465_v21 = vpop.f32.mrb[45].mxu0 }
 0x1bb   : > { %2244 = vst [vmem:[%s3304_s22 + $0x18] sm:$0xff] %v2235_v18   ;;  %v1870_v61 = vadd.f32 %v1869_v20, %v1797_v24  ;;  %v2477_v22 = vpop.f32.mrb[45].mxu1  ;;  %v1848_v54 = vpop.f32.mrb[46].mxu0 }
 0x1bc   : > { %v1872_v26 = vpop.f32.mrb[46].mxu1  ;;  %v1849_v27 = vadd.f32 %v1848_v54, %v3289_v14  ;;  %v2466_v29 = vpop.f32.mrb[47].mxu0  ;;  %v1878_v32 = vmax.f32 %v1846_v58, 0.0 }
 0x1bd   : > { %v1873_v55 = vadd.f32 %v1872_v26, %v1800_v1  ;;  %v2478_v30 = vpop.f32.mrb[47].mxu1  ;;  %v1884_v33 = vmax.f32 %v1870_v61, 0.0 }
 0x1be   : > { %v1879_v34 = vmax.f32 %v1849_v27, 0.0 }
 0x1bf   : > { %v1885_v35 = vmax.f32 %v1873_v55, 0.0 }
 0x1c0   : > { %v2225_v36 = vpack.c.bf16 %v1879_v34, %v1878_v32 }
 0x1c1   : > { %v2240_v11 = vpack.c.bf16 %v1885_v35, %v1884_v33  ;;  %v1853_v37 = vpop.f32.mrb[48].mxu0 }
 0x1c2   : > { %2242 = vst [vmem:[%s3304_s22 + $0x8] sm:$0xff] %v2225_v36   ;;  %v1854_v8 = vadd.f32 %v1853_v37, %v3293_v28  ;;  %v2469_v40 = vpop.f32.mrb[49].mxu0 }
 0x1c3   : > { %2245 = vst [vmem:[%s3304_s22 + $0x20] sm:$0xff] %v2240_v11   ;;  %v1856_v14 = vpop.f32.mrb[50].mxu0 }
 0x1c4   : > { %v1857_v6 = vadd.f32 %v1856_v14, %v3295_v31  ;;  %v2470_v43 = vpop.f32.mrb[51].mxu0  ;;  %v1880_v44 = vmax.f32 %v1854_v8, 0.0 }
 0x1c6   : > { %v1881_v7 = vmax.f32 %v1857_v6, 0.0 }
 0x1c8   : > { %v2230_v28 = vpack.c.bf16 %v1881_v7, %v1880_v44 }
 0x1ca   : > { %2243 = vst [vmem:[%s3304_s22 + $0x10] sm:$0xff] %v2230_v28  }
 0x1cb   : > { %2813 = shalt.err (!%p2810_p2)
}
 0x1cc   : > { %s2814_s28 = scalar_lea.hbm %s3321_s26, 640  ;;  %s2818_s8 = scalar_lea.hbm %s3374_s3, 1280 }
 0x1cd   : > { %p2815_p0 = scmp.ne.s32.totalorder %s3321_s26, %s2814_s28  ;;  %p2819_p6 = scmp.lt.u32.totalorder %s3321_s26, %s3374_s3 }
 0x1ce   : > { %p2820_p7 = scmp.lt.u32.totalorder %s2818_s8, %s2814_s28  ;;  %p2822_p8 = scmp.lt.u32.totalorder %s2814_s28, %s3321_s26 }
 0x1cf   : > { %p2816_p4 = pnand %p2815_p0, %p3389_p12 }
 0x1d0   : > { %p2821_p11 = por %p2820_p7, %p2819_p6 }
 0x1d1   : > { %p2817_p13 = pneg %p2816_p4 }
 0x1d2   : > { %p2823_p1 = por %p2822_p8, %p2821_p11 }
 0x1d4   : > { %p2824_p10 = pnand %p2823_p1, %p2817_p13 }
 0x1d6   : > { %2827 = shalt.err (!%p2824_p10)
}
 0x1d7   : > { %s2896_s22 = smov 64   ;;  %s2897_s11 = smov 4  }
 0x1d8   : > { %2510 = dma.vmem_to_hbm [thread:$0]  (%p3389_p12), %s3316_s24, 640, %s3321_s26, %s1937_s10, %s2896_s22, %s2896_s22, %s2897_s11  }
 0x1d9 PF: > { %s1967_s18 = sand.u32 1, %s2866_s12   ;;  %p3390_p3 = scmp.ne.s32.totalorder %s3382_s23, 0 }
 0x1da   : > { %p3391_p5 = scmp.ge.s32.totalorder %s2886_s17, 2  ;;  %s1968_s5 = scalar_lea.sflag [#allocation5], %s1967_s18 }
 0x1dc   : > { %p2524_p9 = pnand %p3391_p5, %p3390_p3 }
 0x1de   : > { %2861 = dma.done.wait (!%p2524_p9), %s1968_s5, 640  }
 0x1df   : > { %2863 = vsyncadd (!%p2524_p9), %s1968_s5, 4294966656  ;;  %s20_s17 = sadd.s32 1, %s2886_s17   ;;  %s3392_s12 = smov %s2870_s13 }
 0x1e0   : > { %p17_p2 = scmp.ge.s32.totalorder %s20_s17, 4   ;;  %s3393_s13 = smov %s2874_s14 }
 0x1e1   : > { %s3394_s14 = smov %s3067_s6  ;;  %s3395_s15 = smov %s2882_s16 }
 0x1e2   : > { %s3396_s16 = smov %s3398_s25  ;;  %19 = sbr.rel (!%p17_p2) target bundleno = 7 (0x7), region = 85 }
 0x1e9   :  { %1973 = vsyncpa [#allocation4], 1 }
 0x1ea   :  { %1975 = vsyncpa [#allocation4 + $0x1], 1 }
 0x1eb   :  { %1976 = vsyncpa [#allocation7], 1 }
 0x1ec   :  { %1977 = vsyncpa [#allocation5], 1 }
 0x1ed   :  { %1979 = vsyncpa [#allocation5 + $0x1], 1 }

</bundles_post_ra>
